<compile_context>
chip_gen: v5e
topology: v5e:2x2
jax: 0.10.0
libtpu: 0.0.40
codegen_flags: <defaults>
</compile_context>

<pallas_src>
import functools
import numpy as np
import jax
import jax.numpy as jnp
from jax.experimental import pallas as pl
from jax.experimental.pallas import tpu as pltpu

INPUT_SIZE = 1
HIDDEN_SIZE = 50

BP = 8       # padded batch   (sublane multiple)
HP = 128     # padded hidden  (lane multiple)
OP = 128     # padded fc output lanes (real output is column 0)

# bf16 MXU operands; f32 accumulation + f32 elementwise math everywhere else.
MXU_DTYPE = jnp.bfloat16


def _sigmoid(v):
    # exact identity, exp/divide-free: EUP tanh + VPU mul/add
    return 0.5 * jnp.tanh(0.5 * v) + 0.5


def lstm_fc_kernel(x_ref, w0row_ref, b0_ref, wcomb_ref, b1_ref, fcw_ref, fcb_ref,
                   out_ref, h01_ref, *, fuse_step_matmul):
    """x_ref: (T*Bp, 1) time-major input column (f32);
    w0row_ref: (1, 4Hp) layer-0 input weight row (f32, VPU operand);
    b0_ref/b1_ref: (1, 4Hp) fused biases (f32);
    wcomb_ref: (2Hp, 8Hp) = [[wih1 | whh0], [whh1 | 0]]  (bf16, MXU operand);
    fcw_ref: (Hp, OP) (bf16); fcb_ref: (1, OP) (f32);
    out_ref: (Bp, OP) (f32); h01_ref: (Bp, 2Hp) persistent [h0 | h1] scratch (bf16)."""
    Bp = out_ref.shape[0]
    T = x_ref.shape[0] // Bp
    Hp = h01_ref.shape[1] // 2
    G = 4 * Hp

    # ---- layer-0 input projection for ALL timesteps (input_size == 1):
    #      single VPU broadcast multiply (no MXU), b0 = b_ih+b_hh folded in.  (T*Bp, 4Hp) f32.
    xproj = x_ref[...] * w0row_ref[...] + b0_ref[...]

    # hoist the layer-1 bias broadcast (JAX does not CSE broadcast_in_dim)
    b1b = jnp.broadcast_to(b1_ref[...], (Bp, G))

    def gates(g, c):
        # gates packed along the last dim as [i | f | g | o], each Hp wide (PyTorch order)
        i_g = _sigmoid(g[:, 0 * Hp:1 * Hp])
        f_g = _sigmoid(g[:, 1 * Hp:2 * Hp])
        g_g = jnp.tanh(g[:, 2 * Hp:3 * Hp])
        o_g = _sigmoid(g[:, 3 * Hp:4 * Hp])
        c_new = f_g * c + i_g * g_g
        h_new = o_g * jnp.tanh(c_new)
        return h_new, c_new

    # persistent [h0 | h1] MXU operand
    h01_ref[...] = jnp.zeros_like(h01_ref)
    c0 = jnp.zeros((Bp, Hp), jnp.float32)
    c1 = jnp.zeros((Bp, Hp), jnp.float32)
    rec0 = jnp.zeros((Bp, G), jnp.float32)     # h0(t-1) @ whh0 (zero at t = 0)

    # Fully unrolled time loop (T small & static) -> cross-step scheduler visibility.
    # TODO(synk): for long sequences (esp. v7x's 64 MiB VMEM) stream x over a grid axis in
    #             T-chunks with h/c carried in VMEM scratch, init under pl.when(pid == 0).
    # TODO(synk): for batch > BP add a "parallel" grid axis over batch tiles so the two v7x
    #             TensorCores each run an independent batch shard.
    for t in range(T):
        # layer 0: recurrent term was produced by the previous step's (fused) matmul
        g0 = xproj[t * Bp:(t + 1) * Bp, :] + rec0
        h0, c0 = gates(g0, c0)
        h01_ref[:, :Hp] = h0.astype(h01_ref.dtype)

        if fuse_step_matmul:
            # one K=2Hp=256-deep matmul yields g1(t) AND h0(t)@whh0 (recurrent term of
            # g0(t+1)); halves the serialized MXU boundaries per step (v6e/v7x).
            gcomb = jnp.dot(h01_ref[...], wcomb_ref[...],
                            preferred_element_type=jnp.float32)
            g1 = gcomb[:, :G] + b1b
            rec0 = gcomb[:, G:]
        else:
            # v5e (128-deep MXU): keep the two matmuls split so the zero K-block of the
            # combined RHS is not paid on the serial critical path.
            g1 = jnp.dot(h01_ref[...], wcomb_ref[:, :G],
                         preferred_element_type=jnp.float32) + b1b
            rec0 = jnp.dot(h01_ref[:, :Hp], wcomb_ref[:Hp, G:],
                           preferred_element_type=jnp.float32)

        h1, c1 = gates(g1, c1)
        h01_ref[:, Hp:] = h1.astype(h01_ref.dtype)

    # final fc on the last-timestep hidden of the top layer (already bf16 in the scratch)
    out_ref[...] = (jnp.dot(h01_ref[:, Hp:], fcw_ref[...],
                            preferred_element_type=jnp.float32)
                    + fcb_ref[...])


# ----------------------- host-side packing / padding glue --------------------------
def _pad_gate_matrix(w_t, h, hp, kp):
    """w_t: (K, 4*h) transposed weight; returns (kp, 4*hp) with per-gate padding."""
    k = w_t.shape[0]
    out = np.zeros((kp, 4 * hp), np.float32)
    for g in range(4):
        out[:k, g * hp:g * hp + h] = w_t[:, g * h:(g + 1) * h]
    return out


def _pad_gate_bias(b, h, hp):
    out = np.zeros((1, 4 * hp), np.float32)
    for g in range(4):
        out[0, g * hp:g * hp + h] = b[g * h:(g + 1) * h]
    return out


def _use_fused_step_matmul():
    # K=256 exactly fills the v6e/v7x MXU; on v5e's 128-deep MXU prefer the split form.
    try:
        kind = jax.devices()[0].device_kind.lower()
        return not ("v5 lite" in kind or "v5e" in kind or "v5litepod" in kind)
    except Exception:
        return True


def lstm_model_forward(x, params):
    """x: (B, T, 1) float32 -> (B, 1) float32, matching LSTMModel.forward."""
    B, T, I = x.shape
    H = HIDDEN_SIZE
    assert I == INPUT_SIZE and B <= BP and H <= HP

    # --- pack / pad parameters ---
    # layer-0 input weights: input_size == 1 -> a single (1, 4HP) row (f32, VPU operand)
    w0row = _pad_gate_matrix(np.asarray(params["w_ih_l0"]).T, H, HP, 1)          # (1, 4HP)
    b0 = _pad_gate_bias(np.asarray(params["b_ih_l0"]) + np.asarray(params["b_hh_l0"]), H, HP)
    b1 = _pad_gate_bias(np.asarray(params["b_ih_l1"]) + np.asarray(params["b_hh_l1"]), H, HP)

    whh0 = _pad_gate_matrix(np.asarray(params["w_hh_l0"]).T, H, HP, HP)          # (HP, 4HP)
    wih1 = _pad_gate_matrix(np.asarray(params["w_ih_l1"]).T, H, HP, HP)          # (HP, 4HP)
    whh1 = _pad_gate_matrix(np.asarray(params["w_hh_l1"]).T, H, HP, HP)          # (HP, 4HP)
    # combined per-step RHS:  [[wih1 | whh0], [whh1 | 0]]   (2HP, 8HP)
    wcomb = np.zeros((2 * HP, 8 * HP), np.float32)
    wcomb[:HP, :4 * HP] = wih1
    wcomb[HP:, :4 * HP] = whh1
    wcomb[:HP, 4 * HP:] = whh0

    fcw = np.zeros((HP, OP), np.float32)
    fcw[:H, 0] = np.asarray(params["fc_w"])[0, :]                                # fc.weight: (1, H)
    fcb = np.full((1, OP), float(np.asarray(params["fc_b"])[0]), np.float32)

    wcomb = jnp.asarray(wcomb, MXU_DTYPE)    # MXU operand -> bf16
    fcw = jnp.asarray(fcw, MXU_DTYPE)        # MXU operand -> bf16
    w0row = jnp.asarray(w0row)               # f32 (VPU path)
    b0 = jnp.asarray(b0)
    b1 = jnp.asarray(b1)
    fcb = jnp.asarray(fcb)

    # --- pad + relayout input: (B, T, 1) -> time-major column (T*BP, 1), f32 ---
    x_tb = jnp.transpose(x.astype(jnp.float32), (1, 0, 2))                       # (T, B, 1)
    x_col = jnp.zeros((T, BP, 1), jnp.float32).at[:, :B, :].set(x_tb).reshape(T * BP, 1)

    vmem = pl.BlockSpec(memory_space=pltpu.MemorySpace.VMEM)
    kernel = functools.partial(lstm_fc_kernel,
                               fuse_step_matmul=_use_fused_step_matmul())
    out_pad = pl.pallas_call(
        kernel,
        out_shape=jax.ShapeDtypeStruct((BP, OP), jnp.float32),
        in_specs=[vmem] * 7,
        out_specs=vmem,
        scratch_shapes=[pltpu.VMEM((BP, 2 * HP), MXU_DTYPE)],
    )(x_col, w0row, b0, wcomb, b1, fcw, fcb)

    return out_pad[:B, :1]


# ---------------- deterministic parameter init (PyTorch-style uniform) -------------
def init_params(key):
    bound = 1.0 / np.sqrt(HIDDEN_SIZE)
    shapes = {
        "w_ih_l0": (4 * HIDDEN_SIZE, INPUT_SIZE),
        "w_hh_l0": (4 * HIDDEN_SIZE, HIDDEN_SIZE),
        "b_ih_l0": (4 * HIDDEN_SIZE,),
        "b_hh_l0": (4 * HIDDEN_SIZE,),
        "w_ih_l1": (4 * HIDDEN_SIZE, HIDDEN_SIZE),
        "w_hh_l1": (4 * HIDDEN_SIZE, HIDDEN_SIZE),
        "b_ih_l1": (4 * HIDDEN_SIZE,),
        "b_hh_l1": (4 * HIDDEN_SIZE,),
        "fc_w": (1, HIDDEN_SIZE),
        "fc_b": (1,),
    }
    params = {}
    keys = jax.random.split(key, len(shapes))
    for k, (name, shape) in zip(keys, shapes.items()):
        params[name] = jax.random.uniform(k, shape, jnp.float32, -bound, bound)
    return params


# ---------------- pure-JAX reference (mirrors PyTorch nn.LSTM + fc) ----------------
def reference_forward(x, p):
    B, T, _ = x.shape
    H = HIDDEN_SIZE

    def cell(x_t, h, c, wih, whh, bih, bhh):
        g = x_t @ wih.T + h @ whh.T + bih + bhh
        i = jax.nn.sigmoid(g[:, :H])
        f = jax.nn.sigmoid(g[:, H:2 * H])
        gg = jnp.tanh(g[:, 2 * H:3 * H])
        o = jax.nn.sigmoid(g[:, 3 * H:])
        c = f * c + i * gg
        h = o * jnp.tanh(c)
        return h, c

    h0 = c0 = h1 = c1 = jnp.zeros((B, H), jnp.float32)
    for t in range(T):
        h0, c0 = cell(x[:, t], h0, c0, p["w_ih_l0"], p["w_hh_l0"], p["b_ih_l0"], p["b_hh_l0"])
        h1, c1 = cell(h0, h1, c1, p["w_ih_l1"], p["w_hh_l1"], p["b_ih_l1"], p["b_hh_l1"])
    return h1 @ p["fc_w"].T + p["fc_b"]


if __name__ == "__main__":
    key = jax.random.PRNGKey(0)
    pkey, xkey = jax.random.split(key)
    params = init_params(pkey)

    B, T = 2, 8
    x = jax.random.normal(xkey, (B, T, INPUT_SIZE), jnp.float32)

    out = lstm_model_forward(x, params)
    out = jax.block_until_ready(out)

    ref = reference_forward(x, params)
    assert out.shape == (B, 1), out.shape
    # f32 MXU operands reproduce the reference to 1e-4; bf16 weight/hidden rounding
    # compounds over the T-step recurrence, so allow 1e-2 in the bf16 configuration.
    tol = 1e-4 if MXU_DTYPE == jnp.float32 else 1e-2
    np.testing.assert_allclose(np.asarray(out), np.asarray(ref), atol=tol, rtol=tol)
    print("KERNEL_OK")
</pallas_src>

<mosaic_0001>
module attributes {stable_mosaic.version = 11 : i64} {
  func.func @lstm_fc_kernel(%arg0: memref<64x1xf32, #tpu.memory_space<vmem>>, %arg1: memref<1x512xf32, #tpu.memory_space<vmem>>, %arg2: memref<1x512xf32, #tpu.memory_space<vmem>>, %arg3: memref<256x1024xbf16, #tpu.memory_space<vmem>>, %arg4: memref<1x512xf32, #tpu.memory_space<vmem>>, %arg5: memref<128x128xbf16, #tpu.memory_space<vmem>>, %arg6: memref<1x128xf32, #tpu.memory_space<vmem>>, %arg7: memref<8x128xf32, #tpu.memory_space<vmem>>, %arg8: memref<8x256xbf16, #tpu.memory_space<vmem>>) attributes {dimension_semantics = [], scalar_prefetch = 0 : i64, scratch_operands = 1 : i64, tpu.core_type = #tpu.core_type<tc>} {
    %c0 = arith.constant 0 : index
    %c0_0 = arith.constant 0 : index
    %0 = vector.load %arg0[%c0, %c0_0] : memref<64x1xf32, #tpu.memory_space<vmem>>, vector<64x1xf32>
    %c0_1 = arith.constant 0 : index
    %c0_2 = arith.constant 0 : index
    %1 = vector.load %arg1[%c0_1, %c0_2] : memref<1x512xf32, #tpu.memory_space<vmem>>, vector<1x512xf32>
    %2 = vector.broadcast %0 : vector<64x1xf32> to vector<64x512xf32>
    %3 = vector.broadcast %1 : vector<1x512xf32> to vector<64x512xf32>
    %4 = arith.mulf %2, %3 : vector<64x512xf32>
    %c0_3 = arith.constant 0 : index
    %c0_4 = arith.constant 0 : index
    %5 = vector.load %arg2[%c0_3, %c0_4] : memref<1x512xf32, #tpu.memory_space<vmem>>, vector<1x512xf32>
    %6 = vector.broadcast %5 : vector<1x512xf32> to vector<64x512xf32>
    %7 = arith.addf %4, %6 : vector<64x512xf32>
    %c0_5 = arith.constant 0 : index
    %c0_6 = arith.constant 0 : index
    %8 = vector.load %arg4[%c0_5, %c0_6] : memref<1x512xf32, #tpu.memory_space<vmem>>, vector<1x512xf32>
    %9 = vector.shape_cast %8 : vector<1x512xf32> to vector<1x512xf32>
    %10 = vector.broadcast %9 : vector<1x512xf32> to vector<8x512xf32>
    %cst = arith.constant 0.000000e+00 : bf16
    %11 = vector.broadcast %cst : bf16 to vector<8x256xbf16>
    %c0_7 = arith.constant 0 : index
    %c0_8 = arith.constant 0 : index
    %12 = vector.load %arg8[%c0_7, %c0_8] : memref<8x256xbf16, #tpu.memory_space<vmem>>, vector<8x256xbf16>
    tpu.vector_store %arg8[%c0_7, %c0_8], %11 {strides = array<i32>} : memref<8x256xbf16, #tpu.memory_space<vmem>>, vector<8x256xbf16>,
    %cst_9 = arith.constant 0.000000e+00 : f32
    %13 = vector.broadcast %cst_9 : f32 to vector<8x128xf32>
    %cst_10 = arith.constant 0.000000e+00 : f32
    %14 = vector.broadcast %cst_10 : f32 to vector<8x128xf32>
    %cst_11 = arith.constant 0.000000e+00 : f32
    %15 = vector.broadcast %cst_11 : f32 to vector<8x512xf32>
    %16 = vector.extract_strided_slice %7 {offsets = [0, 0], sizes = [8, 512], strides = [1, 1]} : vector<64x512xf32> to vector<8x512xf32>
    %17 = arith.addf %16, %15 : vector<8x512xf32>
    %18 = vector.extract_strided_slice %17 {offsets = [0, 0], sizes = [8, 128], strides = [1, 1]} : vector<8x512xf32> to vector<8x128xf32>
    %cst_12 = arith.constant 5.000000e-01 : f32
    %19 = vector.broadcast %cst_12 : f32 to vector<8x128xf32>
    %20 = arith.mulf %19, %18 : vector<8x128xf32>
    %21 = math.tanh %20 : vector<8x128xf32>
    %cst_13 = arith.constant 5.000000e-01 : f32
    %22 = vector.broadcast %cst_13 : f32 to vector<8x128xf32>
    %23 = arith.mulf %22, %21 : vector<8x128xf32>
    %cst_14 = arith.constant 5.000000e-01 : f32
    %24 = vector.broadcast %cst_14 : f32 to vector<8x128xf32>
    %25 = arith.addf %23, %24 : vector<8x128xf32>
    %26 = vector.extract_strided_slice %17 {offsets = [0, 128], sizes = [8, 128], strides = [1, 1]} : vector<8x512xf32> to vector<8x128xf32>
    %cst_15 = arith.constant 5.000000e-01 : f32
    %27 = vector.broadcast %cst_15 : f32 to vector<8x128xf32>
    %28 = arith.mulf %27, %26 : vector<8x128xf32>
    %29 = math.tanh %28 : vector<8x128xf32>
    %cst_16 = arith.constant 5.000000e-01 : f32
    %30 = vector.broadcast %cst_16 : f32 to vector<8x128xf32>
    %31 = arith.mulf %30, %29 : vector<8x128xf32>
    %cst_17 = arith.constant 5.000000e-01 : f32
    %32 = vector.broadcast %cst_17 : f32 to vector<8x128xf32>
    %33 = arith.addf %31, %32 : vector<8x128xf32>
    %34 = vector.extract_strided_slice %17 {offsets = [0, 256], sizes = [8, 128], strides = [1, 1]} : vector<8x512xf32> to vector<8x128xf32>
    %35 = math.tanh %34 : vector<8x128xf32>
    %36 = vector.extract_strided_slice %17 {offsets = [0, 384], sizes = [8, 128], strides = [1, 1]} : vector<8x512xf32> to vector<8x128xf32>
    %cst_18 = arith.constant 5.000000e-01 : f32
    %37 = vector.broadcast %cst_18 : f32 to vector<8x128xf32>
    %38 = arith.mulf %37, %36 : vector<8x128xf32>
    %39 = math.tanh %38 : vector<8x128xf32>
    %cst_19 = arith.constant 5.000000e-01 : f32
    %40 = vector.broadcast %cst_19 : f32 to vector<8x128xf32>
    %41 = arith.mulf %40, %39 : vector<8x128xf32>
    %cst_20 = arith.constant 5.000000e-01 : f32
    %42 = vector.broadcast %cst_20 : f32 to vector<8x128xf32>
    %43 = arith.addf %41, %42 : vector<8x128xf32>
    %44 = arith.mulf %33, %13 : vector<8x128xf32>
    %45 = arith.mulf %25, %35 : vector<8x128xf32>
    %46 = arith.addf %44, %45 : vector<8x128xf32>
    %47 = math.tanh %46 : vector<8x128xf32>
    %48 = arith.mulf %43, %47 : vector<8x128xf32>
    %49 = arith.truncf %48 : vector<8x128xf32> to vector<8x128xbf16>
    %c0_21 = arith.constant 0 : index
    %c0_22 = arith.constant 0 : index
    %50 = vector.load %arg8[%c0_21, %c0_22] : memref<8x256xbf16, #tpu.memory_space<vmem>>, vector<8x128xbf16>
    tpu.vector_store %arg8[%c0_21, %c0_22], %49 {strides = array<i32>} : memref<8x256xbf16, #tpu.memory_space<vmem>>, vector<8x128xbf16>,
    %c0_23 = arith.constant 0 : index
    %c0_24 = arith.constant 0 : index
    %51 = vector.load %arg8[%c0_23, %c0_24] : memref<8x256xbf16, #tpu.memory_space<vmem>>, vector<8x256xbf16>
    %c0_25 = arith.constant 0 : index
    %c0_26 = arith.constant 0 : index
    %52 = vector.load %arg3[%c0_25, %c0_26] : memref<256x1024xbf16, #tpu.memory_space<vmem>>, vector<256x1024xbf16>
    %cst_27 = arith.constant dense<0.000000e+00> : vector<8x1024xf32>
    %53 = tpu.matmul %51, %52, %cst_27 {dimension_numbers = #tpu.dot_dimension_numbers<[1], [0], [0], [1], [0, 0, 1, 1], [], []>} : vector<8x256xbf16>, vector<256x1024xbf16>, vector<8x1024xf32> -> vector<8x1024xf32>
    %54 = vector.extract_strided_slice %53 {offsets = [0, 0], sizes = [8, 512], strides = [1, 1]} : vector<8x1024xf32> to vector<8x512xf32>
    %55 = arith.addf %54, %10 : vector<8x512xf32>
    %56 = vector.extract_strided_slice %53 {offsets = [0, 512], sizes = [8, 512], strides = [1, 1]} : vector<8x1024xf32> to vector<8x512xf32>
    %57 = vector.extract_strided_slice %55 {offsets = [0, 0], sizes = [8, 128], strides = [1, 1]} : vector<8x512xf32> to vector<8x128xf32>
    %cst_28 = arith.constant 5.000000e-01 : f32
    %58 = vector.broadcast %cst_28 : f32 to vector<8x128xf32>
    %59 = arith.mulf %58, %57 : vector<8x128xf32>
    %60 = math.tanh %59 : vector<8x128xf32>
    %cst_29 = arith.constant 5.000000e-01 : f32
    %61 = vector.broadcast %cst_29 : f32 to vector<8x128xf32>
    %62 = arith.mulf %61, %60 : vector<8x128xf32>
    %cst_30 = arith.constant 5.000000e-01 : f32
    %63 = vector.broadcast %cst_30 : f32 to vector<8x128xf32>
    %64 = arith.addf %62, %63 : vector<8x128xf32>
    %65 = vector.extract_strided_slice %55 {offsets = [0, 128], sizes = [8, 128], strides = [1, 1]} : vector<8x512xf32> to vector<8x128xf32>
    %cst_31 = arith.constant 5.000000e-01 : f32
    %66 = vector.broadcast %cst_31 : f32 to vector<8x128xf32>
    %67 = arith.mulf %66, %65 : vector<8x128xf32>
    %68 = math.tanh %67 : vector<8x128xf32>
    %cst_32 = arith.constant 5.000000e-01 : f32
    %69 = vector.broadcast %cst_32 : f32 to vector<8x128xf32>
    %70 = arith.mulf %69, %68 : vector<8x128xf32>
    %cst_33 = arith.constant 5.000000e-01 : f32
    %71 = vector.broadcast %cst_33 : f32 to vector<8x128xf32>
    %72 = arith.addf %70, %71 : vector<8x128xf32>
    %73 = vector.extract_strided_slice %55 {offsets = [0, 256], sizes = [8, 128], strides = [1, 1]} : vector<8x512xf32> to vector<8x128xf32>
    %74 = math.tanh %73 : vector<8x128xf32>
    %75 = vector.extract_strided_slice %55 {offsets = [0, 384], sizes = [8, 128], strides = [1, 1]} : vector<8x512xf32> to vector<8x128xf32>
    %cst_34 = arith.constant 5.000000e-01 : f32
    %76 = vector.broadcast %cst_34 : f32 to vector<8x128xf32>
    %77 = arith.mulf %76, %75 : vector<8x128xf32>
    %78 = math.tanh %77 : vector<8x128xf32>
    %cst_35 = arith.constant 5.000000e-01 : f32
    %79 = vector.broadcast %cst_35 : f32 to vector<8x128xf32>
    %80 = arith.mulf %79, %78 : vector<8x128xf32>
    %cst_36 = arith.constant 5.000000e-01 : f32
    %81 = vector.broadcast %cst_36 : f32 to vector<8x128xf32>
    %82 = arith.addf %80, %81 : vector<8x128xf32>
    %83 = arith.mulf %72, %14 : vector<8x128xf32>
    %84 = arith.mulf %64, %74 : vector<8x128xf32>
    %85 = arith.addf %83, %84 : vector<8x128xf32>
    %86 = math.tanh %85 : vector<8x128xf32>
    %87 = arith.mulf %82, %86 : vector<8x128xf32>
    %88 = arith.truncf %87 : vector<8x128xf32> to vector<8x128xbf16>
    %c0_37 = arith.constant 0 : index
    %c128 = arith.constant 128 : index
    %89 = vector.load %arg8[%c0_37, %c128] : memref<8x256xbf16, #tpu.memory_space<vmem>>, vector<8x128xbf16>
    tpu.vector_store %arg8[%c0_37, %c128], %88 {strides = array<i32>} : memref<8x256xbf16, #tpu.memory_space<vmem>>, vector<8x128xbf16>,
    %90 = vector.extract_strided_slice %7 {offsets = [8, 0], sizes = [8, 512], strides = [1, 1]} : vector<64x512xf32> to vector<8x512xf32>
    %91 = arith.addf %90, %56 : vector<8x512xf32>
    %92 = vector.extract_strided_slice %91 {offsets = [0, 0], sizes = [8, 128], strides = [1, 1]} : vector<8x512xf32> to vector<8x128xf32>
    %cst_38 = arith.constant 5.000000e-01 : f32
    %93 = vector.broadcast %cst_38 : f32 to vector<8x128xf32>
    %94 = arith.mulf %93, %92 : vector<8x128xf32>
    %95 = math.tanh %94 : vector<8x128xf32>
    %cst_39 = arith.constant 5.000000e-01 : f32
    %96 = vector.broadcast %cst_39 : f32 to vector<8x128xf32>
    %97 = arith.mulf %96, %95 : vector<8x128xf32>
    %cst_40 = arith.constant 5.000000e-01 : f32
    %98 = vector.broadcast %cst_40 : f32 to vector<8x128xf32>
    %99 = arith.addf %97, %98 : vector<8x128xf32>
    %100 = vector.extract_strided_slice %91 {offsets = [0, 128], sizes = [8, 128], strides = [1, 1]} : vector<8x512xf32> to vector<8x128xf32>
    %cst_41 = arith.constant 5.000000e-01 : f32
    %101 = vector.broadcast %cst_41 : f32 to vector<8x128xf32>
    %102 = arith.mulf %101, %100 : vector<8x128xf32>
    %103 = math.tanh %102 : vector<8x128xf32>
    %cst_42 = arith.constant 5.000000e-01 : f32
    %104 = vector.broadcast %cst_42 : f32 to vector<8x128xf32>
    %105 = arith.mulf %104, %103 : vector<8x128xf32>
    %cst_43 = arith.constant 5.000000e-01 : f32
    %106 = vector.broadcast %cst_43 : f32 to vector<8x128xf32>
    %107 = arith.addf %105, %106 : vector<8x128xf32>
    %108 = vector.extract_strided_slice %91 {offsets = [0, 256], sizes = [8, 128], strides = [1, 1]} : vector<8x512xf32> to vector<8x128xf32>
    %109 = math.tanh %108 : vector<8x128xf32>
    %110 = vector.extract_strided_slice %91 {offsets = [0, 384], sizes = [8, 128], strides = [1, 1]} : vector<8x512xf32> to vector<8x128xf32>
    %cst_44 = arith.constant 5.000000e-01 : f32
    %111 = vector.broadcast %cst_44 : f32 to vector<8x128xf32>
    %112 = arith.mulf %111, %110 : vector<8x128xf32>
    %113 = math.tanh %112 : vector<8x128xf32>
    %cst_45 = arith.constant 5.000000e-01 : f32
    %114 = vector.broadcast %cst_45 : f32 to vector<8x128xf32>
    %115 = arith.mulf %114, %113 : vector<8x128xf32>
    %cst_46 = arith.constant 5.000000e-01 : f32
    %116 = vector.broadcast %cst_46 : f32 to vector<8x128xf32>
    %117 = arith.addf %115, %116 : vector<8x128xf32>
    %118 = arith.mulf %107, %46 : vector<8x128xf32>
    %119 = arith.mulf %99, %109 : vector<8x128xf32>
    %120 = arith.addf %118, %119 : vector<8x128xf32>
    %121 = math.tanh %120 : vector<8x128xf32>
    %122 = arith.mulf %117, %121 : vector<8x128xf32>
    %123 = arith.truncf %122 : vector<8x128xf32> to vector<8x128xbf16>
    %c0_47 = arith.constant 0 : index
    %c0_48 = arith.constant 0 : index
    %124 = vector.load %arg8[%c0_47, %c0_48] : memref<8x256xbf16, #tpu.memory_space<vmem>>, vector<8x128xbf16>
    tpu.vector_store %arg8[%c0_47, %c0_48], %123 {strides = array<i32>} : memref<8x256xbf16, #tpu.memory_space<vmem>>, vector<8x128xbf16>,
    %c0_49 = arith.constant 0 : index
    %c0_50 = arith.constant 0 : index
    %125 = vector.load %arg8[%c0_49, %c0_50] : memref<8x256xbf16, #tpu.memory_space<vmem>>, vector<8x256xbf16>
    %c0_51 = arith.constant 0 : index
    %c0_52 = arith.constant 0 : index
    %126 = vector.load %arg3[%c0_51, %c0_52] : memref<256x1024xbf16, #tpu.memory_space<vmem>>, vector<256x1024xbf16>
    %cst_53 = arith.constant dense<0.000000e+00> : vector<8x1024xf32>
    %127 = tpu.matmul %125, %126, %cst_53 {dimension_numbers = #tpu.dot_dimension_numbers<[1], [0], [0], [1], [0, 0, 1, 1], [], []>} : vector<8x256xbf16>, vector<256x1024xbf16>, vector<8x1024xf32> -> vector<8x1024xf32>
    %128 = vector.extract_strided_slice %127 {offsets = [0, 0], sizes = [8, 512], strides = [1, 1]} : vector<8x1024xf32> to vector<8x512xf32>
    %129 = arith.addf %128, %10 : vector<8x512xf32>
    %130 = vector.extract_strided_slice %127 {offsets = [0, 512], sizes = [8, 512], strides = [1, 1]} : vector<8x1024xf32> to vector<8x512xf32>
    %131 = vector.extract_strided_slice %129 {offsets = [0, 0], sizes = [8, 128], strides = [1, 1]} : vector<8x512xf32> to vector<8x128xf32>
    %cst_54 = arith.constant 5.000000e-01 : f32
    %132 = vector.broadcast %cst_54 : f32 to vector<8x128xf32>
    %133 = arith.mulf %132, %131 : vector<8x128xf32>
    %134 = math.tanh %133 : vector<8x128xf32>
    %cst_55 = arith.constant 5.000000e-01 : f32
    %135 = vector.broadcast %cst_55 : f32 to vector<8x128xf32>
    %136 = arith.mulf %135, %134 : vector<8x128xf32>
    %cst_56 = arith.constant 5.000000e-01 : f32
    %137 = vector.broadcast %cst_56 : f32 to vector<8x128xf32>
    %138 = arith.addf %136, %137 : vector<8x128xf32>
    %139 = vector.extract_strided_slice %129 {offsets = [0, 128], sizes = [8, 128], strides = [1, 1]} : vector<8x512xf32> to vector<8x128xf32>
    %cst_57 = arith.constant 5.000000e-01 : f32
    %140 = vector.broadcast %cst_57 : f32 to vector<8x128xf32>
    %141 = arith.mulf %140, %139 : vector<8x128xf32>
    %142 = math.tanh %141 : vector<8x128xf32>
    %cst_58 = arith.constant 5.000000e-01 : f32
    %143 = vector.broadcast %cst_58 : f32 to vector<8x128xf32>
    %144 = arith.mulf %143, %142 : vector<8x128xf32>
    %cst_59 = arith.constant 5.000000e-01 : f32
    %145 = vector.broadcast %cst_59 : f32 to vector<8x128xf32>
    %146 = arith.addf %144, %145 : vector<8x128xf32>
    %147 = vector.extract_strided_slice %129 {offsets = [0, 256], sizes = [8, 128], strides = [1, 1]} : vector<8x512xf32> to vector<8x128xf32>
    %148 = math.tanh %147 : vector<8x128xf32>
    %149 = vector.extract_strided_slice %129 {offsets = [0, 384], sizes = [8, 128], strides = [1, 1]} : vector<8x512xf32> to vector<8x128xf32>
    %cst_60 = arith.constant 5.000000e-01 : f32
    %150 = vector.broadcast %cst_60 : f32 to vector<8x128xf32>
    %151 = arith.mulf %150, %149 : vector<8x128xf32>
    %152 = math.tanh %151 : vector<8x128xf32>
    %cst_61 = arith.constant 5.000000e-01 : f32
    %153 = vector.broadcast %cst_61 : f32 to vector<8x128xf32>
    %154 = arith.mulf %153, %152 : vector<8x128xf32>
    %cst_62 = arith.constant 5.000000e-01 : f32
    %155 = vector.broadcast %cst_62 : f32 to vector<8x128xf32>
    %156 = arith.addf %154, %155 : vector<8x128xf32>
    %157 = arith.mulf %146, %85 : vector<8x128xf32>
    %158 = arith.mulf %138, %148 : vector<8x128xf32>
    %159 = arith.addf %157, %158 : vector<8x128xf32>
    %160 = math.tanh %159 : vector<8x128xf32>
    %161 = arith.mulf %156, %160 : vector<8x128xf32>
    %162 = arith.truncf %161 : vector<8x128xf32> to vector<8x128xbf16>
    %c0_63 = arith.constant 0 : index
    %c128_64 = arith.constant 128 : index
    %163 = vector.load %arg8[%c0_63, %c128_64] : memref<8x256xbf16, #tpu.memory_space<vmem>>, vector<8x128xbf16>
    tpu.vector_store %arg8[%c0_63, %c128_64], %162 {strides = array<i32>} : memref<8x256xbf16, #tpu.memory_space<vmem>>, vector<8x128xbf16>,
    %164 = vector.extract_strided_slice %7 {offsets = [16, 0], sizes = [8, 512], strides = [1, 1]} : vector<64x512xf32> to vector<8x512xf32>
    %165 = arith.addf %164, %130 : vector<8x512xf32>
    %166 = vector.extract_strided_slice %165 {offsets = [0, 0], sizes = [8, 128], strides = [1, 1]} : vector<8x512xf32> to vector<8x128xf32>
    %cst_65 = arith.constant 5.000000e-01 : f32
    %167 = vector.broadcast %cst_65 : f32 to vector<8x128xf32>
    %168 = arith.mulf %167, %166 : vector<8x128xf32>
    %169 = math.tanh %168 : vector<8x128xf32>
    %cst_66 = arith.constant 5.000000e-01 : f32
    %170 = vector.broadcast %cst_66 : f32 to vector<8x128xf32>
    %171 = arith.mulf %170, %169 : vector<8x128xf32>
    %cst_67 = arith.constant 5.000000e-01 : f32
    %172 = vector.broadcast %cst_67 : f32 to vector<8x128xf32>
    %173 = arith.addf %171, %172 : vector<8x128xf32>
    %174 = vector.extract_strided_slice %165 {offsets = [0, 128], sizes = [8, 128], strides = [1, 1]} : vector<8x512xf32> to vector<8x128xf32>
    %cst_68 = arith.constant 5.000000e-01 : f32
    %175 = vector.broadcast %cst_68 : f32 to vector<8x128xf32>
    %176 = arith.mulf %175, %174 : vector<8x128xf32>
    %177 = math.tanh %176 : vector<8x128xf32>
    %cst_69 = arith.constant 5.000000e-01 : f32
    %178 = vector.broadcast %cst_69 : f32 to vector<8x128xf32>
    %179 = arith.mulf %178, %177 : vector<8x128xf32>
    %cst_70 = arith.constant 5.000000e-01 : f32
    %180 = vector.broadcast %cst_70 : f32 to vector<8x128xf32>
    %181 = arith.addf %179, %180 : vector<8x128xf32>
    %182 = vector.extract_strided_slice %165 {offsets = [0, 256], sizes = [8, 128], strides = [1, 1]} : vector<8x512xf32> to vector<8x128xf32>
    %183 = math.tanh %182 : vector<8x128xf32>
    %184 = vector.extract_strided_slice %165 {offsets = [0, 384], sizes = [8, 128], strides = [1, 1]} : vector<8x512xf32> to vector<8x128xf32>
    %cst_71 = arith.constant 5.000000e-01 : f32
    %185 = vector.broadcast %cst_71 : f32 to vector<8x128xf32>
    %186 = arith.mulf %185, %184 : vector<8x128xf32>
    %187 = math.tanh %186 : vector<8x128xf32>
    %cst_72 = arith.constant 5.000000e-01 : f32
    %188 = vector.broadcast %cst_72 : f32 to vector<8x128xf32>
    %189 = arith.mulf %188, %187 : vector<8x128xf32>
    %cst_73 = arith.constant 5.000000e-01 : f32
    %190 = vector.broadcast %cst_73 : f32 to vector<8x128xf32>
    %191 = arith.addf %189, %190 : vector<8x128xf32>
    %192 = arith.mulf %181, %120 : vector<8x128xf32>
    %193 = arith.mulf %173, %183 : vector<8x128xf32>
    %194 = arith.addf %192, %193 : vector<8x128xf32>
    %195 = math.tanh %194 : vector<8x128xf32>
    %196 = arith.mulf %191, %195 : vector<8x128xf32>
    %197 = arith.truncf %196 : vector<8x128xf32> to vector<8x128xbf16>
    %c0_74 = arith.constant 0 : index
    %c0_75 = arith.constant 0 : index
    %198 = vector.load %arg8[%c0_74, %c0_75] : memref<8x256xbf16, #tpu.memory_space<vmem>>, vector<8x128xbf16>
    tpu.vector_store %arg8[%c0_74, %c0_75], %197 {strides = array<i32>} : memref<8x256xbf16, #tpu.memory_space<vmem>>, vector<8x128xbf16>,
    %c0_76 = arith.constant 0 : index
    %c0_77 = arith.constant 0 : index
    %199 = vector.load %arg8[%c0_76, %c0_77] : memref<8x256xbf16, #tpu.memory_space<vmem>>, vector<8x256xbf16>
    %c0_78 = arith.constant 0 : index
    %c0_79 = arith.constant 0 : index
    %200 = vector.load %arg3[%c0_78, %c0_79] : memref<256x1024xbf16, #tpu.memory_space<vmem>>, vector<256x1024xbf16>
    %cst_80 = arith.constant dense<0.000000e+00> : vector<8x1024xf32>
    %201 = tpu.matmul %199, %200, %cst_80 {dimension_numbers = #tpu.dot_dimension_numbers<[1], [0], [0], [1], [0, 0, 1, 1], [], []>} : vector<8x256xbf16>, vector<256x1024xbf16>, vector<8x1024xf32> -> vector<8x1024xf32>
    %202 = vector.extract_strided_slice %201 {offsets = [0, 0], sizes = [8, 512], strides = [1, 1]} : vector<8x1024xf32> to vector<8x512xf32>
    %203 = arith.addf %202, %10 : vector<8x512xf32>
    %204 = vector.extract_strided_slice %201 {offsets = [0, 512], sizes = [8, 512], strides = [1, 1]} : vector<8x1024xf32> to vector<8x512xf32>
    %205 = vector.extract_strided_slice %203 {offsets = [0, 0], sizes = [8, 128], strides = [1, 1]} : vector<8x512xf32> to vector<8x128xf32>
    %cst_81 = arith.constant 5.000000e-01 : f32
    %206 = vector.broadcast %cst_81 : f32 to vector<8x128xf32>
    %207 = arith.mulf %206, %205 : vector<8x128xf32>
    %208 = math.tanh %207 : vector<8x128xf32>
    %cst_82 = arith.constant 5.000000e-01 : f32
    %209 = vector.broadcast %cst_82 : f32 to vector<8x128xf32>
    %210 = arith.mulf %209, %208 : vector<8x128xf32>
    %cst_83 = arith.constant 5.000000e-01 : f32
    %211 = vector.broadcast %cst_83 : f32 to vector<8x128xf32>
    %212 = arith.addf %210, %211 : vector<8x128xf32>
    %213 = vector.extract_strided_slice %203 {offsets = [0, 128], sizes = [8, 128], strides = [1, 1]} : vector<8x512xf32> to vector<8x128xf32>
    %cst_84 = arith.constant 5.000000e-01 : f32
    %214 = vector.broadcast %cst_84 : f32 to vector<8x128xf32>
    %215 = arith.mulf %214, %213 : vector<8x128xf32>
    %216 = math.tanh %215 : vector<8x128xf32>
    %cst_85 = arith.constant 5.000000e-01 : f32
    %217 = vector.broadcast %cst_85 : f32 to vector<8x128xf32>
    %218 = arith.mulf %217, %216 : vector<8x128xf32>
    %cst_86 = arith.constant 5.000000e-01 : f32
    %219 = vector.broadcast %cst_86 : f32 to vector<8x128xf32>
    %220 = arith.addf %218, %219 : vector<8x128xf32>
    %221 = vector.extract_strided_slice %203 {offsets = [0, 256], sizes = [8, 128], strides = [1, 1]} : vector<8x512xf32> to vector<8x128xf32>
    %222 = math.tanh %221 : vector<8x128xf32>
    %223 = vector.extract_strided_slice %203 {offsets = [0, 384], sizes = [8, 128], strides = [1, 1]} : vector<8x512xf32> to vector<8x128xf32>
    %cst_87 = arith.constant 5.000000e-01 : f32
    %224 = vector.broadcast %cst_87 : f32 to vector<8x128xf32>
    %225 = arith.mulf %224, %223 : vector<8x128xf32>
    %226 = math.tanh %225 : vector<8x128xf32>
    %cst_88 = arith.constant 5.000000e-01 : f32
    %227 = vector.broadcast %cst_88 : f32 to vector<8x128xf32>
    %228 = arith.mulf %227, %226 : vector<8x128xf32>
    %cst_89 = arith.constant 5.000000e-01 : f32
    %229 = vector.broadcast %cst_89 : f32 to vector<8x128xf32>
    %230 = arith.addf %228, %229 : vector<8x128xf32>
    %231 = arith.mulf %220, %159 : vector<8x128xf32>
    %232 = arith.mulf %212, %222 : vector<8x128xf32>
    %233 = arith.addf %231, %232 : vector<8x128xf32>
    %234 = math.tanh %233 : vector<8x128xf32>
    %235 = arith.mulf %230, %234 : vector<8x128xf32>
    %236 = arith.truncf %235 : vector<8x128xf32> to vector<8x128xbf16>
    %c0_90 = arith.constant 0 : index
    %c128_91 = arith.constant 128 : index
    %237 = vector.load %arg8[%c0_90, %c128_91] : memref<8x256xbf16, #tpu.memory_space<vmem>>, vector<8x128xbf16>
    tpu.vector_store %arg8[%c0_90, %c128_91], %236 {strides = array<i32>} : memref<8x256xbf16, #tpu.memory_space<vmem>>, vector<8x128xbf16>,
    %238 = vector.extract_strided_slice %7 {offsets = [24, 0], sizes = [8, 512], strides = [1, 1]} : vector<64x512xf32> to vector<8x512xf32>
    %239 = arith.addf %238, %204 : vector<8x512xf32>
    %240 = vector.extract_strided_slice %239 {offsets = [0, 0], sizes = [8, 128], strides = [1, 1]} : vector<8x512xf32> to vector<8x128xf32>
    %cst_92 = arith.constant 5.000000e-01 : f32
    %241 = vector.broadcast %cst_92 : f32 to vector<8x128xf32>
    %242 = arith.mulf %241, %240 : vector<8x128xf32>
    %243 = math.tanh %242 : vector<8x128xf32>
    %cst_93 = arith.constant 5.000000e-01 : f32
    %244 = vector.broadcast %cst_93 : f32 to vector<8x128xf32>
    %245 = arith.mulf %244, %243 : vector<8x128xf32>
    %cst_94 = arith.constant 5.000000e-01 : f32
    %246 = vector.broadcast %cst_94 : f32 to vector<8x128xf32>
    %247 = arith.addf %245, %246 : vector<8x128xf32>
    %248 = vector.extract_strided_slice %239 {offsets = [0, 128], sizes = [8, 128], strides = [1, 1]} : vector<8x512xf32> to vector<8x128xf32>
    %cst_95 = arith.constant 5.000000e-01 : f32
    %249 = vector.broadcast %cst_95 : f32 to vector<8x128xf32>
    %250 = arith.mulf %249, %248 : vector<8x128xf32>
    %251 = math.tanh %250 : vector<8x128xf32>
    %cst_96 = arith.constant 5.000000e-01 : f32
    %252 = vector.broadcast %cst_96 : f32 to vector<8x128xf32>
    %253 = arith.mulf %252, %251 : vector<8x128xf32>
    %cst_97 = arith.constant 5.000000e-01 : f32
    %254 = vector.broadcast %cst_97 : f32 to vector<8x128xf32>
    %255 = arith.addf %253, %254 : vector<8x128xf32>
    %256 = vector.extract_strided_slice %239 {offsets = [0, 256], sizes = [8, 128], strides = [1, 1]} : vector<8x512xf32> to vector<8x128xf32>
    %257 = math.tanh %256 : vector<8x128xf32>
    %258 = vector.extract_strided_slice %239 {offsets = [0, 384], sizes = [8, 128], strides = [1, 1]} : vector<8x512xf32> to vector<8x128xf32>
    %cst_98 = arith.constant 5.000000e-01 : f32
    %259 = vector.broadcast %cst_98 : f32 to vector<8x128xf32>
    %260 = arith.mulf %259, %258 : vector<8x128xf32>
    %261 = math.tanh %260 : vector<8x128xf32>
    %cst_99 = arith.constant 5.000000e-01 : f32
    %262 = vector.broadcast %cst_99 : f32 to vector<8x128xf32>
    %263 = arith.mulf %262, %261 : vector<8x128xf32>
    %cst_100 = arith.constant 5.000000e-01 : f32
    %264 = vector.broadcast %cst_100 : f32 to vector<8x128xf32>
    %265 = arith.addf %263, %264 : vector<8x128xf32>
    %266 = arith.mulf %255, %194 : vector<8x128xf32>
    %267 = arith.mulf %247, %257 : vector<8x128xf32>
    %268 = arith.addf %266, %267 : vector<8x128xf32>
    %269 = math.tanh %268 : vector<8x128xf32>
    %270 = arith.mulf %265, %269 : vector<8x128xf32>
    %271 = arith.truncf %270 : vector<8x128xf32> to vector<8x128xbf16>
    %c0_101 = arith.constant 0 : index
    %c0_102 = arith.constant 0 : index
    %272 = vector.load %arg8[%c0_101, %c0_102] : memref<8x256xbf16, #tpu.memory_space<vmem>>, vector<8x128xbf16>
    tpu.vector_store %arg8[%c0_101, %c0_102], %271 {strides = array<i32>} : memref<8x256xbf16, #tpu.memory_space<vmem>>, vector<8x128xbf16>,
    %c0_103 = arith.constant 0 : index
    %c0_104 = arith.constant 0 : index
    %273 = vector.load %arg8[%c0_103, %c0_104] : memref<8x256xbf16, #tpu.memory_space<vmem>>, vector<8x256xbf16>
    %c0_105 = arith.constant 0 : index
    %c0_106 = arith.constant 0 : index
    %274 = vector.load %arg3[%c0_105, %c0_106] : memref<256x1024xbf16, #tpu.memory_space<vmem>>, vector<256x1024xbf16>
    %cst_107 = arith.constant dense<0.000000e+00> : vector<8x1024xf32>
    %275 = tpu.matmul %273, %274, %cst_107 {dimension_numbers = #tpu.dot_dimension_numbers<[1], [0], [0], [1], [0, 0, 1, 1], [], []>} : vector<8x256xbf16>, vector<256x1024xbf16>, vector<8x1024xf32> -> vector<8x1024xf32>
    %276 = vector.extract_strided_slice %275 {offsets = [0, 0], sizes = [8, 512], strides = [1, 1]} : vector<8x1024xf32> to vector<8x512xf32>
    %277 = arith.addf %276, %10 : vector<8x512xf32>
    %278 = vector.extract_strided_slice %275 {offsets = [0, 512], sizes = [8, 512], strides = [1, 1]} : vector<8x1024xf32> to vector<8x512xf32>
    %279 = vector.extract_strided_slice %277 {offsets = [0, 0], sizes = [8, 128], strides = [1, 1]} : vector<8x512xf32> to vector<8x128xf32>
    %cst_108 = arith.constant 5.000000e-01 : f32
    %280 = vector.broadcast %cst_108 : f32 to vector<8x128xf32>
    %281 = arith.mulf %280, %279 : vector<8x128xf32>
    %282 = math.tanh %281 : vector<8x128xf32>
    %cst_109 = arith.constant 5.000000e-01 : f32
    %283 = vector.broadcast %cst_109 : f32 to vector<8x128xf32>
    %284 = arith.mulf %283, %282 : vector<8x128xf32>
    %cst_110 = arith.constant 5.000000e-01 : f32
    %285 = vector.broadcast %cst_110 : f32 to vector<8x128xf32>
    %286 = arith.addf %284, %285 : vector<8x128xf32>
    %287 = vector.extract_strided_slice %277 {offsets = [0, 128], sizes = [8, 128], strides = [1, 1]} : vector<8x512xf32> to vector<8x128xf32>
    %cst_111 = arith.constant 5.000000e-01 : f32
    %288 = vector.broadcast %cst_111 : f32 to vector<8x128xf32>
    %289 = arith.mulf %288, %287 : vector<8x128xf32>
    %290 = math.tanh %289 : vector<8x128xf32>
    %cst_112 = arith.constant 5.000000e-01 : f32
    %291 = vector.broadcast %cst_112 : f32 to vector<8x128xf32>
    %292 = arith.mulf %291, %290 : vector<8x128xf32>
    %cst_113 = arith.constant 5.000000e-01 : f32
    %293 = vector.broadcast %cst_113 : f32 to vector<8x128xf32>
    %294 = arith.addf %292, %293 : vector<8x128xf32>
    %295 = vector.extract_strided_slice %277 {offsets = [0, 256], sizes = [8, 128], strides = [1, 1]} : vector<8x512xf32> to vector<8x128xf32>
    %296 = math.tanh %295 : vector<8x128xf32>
    %297 = vector.extract_strided_slice %277 {offsets = [0, 384], sizes = [8, 128], strides = [1, 1]} : vector<8x512xf32> to vector<8x128xf32>
    %cst_114 = arith.constant 5.000000e-01 : f32
    %298 = vector.broadcast %cst_114 : f32 to vector<8x128xf32>
    %299 = arith.mulf %298, %297 : vector<8x128xf32>
    %300 = math.tanh %299 : vector<8x128xf32>
    %cst_115 = arith.constant 5.000000e-01 : f32
    %301 = vector.broadcast %cst_115 : f32 to vector<8x128xf32>
    %302 = arith.mulf %301, %300 : vector<8x128xf32>
    %cst_116 = arith.constant 5.000000e-01 : f32
    %303 = vector.broadcast %cst_116 : f32 to vector<8x128xf32>
    %304 = arith.addf %302, %303 : vector<8x128xf32>
    %305 = arith.mulf %294, %233 : vector<8x128xf32>
    %306 = arith.mulf %286, %296 : vector<8x128xf32>
    %307 = arith.addf %305, %306 : vector<8x128xf32>
    %308 = math.tanh %307 : vector<8x128xf32>
    %309 = arith.mulf %304, %308 : vector<8x128xf32>
    %310 = arith.truncf %309 : vector<8x128xf32> to vector<8x128xbf16>
    %c0_117 = arith.constant 0 : index
    %c128_118 = arith.constant 128 : index
    %311 = vector.load %arg8[%c0_117, %c128_118] : memref<8x256xbf16, #tpu.memory_space<vmem>>, vector<8x128xbf16>
    tpu.vector_store %arg8[%c0_117, %c128_118], %310 {strides = array<i32>} : memref<8x256xbf16, #tpu.memory_space<vmem>>, vector<8x128xbf16>,
    %312 = vector.extract_strided_slice %7 {offsets = [32, 0], sizes = [8, 512], strides = [1, 1]} : vector<64x512xf32> to vector<8x512xf32>
    %313 = arith.addf %312, %278 : vector<8x512xf32>
    %314 = vector.extract_strided_slice %313 {offsets = [0, 0], sizes = [8, 128], strides = [1, 1]} : vector<8x512xf32> to vector<8x128xf32>
    %cst_119 = arith.constant 5.000000e-01 : f32
    %315 = vector.broadcast %cst_119 : f32 to vector<8x128xf32>
    %316 = arith.mulf %315, %314 : vector<8x128xf32>
    %317 = math.tanh %316 : vector<8x128xf32>
    %cst_120 = arith.constant 5.000000e-01 : f32
    %318 = vector.broadcast %cst_120 : f32 to vector<8x128xf32>
    %319 = arith.mulf %318, %317 : vector<8x128xf32>
    %cst_121 = arith.constant 5.000000e-01 : f32
    %320 = vector.broadcast %cst_121 : f32 to vector<8x128xf32>
    %321 = arith.addf %319, %320 : vector<8x128xf32>
    %322 = vector.extract_strided_slice %313 {offsets = [0, 128], sizes = [8, 128], strides = [1, 1]} : vector<8x512xf32> to vector<8x128xf32>
    %cst_122 = arith.constant 5.000000e-01 : f32
    %323 = vector.broadcast %cst_122 : f32 to vector<8x128xf32>
    %324 = arith.mulf %323, %322 : vector<8x128xf32>
    %325 = math.tanh %324 : vector<8x128xf32>
    %cst_123 = arith.constant 5.000000e-01 : f32
    %326 = vector.broadcast %cst_123 : f32 to vector<8x128xf32>
    %327 = arith.mulf %326, %325 : vector<8x128xf32>
    %cst_124 = arith.constant 5.000000e-01 : f32
    %328 = vector.broadcast %cst_124 : f32 to vector<8x128xf32>
    %329 = arith.addf %327, %328 : vector<8x128xf32>
    %330 = vector.extract_strided_slice %313 {offsets = [0, 256], sizes = [8, 128], strides = [1, 1]} : vector<8x512xf32> to vector<8x128xf32>
    %331 = math.tanh %330 : vector<8x128xf32>
    %332 = vector.extract_strided_slice %313 {offsets = [0, 384], sizes = [8, 128], strides = [1, 1]} : vector<8x512xf32> to vector<8x128xf32>
    %cst_125 = arith.constant 5.000000e-01 : f32
    %333 = vector.broadcast %cst_125 : f32 to vector<8x128xf32>
    %334 = arith.mulf %333, %332 : vector<8x128xf32>
    %335 = math.tanh %334 : vector<8x128xf32>
    %cst_126 = arith.constant 5.000000e-01 : f32
    %336 = vector.broadcast %cst_126 : f32 to vector<8x128xf32>
    %337 = arith.mulf %336, %335 : vector<8x128xf32>
    %cst_127 = arith.constant 5.000000e-01 : f32
    %338 = vector.broadcast %cst_127 : f32 to vector<8x128xf32>
    %339 = arith.addf %337, %338 : vector<8x128xf32>
    %340 = arith.mulf %329, %268 : vector<8x128xf32>
    %341 = arith.mulf %321, %331 : vector<8x128xf32>
    %342 = arith.addf %340, %341 : vector<8x128xf32>
    %343 = math.tanh %342 : vector<8x128xf32>
    %344 = arith.mulf %339, %343 : vector<8x128xf32>
    %345 = arith.truncf %344 : vector<8x128xf32> to vector<8x128xbf16>
    %c0_128 = arith.constant 0 : index
    %c0_129 = arith.constant 0 : index
    %346 = vector.load %arg8[%c0_128, %c0_129] : memref<8x256xbf16, #tpu.memory_space<vmem>>, vector<8x128xbf16>
    tpu.vector_store %arg8[%c0_128, %c0_129], %345 {strides = array<i32>} : memref<8x256xbf16, #tpu.memory_space<vmem>>, vector<8x128xbf16>,
    %c0_130 = arith.constant 0 : index
    %c0_131 = arith.constant 0 : index
    %347 = vector.load %arg8[%c0_130, %c0_131] : memref<8x256xbf16, #tpu.memory_space<vmem>>, vector<8x256xbf16>
    %c0_132 = arith.constant 0 : index
    %c0_133 = arith.constant 0 : index
    %348 = vector.load %arg3[%c0_132, %c0_133] : memref<256x1024xbf16, #tpu.memory_space<vmem>>, vector<256x1024xbf16>
    %cst_134 = arith.constant dense<0.000000e+00> : vector<8x1024xf32>
    %349 = tpu.matmul %347, %348, %cst_134 {dimension_numbers = #tpu.dot_dimension_numbers<[1], [0], [0], [1], [0, 0, 1, 1], [], []>} : vector<8x256xbf16>, vector<256x1024xbf16>, vector<8x1024xf32> -> vector<8x1024xf32>
    %350 = vector.extract_strided_slice %349 {offsets = [0, 0], sizes = [8, 512], strides = [1, 1]} : vector<8x1024xf32> to vector<8x512xf32>
    %351 = arith.addf %350, %10 : vector<8x512xf32>
    %352 = vector.extract_strided_slice %349 {offsets = [0, 512], sizes = [8, 512], strides = [1, 1]} : vector<8x1024xf32> to vector<8x512xf32>
    %353 = vector.extract_strided_slice %351 {offsets = [0, 0], sizes = [8, 128], strides = [1, 1]} : vector<8x512xf32> to vector<8x128xf32>
    %cst_135 = arith.constant 5.000000e-01 : f32
    %354 = vector.broadcast %cst_135 : f32 to vector<8x128xf32>
    %355 = arith.mulf %354, %353 : vector<8x128xf32>
    %356 = math.tanh %355 : vector<8x128xf32>
    %cst_136 = arith.constant 5.000000e-01 : f32
    %357 = vector.broadcast %cst_136 : f32 to vector<8x128xf32>
    %358 = arith.mulf %357, %356 : vector<8x128xf32>
    %cst_137 = arith.constant 5.000000e-01 : f32
    %359 = vector.broadcast %cst_137 : f32 to vector<8x128xf32>
    %360 = arith.addf %358, %359 : vector<8x128xf32>
    %361 = vector.extract_strided_slice %351 {offsets = [0, 128], sizes = [8, 128], strides = [1, 1]} : vector<8x512xf32> to vector<8x128xf32>
    %cst_138 = arith.constant 5.000000e-01 : f32
    %362 = vector.broadcast %cst_138 : f32 to vector<8x128xf32>
    %363 = arith.mulf %362, %361 : vector<8x128xf32>
    %364 = math.tanh %363 : vector<8x128xf32>
    %cst_139 = arith.constant 5.000000e-01 : f32
    %365 = vector.broadcast %cst_139 : f32 to vector<8x128xf32>
    %366 = arith.mulf %365, %364 : vector<8x128xf32>
    %cst_140 = arith.constant 5.000000e-01 : f32
    %367 = vector.broadcast %cst_140 : f32 to vector<8x128xf32>
    %368 = arith.addf %366, %367 : vector<8x128xf32>
    %369 = vector.extract_strided_slice %351 {offsets = [0, 256], sizes = [8, 128], strides = [1, 1]} : vector<8x512xf32> to vector<8x128xf32>
    %370 = math.tanh %369 : vector<8x128xf32>
    %371 = vector.extract_strided_slice %351 {offsets = [0, 384], sizes = [8, 128], strides = [1, 1]} : vector<8x512xf32> to vector<8x128xf32>
    %cst_141 = arith.constant 5.000000e-01 : f32
    %372 = vector.broadcast %cst_141 : f32 to vector<8x128xf32>
    %373 = arith.mulf %372, %371 : vector<8x128xf32>
    %374 = math.tanh %373 : vector<8x128xf32>
    %cst_142 = arith.constant 5.000000e-01 : f32
    %375 = vector.broadcast %cst_142 : f32 to vector<8x128xf32>
    %376 = arith.mulf %375, %374 : vector<8x128xf32>
    %cst_143 = arith.constant 5.000000e-01 : f32
    %377 = vector.broadcast %cst_143 : f32 to vector<8x128xf32>
    %378 = arith.addf %376, %377 : vector<8x128xf32>
    %379 = arith.mulf %368, %307 : vector<8x128xf32>
    %380 = arith.mulf %360, %370 : vector<8x128xf32>
    %381 = arith.addf %379, %380 : vector<8x128xf32>
    %382 = math.tanh %381 : vector<8x128xf32>
    %383 = arith.mulf %378, %382 : vector<8x128xf32>
    %384 = arith.truncf %383 : vector<8x128xf32> to vector<8x128xbf16>
    %c0_144 = arith.constant 0 : index
    %c128_145 = arith.constant 128 : index
    %385 = vector.load %arg8[%c0_144, %c128_145] : memref<8x256xbf16, #tpu.memory_space<vmem>>, vector<8x128xbf16>
    tpu.vector_store %arg8[%c0_144, %c128_145], %384 {strides = array<i32>} : memref<8x256xbf16, #tpu.memory_space<vmem>>, vector<8x128xbf16>,
    %386 = vector.extract_strided_slice %7 {offsets = [40, 0], sizes = [8, 512], strides = [1, 1]} : vector<64x512xf32> to vector<8x512xf32>
    %387 = arith.addf %386, %352 : vector<8x512xf32>
    %388 = vector.extract_strided_slice %387 {offsets = [0, 0], sizes = [8, 128], strides = [1, 1]} : vector<8x512xf32> to vector<8x128xf32>
    %cst_146 = arith.constant 5.000000e-01 : f32
    %389 = vector.broadcast %cst_146 : f32 to vector<8x128xf32>
    %390 = arith.mulf %389, %388 : vector<8x128xf32>
    %391 = math.tanh %390 : vector<8x128xf32>
    %cst_147 = arith.constant 5.000000e-01 : f32
    %392 = vector.broadcast %cst_147 : f32 to vector<8x128xf32>
    %393 = arith.mulf %392, %391 : vector<8x128xf32>
    %cst_148 = arith.constant 5.000000e-01 : f32
    %394 = vector.broadcast %cst_148 : f32 to vector<8x128xf32>
    %395 = arith.addf %393, %394 : vector<8x128xf32>
    %396 = vector.extract_strided_slice %387 {offsets = [0, 128], sizes = [8, 128], strides = [1, 1]} : vector<8x512xf32> to vector<8x128xf32>
    %cst_149 = arith.constant 5.000000e-01 : f32
    %397 = vector.broadcast %cst_149 : f32 to vector<8x128xf32>
    %398 = arith.mulf %397, %396 : vector<8x128xf32>
    %399 = math.tanh %398 : vector<8x128xf32>
    %cst_150 = arith.constant 5.000000e-01 : f32
    %400 = vector.broadcast %cst_150 : f32 to vector<8x128xf32>
    %401 = arith.mulf %400, %399 : vector<8x128xf32>
    %cst_151 = arith.constant 5.000000e-01 : f32
    %402 = vector.broadcast %cst_151 : f32 to vector<8x128xf32>
    %403 = arith.addf %401, %402 : vector<8x128xf32>
    %404 = vector.extract_strided_slice %387 {offsets = [0, 256], sizes = [8, 128], strides = [1, 1]} : vector<8x512xf32> to vector<8x128xf32>
    %405 = math.tanh %404 : vector<8x128xf32>
    %406 = vector.extract_strided_slice %387 {offsets = [0, 384], sizes = [8, 128], strides = [1, 1]} : vector<8x512xf32> to vector<8x128xf32>
    %cst_152 = arith.constant 5.000000e-01 : f32
    %407 = vector.broadcast %cst_152 : f32 to vector<8x128xf32>
    %408 = arith.mulf %407, %406 : vector<8x128xf32>
    %409 = math.tanh %408 : vector<8x128xf32>
    %cst_153 = arith.constant 5.000000e-01 : f32
    %410 = vector.broadcast %cst_153 : f32 to vector<8x128xf32>
    %411 = arith.mulf %410, %409 : vector<8x128xf32>
    %cst_154 = arith.constant 5.000000e-01 : f32
    %412 = vector.broadcast %cst_154 : f32 to vector<8x128xf32>
    %413 = arith.addf %411, %412 : vector<8x128xf32>
    %414 = arith.mulf %403, %342 : vector<8x128xf32>
    %415 = arith.mulf %395, %405 : vector<8x128xf32>
    %416 = arith.addf %414, %415 : vector<8x128xf32>
    %417 = math.tanh %416 : vector<8x128xf32>
    %418 = arith.mulf %413, %417 : vector<8x128xf32>
    %419 = arith.truncf %418 : vector<8x128xf32> to vector<8x128xbf16>
    %c0_155 = arith.constant 0 : index
    %c0_156 = arith.constant 0 : index
    %420 = vector.load %arg8[%c0_155, %c0_156] : memref<8x256xbf16, #tpu.memory_space<vmem>>, vector<8x128xbf16>
    tpu.vector_store %arg8[%c0_155, %c0_156], %419 {strides = array<i32>} : memref<8x256xbf16, #tpu.memory_space<vmem>>, vector<8x128xbf16>,
    %c0_157 = arith.constant 0 : index
    %c0_158 = arith.constant 0 : index
    %421 = vector.load %arg8[%c0_157, %c0_158] : memref<8x256xbf16, #tpu.memory_space<vmem>>, vector<8x256xbf16>
    %c0_159 = arith.constant 0 : index
    %c0_160 = arith.constant 0 : index
    %422 = vector.load %arg3[%c0_159, %c0_160] : memref<256x1024xbf16, #tpu.memory_space<vmem>>, vector<256x1024xbf16>
    %cst_161 = arith.constant dense<0.000000e+00> : vector<8x1024xf32>
    %423 = tpu.matmul %421, %422, %cst_161 {dimension_numbers = #tpu.dot_dimension_numbers<[1], [0], [0], [1], [0, 0, 1, 1], [], []>} : vector<8x256xbf16>, vector<256x1024xbf16>, vector<8x1024xf32> -> vector<8x1024xf32>
    %424 = vector.extract_strided_slice %423 {offsets = [0, 0], sizes = [8, 512], strides = [1, 1]} : vector<8x1024xf32> to vector<8x512xf32>
    %425 = arith.addf %424, %10 : vector<8x512xf32>
    %426 = vector.extract_strided_slice %423 {offsets = [0, 512], sizes = [8, 512], strides = [1, 1]} : vector<8x1024xf32> to vector<8x512xf32>
    %427 = vector.extract_strided_slice %425 {offsets = [0, 0], sizes = [8, 128], strides = [1, 1]} : vector<8x512xf32> to vector<8x128xf32>
    %cst_162 = arith.constant 5.000000e-01 : f32
    %428 = vector.broadcast %cst_162 : f32 to vector<8x128xf32>
    %429 = arith.mulf %428, %427 : vector<8x128xf32>
    %430 = math.tanh %429 : vector<8x128xf32>
    %cst_163 = arith.constant 5.000000e-01 : f32
    %431 = vector.broadcast %cst_163 : f32 to vector<8x128xf32>
    %432 = arith.mulf %431, %430 : vector<8x128xf32>
    %cst_164 = arith.constant 5.000000e-01 : f32
    %433 = vector.broadcast %cst_164 : f32 to vector<8x128xf32>
    %434 = arith.addf %432, %433 : vector<8x128xf32>
    %435 = vector.extract_strided_slice %425 {offsets = [0, 128], sizes = [8, 128], strides = [1, 1]} : vector<8x512xf32> to vector<8x128xf32>
    %cst_165 = arith.constant 5.000000e-01 : f32
    %436 = vector.broadcast %cst_165 : f32 to vector<8x128xf32>
    %437 = arith.mulf %436, %435 : vector<8x128xf32>
    %438 = math.tanh %437 : vector<8x128xf32>
    %cst_166 = arith.constant 5.000000e-01 : f32
    %439 = vector.broadcast %cst_166 : f32 to vector<8x128xf32>
    %440 = arith.mulf %439, %438 : vector<8x128xf32>
    %cst_167 = arith.constant 5.000000e-01 : f32
    %441 = vector.broadcast %cst_167 : f32 to vector<8x128xf32>
    %442 = arith.addf %440, %441 : vector<8x128xf32>
    %443 = vector.extract_strided_slice %425 {offsets = [0, 256], sizes = [8, 128], strides = [1, 1]} : vector<8x512xf32> to vector<8x128xf32>
    %444 = math.tanh %443 : vector<8x128xf32>
    %445 = vector.extract_strided_slice %425 {offsets = [0, 384], sizes = [8, 128], strides = [1, 1]} : vector<8x512xf32> to vector<8x128xf32>
    %cst_168 = arith.constant 5.000000e-01 : f32
    %446 = vector.broadcast %cst_168 : f32 to vector<8x128xf32>
    %447 = arith.mulf %446, %445 : vector<8x128xf32>
    %448 = math.tanh %447 : vector<8x128xf32>
    %cst_169 = arith.constant 5.000000e-01 : f32
    %449 = vector.broadcast %cst_169 : f32 to vector<8x128xf32>
    %450 = arith.mulf %449, %448 : vector<8x128xf32>
    %cst_170 = arith.constant 5.000000e-01 : f32
    %451 = vector.broadcast %cst_170 : f32 to vector<8x128xf32>
    %452 = arith.addf %450, %451 : vector<8x128xf32>
    %453 = arith.mulf %442, %381 : vector<8x128xf32>
    %454 = arith.mulf %434, %444 : vector<8x128xf32>
    %455 = arith.addf %453, %454 : vector<8x128xf32>
    %456 = math.tanh %455 : vector<8x128xf32>
    %457 = arith.mulf %452, %456 : vector<8x128xf32>
    %458 = arith.truncf %457 : vector<8x128xf32> to vector<8x128xbf16>
    %c0_171 = arith.constant 0 : index
    %c128_172 = arith.constant 128 : index
    %459 = vector.load %arg8[%c0_171, %c128_172] : memref<8x256xbf16, #tpu.memory_space<vmem>>, vector<8x128xbf16>
    tpu.vector_store %arg8[%c0_171, %c128_172], %458 {strides = array<i32>} : memref<8x256xbf16, #tpu.memory_space<vmem>>, vector<8x128xbf16>,
    %460 = vector.extract_strided_slice %7 {offsets = [48, 0], sizes = [8, 512], strides = [1, 1]} : vector<64x512xf32> to vector<8x512xf32>
    %461 = arith.addf %460, %426 : vector<8x512xf32>
    %462 = vector.extract_strided_slice %461 {offsets = [0, 0], sizes = [8, 128], strides = [1, 1]} : vector<8x512xf32> to vector<8x128xf32>
    %cst_173 = arith.constant 5.000000e-01 : f32
    %463 = vector.broadcast %cst_173 : f32 to vector<8x128xf32>
    %464 = arith.mulf %463, %462 : vector<8x128xf32>
    %465 = math.tanh %464 : vector<8x128xf32>
    %cst_174 = arith.constant 5.000000e-01 : f32
    %466 = vector.broadcast %cst_174 : f32 to vector<8x128xf32>
    %467 = arith.mulf %466, %465 : vector<8x128xf32>
    %cst_175 = arith.constant 5.000000e-01 : f32
    %468 = vector.broadcast %cst_175 : f32 to vector<8x128xf32>
    %469 = arith.addf %467, %468 : vector<8x128xf32>
    %470 = vector.extract_strided_slice %461 {offsets = [0, 128], sizes = [8, 128], strides = [1, 1]} : vector<8x512xf32> to vector<8x128xf32>
    %cst_176 = arith.constant 5.000000e-01 : f32
    %471 = vector.broadcast %cst_176 : f32 to vector<8x128xf32>
    %472 = arith.mulf %471, %470 : vector<8x128xf32>
    %473 = math.tanh %472 : vector<8x128xf32>
    %cst_177 = arith.constant 5.000000e-01 : f32
    %474 = vector.broadcast %cst_177 : f32 to vector<8x128xf32>
    %475 = arith.mulf %474, %473 : vector<8x128xf32>
    %cst_178 = arith.constant 5.000000e-01 : f32
    %476 = vector.broadcast %cst_178 : f32 to vector<8x128xf32>
    %477 = arith.addf %475, %476 : vector<8x128xf32>
    %478 = vector.extract_strided_slice %461 {offsets = [0, 256], sizes = [8, 128], strides = [1, 1]} : vector<8x512xf32> to vector<8x128xf32>
    %479 = math.tanh %478 : vector<8x128xf32>
    %480 = vector.extract_strided_slice %461 {offsets = [0, 384], sizes = [8, 128], strides = [1, 1]} : vector<8x512xf32> to vector<8x128xf32>
    %cst_179 = arith.constant 5.000000e-01 : f32
    %481 = vector.broadcast %cst_179 : f32 to vector<8x128xf32>
    %482 = arith.mulf %481, %480 : vector<8x128xf32>
    %483 = math.tanh %482 : vector<8x128xf32>
    %cst_180 = arith.constant 5.000000e-01 : f32
    %484 = vector.broadcast %cst_180 : f32 to vector<8x128xf32>
    %485 = arith.mulf %484, %483 : vector<8x128xf32>
    %cst_181 = arith.constant 5.000000e-01 : f32
    %486 = vector.broadcast %cst_181 : f32 to vector<8x128xf32>
    %487 = arith.addf %485, %486 : vector<8x128xf32>
    %488 = arith.mulf %477, %416 : vector<8x128xf32>
    %489 = arith.mulf %469, %479 : vector<8x128xf32>
    %490 = arith.addf %488, %489 : vector<8x128xf32>
    %491 = math.tanh %490 : vector<8x128xf32>
    %492 = arith.mulf %487, %491 : vector<8x128xf32>
    %493 = arith.truncf %492 : vector<8x128xf32> to vector<8x128xbf16>
    %c0_182 = arith.constant 0 : index
    %c0_183 = arith.constant 0 : index
    %494 = vector.load %arg8[%c0_182, %c0_183] : memref<8x256xbf16, #tpu.memory_space<vmem>>, vector<8x128xbf16>
    tpu.vector_store %arg8[%c0_182, %c0_183], %493 {strides = array<i32>} : memref<8x256xbf16, #tpu.memory_space<vmem>>, vector<8x128xbf16>,
    %c0_184 = arith.constant 0 : index
    %c0_185 = arith.constant 0 : index
    %495 = vector.load %arg8[%c0_184, %c0_185] : memref<8x256xbf16, #tpu.memory_space<vmem>>, vector<8x256xbf16>
    %c0_186 = arith.constant 0 : index
    %c0_187 = arith.constant 0 : index
    %496 = vector.load %arg3[%c0_186, %c0_187] : memref<256x1024xbf16, #tpu.memory_space<vmem>>, vector<256x1024xbf16>
    %cst_188 = arith.constant dense<0.000000e+00> : vector<8x1024xf32>
    %497 = tpu.matmul %495, %496, %cst_188 {dimension_numbers = #tpu.dot_dimension_numbers<[1], [0], [0], [1], [0, 0, 1, 1], [], []>} : vector<8x256xbf16>, vector<256x1024xbf16>, vector<8x1024xf32> -> vector<8x1024xf32>
    %498 = vector.extract_strided_slice %497 {offsets = [0, 0], sizes = [8, 512], strides = [1, 1]} : vector<8x1024xf32> to vector<8x512xf32>
    %499 = arith.addf %498, %10 : vector<8x512xf32>
    %500 = vector.extract_strided_slice %497 {offsets = [0, 512], sizes = [8, 512], strides = [1, 1]} : vector<8x1024xf32> to vector<8x512xf32>
    %501 = vector.extract_strided_slice %499 {offsets = [0, 0], sizes = [8, 128], strides = [1, 1]} : vector<8x512xf32> to vector<8x128xf32>
    %cst_189 = arith.constant 5.000000e-01 : f32
    %502 = vector.broadcast %cst_189 : f32 to vector<8x128xf32>
    %503 = arith.mulf %502, %501 : vector<8x128xf32>
    %504 = math.tanh %503 : vector<8x128xf32>
    %cst_190 = arith.constant 5.000000e-01 : f32
    %505 = vector.broadcast %cst_190 : f32 to vector<8x128xf32>
    %506 = arith.mulf %505, %504 : vector<8x128xf32>
    %cst_191 = arith.constant 5.000000e-01 : f32
    %507 = vector.broadcast %cst_191 : f32 to vector<8x128xf32>
    %508 = arith.addf %506, %507 : vector<8x128xf32>
    %509 = vector.extract_strided_slice %499 {offsets = [0, 128], sizes = [8, 128], strides = [1, 1]} : vector<8x512xf32> to vector<8x128xf32>
    %cst_192 = arith.constant 5.000000e-01 : f32
    %510 = vector.broadcast %cst_192 : f32 to vector<8x128xf32>
    %511 = arith.mulf %510, %509 : vector<8x128xf32>
    %512 = math.tanh %511 : vector<8x128xf32>
    %cst_193 = arith.constant 5.000000e-01 : f32
    %513 = vector.broadcast %cst_193 : f32 to vector<8x128xf32>
    %514 = arith.mulf %513, %512 : vector<8x128xf32>
    %cst_194 = arith.constant 5.000000e-01 : f32
    %515 = vector.broadcast %cst_194 : f32 to vector<8x128xf32>
    %516 = arith.addf %514, %515 : vector<8x128xf32>
    %517 = vector.extract_strided_slice %499 {offsets = [0, 256], sizes = [8, 128], strides = [1, 1]} : vector<8x512xf32> to vector<8x128xf32>
    %518 = math.tanh %517 : vector<8x128xf32>
    %519 = vector.extract_strided_slice %499 {offsets = [0, 384], sizes = [8, 128], strides = [1, 1]} : vector<8x512xf32> to vector<8x128xf32>
    %cst_195 = arith.constant 5.000000e-01 : f32
    %520 = vector.broadcast %cst_195 : f32 to vector<8x128xf32>
    %521 = arith.mulf %520, %519 : vector<8x128xf32>
    %522 = math.tanh %521 : vector<8x128xf32>
    %cst_196 = arith.constant 5.000000e-01 : f32
    %523 = vector.broadcast %cst_196 : f32 to vector<8x128xf32>
    %524 = arith.mulf %523, %522 : vector<8x128xf32>
    %cst_197 = arith.constant 5.000000e-01 : f32
    %525 = vector.broadcast %cst_197 : f32 to vector<8x128xf32>
    %526 = arith.addf %524, %525 : vector<8x128xf32>
    %527 = arith.mulf %516, %455 : vector<8x128xf32>
    %528 = arith.mulf %508, %518 : vector<8x128xf32>
    %529 = arith.addf %527, %528 : vector<8x128xf32>
    %530 = math.tanh %529 : vector<8x128xf32>
    %531 = arith.mulf %526, %530 : vector<8x128xf32>
    %532 = arith.truncf %531 : vector<8x128xf32> to vector<8x128xbf16>
    %c0_198 = arith.constant 0 : index
    %c128_199 = arith.constant 128 : index
    %533 = vector.load %arg8[%c0_198, %c128_199] : memref<8x256xbf16, #tpu.memory_space<vmem>>, vector<8x128xbf16>
    tpu.vector_store %arg8[%c0_198, %c128_199], %532 {strides = array<i32>} : memref<8x256xbf16, #tpu.memory_space<vmem>>, vector<8x128xbf16>,
    %534 = vector.extract_strided_slice %7 {offsets = [56, 0], sizes = [8, 512], strides = [1, 1]} : vector<64x512xf32> to vector<8x512xf32>
    %535 = arith.addf %534, %500 : vector<8x512xf32>
    %536 = vector.extract_strided_slice %535 {offsets = [0, 0], sizes = [8, 128], strides = [1, 1]} : vector<8x512xf32> to vector<8x128xf32>
    %cst_200 = arith.constant 5.000000e-01 : f32
    %537 = vector.broadcast %cst_200 : f32 to vector<8x128xf32>
    %538 = arith.mulf %537, %536 : vector<8x128xf32>
    %539 = math.tanh %538 : vector<8x128xf32>
    %cst_201 = arith.constant 5.000000e-01 : f32
    %540 = vector.broadcast %cst_201 : f32 to vector<8x128xf32>
    %541 = arith.mulf %540, %539 : vector<8x128xf32>
    %cst_202 = arith.constant 5.000000e-01 : f32
    %542 = vector.broadcast %cst_202 : f32 to vector<8x128xf32>
    %543 = arith.addf %541, %542 : vector<8x128xf32>
    %544 = vector.extract_strided_slice %535 {offsets = [0, 128], sizes = [8, 128], strides = [1, 1]} : vector<8x512xf32> to vector<8x128xf32>
    %cst_203 = arith.constant 5.000000e-01 : f32
    %545 = vector.broadcast %cst_203 : f32 to vector<8x128xf32>
    %546 = arith.mulf %545, %544 : vector<8x128xf32>
    %547 = math.tanh %546 : vector<8x128xf32>
    %cst_204 = arith.constant 5.000000e-01 : f32
    %548 = vector.broadcast %cst_204 : f32 to vector<8x128xf32>
    %549 = arith.mulf %548, %547 : vector<8x128xf32>
    %cst_205 = arith.constant 5.000000e-01 : f32
    %550 = vector.broadcast %cst_205 : f32 to vector<8x128xf32>
    %551 = arith.addf %549, %550 : vector<8x128xf32>
    %552 = vector.extract_strided_slice %535 {offsets = [0, 256], sizes = [8, 128], strides = [1, 1]} : vector<8x512xf32> to vector<8x128xf32>
    %553 = math.tanh %552 : vector<8x128xf32>
    %554 = vector.extract_strided_slice %535 {offsets = [0, 384], sizes = [8, 128], strides = [1, 1]} : vector<8x512xf32> to vector<8x128xf32>
    %cst_206 = arith.constant 5.000000e-01 : f32
    %555 = vector.broadcast %cst_206 : f32 to vector<8x128xf32>
    %556 = arith.mulf %555, %554 : vector<8x128xf32>
    %557 = math.tanh %556 : vector<8x128xf32>
    %cst_207 = arith.constant 5.000000e-01 : f32
    %558 = vector.broadcast %cst_207 : f32 to vector<8x128xf32>
    %559 = arith.mulf %558, %557 : vector<8x128xf32>
    %cst_208 = arith.constant 5.000000e-01 : f32
    %560 = vector.broadcast %cst_208 : f32 to vector<8x128xf32>
    %561 = arith.addf %559, %560 : vector<8x128xf32>
    %562 = arith.mulf %551, %490 : vector<8x128xf32>
    %563 = arith.mulf %543, %553 : vector<8x128xf32>
    %564 = arith.addf %562, %563 : vector<8x128xf32>
    %565 = math.tanh %564 : vector<8x128xf32>
    %566 = arith.mulf %561, %565 : vector<8x128xf32>
    %567 = arith.truncf %566 : vector<8x128xf32> to vector<8x128xbf16>
    %c0_209 = arith.constant 0 : index
    %c0_210 = arith.constant 0 : index
    %568 = vector.load %arg8[%c0_209, %c0_210] : memref<8x256xbf16, #tpu.memory_space<vmem>>, vector<8x128xbf16>
    tpu.vector_store %arg8[%c0_209, %c0_210], %567 {strides = array<i32>} : memref<8x256xbf16, #tpu.memory_space<vmem>>, vector<8x128xbf16>,
    %c0_211 = arith.constant 0 : index
    %c0_212 = arith.constant 0 : index
    %569 = vector.load %arg8[%c0_211, %c0_212] : memref<8x256xbf16, #tpu.memory_space<vmem>>, vector<8x256xbf16>
    %c0_213 = arith.constant 0 : index
    %c0_214 = arith.constant 0 : index
    %570 = vector.load %arg3[%c0_213, %c0_214] : memref<256x1024xbf16, #tpu.memory_space<vmem>>, vector<256x1024xbf16>
    %cst_215 = arith.constant dense<0.000000e+00> : vector<8x1024xf32>
    %571 = tpu.matmul %569, %570, %cst_215 {dimension_numbers = #tpu.dot_dimension_numbers<[1], [0], [0], [1], [0, 0, 1, 1], [], []>} : vector<8x256xbf16>, vector<256x1024xbf16>, vector<8x1024xf32> -> vector<8x1024xf32>
    %572 = vector.extract_strided_slice %571 {offsets = [0, 0], sizes = [8, 512], strides = [1, 1]} : vector<8x1024xf32> to vector<8x512xf32>
    %573 = arith.addf %572, %10 : vector<8x512xf32>
    %574 = vector.extract_strided_slice %573 {offsets = [0, 0], sizes = [8, 128], strides = [1, 1]} : vector<8x512xf32> to vector<8x128xf32>
    %cst_216 = arith.constant 5.000000e-01 : f32
    %575 = vector.broadcast %cst_216 : f32 to vector<8x128xf32>
    %576 = arith.mulf %575, %574 : vector<8x128xf32>
    %577 = math.tanh %576 : vector<8x128xf32>
    %cst_217 = arith.constant 5.000000e-01 : f32
    %578 = vector.broadcast %cst_217 : f32 to vector<8x128xf32>
    %579 = arith.mulf %578, %577 : vector<8x128xf32>
    %cst_218 = arith.constant 5.000000e-01 : f32
    %580 = vector.broadcast %cst_218 : f32 to vector<8x128xf32>
    %581 = arith.addf %579, %580 : vector<8x128xf32>
    %582 = vector.extract_strided_slice %573 {offsets = [0, 128], sizes = [8, 128], strides = [1, 1]} : vector<8x512xf32> to vector<8x128xf32>
    %cst_219 = arith.constant 5.000000e-01 : f32
    %583 = vector.broadcast %cst_219 : f32 to vector<8x128xf32>
    %584 = arith.mulf %583, %582 : vector<8x128xf32>
    %585 = math.tanh %584 : vector<8x128xf32>
    %cst_220 = arith.constant 5.000000e-01 : f32
    %586 = vector.broadcast %cst_220 : f32 to vector<8x128xf32>
    %587 = arith.mulf %586, %585 : vector<8x128xf32>
    %cst_221 = arith.constant 5.000000e-01 : f32
    %588 = vector.broadcast %cst_221 : f32 to vector<8x128xf32>
    %589 = arith.addf %587, %588 : vector<8x128xf32>
    %590 = vector.extract_strided_slice %573 {offsets = [0, 256], sizes = [8, 128], strides = [1, 1]} : vector<8x512xf32> to vector<8x128xf32>
    %591 = math.tanh %590 : vector<8x128xf32>
    %592 = vector.extract_strided_slice %573 {offsets = [0, 384], sizes = [8, 128], strides = [1, 1]} : vector<8x512xf32> to vector<8x128xf32>
    %cst_222 = arith.constant 5.000000e-01 : f32
    %593 = vector.broadcast %cst_222 : f32 to vector<8x128xf32>
    %594 = arith.mulf %593, %592 : vector<8x128xf32>
    %595 = math.tanh %594 : vector<8x128xf32>
    %cst_223 = arith.constant 5.000000e-01 : f32
    %596 = vector.broadcast %cst_223 : f32 to vector<8x128xf32>
    %597 = arith.mulf %596, %595 : vector<8x128xf32>
    %cst_224 = arith.constant 5.000000e-01 : f32
    %598 = vector.broadcast %cst_224 : f32 to vector<8x128xf32>
    %599 = arith.addf %597, %598 : vector<8x128xf32>
    %600 = arith.mulf %589, %529 : vector<8x128xf32>
    %601 = arith.mulf %581, %591 : vector<8x128xf32>
    %602 = arith.addf %600, %601 : vector<8x128xf32>
    %603 = math.tanh %602 : vector<8x128xf32>
    %604 = arith.mulf %599, %603 : vector<8x128xf32>
    %605 = arith.truncf %604 : vector<8x128xf32> to vector<8x128xbf16>
    %c0_225 = arith.constant 0 : index
    %c128_226 = arith.constant 128 : index
    %606 = vector.load %arg8[%c0_225, %c128_226] : memref<8x256xbf16, #tpu.memory_space<vmem>>, vector<8x128xbf16>
    tpu.vector_store %arg8[%c0_225, %c128_226], %605 {strides = array<i32>} : memref<8x256xbf16, #tpu.memory_space<vmem>>, vector<8x128xbf16>,
    %c0_227 = arith.constant 0 : index
    %c128_228 = arith.constant 128 : index
    %607 = vector.load %arg8[%c0_227, %c128_228] : memref<8x256xbf16, #tpu.memory_space<vmem>>, vector<8x128xbf16>
    %c0_229 = arith.constant 0 : index
    %c0_230 = arith.constant 0 : index
    %608 = vector.load %arg5[%c0_229, %c0_230] : memref<128x128xbf16, #tpu.memory_space<vmem>>, vector<128x128xbf16>
    %cst_231 = arith.constant dense<0.000000e+00> : vector<8x128xf32>
    %609 = tpu.matmul %607, %608, %cst_231 {dimension_numbers = #tpu.dot_dimension_numbers<[1], [0], [0], [1], [0, 0, 1, 1], [], []>} : vector<8x128xbf16>, vector<128x128xbf16>, vector<8x128xf32> -> vector<8x128xf32>
    %c0_232 = arith.constant 0 : index
    %c0_233 = arith.constant 0 : index
    %610 = vector.load %arg6[%c0_232, %c0_233] : memref<1x128xf32, #tpu.memory_space<vmem>>, vector<1x128xf32>
    %611 = vector.broadcast %610 : vector<1x128xf32> to vector<8x128xf32>
    %612 = arith.addf %609, %611 : vector<8x128xf32>
    %c0_234 = arith.constant 0 : index
    %c0_235 = arith.constant 0 : index
    %613 = vector.load %arg7[%c0_234, %c0_235] : memref<8x128xf32, #tpu.memory_space<vmem>>, vector<8x128xf32>
    tpu.vector_store %arg7[%c0_234, %c0_235], %612 {strides = array<i32>} : memref<8x128xf32, #tpu.memory_space<vmem>>, vector<8x128xf32>,
    return
  }
}

</mosaic_0001>

<bundles_post_ra>
// kernel: tpu_custom_call.1
= control target key start
LH: loop header
LB: loop body
LE: loop exit
PB: predicated region body
PF: predicated region fallthrough
CT: control target
= control target key end

     0   :  { %12 = vsyncpa [#allocation4], 0  ;;  %s13715_s0 = inlined_call_operand.vmem [shape: f32[64,1], index: 0, kind: input, shape index: {}]   ;;  %s13716_s1 = inlined_call_operand.vmem [shape: f32[1,512], index: 1, kind: input, shape index: {}]   ;;  %s13717_s2 = inlined_call_operand.hbm [shape: f32[1,512], index: 2, kind: input, shape index: {}]   ;;  %s13718_s3 = inlined_call_operand.hbm [shape: bf16[256,1024], index: 3, kind: input, shape index: {}]   ;;  %s13719_s4 = inlined_call_operand.hbm [shape: f32[1,512], index: 4, kind: input, shape index: {}]   ;;  %s13720_s5 = inlined_call_operand.vmem [shape: bf16[128,128], index: 5, kind: input, shape index: {}]   ;;  %s13721_s6 = inlined_call_operand.vmem [shape: f32[1,128], index: 6, kind: input, shape index: {}]   ;;  %s13722_s7 = inlined_call_operand.hbm [shape: f32[8,128], index: 7, kind: output, shape index: {}]  }
   0x1   :  { %13 = vsyncpa [#allocation7], 0  ;;  %s34_s26 = sshll.u32 %s13718_s3, 4  ;;  %s35_s26 = int_to_ptr.hbm [resolvable:$true] %s34_s26 }
   0x2   :  { %14 = vsyncpa [#allocation5], 0  ;;  %s13196_s27 = smov [#allocation6]   ;;  %s24_s8 = sshll.u32 %s13717_s2, 4  ;;  %s25_s8 = int_to_ptr.hbm [resolvable:$true] %s24_s8 }
   0x3   :  { %s36_s28 = sshll.u32 %s13196_s27, 4  ;;  %s13197_s9 = smov 512   ;;  %s37_s28 = int_to_ptr.vmem [resolvable:$true] %s36_s28 }
   0x4   :  { %s13198_s10 = smov 32   ;;  %s13199_s11 = smov [#allocation3]  }
   0x5   :  { %42 = dma.hbm_to_vmem [thread:$0]  %s35_s26, 16384, %s37_s28, [#allocation7], %s13197_s9, %s13197_s9, %s13198_s10  }
   0x6   :  { %s26_s12 = sshll.u32 %s13199_s11, 4  ;;  %s48_s15 = sshll.u32 %s13719_s4, 4  ;;  %s27_s12 = int_to_ptr.vmem [resolvable:$true] %s26_s12  ;;  %s49_s15 = int_to_ptr.hbm [resolvable:$true] %s48_s15 }
   0x7   :  { %29 = dma.hbm_to_vmem [thread:$0]  %s25_s8, 64, %s27_s12, [#allocation4]  }
   0x8   :  { %s13200_s3 = smov [#allocation8]  }
   0x9   :  { %s50_s16 = sshll.u32 %s13200_s3, 4  ;;  %s51_s16 = int_to_ptr.vmem [resolvable:$true] %s50_s16 }
   0xa   :  { %53 = dma.hbm_to_vmem [thread:$0]  %s49_s15, 64, %s51_s16, [#allocation7]  }
   0xb   :  { %13190 = dma.done.wait [#allocation4], 64  }
   0xc   :  { %13191 = vsyncadd [#allocation4], 4294967232 }
   0xd   :  { %13192 = dma.done.wait [#allocation7], 16448  }
   0xe   :  { %13193 = vsyncadd [#allocation7], 4294950848  ;;  %v13201_v0 = vmov 0   ;;  %v71_v1 = vld [vmem:[%s13715_s0] sm:$0xff]  ;;  %v8309_v2 = vld [vmem:[#allocation6 + $0x1c0] sm:$0xf] }
   0xf   :  { %12930 = vset.pattern.permute.xlu0 %v13201_v0  ;;  %213 = vst [vmem:[#allocation2] sm:$0xff] %v13201_v0  ;;  %12931 = vset.pattern.permute.xlu1 %v13201_v0  ;;  %v12015_v3 = vld [vmem:[#allocation6 + $0x1dc] sm:$0xf0]  ;;  %v12011_v7 = vld [vmem:[#allocation6 + $0x1c4] sm:$0xf]  ;;  %s13202_s22 = smov [#allocation9]  }
  0x10   :  { %12932 = vset.pattern.permute.xlu2 %v13201_v0  ;;  %82 = vperm.xlu0 %12930, %v71_v1   ;;  %v8565_v4 = vld [vmem:[#allocation6 + $0x3c0] sm:$0xf]  ;;  %v8310_v5 = vor.u32 %v12015_v3, %v8309_v2  ;;  %v8311_v8 = vld [vmem:[#allocation6 + $0x1e0] sm:$0xf0]  ;;  %s8072_s25 = sshll.u32 %s13722_s7, 4  ;;  %s8073_s25 = int_to_ptr.hbm [resolvable:$true] %s8072_s25 }
  0x11   :  { %v12079_v6 = vld [vmem:[#allocation6 + $0x3dc] sm:$0xf0]  ;;  %v8314_v10 = vor.u32 %v12011_v7, %v8311_v8  ;;  %v12075_v11 = vld [vmem:[#allocation6 + $0x3c4] sm:$0xf] }
  0x12   :  { %v8566_v9 = vor.u32 %v12079_v6, %v8565_v4  ;;  %v8567_v12 = vld [vmem:[#allocation6 + $0x3e0] sm:$0xf0]  ;;  %v8277_v13 = vld [vmem:[#allocation6 + $0x180] sm:$0xf]  ;;  %1014 = vmatpush.bf16.msra.mxu0 %v8310_v5 }
  0x13   :  { %v72_v14 = vld [vmem:[%s13715_s0 + $0x8] sm:$0xff]  ;;  %v8570_v15 = vor.u32 %v12075_v11, %v8567_v12  ;;  %1040 = vmatpush.bf16.msra.mxu2 %v8314_v10  ;;  %v12003_v21 = vld [vmem:[#allocation6 + $0x184] sm:$0xf] }
  0x14   :  { %v12007_v16 = vld [vmem:[#allocation6 + $0x19c] sm:$0xf0]  ;;  %1027 = vmatpush.bf16.msra.mxu1 %v8566_v9  ;;  %v8279_v22 = vld [vmem:[#allocation6 + $0x1a0] sm:$0xf0] }
  0x15   :  { %v8533_v17 = vld [vmem:[#allocation6 + $0x380] sm:$0xf]  ;;  %v8278_v19 = vor.u32 %v12007_v16, %v8277_v13  ;;  %v12067_v23 = vld [vmem:[#allocation6 + $0x384] sm:$0xf]  ;;  %1053 = vmatpush.bf16.msra.mxu3 %v8570_v15  ;;  %v8282_v24 = vor.u32 %v12003_v21, %v8279_v22 }
  0x16   :  { %v12071_v18 = vld [vmem:[#allocation6 + $0x39c] sm:$0xf0]  ;;  %v8535_v25 = vld [vmem:[#allocation6 + $0x3a0] sm:$0xf0] }
  0x17   :  { %v8534_v20 = vor.u32 %v12071_v18, %v8533_v17  ;;  %v8245_v26 = vld [vmem:[#allocation6 + $0x140] sm:$0xf]  ;;  %v8538_v28 = vor.u32 %v12067_v23, %v8535_v25  ;;  %v11995_v31 = vld [vmem:[#allocation6 + $0x144] sm:$0xf]  ;;  %1015 = vmatpush.bf16.msra.mxu0 %v8278_v19  ;;  %1041 = vmatpush.bf16.msra.mxu2 %v8282_v24 }
  0x18   :  { %v11999_v27 = vld [vmem:[#allocation6 + $0x15c] sm:$0xf0]  ;;  %v8247_v33 = vld [vmem:[#allocation6 + $0x160] sm:$0xf0]  ;;  %87 = vperm.xlu0 %12930, %v72_v14  }
  0x19   :  { %v8501_v29 = vld [vmem:[#allocation6 + $0x340] sm:$0xf]  ;;  %v8246_v32 = vor.u32 %v11999_v27, %v8245_v26  ;;  %v12059_v34 = vld [vmem:[#allocation6 + $0x344] sm:$0xf]  ;;  %1028 = vmatpush.bf16.msra.mxu1 %v8534_v20  ;;  %1054 = vmatpush.bf16.msra.mxu3 %v8538_v28  ;;  %v8250_v39 = vor.u32 %v11995_v31, %v8247_v33 }
  0x1a   :  { %v12063_v30 = vld [vmem:[#allocation6 + $0x35c] sm:$0xf0]  ;;  %v8503_v35 = vld [vmem:[#allocation6 + $0x360] sm:$0xf0] }
  0x1b   :  { %v8502_v36 = vor.u32 %v12063_v30, %v8501_v29  ;;  %v8213_v37 = vld [vmem:[#allocation6 + $0x100] sm:$0xf]  ;;  %v8506_v40 = vor.u32 %v12059_v34, %v8503_v35  ;;  %v11987_v43 = vld [vmem:[#allocation6 + $0x104] sm:$0xf]  ;;  %1016 = vmatpush.bf16.msra.mxu0 %v8246_v32  ;;  %1042 = vmatpush.bf16.msra.mxu2 %v8250_v39  ;;  %v8317_v35 = vld [vmem:[#allocation6 + $0x1c8] sm:$0xf] }
  0x1c   :  { %v11991_v38 = vld [vmem:[#allocation6 + $0x11c] sm:$0xf0]  ;;  %v8215_v44 = vld [vmem:[#allocation6 + $0x120] sm:$0xf0]  ;;  %v12080_v39 = vld [vmem:[#allocation6 + $0x3e4] sm:$0xf0] }
  0x1d   :  { %v8469_v41 = vld [vmem:[#allocation6 + $0x300] sm:$0xf]  ;;  %v12051_v45 = vld [vmem:[#allocation6 + $0x304] sm:$0xf]  ;;  %v8214_v47 = vor.u32 %v11991_v38, %v8213_v37  ;;  %1029 = vmatpush.bf16.msra.mxu1 %v8502_v36  ;;  %1055 = vmatpush.bf16.msra.mxu3 %v8506_v40  ;;  %v8218_v50 = vor.u32 %v11987_v43, %v8215_v44  ;;  %v12016_v37 = vld [vmem:[#allocation6 + $0x1e4] sm:$0xf0] }
  0x1e   :  { %v12055_v42 = vld [vmem:[#allocation6 + $0x31c] sm:$0xf0]  ;;  %v8471_v46 = vld [vmem:[#allocation6 + $0x320] sm:$0xf0]  ;;  %v8573_v38 = vld [vmem:[#allocation6 + $0x3c8] sm:$0xf]  ;;  %v8318_v40 = vor.u32 %v12016_v37, %v8317_v35 }
  0x1f   :  { %v8470_v48 = vor.u32 %v12055_v42, %v8469_v41  ;;  %v77_v49 = vld [vmem:[%s13715_s0 + $0x30] sm:$0xff]  ;;  %v8474_v51 = vor.u32 %v12051_v45, %v8471_v46  ;;  %1017 = vmatpush.bf16.msra.mxu0 %v8214_v47  ;;  %1043 = vmatpush.bf16.msra.mxu2 %v8218_v50  ;;  %v8181_v52 = vld [vmem:[#allocation6 + $0xc0] sm:$0xf]  ;;  %v8574_v41 = vor.u32 %v12080_v39, %v8573_v38  ;;  %v12012_v42 = vld [vmem:[#allocation6 + $0x1cc] sm:$0xf] }
  0x20   :  { %112 = vperm.xlu0 %12930, %v77_v49   ;;  %v11983_v53 = vld [vmem:[#allocation6 + $0xdc] sm:$0xf0]  ;;  %v11979_v57 = vld [vmem:[#allocation6 + $0xc4] sm:$0xf]  ;;  %v8319_v43 = vld [vmem:[#allocation6 + $0x1e8] sm:$0xf0] }
  0x21   :  { %1030 = vmatpush.bf16.msra.mxu1 %v8470_v48  ;;  %1056 = vmatpush.bf16.msra.mxu3 %v8474_v51  ;;  %v8437_v54 = vld [vmem:[#allocation6 + $0x2c0] sm:$0xf]  ;;  %v8182_v55 = vor.u32 %v11983_v53, %v8181_v52  ;;  %v8183_v58 = vld [vmem:[#allocation6 + $0xe0] sm:$0xf0]  ;;  %v12076_v44 = vld [vmem:[#allocation6 + $0x3cc] sm:$0xf]  ;;  %v8322_v45 = vor.u32 %v12012_v42, %v8319_v43 }
  0x22   :  { %v12047_v56 = vld [vmem:[#allocation6 + $0x2dc] sm:$0xf0]  ;;  %v8186_v60 = vor.u32 %v11979_v57, %v8183_v58  ;;  %v12043_v61 = vld [vmem:[#allocation6 + $0x2c4] sm:$0xf]  ;;  %v8575_v46 = vld [vmem:[#allocation6 + $0x3e8] sm:$0xf0] }
  0x23   :  { %v8438_v59 = vor.u32 %v12047_v56, %v8437_v54  ;;  %v8439_v62 = vld [vmem:[#allocation6 + $0x2e0] sm:$0xf0]  ;;  %1018 = vmatpush.bf16.msra.mxu0 %v8182_v55  ;;  %v8149_v0 = vld [vmem:[#allocation6 + $0x80] sm:$0xf]  ;;  %v8285_v47 = vld [vmem:[#allocation6 + $0x188] sm:$0xf]  ;;  %v8578_v49 = vor.u32 %v12076_v44, %v8575_v46 }
  0x24   :  { %v8442_v63 = vor.u32 %v12043_v61, %v8439_v62  ;;  %1044 = vmatpush.bf16.msra.mxu2 %v8186_v60  ;;  %v11975_v1 = vld [vmem:[#allocation6 + $0x9c] sm:$0xf0]  ;;  %v11971_v5 = vld [vmem:[#allocation6 + $0x84] sm:$0xf]  ;;  %v12008_v48 = vld [vmem:[#allocation6 + $0x1a4] sm:$0xf0] }
  0x25   :  { %1031 = vmatpush.bf16.msra.mxu1 %v8438_v59  ;;  %v8405_v2 = vld [vmem:[#allocation6 + $0x280] sm:$0xf]  ;;  %v8150_v3 = vor.u32 %v11975_v1, %v8149_v0  ;;  %v8151_v6 = vld [vmem:[#allocation6 + $0xa0] sm:$0xf0]  ;;  %v8286_v50 = vor.u32 %v12008_v48, %v8285_v47  ;;  %v8541_v51 = vld [vmem:[#allocation6 + $0x388] sm:$0xf] }
  0x26   :  { %1057 = vmatpush.bf16.msra.mxu3 %v8442_v63  ;;  %v12039_v4 = vld [vmem:[#allocation6 + $0x29c] sm:$0xf0]  ;;  %v8154_v8 = vor.u32 %v11971_v5, %v8151_v6  ;;  %v12035_v9 = vld [vmem:[#allocation6 + $0x284] sm:$0xf]  ;;  %v12072_v52 = vld [vmem:[#allocation6 + $0x3a4] sm:$0xf0] }
  0x27   :  { %v8406_v7 = vor.u32 %v12039_v4, %v8405_v2  ;;  %v8407_v10 = vld [vmem:[#allocation6 + $0x2a0] sm:$0xf0]  ;;  %1019 = vmatpush.bf16.msra.mxu0 %v8150_v3  ;;  %v8117_v12 = vld [vmem:[#allocation6 + $0x40] sm:$0xf]  ;;  %v12004_v53 = vld [vmem:[#allocation6 + $0x18c] sm:$0xf]  ;;  %v8542_v54 = vor.u32 %v12072_v52, %v8541_v51 }
  0x28   :  { %v8410_v11 = vor.u32 %v12035_v9, %v8407_v10  ;;  %1045 = vmatpush.bf16.msra.mxu2 %v8154_v8  ;;  %v11967_v13 = vld [vmem:[#allocation6 + $0x5c] sm:$0xf0]  ;;  %v11963_v17 = vld [vmem:[#allocation6 + $0x44] sm:$0xf]  ;;  %v8287_v55 = vld [vmem:[#allocation6 + $0x1a8] sm:$0xf0] }
  0x29   :  { %1032 = vmatpush.bf16.msra.mxu1 %v8406_v7  ;;  %v8373_v14 = vld [vmem:[#allocation6 + $0x240] sm:$0xf]  ;;  %v8118_v15 = vor.u32 %v11967_v13, %v8117_v12  ;;  %v8119_v18 = vld [vmem:[#allocation6 + $0x60] sm:$0xf0]  ;;  %v12068_v56 = vld [vmem:[#allocation6 + $0x38c] sm:$0xf]  ;;  %v8290_v59 = vor.u32 %v12004_v53, %v8287_v55 }
  0x2a   :  { %1058 = vmatpush.bf16.msra.mxu3 %v8410_v11  ;;  %v12031_v16 = vld [vmem:[#allocation6 + $0x25c] sm:$0xf0]  ;;  %v8122_v20 = vor.u32 %v11963_v17, %v8119_v18  ;;  %v12027_v21 = vld [vmem:[#allocation6 + $0x244] sm:$0xf]  ;;  %v8543_v57 = vld [vmem:[#allocation6 + $0x3a8] sm:$0xf0] }
  0x2b   :  { %v8374_v19 = vor.u32 %v12031_v16, %v8373_v14  ;;  %v8375_v22 = vld [vmem:[#allocation6 + $0x260] sm:$0xf0]  ;;  %1020 = vmatpush.bf16.msra.mxu0 %v8118_v15  ;;  %v8085_v24 = vld [vmem:[#allocation6] sm:$0xf]  ;;  %v79_v58 = vld [vmem:[%s13716_s1] sm:$0xf]  ;;  %v8546_v60 = vor.u32 %v12068_v56, %v8543_v57 }
  0x2c   :  { %v8378_v23 = vor.u32 %v12027_v21, %v8375_v22  ;;  %1046 = vmatpush.bf16.msra.mxu2 %v8122_v20  ;;  %v11959_v25 = vld [vmem:[#allocation6 + $0x1c] sm:$0xf0]  ;;  %v11955_v29 = vld [vmem:[#allocation6 + $0x4] sm:$0xf]  ;;  %v8253_v61 = vld [vmem:[#allocation6 + $0x148] sm:$0xf] }
  0x2d   :  { %1033 = vmatpush.bf16.msra.mxu1 %v8374_v19  ;;  %v8341_v26 = vld [vmem:[#allocation6 + $0x200] sm:$0xf]  ;;  %v8086_v27 = vor.u32 %v11959_v25, %v8085_v24  ;;  %v8087_v30 = vld [vmem:[#allocation6 + $0x20] sm:$0xf0]  ;;  %v12000_v62 = vld [vmem:[#allocation6 + $0x164] sm:$0xf0] }
  0x2e   :  { %1059 = vmatpush.bf16.msra.mxu3 %v8378_v23  ;;  %v12023_v28 = vld [vmem:[#allocation6 + $0x21c] sm:$0xf0]  ;;  %v8090_v32 = vor.u32 %v11955_v29, %v8087_v30  ;;  %v12019_v33 = vld [vmem:[#allocation6 + $0x204] sm:$0xf]  ;;  %v8509_v63 = vld [vmem:[#allocation6 + $0x348] sm:$0xf]  ;;  %v8254_v0 = vor.u32 %v12000_v62, %v8253_v61 }
  0x2f   :  { %v8342_v31 = vor.u32 %v12023_v28, %v8341_v26  ;;  %v8343_v34 = vld [vmem:[#allocation6 + $0x220] sm:$0xf0]  ;;  %1021 = vmatpush.bf16.msra.mxu0 %v8086_v27  ;;  %v12064_v1 = vld [vmem:[#allocation6 + $0x364] sm:$0xf0]  ;;  %v11996_v2 = vld [vmem:[#allocation6 + $0x14c] sm:$0xf] }
  0x30   :  { %v8346_v36 = vor.u32 %v12019_v33, %v8343_v34  ;;  %1047 = vmatpush.bf16.msra.mxu2 %v8090_v32  ;;  %v8255_v3 = vld [vmem:[#allocation6 + $0x168] sm:$0xf0]  ;;  %v8510_v4 = vor.u32 %v12064_v1, %v8509_v63  ;;  %v13264_v8 = vperm.slane %v79_v58, 0  ;;  %v13266_v9 = vperm.slane %v79_v58, 1  ;;  %v161_v10 = vld [vmem:[#allocation3] sm:$0xf] }
  0x31   :  { %1034 = vmatpush.bf16.msra.mxu1 %v8342_v31  ;;  %v8258_v5 = vor.u32 %v11996_v2, %v8255_v3  ;;  %v12060_v6 = vld [vmem:[#allocation6 + $0x34c] sm:$0xf]  ;;  %v8221_v12 = vld [vmem:[#allocation6 + $0x108] sm:$0xf]  ;;  %v13268_v19 = vperm.slane %v79_v58, 2  ;;  %v13270_v20 = vperm.slane %v79_v58, 3 }
  0x32   :  { %1060 = vmatpush.bf16.msra.mxu3 %v8346_v36  ;;  %v8511_v7 = vld [vmem:[#allocation6 + $0x368] sm:$0xf0]  ;;  %v11992_v13 = vld [vmem:[#allocation6 + $0x124] sm:$0xf0]  ;;  %v13272_v25 = vperm.slane %v161_v10, 0  ;;  %v13274_v26 = vperm.slane %v161_v10, 1 }
  0x33   :  { %1066 = vmatpush.bf16.msrb.mxu0 %v8318_v40  ;;  %v8514_v11 = vor.u32 %v12060_v6, %v8511_v7  ;;  %v8477_v14 = vld [vmem:[#allocation6 + $0x308] sm:$0xf]  ;;  %v8222_v15 = vor.u32 %v11992_v13, %v8221_v12  ;;  %v11988_v17 = vld [vmem:[#allocation6 + $0x10c] sm:$0xf]  ;;  %v13276_v27 = vperm.slane %v161_v10, 3  ;;  %v13281_v42 = vperm.slane %v161_v10, 2 }
  0x34   :  { %1092 = vmatpush.bf16.msrb.mxu2 %v8322_v45  ;;  %v12056_v16 = vld [vmem:[#allocation6 + $0x324] sm:$0xf0]  ;;  %v8223_v18 = vld [vmem:[#allocation6 + $0x128] sm:$0xf0]  ;;  %s8070_s1 = sshll.u32 %s13202_s22, 4  ;;  %s8071_s1 = int_to_ptr.vmem [resolvable:$true] %s8070_s1 }
  0x35   :  { %1079 = vmatpush.bf16.msrb.mxu1 %v8574_v41  ;;  %v8478_v21 = vor.u32 %v12056_v16, %v8477_v14  ;;  %v8226_v22 = vor.u32 %v11988_v17, %v8223_v18  ;;  %v12052_v23 = vld [vmem:[#allocation6 + $0x30c] sm:$0xf]  ;;  %v8189_v29 = vld [vmem:[#allocation6 + $0xc8] sm:$0xf] }
  0x36   :  { %1105 = vmatpush.bf16.msrb.mxu3 %v8578_v49  ;;  %v8479_v24 = vld [vmem:[#allocation6 + $0x328] sm:$0xf0]  ;;  %v11984_v30 = vld [vmem:[#allocation6 + $0xe4] sm:$0xf0] }
  0x37   :  { %1067 = vmatpush.bf16.msrb.mxu0 %v8286_v50  ;;  %v8482_v28 = vor.u32 %v12052_v23, %v8479_v24  ;;  %v8445_v31 = vld [vmem:[#allocation6 + $0x2c8] sm:$0xf]  ;;  %v8190_v33 = vor.u32 %v11984_v30, %v8189_v29  ;;  %v11980_v35 = vld [vmem:[#allocation6 + $0xcc] sm:$0xf] }
  0x38   :  { %1093 = vmatpush.bf16.msrb.mxu2 %v8290_v59  ;;  %v12048_v34 = vld [vmem:[#allocation6 + $0x2e4] sm:$0xf0]  ;;  %v8191_v36 = vld [vmem:[#allocation6 + $0xe8] sm:$0xf0] }
  0x39   :  { %1080 = vmatpush.bf16.msrb.mxu1 %v8542_v54  ;;  %v12044_v40 = vld [vmem:[#allocation6 + $0x2cc] sm:$0xf]  ;;  %v8446_v43 = vor.u32 %v12048_v34, %v8445_v31  ;;  %v8194_v44 = vor.u32 %v11980_v35, %v8191_v36  ;;  %v8157_v50 = vld [vmem:[#allocation6 + $0x88] sm:$0xf] }
  0x3a   :  { %1106 = vmatpush.bf16.msrb.mxu3 %v8546_v60  ;;  %v8447_v41 = vld [vmem:[#allocation6 + $0x2e8] sm:$0xf0]  ;;  %v11976_v51 = vld [vmem:[#allocation6 + $0xa4] sm:$0xf0] }
  0x3b   :  { %1068 = vmatpush.bf16.msrb.mxu0 %v8254_v0  ;;  %v8450_v45 = vor.u32 %v12044_v40, %v8447_v41  ;;  %v8413_v52 = vld [vmem:[#allocation6 + $0x288] sm:$0xf]  ;;  %v8158_v53 = vor.u32 %v11976_v51, %v8157_v50  ;;  %v11972_v55 = vld [vmem:[#allocation6 + $0x8c] sm:$0xf]  ;;  %v8325_v50 = vld [vmem:[#allocation6 + $0x1d0] sm:$0xf] }
  0x3c   :  { %1094 = vmatpush.bf16.msrb.mxu2 %v8258_v5  ;;  %v12040_v54 = vld [vmem:[#allocation6 + $0x2a4] sm:$0xf0]  ;;  %v8159_v56 = vld [vmem:[#allocation6 + $0xa8] sm:$0xf0]  ;;  %v12017_v51 = vld [vmem:[#allocation6 + $0x1ec] sm:$0xf0] }
  0x3d   :  { %1081 = vmatpush.bf16.msrb.mxu1 %v8510_v4  ;;  %v12036_v59 = vld [vmem:[#allocation6 + $0x28c] sm:$0xf]  ;;  %v8414_v61 = vor.u32 %v12040_v54, %v8413_v52  ;;  %v8162_v62 = vor.u32 %v11972_v55, %v8159_v56  ;;  %v8125_v2 = vld [vmem:[#allocation6 + $0x48] sm:$0xf]  ;;  %v8581_v52 = vld [vmem:[#allocation6 + $0x3d0] sm:$0xf] }
  0x3e   :  { %1107 = vmatpush.bf16.msrb.mxu3 %v8514_v11  ;;  %v8415_v63 = vld [vmem:[#allocation6 + $0x2a8] sm:$0xf0]  ;;  %v11968_v3 = vld [vmem:[#allocation6 + $0x64] sm:$0xf0]  ;;  %v12081_v54 = vld [vmem:[#allocation6 + $0x3ec] sm:$0xf0] }
  0x3f   :  { %1069 = vmatpush.bf16.msrb.mxu0 %v8222_v15  ;;  %v8418_v1 = vor.u32 %v12036_v59, %v8415_v63  ;;  %v8381_v4 = vld [vmem:[#allocation6 + $0x248] sm:$0xf]  ;;  %v8126_v5 = vor.u32 %v11968_v3, %v8125_v2  ;;  %v11964_v7 = vld [vmem:[#allocation6 + $0x4c] sm:$0xf]  ;;  %v12013_v55 = vld [vmem:[#allocation6 + $0x1d4] sm:$0xf]  ;;  %v8326_v63 = vor.u32 %v12017_v51, %v8325_v50 }
  0x40   :  { %1095 = vmatpush.bf16.msrb.mxu2 %v8226_v22  ;;  %v12032_v6 = vld [vmem:[#allocation6 + $0x264] sm:$0xf0]  ;;  %v8127_v10 = vld [vmem:[#allocation6 + $0x68] sm:$0xf0]  ;;  %v12077_v59 = vld [vmem:[#allocation6 + $0x3d4] sm:$0xf] }
  0x41   :  { %1082 = vmatpush.bf16.msrb.mxu1 %v8478_v21  ;;  %v12028_v11 = vld [vmem:[#allocation6 + $0x24c] sm:$0xf]  ;;  %v8093_v13 = vld [vmem:[#allocation6 + $0x8] sm:$0xf]  ;;  %v8382_v14 = vor.u32 %v12032_v6, %v8381_v4  ;;  %v8130_v15 = vor.u32 %v11964_v7, %v8127_v10  ;;  %v12009_v2 = vld [vmem:[#allocation6 + $0x1ac] sm:$0xf0] }
  0x42   :  { %1108 = vmatpush.bf16.msrb.mxu3 %v8482_v28  ;;  %v8383_v12 = vld [vmem:[#allocation6 + $0x268] sm:$0xf0]  ;;  %v11960_v17 = vld [vmem:[#allocation6 + $0x24] sm:$0xf0]  ;;  %v12073_v6 = vld [vmem:[#allocation6 + $0x3ac] sm:$0xf0] }
  0x43   :  { %1070 = vmatpush.bf16.msrb.mxu0 %v8190_v33  ;;  %v8386_v16 = vor.u32 %v12028_v11, %v8383_v12  ;;  %v8349_v18 = vld [vmem:[#allocation6 + $0x208] sm:$0xf]  ;;  %v11956_v22 = vld [vmem:[#allocation6 + $0xc] sm:$0xf]  ;;  %v8094_v28 = vor.u32 %v11960_v17, %v8093_v13  ;;  %v12005_v7 = vld [vmem:[#allocation6 + $0x194] sm:$0xf] }
  0x44   :  { %1096 = vmatpush.bf16.msrb.mxu2 %v8194_v44  ;;  %v12024_v21 = vld [vmem:[#allocation6 + $0x224] sm:$0xf0]  ;;  %v8095_v23 = vld [vmem:[#allocation6 + $0x28] sm:$0xf0]  ;;  %v8295_v10 = vld [vmem:[#allocation6 + $0x1b0] sm:$0xf0] }
  0x45   :  { %1083 = vmatpush.bf16.msrb.mxu1 %v8446_v43  ;;  %v12020_v24 = vld [vmem:[#allocation6 + $0x20c] sm:$0xf]  ;;  %v8350_v29 = vor.u32 %v12024_v21, %v8349_v18  ;;  %v12069_v11 = vld [vmem:[#allocation6 + $0x394] sm:$0xf]  ;;  %v8298_v17 = vor.u32 %v12005_v7, %v8295_v10  ;;  %v8517_v21 = vld [vmem:[#allocation6 + $0x350] sm:$0xf] }
  0x46   :  { %1109 = vmatpush.bf16.msrb.mxu3 %v8450_v45  ;;  %v8351_v30 = vld [vmem:[#allocation6 + $0x228] sm:$0xf0]  ;;  %v8551_v12 = vld [vmem:[#allocation6 + $0x3b0] sm:$0xf0]  ;;  %v8453_v50 = vld [vmem:[#allocation6 + $0x2d0] sm:$0xf] }
  0x47   :  { %1071 = vmatpush.bf16.msrb.mxu0 %v8158_v53  ;;  %v8354_v35 = vor.u32 %v12020_v24, %v8351_v30  ;;  %v8554_v18 = vor.u32 %v12069_v11, %v8551_v12  ;;  %v8263_v24 = vld [vmem:[#allocation6 + $0x170] sm:$0xf0]  ;;  %v12049_v51 = vld [vmem:[#allocation6 + $0x2ec] sm:$0xf0] }
  0x48   :  { %1097 = vmatpush.bf16.msrb.mxu2 %v8162_v62  ;;  %v8133_v10 = vld [vmem:[#allocation6 + $0x50] sm:$0xf] }
  0x49   :  { %1084 = vmatpush.bf16.msrb.mxu1 %v8414_v61  ;;  %v11969_v11 = vld [vmem:[#allocation6 + $0x6c] sm:$0xf0] }
  0x4a   :  { %1110 = vmatpush.bf16.msrb.mxu3 %v8418_v1  ;;  %v8293_v1 = vld [vmem:[#allocation6 + $0x190] sm:$0xf] }
  0x4b   :  { %1072 = vmatpush.bf16.msrb.mxu0 %v8126_v5  ;;  %v8549_v5 = vld [vmem:[#allocation6 + $0x390] sm:$0xf]  ;;  %v8294_v13 = vor.u32 %v12009_v2, %v8293_v1  ;;  %v11973_v2 = vld [vmem:[#allocation6 + $0x94] sm:$0xf] }
  0x4c   :  { %1098 = vmatpush.bf16.msrb.mxu2 %v8130_v15  ;;  %v8261_v15 = vld [vmem:[#allocation6 + $0x150] sm:$0xf] }
  0x4d   :  { %1085 = vmatpush.bf16.msrb.mxu1 %v8382_v14  ;;  %v8550_v14 = vor.u32 %v12073_v6, %v8549_v5  ;;  %v12041_v1 = vld [vmem:[#allocation6 + $0x2ac] sm:$0xf0]  ;;  %v8423_v5 = vld [vmem:[#allocation6 + $0x2b0] sm:$0xf0] }
  0x4e   :  { %1111 = vmatpush.bf16.msrb.mxu3 %v8386_v16  ;;  %v12001_v16 = vld [vmem:[#allocation6 + $0x16c] sm:$0xf0] }
  0x4f   :  { %1073 = vmatpush.bf16.msrb.mxu0 %v8094_v28  ;;  %v12061_v28 = vld [vmem:[#allocation6 + $0x354] sm:$0xf]  ;;  %v8262_v30 = vor.u32 %v12001_v16, %v8261_v15  ;;  %v12033_v15 = vld [vmem:[#allocation6 + $0x26c] sm:$0xf0] }
  0x50   :  { %v11965_v16 = vld [vmem:[#allocation6 + $0x54] sm:$0xf] }
  0x51   :  { %1086 = vmatpush.bf16.msrb.mxu1 %v8350_v29  ;;  %v8519_v29 = vld [vmem:[#allocation6 + $0x370] sm:$0xf0] }
  0x52   :  { %1112 = vmatpush.bf16.msrb.mxu3 %v8354_v35  ;;  %v8522_v35 = vor.u32 %v12061_v28, %v8519_v29  ;;  %v11961_v28 = vld [vmem:[#allocation6 + $0x2c] sm:$0xf0] }
  0x53   :  { %v8357_v29 = vld [vmem:[#allocation6 + $0x210] sm:$0xf] }
  0x82   :  { %v83_v32 = vpop.permute.xlu0 %82 }
  0x83   :  { %v129_v37 = vmul.f32 %v13264_v8, %v83_v32  ;;  %v130_v38 = vmul.f32 %v13266_v9, %v83_v32  ;;  %v132_v39 = vmul.f32 %v13270_v20, %v83_v32  ;;  %v131_v46 = vmul.f32 %v13268_v19, %v83_v32 }
  0x84   :  { %v8098_v32 = vor.u32 %v11956_v22, %v8095_v23  ;;  %v12065_v22 = vld [vmem:[#allocation6 + $0x36c] sm:$0xf0]  ;;  %v11997_v23 = vld [vmem:[#allocation6 + $0x154] sm:$0xf] }
  0x85   :  { %v171_v47 = vadd.f32 %v13272_v25, %v129_v37  ;;  %v172_v48 = vadd.f32 %v13274_v26, %v130_v38  ;;  %v174_v49 = vadd.f32 %v13276_v27, %v132_v39  ;;  %v173_v0 = vadd.f32 %v13281_v42, %v131_v46 }
  0x86   :  { %1099 = vmatpush.bf16.msrb.mxu2 %v8098_v32  ;;  %v8229_v32 = vld [vmem:[#allocation6 + $0x110] sm:$0xf] }
  0x87   :  { %v218_v57 = vmul.f32 0.5, %v171_v47  ;;  %v222_v58 = vmul.f32 0.5, %v172_v48  ;;  %v227_v60 = vmul.f32 0.5, %v174_v49 }
  0x89   :  { %12934 = vtanh.f32 %v218_v57 }
  0x8a   :  { %12936 = vtanh.f32 %v222_v58  ;;  %v8327_v58 = vld [vmem:[#allocation6 + $0x1f0] sm:$0xf0] }
  0x8b   :  { %12938 = vtanh.f32 %v173_v0  ;;  %v8582_v0 = vor.u32 %v12081_v54, %v8581_v52  ;;  %v8330_v3 = vor.u32 %v12013_v55, %v8327_v58  ;;  %v11981_v52 = vld [vmem:[#allocation6 + $0xd4] sm:$0xf]  ;;  %v8165_v58 = vld [vmem:[#allocation6 + $0x90] sm:$0xf] }
  0x8c   :  { %12940 = vtanh.f32 %v227_v60  ;;  %v8583_v60 = vld [vmem:[#allocation6 + $0x3f0] sm:$0xf0] }
  0x8d   :  { %v8586_v4 = vor.u32 %v12077_v59, %v8583_v60  ;;  %v12045_v54 = vld [vmem:[#allocation6 + $0x2d4] sm:$0xf]  ;;  %v11977_v59 = vld [vmem:[#allocation6 + $0xac] sm:$0xf0] }
  0x8e   :  { %v8455_v55 = vld [vmem:[#allocation6 + $0x2f0] sm:$0xf0]  ;;  %v8166_v6 = vor.u32 %v11977_v59, %v8165_v58  ;;  %v12074_v58 = vld [vmem:[#allocation6 + $0x3b4] sm:$0xf0]  ;;  %v12006_v59 = vld [vmem:[#allocation6 + $0x19c] sm:$0xf] }
  0x8f   :  { %v12935_v31 = vpop.eup %12934 }
  0x90   :  { %v12937_v33 = vpop.eup %12936  ;;  %v220_v34 = vmul.f32 0.5, %v12935_v31  ;;  %v8518_v31 = vor.u32 %v12065_v22, %v8517_v21  ;;  %v8391_v21 = vld [vmem:[#allocation6 + $0x270] sm:$0xf0]  ;;  %v8101_v22 = vld [vmem:[#allocation6 + $0x10] sm:$0xf] }
  0x91   :  { %v224_v36 = vmul.f32 0.5, %v12937_v33  ;;  %v12939_v38 = vpop.eup %12938  ;;  %v11993_v33 = vld [vmem:[#allocation6 + $0x12c] sm:$0xf0] }
  0x92   :  { %v221_v37 = vadd.f32 0.5, %v220_v34  ;;  %v12941_v43 = vpop.eup %12940  ;;  %v8266_v34 = vor.u32 %v11997_v23, %v8263_v24  ;;  %v8134_v23 = vor.u32 %v11969_v11, %v8133_v10  ;;  %v12066_v10 = vld [vmem:[#allocation6 + $0x374] sm:$0xf0]  ;;  %v11998_v11 = vld [vmem:[#allocation6 + $0x15c] sm:$0xf] }
  0x93   :  { %v225_v39 = vadd.f32 0.5, %v224_v36  ;;  %v229_v45 = vmul.f32 0.5, %v12941_v43  ;;  %v8485_v36 = vld [vmem:[#allocation6 + $0x310] sm:$0xf]  ;;  %v8230_v43 = vor.u32 %v11993_v33, %v8229_v32  ;;  %v11957_v33 = vld [vmem:[#allocation6 + $0x14] sm:$0xf] }
  0x94   :  { %v232_v40 = vmul.f32 %v12939_v38, %v221_v37  ;;  %v12057_v37 = vld [vmem:[#allocation6 + $0x32c] sm:$0xf0]  ;;  %v11989_v38 = vld [vmem:[#allocation6 + $0x114] sm:$0xf] }
  0x95   :  { %v231_v41 = vmul.f32 0.0, %v225_v39  ;;  %v230_v46 = vadd.f32 0.5, %v229_v45  ;;  %v8231_v39 = vld [vmem:[#allocation6 + $0x130] sm:$0xf0]  ;;  %v8486_v45 = vor.u32 %v12057_v37, %v8485_v36  ;;  %v8333_v37 = vld [vmem:[#allocation6 + $0x1d8] sm:$0xf] }
  0x96   :  { %v8359_v36 = vld [vmem:[#allocation6 + $0x230] sm:$0xf0] }
  0x97   :  { %v13288_v44 = vadd.f32 %v232_v40, %v231_v41  ;;  %v12053_v40 = vld [vmem:[#allocation6 + $0x314] sm:$0xf] }
  0x98   :  { %v8487_v41 = vld [vmem:[#allocation6 + $0x330] sm:$0xf0] }
  0x99   :  { %12942 = vtanh.f32 %v13288_v44 }
  0x9f   :  { %v12943_v47 = vpop.eup %12942 }
  0xa0   :  { %v235_v48 = vmul.f32 %v12943_v47, %v230_v46  ;;  %v8197_v46 = vld [vmem:[#allocation6 + $0xd0] sm:$0xf] }
  0xa1   :  { %v11985_v47 = vld [vmem:[#allocation6 + $0xec] sm:$0xf0] }
  0xa2   :  { %v236_v49 = vpack.c.bf16 %v235_v48, %v235_v48  ;;  %v8234_v48 = vor.u32 %v11989_v38, %v8231_v39  ;;  %v12018_v38 = vld [vmem:[#allocation6 + $0x1f4] sm:$0xf0] }
  0xa3   :  { %v8589_v39 = vld [vmem:[#allocation6 + $0x3d8] sm:$0xf] }
  0xa4   :  { %237 = vst [vmem:[#allocation2] sm:$0xf] %v236_v49  ;;  %v8490_v49 = vor.u32 %v12053_v40, %v8487_v41  ;;  %v12082_v40 = vld [vmem:[#allocation6 + $0x3f4] sm:$0xf0]  ;;  %v12014_v41 = vld [vmem:[#allocation6 + $0x1dc] sm:$0xf] }
  0xab   :  { %v238_v53 = vld [vmem:[#allocation2] sm:$0xff] }
  0xac   :  { %v368_v56 = vunpack.c.l.b16 %v238_v53  ;;  %v369_v57 = vunpack.c.h.b16 %v238_v53  ;;  %v8199_v53 = vld [vmem:[#allocation6 + $0xf0] sm:$0xf0] }
  0xad   :  { %v8202_v60 = vor.u32 %v11981_v52, %v8199_v53  ;;  %v8590_v52 = vor.u32 %v12082_v40, %v8589_v39  ;;  %v8301_v53 = vld [vmem:[#allocation6 + $0x198] sm:$0xf]  ;;  %v11982_v40 = vld [vmem:[#allocation6 + $0xdc] sm:$0xf] }
  0xae   :  { %v13291_v61 = vpack.c.b16 %v368_v56, %v368_v56  ;;  %v13293_v62 = vpack.c.b16 %v369_v57, %v369_v57  ;;  %v8198_v56 = vor.u32 %v11985_v47, %v8197_v46  ;;  %v8454_v57 = vor.u32 %v12049_v51, %v8453_v50  ;;  %v8335_v46 = vld [vmem:[#allocation6 + $0x1f8] sm:$0xf0]  ;;  %v12050_v39 = vld [vmem:[#allocation6 + $0x2f4] sm:$0xf0] }
  0xaf   :  { %v12078_v47 = vld [vmem:[#allocation6 + $0x3dc] sm:$0xf]  ;;  %v8334_v51 = vor.u32 %v12018_v38, %v8333_v37  ;;  %v8461_v38 = vld [vmem:[#allocation6 + $0x2d8] sm:$0xf] }
  0xb0   :  { %1022 = vmatmul.bf16.vlgmr.msra.gmra.mxu0 %v13291_v61  ;;  %1035 = vmatmul.bf16.vlgmr.msra.gmra.mxu1 %v13293_v62 }
  0xb1   :  { %1048 = vmatmul.bf16.vlgmr.msra.gmra.mxu2 %v13291_v61  ;;  %1061 = vmatmul.bf16.vlgmr.msra.gmra.mxu3 %v13293_v62 }
  0xb2   :  { %1118 = vmatpush.bf16.msra.mxu0 %v8326_v63  ;;  %1131 = vmatpush.bf16.msra.mxu1 %v8582_v0  ;;  %v8458_v63 = vor.u32 %v12045_v54, %v8455_v55  ;;  %v8421_v0 = vld [vmem:[#allocation6 + $0x290] sm:$0xf]  ;;  %v12010_v54 = vld [vmem:[#allocation6 + $0x1b4] sm:$0xf0]  ;;  %v8338_v55 = vor.u32 %v12014_v41, %v8335_v46  ;;  %v8207_v41 = vld [vmem:[#allocation6 + $0xf8] sm:$0xf0] }
  0xb3   :  { %1144 = vmatpush.bf16.msra.mxu2 %v8330_v3  ;;  %1157 = vmatpush.bf16.msra.mxu3 %v8586_v4  ;;  %v8167_v3 = vld [vmem:[#allocation6 + $0xb0] sm:$0xf0]  ;;  %v8422_v7 = vor.u32 %v12041_v1, %v8421_v0  ;;  %v8559_v0 = vld [vmem:[#allocation6 + $0x3b8] sm:$0xf0]  ;;  %v8302_v1 = vor.u32 %v12010_v54, %v8301_v53  ;;  %v12042_v53 = vld [vmem:[#allocation6 + $0x2b4] sm:$0xf0] }
  0xb4   :  { %v12037_v4 = vld [vmem:[#allocation6 + $0x294] sm:$0xf]  ;;  %v8170_v12 = vor.u32 %v11973_v2, %v8167_v3  ;;  %v8269_v3 = vld [vmem:[#allocation6 + $0x158] sm:$0xf]  ;;  %v11974_v54 = vld [vmem:[#allocation6 + $0x9c] sm:$0xf] }
  0xb6   :  { %1119 = vmatpush.bf16.msra.mxu0 %v8294_v13  ;;  %1132 = vmatpush.bf16.msra.mxu1 %v8550_v14  ;;  %v8426_v13 = vor.u32 %v12037_v4, %v8423_v5  ;;  %v8389_v14 = vld [vmem:[#allocation6 + $0x250] sm:$0xf]  ;;  %v12002_v4 = vld [vmem:[#allocation6 + $0x174] sm:$0xf0] }
  0xb7   :  { %1145 = vmatpush.bf16.msra.mxu2 %v8298_v17  ;;  %1158 = vmatpush.bf16.msra.mxu3 %v8554_v18  ;;  %v8135_v17 = vld [vmem:[#allocation6 + $0x70] sm:$0xf0]  ;;  %v8390_v24 = vor.u32 %v12033_v15, %v8389_v14  ;;  %v8527_v14 = vld [vmem:[#allocation6 + $0x378] sm:$0xf0]  ;;  %v8270_v15 = vor.u32 %v12002_v4, %v8269_v3  ;;  %v12034_v3 = vld [vmem:[#allocation6 + $0x274] sm:$0xf0] }
  0xb8   :  { %v12029_v18 = vld [vmem:[#allocation6 + $0x254] sm:$0xf]  ;;  %v11966_v4 = vld [vmem:[#allocation6 + $0x5c] sm:$0xf] }
  0xb9   :  { %v8394_v32 = vor.u32 %v12029_v18, %v8391_v21  ;;  %v11994_v18 = vld [vmem:[#allocation6 + $0x134] sm:$0xf0] }
  0xba   :  { %1120 = vmatpush.bf16.msra.mxu0 %v8262_v30  ;;  %1133 = vmatpush.bf16.msra.mxu1 %v8518_v31  ;;  %v12025_v30 = vld [vmem:[#allocation6 + $0x22c] sm:$0xf0]  ;;  %v8138_v31 = vor.u32 %v11965_v16, %v8135_v17  ;;  %v8237_v17 = vld [vmem:[#allocation6 + $0x118] sm:$0xf] }
  0xbb   :  { %1146 = vmatpush.bf16.msra.mxu2 %v8266_v34  ;;  %1159 = vmatpush.bf16.msra.mxu3 %v8522_v35  ;;  %v8103_v34 = vld [vmem:[#allocation6 + $0x30] sm:$0xf0] }
  0xbc   :  { %v12021_v35 = vld [vmem:[#allocation6 + $0x214] sm:$0xf] }
  0xbd   :  { %v8362_v50 = vor.u32 %v12021_v35, %v8359_v36  ;;  %v11986_v35 = vld [vmem:[#allocation6 + $0xf4] sm:$0xf0] }
  0xbe   :  { %1121 = vmatpush.bf16.msra.mxu0 %v8230_v43  ;;  %1134 = vmatpush.bf16.msra.mxu1 %v8486_v45  ;;  %v8102_v43 = vor.u32 %v11961_v28, %v8101_v22  ;;  %v8358_v45 = vor.u32 %v12025_v30, %v8357_v29  ;;  %v11990_v28 = vld [vmem:[#allocation6 + $0x11c] sm:$0xf] }
  0xbf   :  { %1147 = vmatpush.bf16.msra.mxu2 %v8234_v48  ;;  %1160 = vmatpush.bf16.msra.mxu3 %v8490_v49  ;;  %v8591_v48 = vld [vmem:[#allocation6 + $0x3f8] sm:$0xf0]  ;;  %v8106_v49 = vor.u32 %v11957_v33, %v8103_v34  ;;  %v8205_v34 = vld [vmem:[#allocation6 + $0xd8] sm:$0xf] }
  0xc0   :  { %1074 = vmatmul.bf16.vlgmr.msrb.gmra.mxu0 %v13291_v61  ;;  %1087 = vmatmul.bf16.vlgmr.msrb.gmra.mxu1 %v13293_v62  ;;  %v8239_v29 = vld [vmem:[#allocation6 + $0x138] sm:$0xf0]  ;;  %v8206_v46 = vor.u32 %v11986_v35, %v8205_v34 }
  0xc1   :  { %1100 = vmatmul.bf16.vlgmr.msrb.gmra.mxu2 %v13291_v61  ;;  %1113 = vmatmul.bf16.vlgmr.msrb.gmra.mxu3 %v13293_v62  ;;  %v12054_v30 = vld [vmem:[#allocation6 + $0x31c] sm:$0xf]  ;;  %v8242_v36 = vor.u32 %v11990_v28, %v8239_v29 }
  0xc2   :  { %1122 = vmatpush.bf16.msra.mxu0 %v8198_v56  ;;  %1135 = vmatpush.bf16.msra.mxu1 %v8454_v57  ;;  %v8594_v56 = vor.u32 %v12078_v47, %v8591_v48  ;;  %v8557_v57 = vld [vmem:[#allocation6 + $0x398] sm:$0xf]  ;;  %v8462_v47 = vor.u32 %v12050_v39, %v8461_v38 }
  0xc3   :  { %1148 = vmatpush.bf16.msra.mxu2 %v8202_v60  ;;  %1161 = vmatpush.bf16.msra.mxu3 %v8458_v63  ;;  %v8303_v60 = vld [vmem:[#allocation6 + $0x1b8] sm:$0xf0]  ;;  %v8558_v2 = vor.u32 %v12074_v58, %v8557_v57  ;;  %v8173_v48 = vld [vmem:[#allocation6 + $0x98] sm:$0xf] }
  0xc4   :  { %v12070_v63 = vld [vmem:[#allocation6 + $0x39c] sm:$0xf]  ;;  %v8306_v5 = vor.u32 %v12006_v59, %v8303_v60  ;;  %v8141_v60 = vld [vmem:[#allocation6 + $0x58] sm:$0xf] }
  0xc5   :  { %v8431_v57 = vld [vmem:[#allocation6 + $0x2b8] sm:$0xf0] }
  0xc6   :  { %1123 = vmatpush.bf16.msra.mxu0 %v8166_v6  ;;  %1136 = vmatpush.bf16.msra.mxu1 %v8422_v7  ;;  %v8562_v6 = vor.u32 %v12070_v63, %v8559_v0  ;;  %v8525_v7 = vld [vmem:[#allocation6 + $0x358] sm:$0xf] }
  0xc7   :  { %1149 = vmatpush.bf16.msra.mxu2 %v8170_v12  ;;  %1162 = vmatpush.bf16.msra.mxu3 %v8426_v13  ;;  %v8271_v12 = vld [vmem:[#allocation6 + $0x178] sm:$0xf0]  ;;  %v8526_v16 = vor.u32 %v12066_v10, %v8525_v7  ;;  %v11970_v63 = vld [vmem:[#allocation6 + $0x74] sm:$0xf0] }
  0xc8   :  { %v12062_v13 = vld [vmem:[#allocation6 + $0x35c] sm:$0xf]  ;;  %v8274_v21 = vor.u32 %v11998_v11, %v8271_v12  ;;  %v8142_v10 = vor.u32 %v11970_v63, %v8141_v60  ;;  %v8109_v12 = vld [vmem:[#allocation6 + $0x18] sm:$0xf]  ;;  %v8789_v63 = vld [vmem:[#allocation6 + $0x180] sm:$0xf] }
  0xc9   :  { %v8530_v22 = vor.u32 %v12062_v13, %v8527_v14  ;;  %v8399_v7 = vld [vmem:[#allocation6 + $0x278] sm:$0xf0]  ;;  %v11962_v13 = vld [vmem:[#allocation6 + $0x34] sm:$0xf0] }
  0xca   :  { %1124 = vmatpush.bf16.msra.mxu0 %v8134_v23  ;;  %1137 = vmatpush.bf16.msra.mxu1 %v8390_v24  ;;  %v8493_v23 = vld [vmem:[#allocation6 + $0x318] sm:$0xf] }
  0xcb   :  { %1150 = vmatpush.bf16.msra.mxu2 %v8138_v31  ;;  %1163 = vmatpush.bf16.msra.mxu3 %v8394_v32  ;;  %v12058_v24 = vld [vmem:[#allocation6 + $0x334] sm:$0xf0]  ;;  %v8495_v31 = vld [vmem:[#allocation6 + $0x338] sm:$0xf0]  ;;  %v8238_v32 = vor.u32 %v11994_v18, %v8237_v17 }
  0xcc   :  { %v8494_v33 = vor.u32 %v12058_v24, %v8493_v23  ;;  %v8498_v37 = vor.u32 %v12054_v30, %v8495_v31  ;;  %v12026_v17 = vld [vmem:[#allocation6 + $0x234] sm:$0xf0]  ;;  %v11958_v18 = vld [vmem:[#allocation6 + $0x1c] sm:$0xf]  ;;  %v8110_v24 = vor.u32 %v11962_v13, %v8109_v12  ;;  %v13311_v31 = vld [vmem:[#allocation8] sm:$0xf] }
  0xcd   :  { %v8367_v23 = vld [vmem:[#allocation6 + $0x238] sm:$0xf0]  ;;  %v13314_v34 = vperm.slane %v13311_v31, 0  ;;  %v12195_v12 = vld [vmem:[#allocation6 + $0x384] sm:$0xf] }
  0xce   :  { %1125 = vmatpush.bf16.msra.mxu0 %v8102_v43  ;;  %1138 = vmatpush.bf16.msra.mxu1 %v8358_v45  ;;  %v12046_v43 = vld [vmem:[#allocation6 + $0x2dc] sm:$0xf]  ;;  %v9047_v13 = vld [vmem:[#allocation6 + $0x3a0] sm:$0xf0] }
  0xcf   :  { %1151 = vmatpush.bf16.msra.mxu2 %v8106_v49  ;;  %1164 = vmatpush.bf16.msra.mxu3 %v8362_v50  ;;  %v8463_v45 = vld [vmem:[#allocation6 + $0x2f8] sm:$0xf0]  ;;  %v11978_v49 = vld [vmem:[#allocation6 + $0xb4] sm:$0xf0]  ;;  %v8210_v50 = vor.u32 %v11982_v40, %v8207_v41 }
  0xd0   :  { %v8174_v58 = vor.u32 %v11978_v49, %v8173_v48 }
  0xd1   :  { %1126 = vmatmul.bf16.vlgmr.msra.gmra.mxu0 %v13291_v61  ;;  %1139 = vmatmul.bf16.vlgmr.msra.gmra.mxu1 %v13293_v62 }
  0xd2   :  { %1170 = vmatpush.bf16.msrb.mxu0 %v8334_v51  ;;  %1183 = vmatpush.bf16.msrb.mxu1 %v8590_v52  ;;  %v8466_v51 = vor.u32 %v12046_v43, %v8463_v45  ;;  %v8429_v52 = vld [vmem:[#allocation6 + $0x298] sm:$0xf]  ;;  %v8821_v45 = vld [vmem:[#allocation6 + $0x1c0] sm:$0xf] }
  0xd3   :  { %1196 = vmatpush.bf16.msrb.mxu2 %v8338_v55  ;;  %1209 = vmatpush.bf16.msrb.mxu3 %v8594_v56  ;;  %v8175_v55 = vld [vmem:[#allocation6 + $0xb8] sm:$0xf0]  ;;  %v8430_v59 = vor.u32 %v12042_v53, %v8429_v52  ;;  %v8823_v53 = vld [vmem:[#allocation6 + $0x1e0] sm:$0xf0] }
  0xd4   :  { %1152 = vmatmul.bf16.vlgmr.msra.gmra.mxu2 %v13291_v61  ;;  %1165 = vmatmul.bf16.vlgmr.msra.gmra.mxu3 %v13293_v62  ;;  %v12038_v56 = vld [vmem:[#allocation6 + $0x29c] sm:$0xf]  ;;  %v8178_v0 = vor.u32 %v11974_v54, %v8175_v55  ;;  %v12203_v54 = vld [vmem:[#allocation6 + $0x3c4] sm:$0xf] }
  0xd5   :  { %v9079_v55 = vld [vmem:[#allocation6 + $0x3e0] sm:$0xf0] }
  0xd6   :  { %1171 = vmatpush.bf16.msrb.mxu0 %v8302_v1  ;;  %1184 = vmatpush.bf16.msrb.mxu1 %v8558_v2  ;;  %v8434_v1 = vor.u32 %v12038_v56, %v8431_v57  ;;  %v8397_v2 = vld [vmem:[#allocation6 + $0x258] sm:$0xf]  ;;  %v13322_v56 = vperm.slane %v13311_v31, 2 }
  0xd7   :  { %1197 = vmatpush.bf16.msrb.mxu2 %v8306_v5  ;;  %1210 = vmatpush.bf16.msrb.mxu3 %v8562_v6  ;;  %v8143_v5 = vld [vmem:[#allocation6 + $0x78] sm:$0xf0]  ;;  %v8398_v11 = vor.u32 %v12034_v3, %v8397_v2 }
  0xd8   :  { %v12030_v6 = vld [vmem:[#allocation6 + $0x25c] sm:$0xf]  ;;  %v8146_v14 = vor.u32 %v11966_v4, %v8143_v5  ;;  %v12199_v5 = vld [vmem:[#allocation6 + $0x39c] sm:$0xf0] }
  0xda   :  { %1172 = vmatpush.bf16.msrb.mxu0 %v8270_v15  ;;  %1185 = vmatpush.bf16.msrb.mxu1 %v8526_v16  ;;  %v8402_v15 = vor.u32 %v12030_v6, %v8399_v7  ;;  %v8365_v16 = vld [vmem:[#allocation6 + $0x218] sm:$0xf]  ;;  %v12131_v6 = vld [vmem:[#allocation6 + $0x184] sm:$0xf] }
  0xdb   :  { %1198 = vmatpush.bf16.msrb.mxu2 %v8274_v21  ;;  %1211 = vmatpush.bf16.msrb.mxu3 %v8530_v22  ;;  %v8111_v21 = vld [vmem:[#allocation6 + $0x38] sm:$0xf0]  ;;  %v8366_v28 = vor.u32 %v12026_v17, %v8365_v16 }
  0xdc   :  { %v12022_v22 = vld [vmem:[#allocation6 + $0x21c] sm:$0xf]  ;;  %v8114_v29 = vor.u32 %v11958_v18, %v8111_v21  ;;  %v8757_v18 = vld [vmem:[#allocation6 + $0x140] sm:$0xf] }
  0xdd   :  { %v8370_v30 = vor.u32 %v12022_v22, %v8367_v23  ;;  %v12127_v21 = vld [vmem:[#allocation6 + $0x15c] sm:$0xf0] }
  0xde   :  { %1173 = vmatpush.bf16.msrb.mxu0 %v8238_v32  ;;  %1186 = vmatpush.bf16.msrb.mxu1 %v8494_v33  ;;  %v9013_v22 = vld [vmem:[#allocation6 + $0x340] sm:$0xf] }
  0xdf   :  { %1199 = vmatpush.bf16.msrb.mxu2 %v8242_v36  ;;  %1212 = vmatpush.bf16.msrb.mxu3 %v8498_v37  ;;  %v13318_v37 = vperm.slane %v13311_v31, 1 }
  0xe2   :  { %1174 = vmatpush.bf16.msrb.mxu0 %v8206_v46  ;;  %1187 = vmatpush.bf16.msrb.mxu1 %v8462_v47  ;;  %v12143_v46 = vld [vmem:[#allocation6 + $0x1dc] sm:$0xf0] }
  0xe3   :  { %1200 = vmatpush.bf16.msrb.mxu2 %v8210_v50  ;;  %1213 = vmatpush.bf16.msrb.mxu3 %v8466_v51  ;;  %v9077_v47 = vld [vmem:[#allocation6 + $0x3c0] sm:$0xf]  ;;  %v8822_v49 = vor.u32 %v12143_v46, %v8821_v45  ;;  %v12139_v51 = vld [vmem:[#allocation6 + $0x1c4] sm:$0xf] }
  0xe4   :  { %v12207_v50 = vld [vmem:[#allocation6 + $0x3dc] sm:$0xf0]  ;;  %v8826_v57 = vor.u32 %v12139_v51, %v8823_v53  ;;  %v12115_v53 = vld [vmem:[#allocation6 + $0x104] sm:$0xf] }
  0xe5   :  { %v9078_v52 = vor.u32 %v12207_v50, %v9077_v47  ;;  %v8725_v45 = vld [vmem:[#allocation6 + $0x100] sm:$0xf] }
  0xe6   :  { %1175 = vmatpush.bf16.msrb.mxu0 %v8174_v58  ;;  %1188 = vmatpush.bf16.msrb.mxu1 %v8430_v59  ;;  %v9082_v58 = vor.u32 %v12203_v54, %v9079_v55  ;;  %v12119_v46 = vld [vmem:[#allocation6 + $0x11c] sm:$0xf0]  ;;  %v12179_v55 = vld [vmem:[#allocation6 + $0x304] sm:$0xf] }
  0xe7   :  { %1201 = vmatpush.bf16.msrb.mxu2 %v8178_v0  ;;  %1214 = vmatpush.bf16.msrb.mxu3 %v8434_v1  ;;  %v12135_v0 = vld [vmem:[#allocation6 + $0x19c] sm:$0xf0]  ;;  %v8726_v50 = vor.u32 %v12119_v46, %v8725_v45 }
  0xe8   :  { %v9045_v1 = vld [vmem:[#allocation6 + $0x380] sm:$0xf]  ;;  %v8790_v4 = vor.u32 %v12135_v0, %v8789_v63 }
  0xe9   :  { %v8981_v51 = vld [vmem:[#allocation6 + $0x300] sm:$0xf] }
  0xea   :  { %1176 = vmatpush.bf16.msrb.mxu0 %v8142_v10  ;;  %1189 = vmatpush.bf16.msrb.mxu1 %v8398_v11  ;;  %v9046_v10 = vor.u32 %v12199_v5, %v9045_v1  ;;  %v8791_v11 = vld [vmem:[#allocation6 + $0x1a0] sm:$0xf0]  ;;  %v8693_v1 = vld [vmem:[#allocation6 + $0xc0] sm:$0xf] }
  0xeb   :  { %1202 = vmatpush.bf16.msrb.mxu2 %v8146_v14  ;;  %1215 = vmatpush.bf16.msrb.mxu3 %v8402_v15  ;;  %v8794_v14 = vor.u32 %v12131_v6, %v8791_v11  ;;  %v9050_v15 = vor.u32 %v12195_v12, %v9047_v13  ;;  %v12107_v11 = vld [vmem:[#allocation6 + $0xc4] sm:$0xf]  ;;  %v12095_v45 = vld [vmem:[#allocation6 + $0x5c] sm:$0xf0] }
  0xec   :  { %v8695_v13 = vld [vmem:[#allocation6 + $0xe0] sm:$0xf0]  ;;  %v8885_v46 = vld [vmem:[#allocation6 + $0x240] sm:$0xf] }
  0xee   :  { %1177 = vmatpush.bf16.msrb.mxu0 %v8110_v24  ;;  %1190 = vmatpush.bf16.msrb.mxu1 %v8366_v28  ;;  %v8758_v24 = vor.u32 %v12127_v21, %v8757_v18  ;;  %v12191_v28 = vld [vmem:[#allocation6 + $0x35c] sm:$0xf0] }
  0xef   :  { %1203 = vmatpush.bf16.msrb.mxu2 %v8114_v29  ;;  %1216 = vmatpush.bf16.msrb.mxu3 %v8370_v30  ;;  %v12123_v29 = vld [vmem:[#allocation6 + $0x144] sm:$0xf] }
  0xf0   :  { %v8759_v30 = vld [vmem:[#allocation6 + $0x160] sm:$0xf0] }
  0xf1   :  { %1178 = vmatmul.bf16.vlgmr.msrb.gmra.mxu0 %v13291_v61  ;;  %1191 = vmatmul.bf16.vlgmr.msrb.gmra.mxu1 %v13293_v62 }
  0xf2   :  { %1204 = vmatmul.bf16.vlgmr.msrb.gmra.mxu2 %v13291_v61  ;;  %1217 = vmatmul.bf16.vlgmr.msrb.gmra.mxu3 %v13293_v62 }
  0xf3   :  { %2046 = vmatpush.bf16.msra.mxu0 %v8822_v49  ;;  %2059 = vmatpush.bf16.msra.mxu1 %v9078_v52  ;;  %v12183_v52 = vld [vmem:[#allocation6 + $0x31c] sm:$0xf0] }
  0xf4   :  { %2072 = vmatpush.bf16.msra.mxu2 %v8826_v57  ;;  %2085 = vmatpush.bf16.msra.mxu3 %v9082_v58  ;;  %v8982_v54 = vor.u32 %v12183_v52, %v8981_v51  ;;  %v8631_v51 = vld [vmem:[#allocation6 + $0x60] sm:$0xf0] }
  0xf7   :  { %2047 = vmatpush.bf16.msra.mxu0 %v8790_v4  ;;  %2060 = vmatpush.bf16.msra.mxu1 %v9046_v10  ;;  %v12175_v10 = vld [vmem:[#allocation6 + $0x2dc] sm:$0xf0] }
  0xf8   :  { %2073 = vmatpush.bf16.msra.mxu2 %v8794_v14  ;;  %2086 = vmatpush.bf16.msra.mxu3 %v9050_v15  ;;  %v12171_v14 = vld [vmem:[#allocation6 + $0x2c4] sm:$0xf] }
  0xf9   :  { %v8951_v15 = vld [vmem:[#allocation6 + $0x2e0] sm:$0xf0] }
  0xfa   :  { %v8954_v18 = vor.u32 %v12171_v14, %v8951_v15  ;;  %v8855_v14 = vld [vmem:[#allocation6 + $0x220] sm:$0xf0] }
  0xfb   :  { %2048 = vmatpush.bf16.msra.mxu0 %v8758_v24  ;;  %v12103_v24 = vld [vmem:[#allocation6 + $0x9c] sm:$0xf0] }
  0xff   :  { %2049 = vmatpush.bf16.msra.mxu0 %v8726_v50  ;;  %v12091_v50 = vld [vmem:[#allocation6 + $0x44] sm:$0xf] }
 0x12d   :  { %v1023_v32 = vpop.f32.mrf.mxu0  ;;  %v1036_v33 = vpop.f32.mrf.mxu1 }
 0x12e   :  { %v1037_v35 = vadd.f32 %v1036_v33, %v1023_v32  ;;  %v9014_v33 = vor.u32 %v12191_v28, %v9013_v22  ;;  %v8917_v28 = vld [vmem:[#allocation6 + $0x280] sm:$0xf] }
 0x130   :  { %v1222_v36 = vadd.f32 %v1037_v35, %v13314_v34  ;;  %v8762_v35 = vor.u32 %v12123_v29, %v8759_v30  ;;  %2061 = vmatpush.bf16.msra.mxu1 %v9014_v33  ;;  %v12167_v30 = vld [vmem:[#allocation6 + $0x29c] sm:$0xf0]  ;;  %v8663_v33 = vld [vmem:[#allocation6 + $0xa0] sm:$0xf0] }
 0x132   :  { %v1226_v43 = vmul.f32 0.5, %v1222_v36  ;;  %v12187_v36 = vld [vmem:[#allocation6 + $0x344] sm:$0xf]  ;;  %2074 = vmatpush.bf16.msra.mxu2 %v8762_v35  ;;  %v8918_v35 = vor.u32 %v12167_v30, %v8917_v28 }
 0x134   :  { %v1049_v38 = vpop.f32.mrf.mxu2  ;;  %v1062_v39 = vpop.f32.mrf.mxu3  ;;  %12944 = vtanh.f32 %v1226_v43  ;;  %2062 = vmatpush.bf16.msra.mxu1 %v8982_v54  ;;  %v8634_v54 = vor.u32 %v12091_v50, %v8631_v51  ;;  %v12200_v51 = vld [vmem:[#allocation6 + $0x3a4] sm:$0xf0] }
 0x135   :  { %v1063_v40 = vadd.f32 %v1062_v39, %v1049_v38  ;;  %v1025_v41 = vpop.f32.mrf.mxu0  ;;  %v1038_v61 = vpop.f32.mrf.mxu1  ;;  %v9015_v38 = vld [vmem:[#allocation6 + $0x360] sm:$0xf0] }
 0x136   :  { %v9018_v41 = vor.u32 %v12187_v36, %v9015_v38  ;;  %v12163_v38 = vld [vmem:[#allocation6 + $0x284] sm:$0xf] }
 0x137   :  { %v1223_v62 = vadd.f32 %v1063_v40, %v13318_v37  ;;  %v13326_v40 = vperm.slane %v13311_v31, 3  ;;  %v8727_v31 = vld [vmem:[#allocation6 + $0x120] sm:$0xf0] }
 0x138   :  { %2087 = vmatpush.bf16.msra.mxu3 %v9018_v41 }
 0x139   :  { %v1230_v48 = vmul.f32 0.5, %v1223_v62 }
 0x13a   :  { %v12945_v16 = vpop.eup %12944 }
 0x13b   :  { %12946 = vtanh.f32 %v1230_v48  ;;  %v1228_v39 = vmul.f32 0.5, %v12945_v16 }
 0x13c   :  { %v1051_v59 = vpop.f32.mrf.mxu2  ;;  %v1064_v60 = vpop.f32.mrf.mxu3 }
 0x13d   :  { %v1075_v2 = vpop.f32.mrf.mxu0  ;;  %v1088_v3 = vpop.f32.mrf.mxu1  ;;  %v1229_v57 = vadd.f32 0.5, %v1228_v39  ;;  %v8730_v59 = vor.u32 %v12115_v53, %v8727_v31  ;;  %v8983_v60 = vld [vmem:[#allocation6 + $0x320] sm:$0xf0] }
 0x13e   :  { %v1089_v7 = vadd.f32 %v1088_v3, %v1075_v2  ;;  %v8986_v0 = vor.u32 %v12179_v55, %v8983_v60  ;;  %v12111_v2 = vld [vmem:[#allocation6 + $0xdc] sm:$0xf0]  ;;  %v8919_v39 = vld [vmem:[#allocation6 + $0x2a0] sm:$0xf0] }
 0x13f   :  { %v8949_v3 = vld [vmem:[#allocation6 + $0x2c0] sm:$0xf]  ;;  %2075 = vmatpush.bf16.msra.mxu2 %v8730_v59  ;;  %v12155_v31 = vld [vmem:[#allocation6 + $0x244] sm:$0xf] }
 0x140   :  { %v1224_v17 = vadd.f32 %v1089_v7, %v13322_v56  ;;  %v8694_v7 = vor.u32 %v12111_v2, %v8693_v1  ;;  %2088 = vmatpush.bf16.msra.mxu3 %v8986_v0  ;;  %v8950_v12 = vor.u32 %v12175_v10, %v8949_v3  ;;  %v8887_v55 = vld [vmem:[#allocation6 + $0x260] sm:$0xf0]  ;;  %v12087_v0 = vld [vmem:[#allocation6 + $0x1c] sm:$0xf0] }
 0x141   :  { %v12947_v23 = vpop.eup %12946  ;;  %v8890_v59 = vor.u32 %v12155_v31, %v8887_v55  ;;  %v8853_v2 = vld [vmem:[#allocation6 + $0x200] sm:$0xf]  ;;  %v8799_v55 = vld [vmem:[#allocation6 + $0x1a8] sm:$0xf0] }
 0x142   :  { %v1232_v32 = vmul.f32 0.5, %v12947_v23  ;;  %12948 = vtanh.f32 %v1224_v17  ;;  %2050 = vmatpush.bf16.msra.mxu0 %v8694_v7  ;;  %v8698_v17 = vor.u32 %v12107_v11, %v8695_v13  ;;  %2063 = vmatpush.bf16.msra.mxu1 %v8950_v12  ;;  %v8661_v23 = vld [vmem:[#allocation6 + $0x80] sm:$0xf]  ;;  %v8599_v12 = vld [vmem:[#allocation6 + $0x20] sm:$0xf0] }
 0x143   :  { %v8662_v29 = vor.u32 %v12103_v24, %v8661_v23  ;;  %v12151_v3 = vld [vmem:[#allocation6 + $0x21c] sm:$0xf0]  ;;  %v12147_v13 = vld [vmem:[#allocation6 + $0x204] sm:$0xf]  ;;  %v12144_v23 = vld [vmem:[#allocation6 + $0x1e4] sm:$0xf0] }
 0x144   :  { %v1233_v61 = vadd.f32 0.5, %v1232_v32  ;;  %v1101_v43 = vpop.f32.mrf.mxu2  ;;  %v1114_v62 = vpop.f32.mrf.mxu3  ;;  %2076 = vmatpush.bf16.msra.mxu2 %v8698_v17  ;;  %v12099_v32 = vld [vmem:[#allocation6 + $0x84] sm:$0xf]  ;;  %2089 = vmatpush.bf16.msra.mxu3 %v8954_v18  ;;  %v8854_v11 = vor.u32 %v12151_v3, %v8853_v2  ;;  %v9085_v24 = vld [vmem:[#allocation6 + $0x3c8] sm:$0xf] }
 0x145   :  { %v1115_v47 = vadd.f32 %v1114_v62, %v1101_v43  ;;  %v1077_v48 = vpop.f32.mrf.mxu0  ;;  %v1090_v49 = vpop.f32.mrf.mxu1  ;;  %v8666_v36 = vor.u32 %v12099_v32, %v8663_v33  ;;  %v8922_v43 = vor.u32 %v12163_v38, %v8919_v39  ;;  %v8629_v62 = vld [vmem:[#allocation6 + $0x40] sm:$0xf]  ;;  %v12208_v32 = vld [vmem:[#allocation6 + $0x3e4] sm:$0xf0]  ;;  %v12140_v33 = vld [vmem:[#allocation6 + $0x1cc] sm:$0xf] }
 0x146   :  { %v1239_v4 = vmul.f32 0.0, %v1233_v61  ;;  %2051 = vmatpush.bf16.msra.mxu0 %v8662_v29  ;;  %2064 = vmatpush.bf16.msra.mxu1 %v8918_v35  ;;  %v8630_v48 = vor.u32 %v12095_v45, %v8629_v62  ;;  %v12159_v49 = vld [vmem:[#allocation6 + $0x25c] sm:$0xf0]  ;;  %v8831_v35 = vld [vmem:[#allocation6 + $0x1e8] sm:$0xf0] }
 0x147   :  { %v1225_v58 = vadd.f32 %v1115_v47, %v13326_v40  ;;  %v8886_v53 = vor.u32 %v12159_v49, %v8885_v46  ;;  %v8834_v38 = vor.u32 %v12140_v33, %v8831_v35  ;;  %v12204_v39 = vld [vmem:[#allocation6 + $0x3cc] sm:$0xf]  ;;  %v8797_v62 = vld [vmem:[#allocation6 + $0x188] sm:$0xf] }
 0x148   :  { %v12949_v63 = vpop.eup %12948  ;;  %2077 = vmatpush.bf16.msra.mxu2 %v8666_v36  ;;  %2090 = vmatpush.bf16.msra.mxu3 %v8922_v43  ;;  %v9086_v36 = vor.u32 %v12208_v32, %v9085_v24  ;;  %v9087_v43 = vld [vmem:[#allocation6 + $0x3e8] sm:$0xf0]  ;;  %v9053_v49 = vld [vmem:[#allocation6 + $0x388] sm:$0xf] }
 0x149   :  { %v1240_v5 = vmul.f32 %v12949_v63, %v1229_v57  ;;  %v1235_v6 = vmul.f32 0.5, %v1225_v58  ;;  %v13336_v58 = vpop.permute.xlu0 %87  ;;  %v8597_v63 = vld [vmem:[#allocation6] sm:$0xf]  ;;  %v9054_v31 = vor.u32 %v12200_v51, %v9053_v49  ;;  %v12184_v24 = vld [vmem:[#allocation6 + $0x324] sm:$0xf0] }
 0x14a   :  { %2052 = vmatpush.bf16.msra.mxu0 %v8630_v48  ;;  %2065 = vmatpush.bf16.msra.mxu1 %v8886_v53  ;;  %v8598_v1 = vor.u32 %v12087_v0, %v8597_v63  ;;  %v133_v45 = vmul.f32 %v13264_v8, %v13336_v58  ;;  %v12136_v48 = vld [vmem:[#allocation6 + $0x1a4] sm:$0xf0]  ;;  %v12180_v33 = vld [vmem:[#allocation6 + $0x30c] sm:$0xf] }
 0x14b   :  { %v13329_v16 = vadd.f32 %v1240_v5, %v1239_v4  ;;  %12950 = vtanh.f32 %v1235_v6  ;;  %v12083_v4 = vld [vmem:[#allocation6 + $0x4] sm:$0xf]  ;;  %v134_v5 = vmul.f32 %v13266_v9, %v13336_v58  ;;  %v8798_v50 = vor.u32 %v12136_v48, %v8797_v62  ;;  %v8765_v0 = vld [vmem:[#allocation6 + $0x148] sm:$0xf]  ;;  %v8991_v35 = vld [vmem:[#allocation6 + $0x328] sm:$0xf0] }
 0x14c   :  { %v1103_v21 = vpop.f32.mrf.mxu2  ;;  %v1116_v22 = vpop.f32.mrf.mxu3  ;;  %2078 = vmatpush.bf16.msra.mxu2 %v8634_v54  ;;  %2091 = vmatpush.bf16.msra.mxu3 %v8890_v59  ;;  %v8602_v18 = vor.u32 %v12083_v4, %v8599_v12  ;;  %v9055_v59 = vld [vmem:[#allocation6 + $0x3a8] sm:$0xf0]  ;;  %v175_v2 = vadd.f32 %v13272_v25, %v133_v45  ;;  %v8957_v62 = vld [vmem:[#allocation6 + $0x2c8] sm:$0xf] }
 0x14d   :  { %12952 = vtanh.f32 %v13329_v16  ;;  %v8858_v21 = vor.u32 %v12147_v13, %v8855_v14  ;;  %v8829_v22 = vld [vmem:[#allocation6 + $0x1c8] sm:$0xf]  ;;  %v176_v46 = vadd.f32 %v13274_v26, %v134_v5  ;;  %v8703_v49 = vld [vmem:[#allocation6 + $0xe8] sm:$0xf0] }
 0x14e   :  { %v13332_v41 = vpop.f32.mrf.mxu0  ;;  %v13334_v61 = vpop.f32.mrf.mxu1  ;;  %2053 = vmatpush.bf16.msra.mxu0 %v8598_v1  ;;  %2066 = vmatpush.bf16.msra.mxu1 %v8854_v11  ;;  %v8830_v30 = vor.u32 %v12144_v23, %v8829_v22  ;;  %v12128_v1 = vld [vmem:[#allocation6 + $0x164] sm:$0xf0]  ;;  %v12188_v11 = vld [vmem:[#allocation6 + $0x34c] sm:$0xf] }
 0x14f   :  { %v1141_v53 = vadd.f32 %v13334_v61, %v13332_v41  ;;  %v8766_v5 = vor.u32 %v12128_v1, %v8765_v0  ;;  %v8767_v61 = vld [vmem:[#allocation6 + $0x168] sm:$0xf0]  ;;  %v8989_v22 = vld [vmem:[#allocation6 + $0x308] sm:$0xf] }
 0x150   :  { %2079 = vmatpush.bf16.msra.mxu2 %v8602_v18  ;;  %2092 = vmatpush.bf16.msra.mxu3 %v8858_v21  ;;  %v8733_v18 = vld [vmem:[#allocation6 + $0x108] sm:$0xf]  ;;  %v8959_v51 = vld [vmem:[#allocation6 + $0x2e8] sm:$0xf0] }
 0x151   :  { %v12951_v47 = vpop.eup %12950  ;;  %v1246_v12 = vadd.f32 %v1141_v53, %v175_v2  ;;  %v12120_v21 = vld [vmem:[#allocation6 + $0x124] sm:$0xf0]  ;;  %v8671_v0 = vld [vmem:[#allocation6 + $0xa8] sm:$0xf0] }
 0x152   :  { %v1237_v52 = vmul.f32 0.5, %v12951_v47  ;;  %2098 = vmatpush.bf16.msrb.mxu0 %v8830_v30  ;;  %v9090_v47 = vor.u32 %v12204_v39, %v9087_v43  ;;  %2111 = vmatpush.bf16.msrb.mxu1 %v9086_v36  ;;  %v8734_v23 = vor.u32 %v12120_v21, %v8733_v18  ;;  %v8990_v30 = vor.u32 %v12184_v24, %v8989_v22  ;;  %v8701_v39 = vld [vmem:[#allocation6 + $0xc8] sm:$0xf]  ;;  %v8639_v18 = vld [vmem:[#allocation6 + $0x68] sm:$0xf0] }
 0x153   :  { %v12953_v57 = vpop.eup %12952  ;;  %v1250_v36 = vmul.f32 0.5, %v1246_v12  ;;  %v12112_v43 = vld [vmem:[#allocation6 + $0xe4] sm:$0xf0] }
 0x154   :  { %v1238_v60 = vadd.f32 0.5, %v1237_v52  ;;  %2124 = vmatpush.bf16.msrb.mxu2 %v8834_v38  ;;  %v12132_v52 = vld [vmem:[#allocation6 + $0x18c] sm:$0xf]  ;;  %2137 = vmatpush.bf16.msrb.mxu3 %v9090_v47  ;;  %v8994_v38 = vor.u32 %v12180_v33, %v8991_v35  ;;  %v8702_v45 = vor.u32 %v12112_v43, %v8701_v39  ;;  %v12096_v12 = vld [vmem:[#allocation6 + $0x64] sm:$0xf0] }
 0x155   :  { %v12108_v47 = vld [vmem:[#allocation6 + $0xcc] sm:$0xf]  ;;  %v8605_v35 = vld [vmem:[#allocation6 + $0x8] sm:$0xf] }
 0x156   :  { %v1243_v6 = vmul.f32 %v12953_v57, %v1238_v60  ;;  %v1129_v15 = vpop.f32.mrf.mxu0  ;;  %v1142_v17 = vpop.f32.mrf.mxu1  ;;  %v12196_v57 = vld [vmem:[#allocation6 + $0x38c] sm:$0xf]  ;;  %v8802_v60 = vor.u32 %v12132_v52, %v8799_v55  ;;  %2099 = vmatpush.bf16.msrb.mxu0 %v8798_v50  ;;  %2112 = vmatpush.bf16.msrb.mxu1 %v9054_v31  ;;  %v8706_v52 = vor.u32 %v12108_v47, %v8703_v49  ;;  %v8669_v31 = vld [vmem:[#allocation6 + $0x88] sm:$0xf] }
 0x157   :  { %v1153_v7 = vpop.f32.mrf.mxu2  ;;  %v1166_v10 = vpop.f32.mrf.mxu3  ;;  %v9058_v63 = vor.u32 %v12196_v57, %v9055_v59  ;;  %v9023_v15 = vld [vmem:[#allocation6 + $0x368] sm:$0xf0]  ;;  %v12104_v55 = vld [vmem:[#allocation6 + $0xa4] sm:$0xf0] }
 0x158   :  { %v1244_v28 = vpack.c.bf16 %v1243_v6, %v1243_v6  ;;  %v1167_v29 = vadd.f32 %v1166_v10, %v1153_v7  ;;  %v9021_v6 = vld [vmem:[#allocation6 + $0x348] sm:$0xf]  ;;  %v12124_v10 = vld [vmem:[#allocation6 + $0x14c] sm:$0xf]  ;;  %2125 = vmatpush.bf16.msrb.mxu2 %v8802_v60  ;;  %v9026_v17 = vor.u32 %v12188_v11, %v9023_v15  ;;  %v8670_v59 = vor.u32 %v12104_v55, %v8669_v31 }
 0x159   :  { %v12192_v7 = vld [vmem:[#allocation6 + $0x364] sm:$0xf0]  ;;  %2138 = vmatpush.bf16.msrb.mxu3 %v9058_v63  ;;  %v8770_v14 = vor.u32 %v12124_v10, %v8767_v61  ;;  %v12172_v50 = vld [vmem:[#allocation6 + $0x2cc] sm:$0xf] }
 0x15a   :  { %1245 = vst [vmem:[#allocation2 + $0x4] sm:$0xf] %v1244_v28  ;;  %v1247_v54 = vadd.f32 %v1167_v29, %v176_v46  ;;  %v9022_v41 = vor.u32 %v12192_v7, %v9021_v6  ;;  %2100 = vmatpush.bf16.msrb.mxu0 %v8766_v5  ;;  %v12116_v28 = vld [vmem:[#allocation6 + $0x10c] sm:$0xf]  ;;  %v12176_v46 = vld [vmem:[#allocation6 + $0x2e4] sm:$0xf0]  ;;  %v8962_v53 = vor.u32 %v12172_v50, %v8959_v51 }
 0x15b   :  { %v8735_v29 = vld [vmem:[#allocation6 + $0x128] sm:$0xf0]  ;;  %v8958_v48 = vor.u32 %v12176_v46, %v8957_v62  ;;  %v8925_v57 = vld [vmem:[#allocation6 + $0x288] sm:$0xf] }
 0x15c   :  { %v1254_v13 = vmul.f32 0.5, %v1247_v54  ;;  %2113 = vmatpush.bf16.msrb.mxu1 %v9022_v41  ;;  %2126 = vmatpush.bf16.msrb.mxu2 %v8770_v14  ;;  %v8738_v32 = vor.u32 %v12116_v28, %v8735_v29  ;;  %v135_v54 = vmul.f32 %v13268_v19, %v13336_v58  ;;  %v12168_v60 = vld [vmem:[#allocation6 + $0x2a4] sm:$0xf0]  ;;  %v12100_v63 = vld [vmem:[#allocation6 + $0x8c] sm:$0xf] }
 0x15d   :  { %2139 = vmatpush.bf16.msrb.mxu3 %v9026_v17  ;;  %v8926_v1 = vor.u32 %v12168_v60, %v8925_v57  ;;  %v8674_v2 = vor.u32 %v12100_v63, %v8671_v0  ;;  %v8637_v11 = vld [vmem:[#allocation6 + $0x48] sm:$0xf]  ;;  %v12092_v17 = vld [vmem:[#allocation6 + $0x4c] sm:$0xf] }
 0x15e   :  { %12954 = vtanh.f32 %v1254_v13  ;;  %2101 = vmatpush.bf16.msrb.mxu0 %v8734_v23  ;;  %v177_v41 = vadd.f32 %v13281_v42, %v135_v54  ;;  %v8893_v13 = vld [vmem:[#allocation6 + $0x248] sm:$0xf]  ;;  %v8638_v14 = vor.u32 %v12096_v12, %v8637_v11  ;;  %v8642_v28 = vor.u32 %v12092_v17, %v8639_v18  ;;  %v12156_v29 = vld [vmem:[#allocation6 + $0x24c] sm:$0xf]  ;;  %v8837_v12 = vld [vmem:[#allocation6 + $0x1d0] sm:$0xf] }
 0x15f   :  { %v1155_v3 = vpop.f32.mrf.mxu2  ;;  %v1168_v4 = vpop.f32.mrf.mxu3  ;;  %12956 = vtanh.f32 %v1250_v36  ;;  %v12160_v15 = vld [vmem:[#allocation6 + $0x264] sm:$0xf0]  ;;  %v12084_v43 = vld [vmem:[#allocation6 + $0xc] sm:$0xf]  ;;  %v12141_v17 = vld [vmem:[#allocation6 + $0x1d4] sm:$0xf] }
 0x160   :  { %2114 = vmatpush.bf16.msrb.mxu1 %v8990_v30  ;;  %2127 = vmatpush.bf16.msrb.mxu2 %v8738_v32  ;;  %v12164_v3 = vld [vmem:[#allocation6 + $0x28c] sm:$0xf]  ;;  %v8894_v24 = vor.u32 %v12160_v15, %v8893_v13  ;;  %v136_v32 = vmul.f32 %v13270_v20, %v13336_v58  ;;  %v12088_v36 = vld [vmem:[#allocation6 + $0x24] sm:$0xf0]  ;;  %v12145_v13 = vld [vmem:[#allocation6 + $0x1ec] sm:$0xf0] }
 0x161   :  { %2140 = vmatpush.bf16.msrb.mxu3 %v8994_v38  ;;  %v8927_v4 = vld [vmem:[#allocation6 + $0x2a8] sm:$0xf0]  ;;  %v8861_v38 = vld [vmem:[#allocation6 + $0x208] sm:$0xf]  ;;  %v8606_v46 = vor.u32 %v12088_v36, %v8605_v35  ;;  %v12209_v15 = vld [vmem:[#allocation6 + $0x3ec] sm:$0xf0] }
 0x162   :  { %2102 = vmatpush.bf16.msrb.mxu0 %v8702_v45  ;;  %v8930_v10 = vor.u32 %v12164_v3, %v8927_v4  ;;  %v8895_v30 = vld [vmem:[#allocation6 + $0x268] sm:$0xf0]  ;;  %v12152_v39 = vld [vmem:[#allocation6 + $0x224] sm:$0xf0]  ;;  %v12137_v35 = vld [vmem:[#allocation6 + $0x1ac] sm:$0xf0] }
 0x163   :  { %v8898_v33 = vor.u32 %v12156_v29, %v8895_v30  ;;  %v8607_v62 = vld [vmem:[#allocation6 + $0x28] sm:$0xf0]  ;;  %v8862_v51 = vor.u32 %v12152_v39, %v8861_v38  ;;  %v8838_v30 = vor.u32 %v12145_v13, %v8837_v12  ;;  %v9061_v39 = vld [vmem:[#allocation6 + $0x390] sm:$0xf] }
 0x164   :  { %2115 = vmatpush.bf16.msrb.mxu1 %v8958_v48  ;;  %2128 = vmatpush.bf16.msrb.mxu2 %v8706_v52  ;;  %v12955_v5 = vpop.eup %12954  ;;  %v12148_v47 = vld [vmem:[#allocation6 + $0x20c] sm:$0xf]  ;;  %v8610_v58 = vor.u32 %v12084_v43, %v8607_v62  ;;  %v12201_v43 = vld [vmem:[#allocation6 + $0x3ac] sm:$0xf0]  ;;  %v12133_v62 = vld [vmem:[#allocation6 + $0x194] sm:$0xf] }
 0x165   :  { %2141 = vmatpush.bf16.msrb.mxu3 %v8962_v53  ;;  %v12957_v21 = vpop.eup %12956  ;;  %v1256_v22 = vmul.f32 0.5, %v12955_v5  ;;  %v8863_v48 = vld [vmem:[#allocation6 + $0x228] sm:$0xf0]  ;;  %v178_v53 = vadd.f32 %v13276_v27, %v136_v32 }
 0x166   :  { %2103 = vmatpush.bf16.msrb.mxu0 %v8670_v59  ;;  %v1252_v45 = vmul.f32 0.5, %v12957_v21  ;;  %v8866_v57 = vor.u32 %v12148_v47, %v8863_v48  ;;  %v9063_v47 = vld [vmem:[#allocation6 + $0x3b0] sm:$0xf0] }
 0x167   :  { %v1257_v52 = vadd.f32 0.5, %v1256_v22  ;;  %v8839_v22 = vld [vmem:[#allocation6 + $0x1f0] sm:$0xf0] }
 0x168   :  { %2116 = vmatpush.bf16.msrb.mxu1 %v8926_v1  ;;  %2129 = vmatpush.bf16.msrb.mxu2 %v8674_v2  ;;  %v1253_v59 = vadd.f32 0.5, %v1252_v45  ;;  %v8842_v36 = vor.u32 %v12141_v17, %v8839_v22  ;;  %v8807_v45 = vld [vmem:[#allocation6 + $0x1b0] sm:$0xf0] }
 0x169   :  { %2142 = vmatpush.bf16.msrb.mxu3 %v8930_v10  ;;  %v1263_v0 = vmul.f32 %v1257_v52, %v13288_v44  ;;  %v9093_v44 = vld [vmem:[#allocation6 + $0x3d0] sm:$0xf]  ;;  %v12109_v22 = vld [vmem:[#allocation6 + $0xd4] sm:$0xf] }
 0x16a   :  { %2104 = vmatpush.bf16.msrb.mxu0 %v8638_v14  ;;  %v9094_v32 = vor.u32 %v12209_v15, %v9093_v44  ;;  %v8709_v44 = vld [vmem:[#allocation6 + $0xd0] sm:$0xf] }
 0x16c   :  { %2117 = vmatpush.bf16.msrb.mxu1 %v8894_v24  ;;  %2130 = vmatpush.bf16.msrb.mxu2 %v8642_v28  ;;  %v9095_v24 = vld [vmem:[#allocation6 + $0x3f0] sm:$0xf0] }
 0x16d   :  { %2143 = vmatpush.bf16.msrb.mxu3 %v8898_v33  ;;  %v8805_v33 = vld [vmem:[#allocation6 + $0x190] sm:$0xf] }
 0x16e   :  { %v1179_v6 = vpop.f32.mrf.mxu0  ;;  %v1192_v7 = vpop.f32.mrf.mxu1  ;;  %2105 = vmatpush.bf16.msrb.mxu0 %v8606_v46  ;;  %v12197_v46 = vld [vmem:[#allocation6 + $0x394] sm:$0xf]  ;;  %v8806_v48 = vor.u32 %v12137_v35, %v8805_v33  ;;  %v8677_v35 = vld [vmem:[#allocation6 + $0x90] sm:$0xf] }
 0x16f   :  { %v1193_v61 = vadd.f32 %v1192_v7, %v1179_v6  ;;  %v9066_v52 = vor.u32 %v12197_v46, %v9063_v47  ;;  %v8679_v46 = vld [vmem:[#allocation6 + $0xb0] sm:$0xf0] }
 0x170   :  { %2118 = vmatpush.bf16.msrb.mxu1 %v8862_v51  ;;  %2131 = vmatpush.bf16.msrb.mxu2 %v8610_v58  ;;  %v12129_v51 = vld [vmem:[#allocation6 + $0x16c] sm:$0xf0]  ;;  %v8810_v58 = vor.u32 %v12133_v62, %v8807_v45  ;;  %v12101_v45 = vld [vmem:[#allocation6 + $0x94] sm:$0xf] }
 0x171   :  { %v1248_v23 = vadd.f32 %v1193_v61, %v177_v41  ;;  %2144 = vmatpush.bf16.msrb.mxu3 %v8866_v57  ;;  %v12189_v57 = vld [vmem:[#allocation6 + $0x354] sm:$0xf]  ;;  %v12169_v62 = vld [vmem:[#allocation6 + $0x2ac] sm:$0xf0] }
 0x172   :  { %v12165_v47 = vld [vmem:[#allocation6 + $0x294] sm:$0xf] }
 0x173   :  { %12958 = vtanh.f32 %v1248_v23  ;;  %v12205_v23 = vld [vmem:[#allocation6 + $0x3d4] sm:$0xf] }
 0x174   :  { %v9098_v38 = vor.u32 %v12205_v23, %v9095_v24  ;;  %v8711_v23 = vld [vmem:[#allocation6 + $0xf0] sm:$0xf0] }
 0x175   :  { %v1205_v49 = vpop.f32.mrf.mxu2  ;;  %v1218_v50 = vpop.f32.mrf.mxu3  ;;  %v12173_v24 = vld [vmem:[#allocation6 + $0x2d4] sm:$0xf] }
 0x176   :  { %v1219_v54 = vadd.f32 %v1218_v50, %v1205_v49  ;;  %v1181_v31 = vpop.f32.mrf.mxu0  ;;  %v1194_v55 = vpop.f32.mrf.mxu1  ;;  %v9062_v49 = vor.u32 %v12201_v43, %v9061_v39  ;;  %v8773_v50 = vld [vmem:[#allocation6 + $0x150] sm:$0xf] }
 0x177   :  { %v12125_v31 = vld [vmem:[#allocation6 + $0x154] sm:$0xf]  ;;  %v8933_v43 = vld [vmem:[#allocation6 + $0x290] sm:$0xf] }
 0x178   :  { %v1249_v60 = vadd.f32 %v1219_v54, %v178_v53  ;;  %v9029_v53 = vld [vmem:[#allocation6 + $0x350] sm:$0xf]  ;;  %v8775_v55 = vld [vmem:[#allocation6 + $0x170] sm:$0xf0] }
 0x179   :  { %v12959_v63 = vpop.eup %12958  ;;  %v12193_v54 = vld [vmem:[#allocation6 + $0x36c] sm:$0xf0] }
 0x17a   :  { %v1264_v1 = vmul.f32 %v12959_v63, %v1253_v59  ;;  %v1259_v2 = vmul.f32 0.5, %v1249_v60  ;;  %v9031_v59 = vld [vmem:[#allocation6 + $0x370] sm:$0xf0]  ;;  %v8774_v60 = vor.u32 %v12129_v51, %v8773_v50  ;;  %v9030_v63 = vor.u32 %v12193_v54, %v9029_v53  ;;  %v8645_v51 = vld [vmem:[#allocation6 + $0x50] sm:$0xf] }
 0x17b   :  { %v8934_v50 = vor.u32 %v12169_v62, %v8933_v43  ;;  %v8901_v54 = vld [vmem:[#allocation6 + $0x250] sm:$0xf]  ;;  %v9069_v62 = vld [vmem:[#allocation6 + $0x398] sm:$0xf] }
 0x17c   :  { %v13353_v3 = vadd.f32 %v1264_v1, %v1263_v0  ;;  %12960 = vtanh.f32 %v1259_v2  ;;  %v8741_v0 = vld [vmem:[#allocation6 + $0x110] sm:$0xf]  ;;  %v8778_v2 = vor.u32 %v12125_v31, %v8775_v55  ;;  %v12093_v55 = vld [vmem:[#allocation6 + $0x54] sm:$0xf] }
 0x17d   :  { %v1207_v4 = vpop.f32.mrf.mxu2  ;;  %v1220_v5 = vpop.f32.mrf.mxu3  ;;  %v12121_v1 = vld [vmem:[#allocation6 + $0x12c] sm:$0xf0] }
 0x17e   :  { %12962 = vtanh.f32 %v13353_v3  ;;  %v9034_v4 = vor.u32 %v12189_v57, %v9031_v59  ;;  %v8997_v5 = vld [vmem:[#allocation6 + $0x310] sm:$0xf]  ;;  %v8742_v12 = vor.u32 %v12121_v1, %v8741_v0  ;;  %v8647_v57 = vld [vmem:[#allocation6 + $0x70] sm:$0xf0] }
 0x17f   :  { %v12161_v31 = vld [vmem:[#allocation6 + $0x26c] sm:$0xf0]  ;;  %v12157_v59 = vld [vmem:[#allocation6 + $0x254] sm:$0xf] }
 0x180   :  { %v12089_v0 = vld [vmem:[#allocation6 + $0x2c] sm:$0xf0] }
 0x182   :  { %v12961_v6 = vpop.eup %12960 }
 0x183   :  { %v1261_v7 = vmul.f32 0.5, %v12961_v6  ;;  %v12185_v6 = vld [vmem:[#allocation6 + $0x32c] sm:$0xf0] }
 0x184   :  { %v12963_v10 = vpop.eup %12962  ;;  %v8998_v13 = vor.u32 %v12185_v6, %v8997_v5  ;;  %v12153_v5 = vld [vmem:[#allocation6 + $0x22c] sm:$0xf0]  ;;  %v12085_v6 = vld [vmem:[#allocation6 + $0x14] sm:$0xf] }
 0x185   :  { %v1262_v41 = vadd.f32 0.5, %v1261_v7  ;;  %v12117_v7 = vld [vmem:[#allocation6 + $0x114] sm:$0xf] }
 0x187   :  { %v1267_v61 = vmul.f32 %v12963_v10, %v1262_v41  ;;  %v8743_v10 = vld [vmem:[#allocation6 + $0x130] sm:$0xf0] }
 0x188   :  { %v12181_v41 = vld [vmem:[#allocation6 + $0x314] sm:$0xf]  ;;  %v8746_v15 = vor.u32 %v12117_v7, %v8743_v10  ;;  %v8650_v7 = vor.u32 %v12093_v55, %v8647_v57  ;;  %v12194_v55 = vld [vmem:[#allocation6 + $0x374] sm:$0xf0]  ;;  %v12126_v57 = vld [vmem:[#allocation6 + $0x15c] sm:$0xf] }
 0x189   :  { %v1268_v11 = vpack.c.bf16 %v1267_v61, %v1267_v61  ;;  %v8999_v61 = vld [vmem:[#allocation6 + $0x330] sm:$0xf0] }
 0x18a   :  { %v9002_v17 = vor.u32 %v12181_v41, %v8999_v61  ;;  %v8615_v41 = vld [vmem:[#allocation6 + $0x30] sm:$0xf0] }
 0x18b   :  { %1269 = vst [vmem:[#allocation2] sm:$0xf] %v1268_v11  ;;  %v73_v11 = vld [vmem:[%s13715_s0 + $0x10] sm:$0xff]  ;;  %v12149_v61 = vld [vmem:[#allocation6 + $0x214] sm:$0xf] }
 0x18c   :  { %92 = vperm.xlu1 %12931, %v73_v11   ;;  %v8871_v11 = vld [vmem:[#allocation6 + $0x230] sm:$0xf0] }
 0x192   :  { %v1270_v14 = vld [vmem:[#allocation2] sm:$0xff] }
 0x193   :  { %v1400_v18 = vunpack.c.l.b16 %v1270_v14  ;;  %v1401_v21 = vunpack.c.h.b16 %v1270_v14  ;;  %v12113_v14 = vld [vmem:[#allocation6 + $0xec] sm:$0xf0] }
 0x195   :  { %v13356_v28 = vpack.c.b16 %v1400_v18, %v1400_v18  ;;  %v13358_v29 = vpack.c.b16 %v1401_v21, %v1401_v21  ;;  %v8965_v18 = vld [vmem:[#allocation6 + $0x2d0] sm:$0xf] }
 0x196   :  { %v12177_v21 = vld [vmem:[#allocation6 + $0x2ec] sm:$0xf0] }
 0x197   :  { %2054 = vmatmul.bf16.vlgmr.msra.gmra.mxu0 %v13356_v28  ;;  %2067 = vmatmul.bf16.vlgmr.msra.gmra.mxu1 %v13358_v29  ;;  %v8966_v33 = vor.u32 %v12177_v21, %v8965_v18 }
 0x198   :  { %2080 = vmatmul.bf16.vlgmr.msra.gmra.mxu2 %v13356_v28  ;;  %2093 = vmatmul.bf16.vlgmr.msra.gmra.mxu3 %v13358_v29 }
 0x199   :  { %2150 = vmatpush.bf16.msra.mxu0 %v8838_v30  ;;  %2163 = vmatpush.bf16.msra.mxu1 %v9094_v32  ;;  %v8967_v30 = vld [vmem:[#allocation6 + $0x2f0] sm:$0xf0]  ;;  %v8710_v32 = vor.u32 %v12113_v14, %v8709_v44  ;;  %v9101_v44 = vld [vmem:[#allocation6 + $0x3d8] sm:$0xf] }
 0x19a   :  { %2176 = vmatpush.bf16.msra.mxu2 %v8842_v36  ;;  %2189 = vmatpush.bf16.msra.mxu3 %v9098_v38  ;;  %v12105_v36 = vld [vmem:[#allocation6 + $0xac] sm:$0xf0]  ;;  %v8714_v38 = vor.u32 %v12109_v22, %v8711_v23  ;;  %v8970_v39 = vor.u32 %v12173_v24, %v8967_v30  ;;  %v12210_v14 = vld [vmem:[#allocation6 + $0x3f4] sm:$0xf0]  ;;  %v8847_v22 = vld [vmem:[#allocation6 + $0x1f8] sm:$0xf0]  ;;  %v8618_v30 = vor.u32 %v12085_v6, %v8615_v41 }
 0x19b   :  { %v12206_v23 = vld [vmem:[#allocation6 + $0x3dc] sm:$0xf]  ;;  %v12186_v41 = vld [vmem:[#allocation6 + $0x334] sm:$0xf0] }
 0x19c   :  { %v9103_v24 = vld [vmem:[#allocation6 + $0x3f8] sm:$0xf0] }
 0x19d   :  { %2151 = vmatpush.bf16.msra.mxu0 %v8806_v48  ;;  %2164 = vmatpush.bf16.msra.mxu1 %v9062_v49  ;;  %v8935_v48 = vld [vmem:[#allocation6 + $0x2b0] sm:$0xf0]  ;;  %v8678_v49 = vor.u32 %v12105_v36, %v8677_v35  ;;  %v9102_v35 = vor.u32 %v12210_v14, %v9101_v44  ;;  %v8813_v36 = vld [vmem:[#allocation6 + $0x198] sm:$0xf]  ;;  %v9106_v43 = vor.u32 %v12206_v23, %v9103_v24  ;;  %v12110_v24 = vld [vmem:[#allocation6 + $0xdc] sm:$0xf] }
 0x19e   :  { %2177 = vmatpush.bf16.msra.mxu2 %v8810_v58  ;;  %2190 = vmatpush.bf16.msra.mxu3 %v9066_v52  ;;  %v12097_v58 = vld [vmem:[#allocation6 + $0x6c] sm:$0xf0]  ;;  %v8682_v52 = vor.u32 %v12101_v45, %v8679_v46  ;;  %v8938_v53 = vor.u32 %v12165_v47, %v8935_v48  ;;  %v12202_v45 = vld [vmem:[#allocation6 + $0x3b4] sm:$0xf0]  ;;  %v12134_v46 = vld [vmem:[#allocation6 + $0x19c] sm:$0xf] }
 0x19f   :  { %v8646_v1 = vor.u32 %v12097_v58, %v8645_v51  ;;  %v8815_v47 = vld [vmem:[#allocation6 + $0x1b8] sm:$0xf0]  ;;  %v9070_v51 = vor.u32 %v12202_v45, %v9069_v62  ;;  %v8781_v58 = vld [vmem:[#allocation6 + $0x158] sm:$0xf] }
 0x1a0   :  { %v12198_v48 = vld [vmem:[#allocation6 + $0x39c] sm:$0xf]  ;;  %v12178_v23 = vld [vmem:[#allocation6 + $0x2f4] sm:$0xf0] }
 0x1a1   :  { %2152 = vmatpush.bf16.msra.mxu0 %v8774_v60  ;;  %2165 = vmatpush.bf16.msra.mxu1 %v9030_v63  ;;  %v8903_v60 = vld [vmem:[#allocation6 + $0x270] sm:$0xf0]  ;;  %v8613_v63 = vld [vmem:[#allocation6 + $0x10] sm:$0xf]  ;;  %v8941_v45 = vld [vmem:[#allocation6 + $0x298] sm:$0xf] }
 0x1a2   :  { %2178 = vmatpush.bf16.msra.mxu2 %v8778_v2  ;;  %2191 = vmatpush.bf16.msra.mxu3 %v9034_v4  ;;  %v8902_v2 = vor.u32 %v12161_v31, %v8901_v54  ;;  %v8869_v4 = vld [vmem:[#allocation6 + $0x210] sm:$0xf]  ;;  %v8906_v10 = vor.u32 %v12157_v59, %v8903_v60  ;;  %v8614_v18 = vor.u32 %v12089_v0, %v8613_v63  ;;  %v9037_v31 = vld [vmem:[#allocation6 + $0x358] sm:$0xf]  ;;  %v8783_v59 = vld [vmem:[#allocation6 + $0x178] sm:$0xf0] }
 0x1a3   :  { %v8870_v21 = vor.u32 %v12153_v5, %v8869_v4  ;;  %v12190_v60 = vld [vmem:[#allocation6 + $0x35c] sm:$0xf]  ;;  %v78_v0 = vld [vmem:[%s13715_s0 + $0x38] sm:$0xff]  ;;  %v8749_v4 = vld [vmem:[#allocation6 + $0x118] sm:$0xf]  ;;  %v8786_v6 = vor.u32 %v12126_v57, %v8783_v59 }
 0x1a4   :  { %v9039_v63 = vld [vmem:[#allocation6 + $0x378] sm:$0xf0]  ;;  %v12122_v5 = vld [vmem:[#allocation6 + $0x134] sm:$0xf0] }
 0x1a5   :  { %2153 = vmatpush.bf16.msra.mxu0 %v8742_v12  ;;  %2166 = vmatpush.bf16.msra.mxu1 %v8998_v13  ;;  %v8845_v12 = vld [vmem:[#allocation6 + $0x1d8] sm:$0xf]  ;;  %v8750_v44 = vor.u32 %v12122_v5, %v8749_v4  ;;  %v12094_v59 = vld [vmem:[#allocation6 + $0x5c] sm:$0xf] }
 0x1a6   :  { %2179 = vmatpush.bf16.msra.mxu2 %v8746_v15  ;;  %2192 = vmatpush.bf16.msra.mxu3 %v9002_v17  ;;  %v12146_v13 = vld [vmem:[#allocation6 + $0x1f4] sm:$0xf0]  ;;  %v12142_v15 = vld [vmem:[#allocation6 + $0x1dc] sm:$0xf]  ;;  %v74_v17 = vld [vmem:[%s13715_s0 + $0x18] sm:$0xff] }
 0x1a7   :  { %2106 = vmatmul.bf16.vlgmr.msrb.gmra.mxu0 %v13356_v28  ;;  %2119 = vmatmul.bf16.vlgmr.msrb.gmra.mxu1 %v13358_v29  ;;  %v12162_v57 = vld [vmem:[#allocation6 + $0x274] sm:$0xf0] }
 0x1a8   :  { %2132 = vmatmul.bf16.vlgmr.msrb.gmra.mxu2 %v13356_v28  ;;  %2145 = vmatmul.bf16.vlgmr.msrb.gmra.mxu3 %v13358_v29  ;;  %v8621_v4 = vld [vmem:[#allocation6 + $0x18] sm:$0xf] }
 0x1a9   :  { %2154 = vmatpush.bf16.msra.mxu0 %v8710_v32  ;;  %2167 = vmatpush.bf16.msra.mxu1 %v8966_v33  ;;  %v8874_v32 = vor.u32 %v12149_v61, %v8871_v11  ;;  %v8846_v33 = vor.u32 %v12146_v13, %v8845_v12  ;;  %v12118_v61 = vld [vmem:[#allocation6 + $0x11c] sm:$0xf]  ;;  %v12090_v5 = vld [vmem:[#allocation6 + $0x34] sm:$0xf0] }
 0x1aa   :  { %2180 = vmatpush.bf16.msra.mxu2 %v8714_v38  ;;  %2193 = vmatpush.bf16.msra.mxu3 %v8970_v39  ;;  %v12138_v38 = vld [vmem:[#allocation6 + $0x1b4] sm:$0xf0]  ;;  %v8850_v39 = vor.u32 %v12142_v15, %v8847_v22  ;;  %v8751_v11 = vld [vmem:[#allocation6 + $0x138] sm:$0xf0] }
 0x1ab   :  { %97 = vperm.xlu1 %12931, %v74_v17   ;;  %v12182_v12 = vld [vmem:[#allocation6 + $0x31c] sm:$0xf]  ;;  %v8717_v15 = vld [vmem:[#allocation6 + $0xd8] sm:$0xf] }
 0x1ac   :  { %v9007_v13 = vld [vmem:[#allocation6 + $0x338] sm:$0xf0]  ;;  %v12114_v17 = vld [vmem:[#allocation6 + $0xf4] sm:$0xf0] }
 0x1ad   :  { %2155 = vmatpush.bf16.msra.mxu0 %v8678_v49  ;;  %2168 = vmatpush.bf16.msra.mxu1 %v8934_v50  ;;  %v9071_v49 = vld [vmem:[#allocation6 + $0x3b8] sm:$0xf0]  ;;  %v8814_v50 = vor.u32 %v12138_v38, %v8813_v36  ;;  %v8973_v22 = vld [vmem:[#allocation6 + $0x2d8] sm:$0xf] }
 0x1ae   :  { %2181 = vmatpush.bf16.msra.mxu2 %v8682_v52  ;;  %2194 = vmatpush.bf16.msra.mxu3 %v8938_v53  ;;  %v12130_v52 = vld [vmem:[#allocation6 + $0x174] sm:$0xf0]  ;;  %v8818_v53 = vor.u32 %v12134_v46, %v8815_v47  ;;  %v9074_v54 = vor.u32 %v12198_v48, %v9071_v49  ;;  %v8974_v36 = vor.u32 %v12178_v23, %v8973_v22  ;;  %v12102_v47 = vld [vmem:[#allocation6 + $0x9c] sm:$0xf] }
 0x1af   :  { %v8685_v38 = vld [vmem:[#allocation6 + $0x98] sm:$0xf]  ;;  %v8687_v48 = vld [vmem:[#allocation6 + $0xb8] sm:$0xf0] }
 0x1b0   :  { %v12170_v46 = vld [vmem:[#allocation6 + $0x2b4] sm:$0xf0]  ;;  %v12166_v49 = vld [vmem:[#allocation6 + $0x29c] sm:$0xf] }
 0x1b1   :  { %2156 = vmatpush.bf16.msra.mxu0 %v8646_v1  ;;  %2169 = vmatpush.bf16.msra.mxu1 %v8902_v2  ;;  %v8782_v1 = vor.u32 %v12130_v52, %v8781_v58  ;;  %v9038_v2 = vor.u32 %v12194_v55, %v9037_v31  ;;  %v8942_v58 = vor.u32 %v12170_v46, %v8941_v45  ;;  %v8653_v52 = vld [vmem:[#allocation6 + $0x58] sm:$0xf]  ;;  %v12335_v46 = vld [vmem:[#allocation6 + $0x3dc] sm:$0xf0] }
 0x1b2   :  { %2182 = vmatpush.bf16.msra.mxu2 %v8650_v7  ;;  %2195 = vmatpush.bf16.msra.mxu3 %v8906_v10  ;;  %v9042_v7 = vor.u32 %v12190_v60, %v9039_v63  ;;  %v9005_v10 = vld [vmem:[#allocation6 + $0x318] sm:$0xf]  ;;  %v8655_v60 = vld [vmem:[#allocation6 + $0x78] sm:$0xf0] }
 0x1b3   :  { %117 = vperm.xlu1 %12931, %v78_v0   ;;  %v9006_v14 = vor.u32 %v12186_v41, %v9005_v10  ;;  %v8909_v55 = vld [vmem:[#allocation6 + $0x258] sm:$0xf]  ;;  %v12158_v63 = vld [vmem:[#allocation6 + $0x25c] sm:$0xf] }
 0x1b4   :  { %v8911_v0 = vld [vmem:[#allocation6 + $0x278] sm:$0xf0]  ;;  %v8877_v10 = vld [vmem:[#allocation6 + $0x218] sm:$0xf] }
 0x1b5   :  { %2157 = vmatpush.bf16.msra.mxu0 %v8614_v18  ;;  %2170 = vmatpush.bf16.msra.mxu1 %v8870_v21  ;;  %v8754_v18 = vor.u32 %v12118_v61, %v8751_v11  ;;  %v9010_v21 = vor.u32 %v12182_v12, %v9007_v13  ;;  %v12154_v41 = vld [vmem:[#allocation6 + $0x234] sm:$0xf0]  ;;  %v12086_v61 = vld [vmem:[#allocation6 + $0x1c] sm:$0xf] }
 0x1b6   :  { %2183 = vmatpush.bf16.msra.mxu2 %v8618_v30  ;;  %2196 = vmatpush.bf16.msra.mxu3 %v8874_v32  ;;  %v8719_v30 = vld [vmem:[#allocation6 + $0xf8] sm:$0xf0] }
 0x1b7   :  { %v12174_v32 = vld [vmem:[#allocation6 + $0x2dc] sm:$0xf] }
 0x1b8   :  { %2158 = vmatmul.bf16.vlgmr.msra.gmra.mxu0 %v13356_v28  ;;  %2171 = vmatmul.bf16.vlgmr.msra.gmra.mxu1 %v13358_v29  ;;  %v8623_v11 = vld [vmem:[#allocation6 + $0x38] sm:$0xf0] }
 0x1b9   :  { %2202 = vmatpush.bf16.msrb.mxu0 %v8846_v33  ;;  %2215 = vmatpush.bf16.msrb.mxu1 %v9102_v35  ;;  %v8975_v33 = vld [vmem:[#allocation6 + $0x2f8] sm:$0xf0]  ;;  %v8718_v35 = vor.u32 %v12114_v17, %v8717_v15  ;;  %v8626_v15 = vor.u32 %v12086_v61, %v8623_v11  ;;  %v9269_v11 = vld [vmem:[#allocation6 + $0x140] sm:$0xf] }
 0x1ba   :  { %2228 = vmatpush.bf16.msrb.mxu2 %v8850_v39  ;;  %2241 = vmatpush.bf16.msrb.mxu3 %v9106_v43  ;;  %v12106_v39 = vld [vmem:[#allocation6 + $0xb4] sm:$0xf0]  ;;  %v8722_v43 = vor.u32 %v12110_v24, %v8719_v30  ;;  %v8978_v62 = vor.u32 %v12174_v32, %v8975_v33  ;;  %v12150_v12 = vld [vmem:[#allocation6 + $0x21c] sm:$0xf] }
 0x1bb   :  { %2184 = vmatmul.bf16.vlgmr.msra.gmra.mxu2 %v13356_v28  ;;  %2197 = vmatmul.bf16.vlgmr.msra.gmra.mxu3 %v13358_v29  ;;  %v8879_v13 = vld [vmem:[#allocation6 + $0x238] sm:$0xf0] }
 0x1bc   :  { %v8882_v17 = vor.u32 %v12150_v12, %v8879_v13  ;;  %v12255_v12 = vld [vmem:[#allocation6 + $0x15c] sm:$0xf0] }
 0x1bd   :  { %2203 = vmatpush.bf16.msrb.mxu0 %v8814_v50  ;;  %2216 = vmatpush.bf16.msrb.mxu1 %v9070_v51  ;;  %v8943_v50 = vld [vmem:[#allocation6 + $0x2b8] sm:$0xf0]  ;;  %v8686_v51 = vor.u32 %v12106_v39, %v8685_v38  ;;  %v9333_v39 = vld [vmem:[#allocation6 + $0x1c0] sm:$0xf] }
 0x1be   :  { %2229 = vmatpush.bf16.msrb.mxu2 %v8818_v53  ;;  %2242 = vmatpush.bf16.msrb.mxu3 %v9074_v54  ;;  %v12098_v53 = vld [vmem:[#allocation6 + $0x74] sm:$0xf0]  ;;  %v8690_v54 = vor.u32 %v12102_v47, %v8687_v48  ;;  %v8946_v31 = vor.u32 %v12166_v49, %v8943_v50  ;;  %v9335_v48 = vld [vmem:[#allocation6 + $0x1e0] sm:$0xf0]  ;;  %v9525_v13 = vld [vmem:[#allocation6 + $0x340] sm:$0xf] }
 0x1bf   :  { %v12331_v49 = vld [vmem:[#allocation6 + $0x3c4] sm:$0xf] }
 0x1c0   :  { %v9591_v50 = vld [vmem:[#allocation6 + $0x3e0] sm:$0xf0] }
 0x1c1   :  { %2204 = vmatpush.bf16.msrb.mxu0 %v8782_v1  ;;  %2217 = vmatpush.bf16.msrb.mxu1 %v9038_v2  ;;  %v8654_v1 = vor.u32 %v12098_v53, %v8653_v52  ;;  %v8910_v2 = vor.u32 %v12162_v57, %v8909_v55  ;;  %v9557_v55 = vld [vmem:[#allocation6 + $0x380] sm:$0xf] }
 0x1c2   :  { %2230 = vmatpush.bf16.msrb.mxu2 %v8786_v6  ;;  %2243 = vmatpush.bf16.msrb.mxu3 %v9042_v7  ;;  %v8658_v6 = vor.u32 %v12094_v59, %v8655_v60  ;;  %v8914_v7 = vor.u32 %v12158_v63, %v8911_v0  ;;  %v12327_v63 = vld [vmem:[#allocation6 + $0x39c] sm:$0xf0]  ;;  %v12259_v0 = vld [vmem:[#allocation6 + $0x184] sm:$0xf] }
 0x1c5   :  { %2205 = vmatpush.bf16.msrb.mxu0 %v8750_v44  ;;  %2218 = vmatpush.bf16.msrb.mxu1 %v9006_v14  ;;  %v8622_v44 = vor.u32 %v12090_v5, %v8621_v4  ;;  %v8878_v14 = vor.u32 %v12154_v41, %v8877_v10  ;;  %v9303_v4 = vld [vmem:[#allocation6 + $0x1a0] sm:$0xf0] }
 0x1c6   :  { %2231 = vmatpush.bf16.msrb.mxu2 %v8754_v18  ;;  %2244 = vmatpush.bf16.msrb.mxu3 %v9010_v21  ;;  %v12323_v5 = vld [vmem:[#allocation6 + $0x384] sm:$0xf] }
 0x1c9   :  { %2206 = vmatpush.bf16.msrb.mxu0 %v8718_v35  ;;  %2219 = vmatpush.bf16.msrb.mxu1 %v8974_v36 }
 0x1ca   :  { %2232 = vmatpush.bf16.msrb.mxu2 %v8722_v43  ;;  %2245 = vmatpush.bf16.msrb.mxu3 %v8978_v62  ;;  %v12271_v43 = vld [vmem:[#allocation6 + $0x1dc] sm:$0xf0] }
 0x1cb   :  { %v9589_v62 = vld [vmem:[#allocation6 + $0x3c0] sm:$0xf] }
 0x1cc   :  { %v9590_v47 = vor.u32 %v12335_v46, %v9589_v62 }
 0x1cd   :  { %2207 = vmatpush.bf16.msrb.mxu0 %v8686_v51  ;;  %2220 = vmatpush.bf16.msrb.mxu1 %v8942_v58  ;;  %v9594_v58 = vor.u32 %v12331_v49, %v9591_v50  ;;  %v9239_v50 = vld [vmem:[#allocation6 + $0x120] sm:$0xf0] }
 0x1ce   :  { %2233 = vmatpush.bf16.msrb.mxu2 %v8690_v54  ;;  %2246 = vmatpush.bf16.msrb.mxu3 %v8946_v31  ;;  %v9301_v54 = vld [vmem:[#allocation6 + $0x180] sm:$0xf] }
 0x1cf   :  { %v12263_v31 = vld [vmem:[#allocation6 + $0x19c] sm:$0xf0] }
 0x1d0   :  { %v9302_v60 = vor.u32 %v12263_v31, %v9301_v54 }
 0x1d1   :  { %2208 = vmatpush.bf16.msrb.mxu0 %v8654_v1  ;;  %2221 = vmatpush.bf16.msrb.mxu1 %v8910_v2  ;;  %v9558_v2 = vor.u32 %v12327_v63, %v9557_v55 }
 0x1d2   :  { %2234 = vmatpush.bf16.msrb.mxu2 %v8658_v6  ;;  %2247 = vmatpush.bf16.msrb.mxu3 %v8914_v7  ;;  %v9559_v6 = vld [vmem:[#allocation6 + $0x3a0] sm:$0xf0]  ;;  %v9306_v7 = vor.u32 %v12259_v0, %v9303_v4 }
 0x1d3   :  { %v9562_v10 = vor.u32 %v12323_v5, %v9559_v6  ;;  %v12235_v4 = vld [vmem:[#allocation6 + $0xc4] sm:$0xf] }
 0x1d4   :  { %v9207_v6 = vld [vmem:[#allocation6 + $0xe0] sm:$0xf0] }
 0x1d5   :  { %2209 = vmatpush.bf16.msrb.mxu0 %v8622_v44  ;;  %2222 = vmatpush.bf16.msrb.mxu1 %v8878_v14  ;;  %v9270_v14 = vor.u32 %v12255_v12, %v9269_v11  ;;  %v9210_v11 = vor.u32 %v12235_v4, %v9207_v6  ;;  %v9111_v6 = vld [vmem:[#allocation6 + $0x20] sm:$0xf0] }
 0x1d6   :  { %2235 = vmatpush.bf16.msrb.mxu2 %v8626_v15  ;;  %2248 = vmatpush.bf16.msrb.mxu3 %v8882_v17  ;;  %v12319_v15 = vld [vmem:[#allocation6 + $0x35c] sm:$0xf0]  ;;  %v12251_v17 = vld [vmem:[#allocation6 + $0x144] sm:$0xf] }
 0x1d8   :  { %2210 = vmatmul.bf16.vlgmr.msrb.gmra.mxu0 %v13356_v28  ;;  %2223 = vmatmul.bf16.vlgmr.msrb.gmra.mxu1 %v13358_v29 }
 0x1d9   :  { %2236 = vmatmul.bf16.vlgmr.msrb.gmra.mxu2 %v13356_v28  ;;  %2249 = vmatmul.bf16.vlgmr.msrb.gmra.mxu3 %v13358_v29  ;;  %v9334_v28 = vor.u32 %v12271_v43, %v9333_v39  ;;  %v12267_v29 = vld [vmem:[#allocation6 + $0x1c4] sm:$0xf]  ;;  %v9237_v39 = vld [vmem:[#allocation6 + $0x100] sm:$0xf] }
 0x1da   :  { %v9338_v51 = vor.u32 %v12267_v29, %v9335_v48  ;;  %3091 = vmatpush.bf16.msra.mxu1 %v9590_v47  ;;  %3117 = vmatpush.bf16.msra.mxu3 %v9594_v58  ;;  %v12247_v43 = vld [vmem:[#allocation6 + $0x11c] sm:$0xf0]  ;;  %v12243_v48 = vld [vmem:[#allocation6 + $0x104] sm:$0xf] }
 0x1db   :  { %3078 = vmatpush.bf16.msra.mxu0 %v9334_v28  ;;  %v9238_v46 = vor.u32 %v12247_v43, %v9237_v39  ;;  %v9493_v29 = vld [vmem:[#allocation6 + $0x300] sm:$0xf]  ;;  %v9495_v58 = vld [vmem:[#allocation6 + $0x320] sm:$0xf0]  ;;  %v9242_v31 = vor.u32 %v12243_v48, %v9239_v50 }
 0x1dc   :  { %3104 = vmatpush.bf16.msra.mxu2 %v9338_v51  ;;  %v12311_v47 = vld [vmem:[#allocation6 + $0x31c] sm:$0xf0]  ;;  %v12307_v51 = vld [vmem:[#allocation6 + $0x304] sm:$0xf] }
 0x1dd   :  { %v9494_v49 = vor.u32 %v12311_v47, %v9493_v29  ;;  %v9498_v55 = vor.u32 %v12307_v51, %v9495_v58  ;;  %v12223_v39 = vld [vmem:[#allocation6 + $0x5c] sm:$0xf0]  ;;  %v9143_v29 = vld [vmem:[#allocation6 + $0x60] sm:$0xf0] }
 0x1de   :  { %3092 = vmatpush.bf16.msra.mxu1 %v9558_v2  ;;  %3118 = vmatpush.bf16.msra.mxu3 %v9562_v10  ;;  %v12303_v2 = vld [vmem:[#allocation6 + $0x2dc] sm:$0xf0]  ;;  %v9463_v10 = vld [vmem:[#allocation6 + $0x2e0] sm:$0xf0] }
 0x1df   :  { %3079 = vmatpush.bf16.msra.mxu0 %v9302_v60  ;;  %v9461_v60 = vld [vmem:[#allocation6 + $0x2c0] sm:$0xf]  ;;  %v12283_v50 = vld [vmem:[#allocation6 + $0x244] sm:$0xf] }
 0x1e0   :  { %3105 = vmatpush.bf16.msra.mxu2 %v9306_v7  ;;  %v12299_v7 = vld [vmem:[#allocation6 + $0x2c4] sm:$0xf]  ;;  %v9397_v43 = vld [vmem:[#allocation6 + $0x240] sm:$0xf] }
 0x1e1   :  { %v9399_v51 = vld [vmem:[#allocation6 + $0x260] sm:$0xf0] }
 0x1e3   :  { %3080 = vmatpush.bf16.msra.mxu0 %v9270_v14  ;;  %v12231_v14 = vld [vmem:[#allocation6 + $0x9c] sm:$0xf0] }
 0x1e7   :  { %3081 = vmatpush.bf16.msra.mxu0 %v9238_v46  ;;  %v12219_v46 = vld [vmem:[#allocation6 + $0x44] sm:$0xf] }
 0x214   :  { %v2055_v18 = vpop.f32.mrf.mxu0  ;;  %v2068_v21 = vpop.f32.mrf.mxu1 }
 0x215   :  { %v2069_v22 = vadd.f32 %v2068_v21, %v2055_v18  ;;  %v9271_v18 = vld [vmem:[#allocation6 + $0x160] sm:$0xf0] }
 0x217   :  { %v2254_v23 = vadd.f32 %v2069_v22, %v13314_v34  ;;  %v9526_v22 = vor.u32 %v12319_v15, %v9525_v13  ;;  %v9429_v15 = vld [vmem:[#allocation6 + $0x280] sm:$0xf] }
 0x219   :  { %v2258_v36 = vmul.f32 0.5, %v2254_v23  ;;  %v9274_v23 = vor.u32 %v12251_v17, %v9271_v18  ;;  %3093 = vmatpush.bf16.msra.mxu1 %v9526_v22  ;;  %v12295_v18 = vld [vmem:[#allocation6 + $0x29c] sm:$0xf0]  ;;  %v9175_v22 = vld [vmem:[#allocation6 + $0xa0] sm:$0xf0] }
 0x21b   :  { %v2081_v24 = vpop.f32.mrf.mxu2  ;;  %v2094_v30 = vpop.f32.mrf.mxu3  ;;  %12964 = vtanh.f32 %v2258_v36  ;;  %3106 = vmatpush.bf16.msra.mxu2 %v9274_v23  ;;  %v9430_v23 = vor.u32 %v12295_v18, %v9429_v15  ;;  %v9597_v15 = vld [vmem:[#allocation6 + $0x3c8] sm:$0xf] }
 0x21c   :  { %v2095_v32 = vadd.f32 %v2094_v30, %v2081_v24  ;;  %v2057_v33 = vpop.f32.mrf.mxu0  ;;  %v2070_v35 = vpop.f32.mrf.mxu1  ;;  %v12315_v24 = vld [vmem:[#allocation6 + $0x344] sm:$0xf] }
 0x21d   :  { %v9527_v30 = vld [vmem:[#allocation6 + $0x360] sm:$0xf0]  ;;  %3094 = vmatpush.bf16.msra.mxu1 %v9494_v49  ;;  %v9146_v49 = vor.u32 %v12219_v46, %v9143_v29 }
 0x21e   :  { %v2255_v38 = vadd.f32 %v2095_v32, %v13318_v37  ;;  %v9530_v33 = vor.u32 %v12315_v24, %v9527_v30  ;;  %v12291_v30 = vld [vmem:[#allocation6 + $0x284] sm:$0xf] }
 0x21f   :  { %3107 = vmatpush.bf16.msra.mxu2 %v9242_v31 }
 0x220   :  { %v2262_v45 = vmul.f32 0.5, %v2255_v38  ;;  %3119 = vmatpush.bf16.msra.mxu3 %v9530_v33 }
 0x221   :  { %v12965_v41 = vpop.eup %12964 }
 0x222   :  { %12966 = vtanh.f32 %v2262_v45  ;;  %v2260_v32 = vmul.f32 0.5, %v12965_v41 }
 0x223   :  { %v2083_v52 = vpop.f32.mrf.mxu2  ;;  %v2096_v53 = vpop.f32.mrf.mxu3  ;;  %3108 = vmatpush.bf16.msra.mxu2 %v9210_v11 }
 0x224   :  { %v2107_v57 = vpop.f32.mrf.mxu0  ;;  %v2120_v59 = vpop.f32.mrf.mxu1  ;;  %v2261_v52 = vadd.f32 0.5, %v2260_v32  ;;  %3120 = vmatpush.bf16.msra.mxu3 %v9498_v55  ;;  %v9431_v32 = vld [vmem:[#allocation6 + $0x2a0] sm:$0xf0]  ;;  %v9109_v55 = vld [vmem:[#allocation6] sm:$0xf] }
 0x225   :  { %v2121_v1 = vadd.f32 %v2120_v59, %v2107_v57  ;;  %v9205_v57 = vld [vmem:[#allocation6 + $0xc0] sm:$0xf] }
 0x226   :  { %v12239_v59 = vld [vmem:[#allocation6 + $0xdc] sm:$0xf0] }
 0x227   :  { %v2256_v61 = vadd.f32 %v2121_v1, %v13322_v56  ;;  %v9206_v5 = vor.u32 %v12239_v59, %v9205_v57  ;;  %v12215_v57 = vld [vmem:[#allocation6 + $0x1c] sm:$0xf0] }
 0x228   :  { %v12967_v44 = vpop.eup %12966  ;;  %v9110_v59 = vor.u32 %v12215_v57, %v9109_v55  ;;  %v9277_v57 = vld [vmem:[#allocation6 + $0x148] sm:$0xf] }
 0x229   :  { %v2264_v21 = vmul.f32 0.5, %v12967_v44  ;;  %12968 = vtanh.f32 %v2256_v61  ;;  %v9462_v61 = vor.u32 %v12303_v2, %v9461_v60  ;;  %3082 = vmatpush.bf16.msra.mxu0 %v9206_v5  ;;  %v9466_v44 = vor.u32 %v12299_v7, %v9463_v10  ;;  %v9365_v60 = vld [vmem:[#allocation6 + $0x200] sm:$0xf]  ;;  %v12275_v7 = vld [vmem:[#allocation6 + $0x204] sm:$0xf] }
 0x22a   :  { %v9367_v10 = vld [vmem:[#allocation6 + $0x220] sm:$0xf0] }
 0x22b   :  { %v2265_v35 = vadd.f32 0.5, %v2264_v21  ;;  %v2133_v36 = vpop.f32.mrf.mxu2  ;;  %v2146_v38 = vpop.f32.mrf.mxu3  ;;  %3095 = vmatpush.bf16.msra.mxu1 %v9462_v61  ;;  %v12227_v21 = vld [vmem:[#allocation6 + $0x84] sm:$0xf]  ;;  %3121 = vmatpush.bf16.msra.mxu3 %v9466_v44  ;;  %v9370_v44 = vor.u32 %v12275_v7, %v9367_v10 }
 0x22c   :  { %v2147_v62 = vadd.f32 %v2146_v38, %v2133_v36  ;;  %v2109_v45 = vpop.f32.mrf.mxu0  ;;  %v2122_v28 = vpop.f32.mrf.mxu1  ;;  %v9178_v24 = vor.u32 %v12227_v21, %v9175_v22  ;;  %v9434_v36 = vor.u32 %v12291_v30, %v9431_v32  ;;  %v9141_v38 = vld [vmem:[#allocation6 + $0x40] sm:$0xf]  ;;  %v9343_v30 = vld [vmem:[#allocation6 + $0x1e8] sm:$0xf0] }
 0x22d   :  { %v2271_v63 = vmul.f32 %v2265_v35, %v13329_v16  ;;  %v9173_v16 = vld [vmem:[#allocation6 + $0x80] sm:$0xf]  ;;  %v9142_v45 = vor.u32 %v12223_v39, %v9141_v38  ;;  %v12332_v38 = vld [vmem:[#allocation6 + $0x3cc] sm:$0xf] }
 0x22e   :  { %v2257_v53 = vadd.f32 %v2147_v62, %v13326_v40  ;;  %v9174_v17 = vor.u32 %v12231_v14, %v9173_v16  ;;  %v12287_v28 = vld [vmem:[#allocation6 + $0x25c] sm:$0xf0]  ;;  %3109 = vmatpush.bf16.msra.mxu2 %v9178_v24  ;;  %v9341_v16 = vld [vmem:[#allocation6 + $0x1c8] sm:$0xf]  ;;  %v12268_v24 = vld [vmem:[#allocation6 + $0x1cc] sm:$0xf] }
 0x22f   :  { %v12969_v54 = vpop.eup %12968  ;;  %3096 = vmatpush.bf16.msra.mxu1 %v9430_v23  ;;  %3122 = vmatpush.bf16.msra.mxu3 %v9434_v36  ;;  %v9398_v48 = vor.u32 %v12287_v28, %v9397_v43  ;;  %v12272_v14 = vld [vmem:[#allocation6 + $0x1e4] sm:$0xf0]  ;;  %v9346_v36 = vor.u32 %v12268_v24, %v9343_v30  ;;  %v9599_v39 = vld [vmem:[#allocation6 + $0x3e8] sm:$0xf0] }
 0x230   :  { %v2272_v0 = vmul.f32 %v12969_v54, %v2261_v52  ;;  %v2267_v1 = vmul.f32 0.5, %v2257_v53  ;;  %3083 = vmatpush.bf16.msra.mxu0 %v9174_v17  ;;  %v13397_v52 = vpop.permute.xlu1 %92  ;;  %v9402_v53 = vor.u32 %v12283_v50, %v9399_v51  ;;  %v9342_v22 = vor.u32 %v12272_v14, %v9341_v16  ;;  %v12336_v23 = vld [vmem:[#allocation6 + $0x3e4] sm:$0xf0]  ;;  %v12244_v14 = vld [vmem:[#allocation6 + $0x10c] sm:$0xf] }
 0x231   :  { %v138_v31 = vmul.f32 %v13266_v9, %v13397_v52  ;;  %v137_v61 = vmul.f32 %v13264_v8, %v13397_v52  ;;  %v9598_v32 = vor.u32 %v12336_v23, %v9597_v15  ;;  %v9309_v43 = vld [vmem:[#allocation6 + $0x188] sm:$0xf]  ;;  %v9247_v15 = vld [vmem:[#allocation6 + $0x128] sm:$0xf0] }
 0x232   :  { %v13390_v41 = vadd.f32 %v2272_v0, %v2271_v63  ;;  %12970 = vtanh.f32 %v2267_v1  ;;  %v12279_v63 = vld [vmem:[#allocation6 + $0x21c] sm:$0xf0]  ;;  %v12211_v0 = vld [vmem:[#allocation6 + $0x4] sm:$0xf]  ;;  %3110 = vmatpush.bf16.msra.mxu2 %v9146_v49  ;;  %v9565_v28 = vld [vmem:[#allocation6 + $0x388] sm:$0xf]  ;;  %v9250_v24 = vor.u32 %v12244_v14, %v9247_v15 }
 0x233   :  { %v2135_v12 = vpop.f32.mrf.mxu2  ;;  %v2148_v13 = vpop.f32.mrf.mxu3  ;;  %3097 = vmatpush.bf16.msra.mxu1 %v9398_v48  ;;  %3123 = vmatpush.bf16.msra.mxu3 %v9402_v53  ;;  %v9366_v5 = vor.u32 %v12279_v63, %v9365_v60  ;;  %v180_v18 = vadd.f32 %v13274_v26, %v138_v31  ;;  %v179_v46 = vadd.f32 %v13272_v25, %v137_v61  ;;  %v12260_v48 = vld [vmem:[#allocation6 + $0x18c] sm:$0xf]  ;;  %v12312_v16 = vld [vmem:[#allocation6 + $0x324] sm:$0xf0] }
 0x234   :  { %12972 = vtanh.f32 %v13390_v41  ;;  %3084 = vmatpush.bf16.msra.mxu0 %v9142_v45  ;;  %v9114_v13 = vor.u32 %v12211_v0, %v9111_v6  ;;  %v12264_v45 = vld [vmem:[#allocation6 + $0x1a4] sm:$0xf0]  ;;  %v12324_v53 = vld [vmem:[#allocation6 + $0x38c] sm:$0xf] }
 0x235   :  { %v13393_v33 = vpop.f32.mrf.mxu0  ;;  %v13395_v35 = vpop.f32.mrf.mxu1  ;;  %v9310_v29 = vor.u32 %v12264_v45, %v9309_v43  ;;  %v9533_v0 = vld [vmem:[#allocation6 + $0x348] sm:$0xf]  ;;  %v9535_v61 = vld [vmem:[#allocation6 + $0x368] sm:$0xf0] }
 0x236   :  { %3111 = vmatpush.bf16.msra.mxu2 %v9114_v13  ;;  %v2173_v49 = vadd.f32 %v13395_v35, %v13393_v33  ;;  %v9279_v35 = vld [vmem:[#allocation6 + $0x168] sm:$0xf0]  ;;  %v12248_v13 = vld [vmem:[#allocation6 + $0x124] sm:$0xf0] }
 0x237   :  { %3098 = vmatpush.bf16.msra.mxu1 %v9366_v5  ;;  %3124 = vmatpush.bf16.msra.mxu3 %v9370_v44  ;;  %v12316_v5 = vld [vmem:[#allocation6 + $0x34c] sm:$0xf]  ;;  %v9501_v44 = vld [vmem:[#allocation6 + $0x308] sm:$0xf] }
 0x238   :  { %v12971_v62 = vpop.eup %12970  ;;  %3085 = vmatpush.bf16.msra.mxu0 %v9110_v59  ;;  %v12256_v59 = vld [vmem:[#allocation6 + $0x164] sm:$0xf0]  ;;  %v2278_v6 = vadd.f32 %v2173_v49, %v179_v46  ;;  %v12236_v43 = vld [vmem:[#allocation6 + $0xcc] sm:$0xf]  ;;  %v139_v49 = vmul.f32 %v13268_v19, %v13397_v52 }
 0x239   :  { %v2269_v47 = vmul.f32 0.5, %v12971_v62  ;;  %v9602_v62 = vor.u32 %v12332_v38, %v9599_v39  ;;  %v9469_v38 = vld [vmem:[#allocation6 + $0x2c8] sm:$0xf]  ;;  %v12300_v46 = vld [vmem:[#allocation6 + $0x2cc] sm:$0xf] }
 0x23a   :  { %v12973_v58 = vpop.eup %12972  ;;  %3156 = vmatpush.bf16.msrb.mxu2 %v9346_v36  ;;  %v2282_v23 = vmul.f32 0.5, %v2278_v6  ;;  %v12240_v36 = vld [vmem:[#allocation6 + $0xe4] sm:$0xf0] }
 0x23b   :  { %v2270_v54 = vadd.f32 0.5, %v2269_v47  ;;  %3143 = vmatpush.bf16.msrb.mxu1 %v9598_v32  ;;  %v12328_v47 = vld [vmem:[#allocation6 + $0x3a4] sm:$0xf0]  ;;  %3169 = vmatpush.bf16.msrb.mxu3 %v9602_v62 }
 0x23c   :  { %3130 = vmatpush.bf16.msrb.mxu0 %v9342_v22  ;;  %v9566_v51 = vor.u32 %v12328_v47, %v9565_v28  ;;  %v9503_v22 = vld [vmem:[#allocation6 + $0x328] sm:$0xf0]  ;;  %v9213_v32 = vld [vmem:[#allocation6 + $0xc8] sm:$0xf] }
 0x23d   :  { %v2275_v1 = vmul.f32 %v12973_v58, %v2270_v54  ;;  %v2161_v11 = vpop.f32.mrf.mxu0  ;;  %v2174_v12 = vpop.f32.mrf.mxu1  ;;  %v9311_v58 = vld [vmem:[#allocation6 + $0x1a8] sm:$0xf0]  ;;  %v12304_v39 = vld [vmem:[#allocation6 + $0x2e4] sm:$0xf0]  ;;  %v9214_v62 = vor.u32 %v12240_v36, %v9213_v32 }
 0x23e   :  { %v2185_v2 = vpop.f32.mrf.mxu2  ;;  %v2198_v4 = vpop.f32.mrf.mxu3  ;;  %v9567_v54 = vld [vmem:[#allocation6 + $0x3a8] sm:$0xf0]  ;;  %v9314_v31 = vor.u32 %v12260_v48, %v9311_v58  ;;  %v9538_v11 = vor.u32 %v12316_v5, %v9535_v61  ;;  %v9245_v12 = vld [vmem:[#allocation6 + $0x108] sm:$0xf]  ;;  %v9470_v45 = vor.u32 %v12304_v39, %v9469_v38 }
 0x23f   :  { %v2276_v17 = vpack.c.bf16 %v2275_v1, %v2275_v1  ;;  %v2199_v21 = vadd.f32 %v2198_v4, %v2185_v2  ;;  %v9570_v55 = vor.u32 %v12324_v53, %v9567_v54  ;;  %v12320_v1 = vld [vmem:[#allocation6 + $0x364] sm:$0xf0]  ;;  %v12252_v2 = vld [vmem:[#allocation6 + $0x14c] sm:$0xf]  ;;  %3144 = vmatpush.bf16.msrb.mxu1 %v9566_v51  ;;  %v9278_v4 = vor.u32 %v12256_v59, %v9277_v57 }
 0x240   :  { %3131 = vmatpush.bf16.msrb.mxu0 %v9310_v29  ;;  %v9534_v33 = vor.u32 %v12320_v1, %v9533_v0  ;;  %3157 = vmatpush.bf16.msrb.mxu2 %v9314_v31  ;;  %v9282_v10 = vor.u32 %v12252_v2, %v9279_v35  ;;  %v9215_v28 = vld [vmem:[#allocation6 + $0xe8] sm:$0xf0]  ;;  %v12232_v51 = vld [vmem:[#allocation6 + $0xa4] sm:$0xf0] }
 0x241   :  { %2277 = vst [vmem:[#allocation2 + $0x4] sm:$0xf] %v2276_v17  ;;  %v2279_v50 = vadd.f32 %v2199_v21, %v180_v18  ;;  %3170 = vmatpush.bf16.msrb.mxu3 %v9570_v55  ;;  %v9246_v17 = vor.u32 %v12248_v13, %v9245_v12  ;;  %v9502_v18 = vor.u32 %v12312_v16, %v9501_v44  ;;  %v12308_v21 = vld [vmem:[#allocation6 + $0x30c] sm:$0xf]  ;;  %v9437_v58 = vld [vmem:[#allocation6 + $0x288] sm:$0xf] }
 0x242   :  { %v9506_v30 = vor.u32 %v12308_v21, %v9503_v22  ;;  %v9471_v29 = vld [vmem:[#allocation6 + $0x2e8] sm:$0xf0]  ;;  %v9218_v47 = vor.u32 %v12236_v43, %v9215_v28  ;;  %v12296_v53 = vld [vmem:[#allocation6 + $0x2a4] sm:$0xf0] }
 0x243   :  { %v2286_v7 = vmul.f32 0.5, %v2279_v50  ;;  %3145 = vmatpush.bf16.msrb.mxu1 %v9534_v33  ;;  %v9474_v48 = vor.u32 %v12300_v46, %v9471_v29  ;;  %v9181_v50 = vld [vmem:[#allocation6 + $0x88] sm:$0xf]  ;;  %v12228_v54 = vld [vmem:[#allocation6 + $0x8c] sm:$0xf]  ;;  %v9438_v57 = vor.u32 %v12296_v53, %v9437_v58  ;;  %v181_v33 = vadd.f32 %v13281_v42, %v139_v49 }
 0x244   :  { %3132 = vmatpush.bf16.msrb.mxu0 %v9278_v4  ;;  %3158 = vmatpush.bf16.msrb.mxu2 %v9282_v10  ;;  %v9183_v31 = vld [vmem:[#allocation6 + $0xa8] sm:$0xf0]  ;;  %v9182_v55 = vor.u32 %v12232_v51, %v9181_v50  ;;  %v9149_v5 = vld [vmem:[#allocation6 + $0x48] sm:$0xf]  ;;  %v140_v10 = vmul.f32 %v13270_v20, %v13397_v52 }
 0x245   :  { %3171 = vmatpush.bf16.msrb.mxu3 %v9538_v11  ;;  %12974 = vtanh.f32 %v2286_v7  ;;  %v12292_v59 = vld [vmem:[#allocation6 + $0x28c] sm:$0xf]  ;;  %v9186_v2 = vor.u32 %v12228_v54, %v9183_v31  ;;  %v12224_v6 = vld [vmem:[#allocation6 + $0x64] sm:$0xf0] }
 0x246   :  { %v2187_v60 = vpop.f32.mrf.mxu2  ;;  %v2200_v63 = vpop.f32.mrf.mxu3  ;;  %12976 = vtanh.f32 %v2282_v23  ;;  %v9405_v7 = vld [vmem:[#allocation6 + $0x248] sm:$0xf]  ;;  %v12220_v11 = vld [vmem:[#allocation6 + $0x4c] sm:$0xf]  ;;  %v9150_v14 = vor.u32 %v12224_v6, %v9149_v5  ;;  %v9349_v6 = vld [vmem:[#allocation6 + $0x1d0] sm:$0xf] }
 0x247   :  { %3146 = vmatpush.bf16.msrb.mxu1 %v9502_v18  ;;  %v9439_v60 = vld [vmem:[#allocation6 + $0x2a8] sm:$0xf0]  ;;  %v12288_v61 = vld [vmem:[#allocation6 + $0x264] sm:$0xf0] }
 0x248   :  { %3133 = vmatpush.bf16.msrb.mxu0 %v9246_v17  ;;  %3159 = vmatpush.bf16.msrb.mxu2 %v9250_v24  ;;  %v9442_v4 = vor.u32 %v12292_v59, %v9439_v60  ;;  %v9151_v12 = vld [vmem:[#allocation6 + $0x68] sm:$0xf0]  ;;  %v9406_v15 = vor.u32 %v12288_v61, %v9405_v7  ;;  %v9117_v23 = vld [vmem:[#allocation6 + $0x8] sm:$0xf]  ;;  %v9605_v7 = vld [vmem:[#allocation6 + $0x3d0] sm:$0xf] }
 0x249   :  { %3172 = vmatpush.bf16.msrb.mxu3 %v9506_v30  ;;  %v12284_v17 = vld [vmem:[#allocation6 + $0x24c] sm:$0xf]  ;;  %v9154_v21 = vor.u32 %v12220_v11, %v9151_v12  ;;  %v12216_v24 = vld [vmem:[#allocation6 + $0x24] sm:$0xf0]  ;;  %v12337_v61 = vld [vmem:[#allocation6 + $0x3ec] sm:$0xf0] }
 0x24a   :  { %v9407_v18 = vld [vmem:[#allocation6 + $0x268] sm:$0xf0]  ;;  %v9373_v30 = vld [vmem:[#allocation6 + $0x208] sm:$0xf]  ;;  %v9118_v46 = vor.u32 %v12216_v24, %v9117_v23  ;;  %v12269_v11 = vld [vmem:[#allocation6 + $0x1d4] sm:$0xf] }
 0x24b   :  { %3147 = vmatpush.bf16.msrb.mxu1 %v9470_v45  ;;  %v12975_v63 = vpop.eup %12974  ;;  %v9410_v22 = vor.u32 %v12284_v17, %v9407_v18  ;;  %v12280_v52 = vld [vmem:[#allocation6 + $0x224] sm:$0xf0]  ;;  %v12212_v32 = vld [vmem:[#allocation6 + $0xc] sm:$0xf]  ;;  %v182_v45 = vadd.f32 %v13276_v27, %v140_v10  ;;  %v12265_v23 = vld [vmem:[#allocation6 + $0x1ac] sm:$0xf0] }
 0x24c   :  { %3134 = vmatpush.bf16.msrb.mxu0 %v9214_v62  ;;  %3160 = vmatpush.bf16.msrb.mxu2 %v9218_v47  ;;  %v12977_v13 = vpop.eup %12976  ;;  %v2288_v44 = vmul.f32 0.5, %v12975_v63  ;;  %v9119_v36 = vld [vmem:[#allocation6 + $0x28] sm:$0xf0]  ;;  %v9374_v29 = vor.u32 %v12280_v52, %v9373_v30  ;;  %v9573_v52 = vld [vmem:[#allocation6 + $0x390] sm:$0xf] }
 0x24d   :  { %3173 = vmatpush.bf16.msrb.mxu3 %v9474_v48  ;;  %v2284_v38 = vmul.f32 0.5, %v12977_v13  ;;  %v12276_v39 = vld [vmem:[#allocation6 + $0x20c] sm:$0xf]  ;;  %v9122_v51 = vor.u32 %v12212_v32, %v9119_v36  ;;  %v12329_v32 = vld [vmem:[#allocation6 + $0x3ac] sm:$0xf0] }
 0x24e   :  { %v9375_v43 = vld [vmem:[#allocation6 + $0x228] sm:$0xf0]  ;;  %v2289_v47 = vadd.f32 0.5, %v2288_v44  ;;  %v9351_v44 = vld [vmem:[#allocation6 + $0x1f0] sm:$0xf0] }
 0x24f   :  { %3148 = vmatpush.bf16.msrb.mxu1 %v9438_v57  ;;  %v9378_v58 = vor.u32 %v12276_v39, %v9375_v43  ;;  %v2285_v53 = vadd.f32 0.5, %v2284_v38  ;;  %v9354_v24 = vor.u32 %v12269_v11, %v9351_v44  ;;  %v12261_v36 = vld [vmem:[#allocation6 + $0x194] sm:$0xf]  ;;  %v9477_v11 = vld [vmem:[#allocation6 + $0x2d0] sm:$0xf] }
 0x250   :  { %3135 = vmatpush.bf16.msrb.mxu0 %v9182_v55  ;;  %3161 = vmatpush.bf16.msrb.mxu2 %v9186_v2  ;;  %v2295_v55 = vmul.f32 %v2289_v47, %v13353_v3  ;;  %v12273_v3 = vld [vmem:[#allocation6 + $0x1ec] sm:$0xf0]  ;;  %v9319_v38 = vld [vmem:[#allocation6 + $0x1b0] sm:$0xf0] }
 0x251   :  { %3174 = vmatpush.bf16.msrb.mxu3 %v9442_v4  ;;  %v9350_v18 = vor.u32 %v12273_v3, %v9349_v6  ;;  %v12325_v39 = vld [vmem:[#allocation6 + $0x394] sm:$0xf]  ;;  %v9221_v3 = vld [vmem:[#allocation6 + $0xd0] sm:$0xf] }
 0x252   :  { %v9575_v43 = vld [vmem:[#allocation6 + $0x3b0] sm:$0xf0] }
 0x253   :  { %3149 = vmatpush.bf16.msrb.mxu1 %v9406_v15  ;;  %v9578_v47 = vor.u32 %v12325_v39, %v9575_v43  ;;  %v9223_v44 = vld [vmem:[#allocation6 + $0xf0] sm:$0xf0] }
 0x254   :  { %3136 = vmatpush.bf16.msrb.mxu0 %v9150_v14  ;;  %3162 = vmatpush.bf16.msrb.mxu2 %v9154_v21  ;;  %v9607_v14 = vld [vmem:[#allocation6 + $0x3f0] sm:$0xf0]  ;;  %v9606_v21 = vor.u32 %v12337_v61, %v9605_v7  ;;  %v12241_v7 = vld [vmem:[#allocation6 + $0xec] sm:$0xf0] }
 0x255   :  { %v2211_v0 = vpop.f32.mrf.mxu0  ;;  %v2224_v1 = vpop.f32.mrf.mxu1  ;;  %3175 = vmatpush.bf16.msrb.mxu3 %v9410_v22  ;;  %v9317_v22 = vld [vmem:[#allocation6 + $0x190] sm:$0xf]  ;;  %v12293_v39 = vld [vmem:[#allocation6 + $0x294] sm:$0xf] }
 0x256   :  { %v2225_v35 = vadd.f32 %v2224_v1, %v2211_v0  ;;  %v9447_v43 = vld [vmem:[#allocation6 + $0x2b0] sm:$0xf0] }
 0x257   :  { %3150 = vmatpush.bf16.msrb.mxu1 %v9374_v29  ;;  %v9322_v29 = vor.u32 %v12261_v36, %v9319_v38  ;;  %v12229_v36 = vld [vmem:[#allocation6 + $0x94] sm:$0xf] }
 0x258   :  { %v2280_v16 = vadd.f32 %v2225_v35, %v181_v33  ;;  %3137 = vmatpush.bf16.msrb.mxu0 %v9118_v46  ;;  %3163 = vmatpush.bf16.msrb.mxu2 %v9122_v51  ;;  %v12257_v46 = vld [vmem:[#allocation6 + $0x16c] sm:$0xf0]  ;;  %v9287_v51 = vld [vmem:[#allocation6 + $0x170] sm:$0xf0] }
 0x259   :  { %3176 = vmatpush.bf16.msrb.mxu3 %v9378_v58  ;;  %v12317_v58 = vld [vmem:[#allocation6 + $0x354] sm:$0xf] }
 0x25a   :  { %12978 = vtanh.f32 %v2280_v16  ;;  %v12333_v16 = vld [vmem:[#allocation6 + $0x3d4] sm:$0xf] }
 0x25b   :  { %v9610_v30 = vor.u32 %v12333_v16, %v9607_v14  ;;  %v12301_v16 = vld [vmem:[#allocation6 + $0x2d4] sm:$0xf] }
 0x25c   :  { %v2237_v62 = vpop.f32.mrf.mxu2  ;;  %v2250_v28 = vpop.f32.mrf.mxu3  ;;  %v9479_v14 = vld [vmem:[#allocation6 + $0x2f0] sm:$0xf0] }
 0x25d   :  { %v2251_v48 = vadd.f32 %v2250_v28, %v2237_v62  ;;  %v2213_v49 = vpop.f32.mrf.mxu0  ;;  %v2226_v50 = vpop.f32.mrf.mxu1  ;;  %v9318_v62 = vor.u32 %v12265_v23, %v9317_v22  ;;  %v9285_v28 = vld [vmem:[#allocation6 + $0x150] sm:$0xf]  ;;  %v9191_v38 = vld [vmem:[#allocation6 + $0xb0] sm:$0xf0] }
 0x25e   :  { %v12321_v49 = vld [vmem:[#allocation6 + $0x36c] sm:$0xf0]  ;;  %v12253_v50 = vld [vmem:[#allocation6 + $0x154] sm:$0xf] }
 0x25f   :  { %v2281_v54 = vadd.f32 %v2251_v48, %v182_v45  ;;  %v9574_v45 = vor.u32 %v12329_v32, %v9573_v52  ;;  %v9541_v48 = vld [vmem:[#allocation6 + $0x350] sm:$0xf] }
 0x260   :  { %v12979_v31 = vpop.eup %12978  ;;  %v9189_v22 = vld [vmem:[#allocation6 + $0x90] sm:$0xf] }
 0x261   :  { %v2296_v57 = vmul.f32 %v12979_v31, %v2285_v53  ;;  %v2291_v59 = vmul.f32 0.5, %v2281_v54  ;;  %v9543_v53 = vld [vmem:[#allocation6 + $0x370] sm:$0xf0]  ;;  %v9286_v54 = vor.u32 %v12257_v46, %v9285_v28  ;;  %v9542_v31 = vor.u32 %v12321_v49, %v9541_v48  ;;  %v12233_v23 = vld [vmem:[#allocation6 + $0xac] sm:$0xf0] }
 0x262   :  { %v9445_v52 = vld [vmem:[#allocation6 + $0x290] sm:$0xf] }
 0x263   :  { %v13414_v60 = vadd.f32 %v2296_v57, %v2295_v55  ;;  %12980 = vtanh.f32 %v2291_v59  ;;  %v9253_v55 = vld [vmem:[#allocation6 + $0x110] sm:$0xf]  ;;  %v9290_v59 = vor.u32 %v12253_v50, %v9287_v51  ;;  %v12221_v50 = vld [vmem:[#allocation6 + $0x54] sm:$0xf] }
 0x264   :  { %v2239_v63 = vpop.f32.mrf.mxu2  ;;  %v2252_v0 = vpop.f32.mrf.mxu3  ;;  %v12249_v57 = vld [vmem:[#allocation6 + $0x12c] sm:$0xf0]  ;;  %v9159_v51 = vld [vmem:[#allocation6 + $0x70] sm:$0xf0] }
 0x265   :  { %12982 = vtanh.f32 %v13414_v60  ;;  %v9546_v63 = vor.u32 %v12317_v58, %v9543_v53  ;;  %v9509_v0 = vld [vmem:[#allocation6 + $0x310] sm:$0xf]  ;;  %v12285_v58 = vld [vmem:[#allocation6 + $0x254] sm:$0xf] }
 0x266   :  { %v12297_v32 = vld [vmem:[#allocation6 + $0x2ac] sm:$0xf0]  ;;  %v9415_v53 = vld [vmem:[#allocation6 + $0x270] sm:$0xf0] }
 0x267   :  { %v9157_v28 = vld [vmem:[#allocation6 + $0x50] sm:$0xf] }
 0x268   :  { %v12225_v46 = vld [vmem:[#allocation6 + $0x6c] sm:$0xf0] }
 0x269   :  { %v12981_v1 = vpop.eup %12980  ;;  %v9413_v48 = vld [vmem:[#allocation6 + $0x250] sm:$0xf] }
 0x26a   :  { %v2293_v2 = vmul.f32 0.5, %v12981_v1  ;;  %v12313_v1 = vld [vmem:[#allocation6 + $0x32c] sm:$0xf0] }
 0x26b   :  { %v12983_v4 = vpop.eup %12982  ;;  %v9510_v6 = vor.u32 %v12313_v1, %v9509_v0  ;;  %v12289_v49 = vld [vmem:[#allocation6 + $0x26c] sm:$0xf0]  ;;  %v9162_v0 = vor.u32 %v12221_v50, %v9159_v51  ;;  %v9418_v1 = vor.u32 %v12285_v58, %v9415_v53  ;;  %v12254_v50 = vld [vmem:[#allocation6 + $0x15c] sm:$0xf] }
 0x26c   :  { %v2294_v33 = vadd.f32 0.5, %v2293_v2  ;;  %v12245_v2 = vld [vmem:[#allocation6 + $0x114] sm:$0xf]  ;;  %v9295_v51 = vld [vmem:[#allocation6 + $0x178] sm:$0xf0] }
 0x26d   :  { %v12318_v58 = vld [vmem:[#allocation6 + $0x35c] sm:$0xf] }
 0x26e   :  { %v2299_v35 = vmul.f32 %v12983_v4, %v2294_v33  ;;  %v9255_v4 = vld [vmem:[#allocation6 + $0x130] sm:$0xf0]  ;;  %v9551_v53 = vld [vmem:[#allocation6 + $0x378] sm:$0xf0] }
 0x26f   :  { %v12309_v33 = vld [vmem:[#allocation6 + $0x314] sm:$0xf] }
 0x270   :  { %v2300_v5 = vpack.c.bf16 %v2299_v35, %v2299_v35  ;;  %v9511_v35 = vld [vmem:[#allocation6 + $0x330] sm:$0xf0] }
 0x271   :  { %v9514_v61 = vor.u32 %v12309_v33, %v9511_v35  ;;  %v12277_v33 = vld [vmem:[#allocation6 + $0x214] sm:$0xf] }
 0x272   :  { %2301 = vst [vmem:[#allocation2] sm:$0xf] %v2300_v5  ;;  %v9254_v5 = vor.u32 %v12249_v57, %v9253_v55  ;;  %v9414_v55 = vor.u32 %v12289_v49, %v9413_v48  ;;  %v12217_v57 = vld [vmem:[#allocation6 + $0x2c] sm:$0xf0]  ;;  %v9383_v35 = vld [vmem:[#allocation6 + $0x230] sm:$0xf0] }
 0x273   :  { %v9549_v48 = vld [vmem:[#allocation6 + $0x358] sm:$0xf] }
 0x274   :  { %v12322_v49 = vld [vmem:[#allocation6 + $0x374] sm:$0xf0] }
 0x279   :  { %v2302_v10 = vld [vmem:[#allocation2] sm:$0xff] }
 0x27a   :  { %v2432_v12 = vunpack.c.l.b16 %v2302_v10  ;;  %v2433_v13 = vunpack.c.h.b16 %v2302_v10  ;;  %v9258_v10 = vor.u32 %v12245_v2, %v9255_v4  ;;  %v12213_v2 = vld [vmem:[#allocation6 + $0x14] sm:$0xf] }
 0x27b   :  { %v9127_v4 = vld [vmem:[#allocation6 + $0x30] sm:$0xf0] }
 0x27c   :  { %v13417_v15 = vpack.c.b16 %v2432_v12, %v2432_v12  ;;  %v13419_v17 = vpack.c.b16 %v2433_v13, %v2433_v13  ;;  %v12305_v12 = vld [vmem:[#allocation6 + $0x2ec] sm:$0xf0]  ;;  %v12237_v13 = vld [vmem:[#allocation6 + $0xd4] sm:$0xf] }
 0x27e   :  { %3086 = vmatmul.bf16.vlgmr.msra.gmra.mxu0 %v13417_v15  ;;  %3099 = vmatmul.bf16.vlgmr.msra.gmra.mxu1 %v13419_v17 }
 0x27f   :  { %3112 = vmatmul.bf16.vlgmr.msra.gmra.mxu2 %v13417_v15  ;;  %3125 = vmatmul.bf16.vlgmr.msra.gmra.mxu3 %v13419_v17 }
 0x280   :  { %3182 = vmatpush.bf16.msra.mxu0 %v9350_v18  ;;  %3195 = vmatpush.bf16.msra.mxu1 %v9606_v21  ;;  %v9222_v18 = vor.u32 %v12241_v7, %v9221_v3  ;;  %v9478_v21 = vor.u32 %v12305_v12, %v9477_v11  ;;  %v9613_v3 = vld [vmem:[#allocation6 + $0x3d8] sm:$0xf]  ;;  %v9359_v12 = vld [vmem:[#allocation6 + $0x1f8] sm:$0xf0] }
 0x281   :  { %3208 = vmatpush.bf16.msra.mxu2 %v9354_v24  ;;  %3221 = vmatpush.bf16.msra.mxu3 %v9610_v30  ;;  %v9226_v24 = vor.u32 %v12237_v13, %v9223_v44  ;;  %v9482_v30 = vor.u32 %v12301_v16, %v9479_v14  ;;  %v12338_v7 = vld [vmem:[#allocation6 + $0x3f4] sm:$0xf0]  ;;  %v12334_v13 = vld [vmem:[#allocation6 + $0x3dc] sm:$0xf]  ;;  %v9130_v16 = vor.u32 %v12213_v2, %v9127_v4 }
 0x282   :  { %v9615_v44 = vld [vmem:[#allocation6 + $0x3f8] sm:$0xf0]  ;;  %v9386_v14 = vor.u32 %v12277_v33, %v9383_v35 }
 0x283   :  { %v12246_v2 = vld [vmem:[#allocation6 + $0x11c] sm:$0xf] }
 0x284   :  { %3183 = vmatpush.bf16.msra.mxu0 %v9318_v62  ;;  %3196 = vmatpush.bf16.msra.mxu1 %v9574_v45  ;;  %v9190_v62 = vor.u32 %v12233_v23, %v9189_v22  ;;  %v9446_v45 = vor.u32 %v12297_v32, %v9445_v52  ;;  %v9325_v22 = vld [vmem:[#allocation6 + $0x198] sm:$0xf]  ;;  %v9263_v4 = vld [vmem:[#allocation6 + $0x138] sm:$0xf0] }
 0x285   :  { %3209 = vmatpush.bf16.msra.mxu2 %v9322_v29  ;;  %3222 = vmatpush.bf16.msra.mxu3 %v9578_v47  ;;  %v9194_v29 = vor.u32 %v12229_v36, %v9191_v38  ;;  %v9450_v47 = vor.u32 %v12293_v39, %v9447_v43  ;;  %v12266_v23 = vld [vmem:[#allocation6 + $0x1b4] sm:$0xf0]  ;;  %v12262_v36 = vld [vmem:[#allocation6 + $0x19c] sm:$0xf] }
 0x286   :  { %v9581_v52 = vld [vmem:[#allocation6 + $0x398] sm:$0xf]  ;;  %v9327_v38 = vld [vmem:[#allocation6 + $0x1b8] sm:$0xf0] }
 0x287   :  { %v12330_v32 = vld [vmem:[#allocation6 + $0x3b4] sm:$0xf0]  ;;  %v12326_v39 = vld [vmem:[#allocation6 + $0x39c] sm:$0xf] }
 0x288   :  { %3184 = vmatpush.bf16.msra.mxu0 %v9286_v54  ;;  %3197 = vmatpush.bf16.msra.mxu1 %v9542_v31  ;;  %v9125_v54 = vld [vmem:[#allocation6 + $0x10] sm:$0xf]  ;;  %v9158_v31 = vor.u32 %v12225_v46, %v9157_v28  ;;  %v9583_v43 = vld [vmem:[#allocation6 + $0x3b8] sm:$0xf0]  ;;  %v9293_v28 = vld [vmem:[#allocation6 + $0x158] sm:$0xf] }
 0x289   :  { %3210 = vmatpush.bf16.msra.mxu2 %v9290_v59  ;;  %3223 = vmatpush.bf16.msra.mxu3 %v9546_v63  ;;  %v9381_v59 = vld [vmem:[#allocation6 + $0x210] sm:$0xf]  ;;  %v12258_v46 = vld [vmem:[#allocation6 + $0x174] sm:$0xf0]  ;;  %v12310_v33 = vld [vmem:[#allocation6 + $0x31c] sm:$0xf] }
 0x28a   :  { %v12281_v63 = vld [vmem:[#allocation6 + $0x22c] sm:$0xf0]  ;;  %v9519_v35 = vld [vmem:[#allocation6 + $0x338] sm:$0xf0] }
 0x28b   :  { %v9382_v11 = vor.u32 %v12281_v63, %v9381_v59  ;;  %v9298_v59 = vor.u32 %v12254_v50, %v9295_v51  ;;  %v9554_v63 = vor.u32 %v12318_v58, %v9551_v53  ;;  %v12222_v50 = vld [vmem:[#allocation6 + $0x5c] sm:$0xf] }
 0x28c   :  { %3185 = vmatpush.bf16.msra.mxu0 %v9254_v5  ;;  %3198 = vmatpush.bf16.msra.mxu1 %v9510_v6  ;;  %v9357_v5 = vld [vmem:[#allocation6 + $0x1d8] sm:$0xf]  ;;  %v9167_v51 = vld [vmem:[#allocation6 + $0x78] sm:$0xf0] }
 0x28d   :  { %3211 = vmatpush.bf16.msra.mxu2 %v9258_v10  ;;  %3224 = vmatpush.bf16.msra.mxu3 %v9514_v61  ;;  %v12274_v6 = vld [vmem:[#allocation6 + $0x1f4] sm:$0xf0]  ;;  %v12270_v10 = vld [vmem:[#allocation6 + $0x1dc] sm:$0xf]  ;;  %v9126_v61 = vor.u32 %v12217_v57, %v9125_v54  ;;  %v9294_v54 = vor.u32 %v12258_v46, %v9293_v28 }
 0x28e   :  { %3138 = vmatmul.bf16.vlgmr.msrb.gmra.mxu0 %v13417_v15  ;;  %3151 = vmatmul.bf16.vlgmr.msrb.gmra.mxu1 %v13419_v17  ;;  %v12250_v57 = vld [vmem:[#allocation6 + $0x134] sm:$0xf0]  ;;  %v12286_v58 = vld [vmem:[#allocation6 + $0x25c] sm:$0xf] }
 0x28f   :  { %3164 = vmatmul.bf16.vlgmr.msrb.gmra.mxu2 %v13417_v15  ;;  %3177 = vmatmul.bf16.vlgmr.msrb.gmra.mxu3 %v13419_v17  ;;  %v9165_v28 = vld [vmem:[#allocation6 + $0x58] sm:$0xf]  ;;  %v9423_v53 = vld [vmem:[#allocation6 + $0x278] sm:$0xf0] }
 0x290   :  { %3186 = vmatpush.bf16.msra.mxu0 %v9222_v18  ;;  %3199 = vmatpush.bf16.msra.mxu1 %v9478_v21  ;;  %v9358_v18 = vor.u32 %v12274_v6, %v9357_v5  ;;  %v9614_v21 = vor.u32 %v12338_v7, %v9613_v3  ;;  %v9229_v3 = vld [vmem:[#allocation6 + $0xd8] sm:$0xf] }
 0x291   :  { %3212 = vmatpush.bf16.msra.mxu2 %v9226_v24  ;;  %3225 = vmatpush.bf16.msra.mxu3 %v9482_v30  ;;  %v9362_v24 = vor.u32 %v12270_v10, %v9359_v12  ;;  %v9618_v30 = vor.u32 %v12334_v13, %v9615_v44  ;;  %v12242_v7 = vld [vmem:[#allocation6 + $0xf4] sm:$0xf0]  ;;  %v9266_v10 = vor.u32 %v12246_v2, %v9263_v4  ;;  %v12238_v13 = vld [vmem:[#allocation6 + $0xdc] sm:$0xf] }
 0x292   :  { %v12306_v12 = vld [vmem:[#allocation6 + $0x2f4] sm:$0xf0]  ;;  %v9231_v44 = vld [vmem:[#allocation6 + $0xf8] sm:$0xf0] }
 0x293   :  { %v12226_v46 = vld [vmem:[#allocation6 + $0x74] sm:$0xf0]  ;;  %v12214_v2 = vld [vmem:[#allocation6 + $0x1c] sm:$0xf] }
 0x294   :  { %3187 = vmatpush.bf16.msra.mxu0 %v9190_v62  ;;  %3200 = vmatpush.bf16.msra.mxu1 %v9446_v45  ;;  %v9326_v62 = vor.u32 %v12266_v23, %v9325_v22  ;;  %v9582_v45 = vor.u32 %v12330_v32, %v9581_v52  ;;  %v9197_v22 = vld [vmem:[#allocation6 + $0x98] sm:$0xf]  ;;  %v9135_v4 = vld [vmem:[#allocation6 + $0x38] sm:$0xf0] }
 0x295   :  { %3213 = vmatpush.bf16.msra.mxu2 %v9194_v29  ;;  %3226 = vmatpush.bf16.msra.mxu3 %v9450_v47  ;;  %v9330_v29 = vor.u32 %v12262_v36, %v9327_v38  ;;  %v9586_v47 = vor.u32 %v12326_v39, %v9583_v43  ;;  %v12234_v23 = vld [vmem:[#allocation6 + $0xb4] sm:$0xf0]  ;;  %v12230_v36 = vld [vmem:[#allocation6 + $0x9c] sm:$0xf] }
 0x296   :  { %v9453_v52 = vld [vmem:[#allocation6 + $0x298] sm:$0xf]  ;;  %v9199_v38 = vld [vmem:[#allocation6 + $0xb8] sm:$0xf0] }
 0x297   :  { %v12298_v32 = vld [vmem:[#allocation6 + $0x2b4] sm:$0xf0]  ;;  %v12294_v39 = vld [vmem:[#allocation6 + $0x29c] sm:$0xf] }
 0x298   :  { %3188 = vmatpush.bf16.msra.mxu0 %v9158_v31  ;;  %3201 = vmatpush.bf16.msra.mxu1 %v9414_v55  ;;  %v9550_v31 = vor.u32 %v12322_v49, %v9549_v48  ;;  %v9261_v55 = vld [vmem:[#allocation6 + $0x118] sm:$0xf]  ;;  %v9455_v43 = vld [vmem:[#allocation6 + $0x2b8] sm:$0xf0] }
 0x299   :  { %3214 = vmatpush.bf16.msra.mxu2 %v9162_v0  ;;  %3227 = vmatpush.bf16.msra.mxu3 %v9418_v1  ;;  %v9517_v0 = vld [vmem:[#allocation6 + $0x318] sm:$0xf]  ;;  %v9262_v5 = vor.u32 %v12250_v57, %v9261_v55 }
 0x29a   :  { %v12314_v1 = vld [vmem:[#allocation6 + $0x334] sm:$0xf0] }
 0x29b   :  { %v9518_v6 = vor.u32 %v12314_v1, %v9517_v0  ;;  %v9421_v48 = vld [vmem:[#allocation6 + $0x258] sm:$0xf] }
 0x29c   :  { %3189 = vmatpush.bf16.msra.mxu0 %v9126_v61  ;;  %3202 = vmatpush.bf16.msra.mxu1 %v9382_v11  ;;  %v9522_v61 = vor.u32 %v12310_v33, %v9519_v35  ;;  %v9485_v11 = vld [vmem:[#allocation6 + $0x2d8] sm:$0xf]  ;;  %v12278_v33 = vld [vmem:[#allocation6 + $0x21c] sm:$0xf] }
 0x29d   :  { %3215 = vmatpush.bf16.msra.mxu2 %v9130_v16  ;;  %3228 = vmatpush.bf16.msra.mxu3 %v9386_v14  ;;  %v12302_v16 = vld [vmem:[#allocation6 + $0x2dc] sm:$0xf]  ;;  %v12290_v49 = vld [vmem:[#allocation6 + $0x274] sm:$0xf0] }
 0x29e   :  { %v9487_v14 = vld [vmem:[#allocation6 + $0x2f8] sm:$0xf0]  ;;  %v9133_v55 = vld [vmem:[#allocation6 + $0x18] sm:$0xf] }
 0x29f   :  { %3190 = vmatmul.bf16.vlgmr.msra.gmra.mxu0 %v13417_v15  ;;  %3203 = vmatmul.bf16.vlgmr.msra.gmra.mxu1 %v13419_v17  ;;  %v12218_v57 = vld [vmem:[#allocation6 + $0x34] sm:$0xf0]  ;;  %v9391_v35 = vld [vmem:[#allocation6 + $0x238] sm:$0xf0] }
 0x2a0   :  { %3234 = vmatpush.bf16.msrb.mxu0 %v9358_v18  ;;  %3247 = vmatpush.bf16.msrb.mxu1 %v9614_v21  ;;  %v9230_v18 = vor.u32 %v12242_v7, %v9229_v3  ;;  %v9486_v21 = vor.u32 %v12306_v12, %v9485_v11  ;;  %v9389_v0 = vld [vmem:[#allocation6 + $0x218] sm:$0xf]  ;;  %v9138_v3 = vor.u32 %v12214_v2, %v9135_v4  ;;  %v9781_v4 = vld [vmem:[#allocation6 + $0x140] sm:$0xf] }
 0x2a1   :  { %3260 = vmatpush.bf16.msrb.mxu2 %v9362_v24  ;;  %3273 = vmatpush.bf16.msrb.mxu3 %v9618_v30  ;;  %v9234_v24 = vor.u32 %v12238_v13, %v9231_v44  ;;  %v9490_v30 = vor.u32 %v12302_v16, %v9487_v14  ;;  %v12282_v1 = vld [vmem:[#allocation6 + $0x234] sm:$0xf0]  ;;  %v9394_v7 = vor.u32 %v12278_v33, %v9391_v35  ;;  %v12383_v33 = vld [vmem:[#allocation6 + $0x15c] sm:$0xf0] }
 0x2a2   :  { %3216 = vmatmul.bf16.vlgmr.msra.gmra.mxu2 %v13417_v15  ;;  %3229 = vmatmul.bf16.vlgmr.msra.gmra.mxu3 %v13419_v17  ;;  %v10037_v35 = vld [vmem:[#allocation6 + $0x340] sm:$0xf] }
 0x2a4   :  { %3235 = vmatpush.bf16.msrb.mxu0 %v9326_v62  ;;  %3248 = vmatpush.bf16.msrb.mxu1 %v9582_v45  ;;  %v9198_v62 = vor.u32 %v12234_v23, %v9197_v22  ;;  %v9454_v45 = vor.u32 %v12298_v32, %v9453_v52  ;;  %v9845_v23 = vld [vmem:[#allocation6 + $0x1c0] sm:$0xf] }
 0x2a5   :  { %3261 = vmatpush.bf16.msrb.mxu2 %v9330_v29  ;;  %3274 = vmatpush.bf16.msrb.mxu3 %v9586_v47  ;;  %v9202_v29 = vor.u32 %v12230_v36, %v9199_v38  ;;  %v9458_v47 = vor.u32 %v12294_v39, %v9455_v43  ;;  %v12463_v32 = vld [vmem:[#allocation6 + $0x3dc] sm:$0xf0]  ;;  %v9847_v38 = vld [vmem:[#allocation6 + $0x1e0] sm:$0xf0] }
 0x2a6   :  { %v12459_v39 = vld [vmem:[#allocation6 + $0x3c4] sm:$0xf] }
 0x2a7   :  { %v10103_v43 = vld [vmem:[#allocation6 + $0x3e0] sm:$0xf0] }
 0x2a8   :  { %3236 = vmatpush.bf16.msrb.mxu0 %v9294_v54  ;;  %3249 = vmatpush.bf16.msrb.mxu1 %v9550_v31  ;;  %v9166_v54 = vor.u32 %v12226_v46, %v9165_v28  ;;  %v9422_v31 = vor.u32 %v12290_v49, %v9421_v48  ;;  %v10069_v48 = vld [vmem:[#allocation6 + $0x380] sm:$0xf] }
 0x2a9   :  { %3262 = vmatpush.bf16.msrb.mxu2 %v9298_v59  ;;  %3275 = vmatpush.bf16.msrb.mxu3 %v9554_v63  ;;  %v9170_v59 = vor.u32 %v12222_v50, %v9167_v51  ;;  %v9426_v63 = vor.u32 %v12286_v58, %v9423_v53  ;;  %v12455_v58 = vld [vmem:[#allocation6 + $0x39c] sm:$0xf0]  ;;  %v12387_v53 = vld [vmem:[#allocation6 + $0x184] sm:$0xf] }
 0x2ac   :  { %3237 = vmatpush.bf16.msrb.mxu0 %v9262_v5  ;;  %3250 = vmatpush.bf16.msrb.mxu1 %v9518_v6  ;;  %v9134_v5 = vor.u32 %v12218_v57, %v9133_v55  ;;  %v9390_v6 = vor.u32 %v12282_v1, %v9389_v0  ;;  %v9815_v55 = vld [vmem:[#allocation6 + $0x1a0] sm:$0xf0] }
 0x2ad   :  { %3263 = vmatpush.bf16.msrb.mxu2 %v9266_v10  ;;  %3276 = vmatpush.bf16.msrb.mxu3 %v9522_v61  ;;  %v12451_v57 = vld [vmem:[#allocation6 + $0x384] sm:$0xf] }
 0x2b0   :  { %3238 = vmatpush.bf16.msrb.mxu0 %v9230_v18  ;;  %3251 = vmatpush.bf16.msrb.mxu1 %v9486_v21 }
 0x2b1   :  { %3264 = vmatpush.bf16.msrb.mxu2 %v9234_v24  ;;  %3277 = vmatpush.bf16.msrb.mxu3 %v9490_v30  ;;  %v12399_v24 = vld [vmem:[#allocation6 + $0x1dc] sm:$0xf0] }
 0x2b2   :  { %v10101_v30 = vld [vmem:[#allocation6 + $0x3c0] sm:$0xf] }
 0x2b3   :  { %v10102_v36 = vor.u32 %v12463_v32, %v10101_v30 }
 0x2b4   :  { %3239 = vmatpush.bf16.msrb.mxu0 %v9198_v62  ;;  %3252 = vmatpush.bf16.msrb.mxu1 %v9454_v45  ;;  %v10106_v45 = vor.u32 %v12459_v39, %v10103_v43  ;;  %v9751_v43 = vld [vmem:[#allocation6 + $0x120] sm:$0xf0] }
 0x2b5   :  { %3265 = vmatpush.bf16.msrb.mxu2 %v9202_v29  ;;  %3278 = vmatpush.bf16.msrb.mxu3 %v9458_v47  ;;  %v9813_v29 = vld [vmem:[#allocation6 + $0x180] sm:$0xf] }
 0x2b6   :  { %v12391_v47 = vld [vmem:[#allocation6 + $0x19c] sm:$0xf0] }
 0x2b7   :  { %v9814_v51 = vor.u32 %v12391_v47, %v9813_v29 }
 0x2b8   :  { %3240 = vmatpush.bf16.msrb.mxu0 %v9166_v54  ;;  %3253 = vmatpush.bf16.msrb.mxu1 %v9422_v31  ;;  %v10070_v31 = vor.u32 %v12455_v58, %v10069_v48 }
 0x2b9   :  { %3266 = vmatpush.bf16.msrb.mxu2 %v9170_v59  ;;  %3279 = vmatpush.bf16.msrb.mxu3 %v9426_v63  ;;  %v10071_v59 = vld [vmem:[#allocation6 + $0x3a0] sm:$0xf0]  ;;  %v9818_v63 = vor.u32 %v12387_v53, %v9815_v55  ;;  %v12431_v55 = vld [vmem:[#allocation6 + $0x2dc] sm:$0xf0] }
 0x2ba   :  { %v10074_v0 = vor.u32 %v12451_v57, %v10071_v59  ;;  %v12363_v57 = vld [vmem:[#allocation6 + $0xc4] sm:$0xf] }
 0x2bc   :  { %3241 = vmatpush.bf16.msrb.mxu0 %v9134_v5  ;;  %3254 = vmatpush.bf16.msrb.mxu1 %v9390_v6  ;;  %v9782_v6 = vor.u32 %v12383_v33, %v9781_v4 }
 0x2bd   :  { %3267 = vmatpush.bf16.msrb.mxu2 %v9138_v3  ;;  %3280 = vmatpush.bf16.msrb.mxu3 %v9394_v7  ;;  %v12447_v3 = vld [vmem:[#allocation6 + $0x35c] sm:$0xf0]  ;;  %v12379_v7 = vld [vmem:[#allocation6 + $0x144] sm:$0xf] }
 0x2bf   :  { %3242 = vmatmul.bf16.vlgmr.msrb.gmra.mxu0 %v13417_v15  ;;  %3255 = vmatmul.bf16.vlgmr.msrb.gmra.mxu1 %v13419_v17 }
 0x2c0   :  { %3268 = vmatmul.bf16.vlgmr.msrb.gmra.mxu2 %v13417_v15  ;;  %3281 = vmatmul.bf16.vlgmr.msrb.gmra.mxu3 %v13419_v17  ;;  %v9846_v15 = vor.u32 %v12399_v24, %v9845_v23  ;;  %v12395_v17 = vld [vmem:[#allocation6 + $0x1c4] sm:$0xf]  ;;  %v9749_v23 = vld [vmem:[#allocation6 + $0x100] sm:$0xf] }
 0x2c1   :  { %v9850_v62 = vor.u32 %v12395_v17, %v9847_v38  ;;  %4123 = vmatpush.bf16.msra.mxu1 %v10102_v36  ;;  %4149 = vmatpush.bf16.msra.mxu3 %v10106_v45  ;;  %v12375_v24 = vld [vmem:[#allocation6 + $0x11c] sm:$0xf0]  ;;  %v12371_v38 = vld [vmem:[#allocation6 + $0x104] sm:$0xf] }
 0x2c2   :  { %4110 = vmatpush.bf16.msra.mxu0 %v9846_v15  ;;  %v9750_v32 = vor.u32 %v12375_v24, %v9749_v23  ;;  %v10005_v17 = vld [vmem:[#allocation6 + $0x300] sm:$0xf]  ;;  %v10007_v45 = vld [vmem:[#allocation6 + $0x320] sm:$0xf0]  ;;  %v9754_v29 = vor.u32 %v12371_v38, %v9751_v43 }
 0x2c3   :  { %4136 = vmatpush.bf16.msra.mxu2 %v9850_v62  ;;  %v12439_v36 = vld [vmem:[#allocation6 + $0x31c] sm:$0xf0]  ;;  %v12435_v62 = vld [vmem:[#allocation6 + $0x304] sm:$0xf] }
 0x2c4   :  { %v10006_v39 = vor.u32 %v12439_v36, %v10005_v17  ;;  %v10010_v47 = vor.u32 %v12435_v62, %v10007_v45  ;;  %v12351_v23 = vld [vmem:[#allocation6 + $0x5c] sm:$0xf0]  ;;  %v9655_v17 = vld [vmem:[#allocation6 + $0x60] sm:$0xf0] }
 0x2c5   :  { %4124 = vmatpush.bf16.msra.mxu1 %v10070_v31  ;;  %4150 = vmatpush.bf16.msra.mxu3 %v10074_v0  ;;  %v12427_v0 = vld [vmem:[#allocation6 + $0x2c4] sm:$0xf]  ;;  %v9909_v24 = vld [vmem:[#allocation6 + $0x240] sm:$0xf] }
 0x2c6   :  { %4111 = vmatpush.bf16.msra.mxu0 %v9814_v51  ;;  %v9973_v51 = vld [vmem:[#allocation6 + $0x2c0] sm:$0xf]  ;;  %v12411_v43 = vld [vmem:[#allocation6 + $0x244] sm:$0xf] }
 0x2c7   :  { %4137 = vmatpush.bf16.msra.mxu2 %v9818_v63  ;;  %v9974_v59 = vor.u32 %v12431_v55, %v9973_v51  ;;  %v9719_v63 = vld [vmem:[#allocation6 + $0xe0] sm:$0xf0]  ;;  %v12407_v51 = vld [vmem:[#allocation6 + $0x21c] sm:$0xf0] }
 0x2c8   :  { %v9722_v4 = vor.u32 %v12363_v57, %v9719_v63  ;;  %v9911_v62 = vld [vmem:[#allocation6 + $0x260] sm:$0xf0] }
 0x2c9   :  { %v12403_v63 = vld [vmem:[#allocation6 + $0x204] sm:$0xf] }
 0x2ca   :  { %4112 = vmatpush.bf16.msra.mxu0 %v9782_v6  ;;  %v12359_v6 = vld [vmem:[#allocation6 + $0x9c] sm:$0xf0] }
 0x2ce   :  { %4113 = vmatpush.bf16.msra.mxu0 %v9750_v32  ;;  %v12347_v32 = vld [vmem:[#allocation6 + $0x44] sm:$0xf] }
 0x2fb   :  { %v3087_v10 = vpop.f32.mrf.mxu0  ;;  %v3100_v61 = vpop.f32.mrf.mxu1 }
 0x2fc   :  { %v3101_v11 = vadd.f32 %v3100_v61, %v3087_v10  ;;  %v9783_v10 = vld [vmem:[#allocation6 + $0x160] sm:$0xf0] }
 0x2fe   :  { %v3286_v12 = vadd.f32 %v3101_v11, %v13314_v34  ;;  %v10038_v11 = vor.u32 %v12447_v3, %v10037_v35  ;;  %v9941_v3 = vld [vmem:[#allocation6 + $0x280] sm:$0xf] }
 0x300   :  { %v3290_v21 = vmul.f32 0.5, %v3286_v12  ;;  %v9786_v12 = vor.u32 %v12379_v7, %v9783_v10  ;;  %4125 = vmatpush.bf16.msra.mxu1 %v10038_v11  ;;  %v12423_v10 = vld [vmem:[#allocation6 + $0x29c] sm:$0xf0]  ;;  %v9687_v11 = vld [vmem:[#allocation6 + $0xa0] sm:$0xf0] }
 0x302   :  { %v3113_v13 = vpop.f32.mrf.mxu2  ;;  %v3126_v44 = vpop.f32.mrf.mxu3  ;;  %12984 = vtanh.f32 %v3290_v21  ;;  %4138 = vmatpush.bf16.msra.mxu2 %v9786_v12  ;;  %v9942_v12 = vor.u32 %v12423_v10, %v9941_v3 }
 0x303   :  { %v3127_v16 = vadd.f32 %v3126_v44, %v3113_v13  ;;  %v3089_v14 = vpop.f32.mrf.mxu0  ;;  %v3102_v18 = vpop.f32.mrf.mxu1  ;;  %v12443_v13 = vld [vmem:[#allocation6 + $0x344] sm:$0xf] }
 0x304   :  { %v10039_v44 = vld [vmem:[#allocation6 + $0x360] sm:$0xf0]  ;;  %4126 = vmatpush.bf16.msra.mxu1 %v10006_v39  ;;  %v9658_v39 = vor.u32 %v12347_v32, %v9655_v17  ;;  %v12456_v17 = vld [vmem:[#allocation6 + $0x3a4] sm:$0xf0] }
 0x305   :  { %v3287_v22 = vadd.f32 %v3127_v16, %v13318_v37  ;;  %v10042_v14 = vor.u32 %v12443_v13, %v10039_v44  ;;  %v12419_v44 = vld [vmem:[#allocation6 + $0x284] sm:$0xf] }
 0x306   :  { %4139 = vmatpush.bf16.msra.mxu2 %v9754_v29  ;;  %v9621_v29 = vld [vmem:[#allocation6] sm:$0xf] }
 0x307   :  { %v3294_v52 = vmul.f32 0.5, %v3287_v22  ;;  %4151 = vmatpush.bf16.msra.mxu3 %v10042_v14 }
 0x308   :  { %v12985_v1 = vpop.eup %12984  ;;  %4127 = vmatpush.bf16.msra.mxu1 %v9974_v59  ;;  %v9623_v59 = vld [vmem:[#allocation6 + $0x20] sm:$0xf0] }
 0x309   :  { %12986 = vtanh.f32 %v3294_v52  ;;  %v3292_v16 = vmul.f32 0.5, %v12985_v1  ;;  %v9975_v1 = vld [vmem:[#allocation6 + $0x2e0] sm:$0xf0] }
 0x30a   :  { %v3115_v28 = vpop.f32.mrf.mxu2  ;;  %v3128_v46 = vpop.f32.mrf.mxu3  ;;  %v9978_v33 = vor.u32 %v12427_v0, %v9975_v1  ;;  %4140 = vmatpush.bf16.msra.mxu2 %v9722_v4  ;;  %v9879_v0 = vld [vmem:[#allocation6 + $0x220] sm:$0xf0] }
 0x30b   :  { %v3139_v49 = vpop.f32.mrf.mxu0  ;;  %v3152_v50 = vpop.f32.mrf.mxu1  ;;  %v3293_v28 = vadd.f32 0.5, %v3292_v16  ;;  %4152 = vmatpush.bf16.msra.mxu3 %v10010_v47  ;;  %v9943_v16 = vld [vmem:[#allocation6 + $0x2a0] sm:$0xf0]  ;;  %v12343_v47 = vld [vmem:[#allocation6 + $0x1c] sm:$0xf0] }
 0x30c   :  { %v3153_v54 = vadd.f32 %v3152_v50, %v3139_v49  ;;  %v9717_v49 = vld [vmem:[#allocation6 + $0xc0] sm:$0xf]  ;;  %4128 = vmatpush.bf16.msra.mxu1 %v9942_v12  ;;  %v9855_v12 = vld [vmem:[#allocation6 + $0x1e8] sm:$0xf0] }
 0x30d   :  { %v12367_v50 = vld [vmem:[#allocation6 + $0xdc] sm:$0xf0] }
 0x30e   :  { %v3288_v2 = vadd.f32 %v3153_v54, %v13322_v56  ;;  %v9718_v31 = vor.u32 %v12367_v50, %v9717_v49  ;;  %v9622_v49 = vor.u32 %v12343_v47, %v9621_v29  ;;  %v9877_v50 = vld [vmem:[#allocation6 + $0x200] sm:$0xf]  ;;  %v9789_v47 = vld [vmem:[#allocation6 + $0x148] sm:$0xf] }
 0x30f   :  { %v12987_v5 = vpop.eup %12986  ;;  %4153 = vmatpush.bf16.msra.mxu3 %v9978_v33  ;;  %v9878_v57 = vor.u32 %v12407_v51, %v9877_v50 }
 0x310   :  { %v3296_v61 = vmul.f32 0.5, %v12987_v5  ;;  %12988 = vtanh.f32 %v3288_v2  ;;  %4114 = vmatpush.bf16.msra.mxu0 %v9718_v31 }
 0x312   :  { %v3297_v18 = vadd.f32 0.5, %v3296_v61  ;;  %v3165_v21 = vpop.f32.mrf.mxu2  ;;  %v3178_v22 = vpop.f32.mrf.mxu3  ;;  %v12355_v61 = vld [vmem:[#allocation6 + $0x84] sm:$0xf] }
 0x313   :  { %v3179_v30 = vadd.f32 %v3178_v22, %v3165_v21  ;;  %v3141_v52 = vpop.f32.mrf.mxu0  ;;  %v3154_v15 = vpop.f32.mrf.mxu1  ;;  %v9690_v13 = vor.u32 %v12355_v61, %v9687_v11  ;;  %v9946_v21 = vor.u32 %v12419_v44, %v9943_v16  ;;  %v9653_v22 = vld [vmem:[#allocation6 + $0x40] sm:$0xf]  ;;  %v12464_v61 = vld [vmem:[#allocation6 + $0x3e4] sm:$0xf0]  ;;  %v12396_v11 = vld [vmem:[#allocation6 + $0x1cc] sm:$0xf] }
 0x314   :  { %v3303_v58 = vmul.f32 %v3297_v18, %v13390_v41  ;;  %v9685_v41 = vld [vmem:[#allocation6 + $0x80] sm:$0xf]  ;;  %v9654_v52 = vor.u32 %v12351_v23, %v9653_v22  ;;  %v9858_v44 = vor.u32 %v12396_v11, %v9855_v12  ;;  %v12460_v16 = vld [vmem:[#allocation6 + $0x3cc] sm:$0xf]  ;;  %v9821_v22 = vld [vmem:[#allocation6 + $0x188] sm:$0xf] }
 0x315   :  { %v3289_v46 = vadd.f32 %v3179_v30, %v13326_v40  ;;  %v9686_v7 = vor.u32 %v12359_v6, %v9685_v41  ;;  %4141 = vmatpush.bf16.msra.mxu2 %v9690_v13  ;;  %4154 = vmatpush.bf16.msra.mxu3 %v9946_v21  ;;  %v12415_v15 = vld [vmem:[#allocation6 + $0x25c] sm:$0xf0]  ;;  %v12400_v41 = vld [vmem:[#allocation6 + $0x1e4] sm:$0xf0]  ;;  %v10111_v21 = vld [vmem:[#allocation6 + $0x3e8] sm:$0xf0] }
 0x316   :  { %v12989_v48 = vpop.eup %12988  ;;  %v9910_v38 = vor.u32 %v12415_v15, %v9909_v24  ;;  %v10109_v6 = vld [vmem:[#allocation6 + $0x3c8] sm:$0xf]  ;;  %v12436_v11 = vld [vmem:[#allocation6 + $0x30c] sm:$0xf] }
 0x317   :  { %v3304_v53 = vmul.f32 %v12989_v48, %v3293_v28  ;;  %v3299_v54 = vmul.f32 0.5, %v3289_v46  ;;  %4115 = vmatpush.bf16.msra.mxu0 %v9686_v7  ;;  %v9914_v28 = vor.u32 %v12411_v43, %v9911_v62  ;;  %v13449_v48 = vpop.permute.xlu1 %97  ;;  %v10110_v13 = vor.u32 %v12464_v61, %v10109_v6  ;;  %v10077_v15 = vld [vmem:[#allocation6 + $0x388] sm:$0xf]  ;;  %v9823_v62 = vld [vmem:[#allocation6 + $0x1a8] sm:$0xf0] }
 0x318   :  { %4129 = vmatpush.bf16.msra.mxu1 %v9910_v38  ;;  %v141_v23 = vmul.f32 %v13264_v8, %v13449_v48  ;;  %v10078_v43 = vor.u32 %v12456_v17, %v10077_v15  ;;  %v12440_v6 = vld [vmem:[#allocation6 + $0x324] sm:$0xf0]  ;;  %v10015_v12 = vld [vmem:[#allocation6 + $0x328] sm:$0xf0] }
 0x319   :  { %v13442_v2 = vadd.f32 %v3304_v53, %v3303_v58  ;;  %12990 = vtanh.f32 %v3299_v54  ;;  %4142 = vmatpush.bf16.msra.mxu2 %v9658_v39  ;;  %4155 = vmatpush.bf16.msra.mxu3 %v9914_v28  ;;  %v12339_v58 = vld [vmem:[#allocation6 + $0x4] sm:$0xf]  ;;  %v142_v53 = vmul.f32 %v13266_v9, %v13449_v48  ;;  %v10079_v28 = vld [vmem:[#allocation6 + $0x3a8] sm:$0xf0] }
 0x31a   :  { %v3167_v35 = vpop.f32.mrf.mxu2  ;;  %v3180_v5 = vpop.f32.mrf.mxu3  ;;  %v9626_v33 = vor.u32 %v12339_v58, %v9623_v59  ;;  %v183_v50 = vadd.f32 %v13272_v25, %v141_v23  ;;  %v9727_v15 = vld [vmem:[#allocation6 + $0xe8] sm:$0xf0] }
 0x31b   :  { %12992 = vtanh.f32 %v13442_v2  ;;  %4116 = vmatpush.bf16.msra.mxu0 %v9654_v52  ;;  %v9882_v35 = vor.u32 %v12403_v63, %v9879_v0  ;;  %v9853_v5 = vld [vmem:[#allocation6 + $0x1c8] sm:$0xf]  ;;  %v184_v24 = vadd.f32 %v13274_v26, %v142_v53  ;;  %v9983_v17 = vld [vmem:[#allocation6 + $0x2e8] sm:$0xf0] }
 0x31c   :  { %v13445_v14 = vpop.f32.mrf.mxu0  ;;  %v13447_v18 = vpop.f32.mrf.mxu1  ;;  %4130 = vmatpush.bf16.msra.mxu1 %v9878_v57  ;;  %v9854_v10 = vor.u32 %v12400_v41, %v9853_v5  ;;  %v12392_v52 = vld [vmem:[#allocation6 + $0x1a4] sm:$0xf0]  ;;  %v12444_v57 = vld [vmem:[#allocation6 + $0x34c] sm:$0xf] }
 0x31d   :  { %4143 = vmatpush.bf16.msra.mxu2 %v9626_v33  ;;  %4156 = vmatpush.bf16.msra.mxu3 %v9882_v35  ;;  %v9822_v32 = vor.u32 %v12392_v52, %v9821_v22  ;;  %v3205_v38 = vadd.f32 %v13447_v18, %v13445_v14  ;;  %v9791_v18 = vld [vmem:[#allocation6 + $0x168] sm:$0xf0]  ;;  %v9757_v33 = vld [vmem:[#allocation6 + $0x108] sm:$0xf] }
 0x31e   :  { %v12376_v35 = vld [vmem:[#allocation6 + $0x124] sm:$0xf0] }
 0x31f   :  { %v12991_v30 = vpop.eup %12990  ;;  %4117 = vmatpush.bf16.msra.mxu0 %v9622_v49  ;;  %v12384_v49 = vld [vmem:[#allocation6 + $0x164] sm:$0xf0]  ;;  %v3310_v59 = vadd.f32 %v3205_v38, %v183_v50  ;;  %v9758_v41 = vor.u32 %v12376_v35, %v9757_v33  ;;  %v9663_v33 = vld [vmem:[#allocation6 + $0x68] sm:$0xf0] }
 0x320   :  { %v3301_v36 = vmul.f32 0.5, %v12991_v30  ;;  %v10114_v30 = vor.u32 %v12460_v16, %v10111_v21  ;;  %4175 = vmatpush.bf16.msrb.mxu1 %v10110_v13  ;;  %v9790_v53 = vor.u32 %v12384_v49, %v9789_v47  ;;  %v10013_v5 = vld [vmem:[#allocation6 + $0x308] sm:$0xf]  ;;  %v9695_v47 = vld [vmem:[#allocation6 + $0xa8] sm:$0xf0] }
 0x321   :  { %v12993_v45 = vpop.eup %12992  ;;  %4188 = vmatpush.bf16.msrb.mxu2 %v9858_v44  ;;  %v3314_v13 = vmul.f32 0.5, %v3310_v59  ;;  %v10018_v44 = vor.u32 %v12436_v11, %v10015_v12  ;;  %v9725_v16 = vld [vmem:[#allocation6 + $0xc8] sm:$0xf] }
 0x322   :  { %v3302_v46 = vadd.f32 0.5, %v3301_v36  ;;  %v12388_v36 = vld [vmem:[#allocation6 + $0x18c] sm:$0xf]  ;;  %4201 = vmatpush.bf16.msrb.mxu3 %v10114_v30  ;;  %v12368_v21 = vld [vmem:[#allocation6 + $0xe4] sm:$0xf0] }
 0x323   :  { %4162 = vmatpush.bf16.msrb.mxu0 %v9854_v10  ;;  %v10014_v10 = vor.u32 %v12440_v6, %v10013_v5  ;;  %v9981_v22 = vld [vmem:[#allocation6 + $0x2c8] sm:$0xf]  ;;  %v9726_v23 = vor.u32 %v12368_v21, %v9725_v16  ;;  %v12364_v30 = vld [vmem:[#allocation6 + $0xcc] sm:$0xf] }
 0x324   :  { %v3307_v54 = vmul.f32 %v12993_v45, %v3302_v46  ;;  %v3193_v1 = vpop.f32.mrf.mxu0  ;;  %v3206_v4 = vpop.f32.mrf.mxu1  ;;  %v12452_v45 = vld [vmem:[#allocation6 + $0x38c] sm:$0xf]  ;;  %v9826_v46 = vor.u32 %v12388_v36, %v9823_v62  ;;  %4176 = vmatpush.bf16.msrb.mxu1 %v10078_v43  ;;  %v9730_v36 = vor.u32 %v12364_v30, %v9727_v15  ;;  %v9693_v43 = vld [vmem:[#allocation6 + $0x88] sm:$0xf] }
 0x325   :  { %v3217_v31 = vpop.f32.mrf.mxu2  ;;  %v3230_v55 = vpop.f32.mrf.mxu3  ;;  %v10082_v29 = vor.u32 %v12452_v45, %v10079_v28  ;;  %v10047_v1 = vld [vmem:[#allocation6 + $0x368] sm:$0xf0]  ;;  %v12360_v62 = vld [vmem:[#allocation6 + $0xa4] sm:$0xf0] }
 0x326   :  { %v3308_v3 = vpack.c.bf16 %v3307_v54, %v3307_v54  ;;  %v3231_v7 = vadd.f32 %v3230_v55, %v3217_v31  ;;  %v10045_v54 = vld [vmem:[#allocation6 + $0x348] sm:$0xf]  ;;  %v12380_v55 = vld [vmem:[#allocation6 + $0x14c] sm:$0xf]  ;;  %4189 = vmatpush.bf16.msrb.mxu2 %v9826_v46  ;;  %v10050_v4 = vor.u32 %v12444_v57, %v10047_v1  ;;  %v9694_v28 = vor.u32 %v12360_v62, %v9693_v43 }
 0x327   :  { %4163 = vmatpush.bf16.msrb.mxu0 %v9822_v32  ;;  %v12448_v31 = vld [vmem:[#allocation6 + $0x364] sm:$0xf0]  ;;  %4202 = vmatpush.bf16.msrb.mxu3 %v10082_v29  ;;  %v9794_v0 = vor.u32 %v12380_v55, %v9791_v18  ;;  %v12428_v32 = vld [vmem:[#allocation6 + $0x2cc] sm:$0xf] }
 0x328   :  { %3309 = vst [vmem:[#allocation2 + $0x4] sm:$0xf] %v3308_v3  ;;  %v3311_v39 = vadd.f32 %v3231_v7, %v184_v24  ;;  %v10046_v14 = vor.u32 %v12448_v31, %v10045_v54  ;;  %v12372_v3 = vld [vmem:[#allocation6 + $0x10c] sm:$0xf]  ;;  %v12432_v24 = vld [vmem:[#allocation6 + $0x2e4] sm:$0xf0]  ;;  %v9986_v38 = vor.u32 %v12428_v32, %v9983_v17 }
 0x329   :  { %v9759_v7 = vld [vmem:[#allocation6 + $0x128] sm:$0xf0]  ;;  %v9982_v52 = vor.u32 %v12432_v24, %v9981_v22  ;;  %v9949_v45 = vld [vmem:[#allocation6 + $0x288] sm:$0xf] }
 0x32a   :  { %v3318_v63 = vmul.f32 0.5, %v3311_v39  ;;  %4177 = vmatpush.bf16.msrb.mxu1 %v10046_v14  ;;  %4190 = vmatpush.bf16.msrb.mxu2 %v9794_v0  ;;  %v9762_v61 = vor.u32 %v12372_v3, %v9759_v7  ;;  %v143_v39 = vmul.f32 %v13268_v19, %v13449_v48  ;;  %v12424_v46 = vld [vmem:[#allocation6 + $0x2a4] sm:$0xf0]  ;;  %v12356_v29 = vld [vmem:[#allocation6 + $0x8c] sm:$0xf] }
 0x32b   :  { %4164 = vmatpush.bf16.msrb.mxu0 %v9790_v53  ;;  %4203 = vmatpush.bf16.msrb.mxu3 %v10050_v4  ;;  %v9950_v49 = vor.u32 %v12424_v46, %v9949_v45  ;;  %v9698_v50 = vor.u32 %v12356_v29, %v9695_v47  ;;  %v9661_v57 = vld [vmem:[#allocation6 + $0x48] sm:$0xf]  ;;  %v12348_v4 = vld [vmem:[#allocation6 + $0x4c] sm:$0xf] }
 0x32c   :  { %12994 = vtanh.f32 %v3318_v63  ;;  %v185_v14 = vadd.f32 %v13281_v42, %v143_v39  ;;  %v12352_v59 = vld [vmem:[#allocation6 + $0x64] sm:$0xf0]  ;;  %v9666_v3 = vor.u32 %v12348_v4, %v9663_v33  ;;  %v12412_v7 = vld [vmem:[#allocation6 + $0x24c] sm:$0xf]  ;;  %v12397_v4 = vld [vmem:[#allocation6 + $0x1d4] sm:$0xf] }
 0x32d   :  { %v3219_v51 = vpop.f32.mrf.mxu2  ;;  %v3232_v58 = vpop.f32.mrf.mxu3  ;;  %12996 = vtanh.f32 %v3314_v13  ;;  %v9917_v63 = vld [vmem:[#allocation6 + $0x248] sm:$0xf]  ;;  %v9662_v0 = vor.u32 %v12352_v59, %v9661_v57  ;;  %v12340_v21 = vld [vmem:[#allocation6 + $0xc] sm:$0xf]  ;;  %v9861_v59 = vld [vmem:[#allocation6 + $0x1d0] sm:$0xf] }
 0x32e   :  { %4178 = vmatpush.bf16.msrb.mxu1 %v10014_v10  ;;  %4191 = vmatpush.bf16.msrb.mxu2 %v9762_v61  ;;  %v12420_v51 = vld [vmem:[#allocation6 + $0x28c] sm:$0xf]  ;;  %v12416_v1 = vld [vmem:[#allocation6 + $0x264] sm:$0xf0]  ;;  %v144_v61 = vmul.f32 %v13270_v20, %v13449_v48 }
 0x32f   :  { %4165 = vmatpush.bf16.msrb.mxu0 %v9758_v41  ;;  %4204 = vmatpush.bf16.msrb.mxu3 %v10018_v44  ;;  %v9951_v58 = vld [vmem:[#allocation6 + $0x2a8] sm:$0xf0]  ;;  %v9918_v6 = vor.u32 %v12416_v1, %v9917_v63  ;;  %v9629_v12 = vld [vmem:[#allocation6 + $0x8] sm:$0xf]  ;;  %v12401_v63 = vld [vmem:[#allocation6 + $0x1ec] sm:$0xf0] }
 0x330   :  { %v9954_v55 = vor.u32 %v12420_v51, %v9951_v58  ;;  %v9919_v10 = vld [vmem:[#allocation6 + $0x268] sm:$0xf0]  ;;  %v12344_v13 = vld [vmem:[#allocation6 + $0x24] sm:$0xf0]  ;;  %v12465_v1 = vld [vmem:[#allocation6 + $0x3ec] sm:$0xf0] }
 0x331   :  { %v9922_v11 = vor.u32 %v12412_v7, %v9919_v10  ;;  %v9885_v44 = vld [vmem:[#allocation6 + $0x208] sm:$0xf]  ;;  %v9631_v22 = vld [vmem:[#allocation6 + $0x28] sm:$0xf0]  ;;  %v9630_v24 = vor.u32 %v12344_v13, %v9629_v12  ;;  %v9862_v10 = vor.u32 %v12401_v63, %v9861_v59  ;;  %v12393_v12 = vld [vmem:[#allocation6 + $0x1ac] sm:$0xf0] }
 0x332   :  { %4179 = vmatpush.bf16.msrb.mxu1 %v9982_v52  ;;  %4192 = vmatpush.bf16.msrb.mxu2 %v9730_v36  ;;  %v12995_v53 = vpop.eup %12994  ;;  %v12408_v16 = vld [vmem:[#allocation6 + $0x224] sm:$0xf0]  ;;  %v12404_v30 = vld [vmem:[#allocation6 + $0x20c] sm:$0xf]  ;;  %v9634_v48 = vor.u32 %v12340_v21, %v9631_v22  ;;  %v12457_v21 = vld [vmem:[#allocation6 + $0x3ac] sm:$0xf0] }
 0x333   :  { %4166 = vmatpush.bf16.msrb.mxu0 %v9726_v23  ;;  %4205 = vmatpush.bf16.msrb.mxu3 %v9986_v38  ;;  %v12997_v35 = vpop.eup %12996  ;;  %v3320_v5 = vmul.f32 0.5, %v12995_v53  ;;  %v9887_v52 = vld [vmem:[#allocation6 + $0x228] sm:$0xf0]  ;;  %v9886_v17 = vor.u32 %v12408_v16, %v9885_v44  ;;  %v186_v38 = vadd.f32 %v13276_v27, %v144_v61  ;;  %v10085_v16 = vld [vmem:[#allocation6 + $0x390] sm:$0xf] }
 0x334   :  { %v3316_v23 = vmul.f32 0.5, %v12997_v35  ;;  %v9890_v45 = vor.u32 %v12404_v30, %v9887_v52  ;;  %v12389_v22 = vld [vmem:[#allocation6 + $0x194] sm:$0xf]  ;;  %v9733_v63 = vld [vmem:[#allocation6 + $0xd0] sm:$0xf] }
 0x335   :  { %v3321_v36 = vadd.f32 0.5, %v3320_v5  ;;  %v9863_v5 = vld [vmem:[#allocation6 + $0x1f0] sm:$0xf0] }
 0x336   :  { %4180 = vmatpush.bf16.msrb.mxu1 %v9950_v49  ;;  %4193 = vmatpush.bf16.msrb.mxu2 %v9698_v50  ;;  %v9866_v13 = vor.u32 %v12397_v4, %v9863_v5  ;;  %v10087_v30 = vld [vmem:[#allocation6 + $0x3b0] sm:$0xf0]  ;;  %v9989_v4 = vld [vmem:[#allocation6 + $0x2d0] sm:$0xf] }
 0x337   :  { %4167 = vmatpush.bf16.msrb.mxu0 %v9694_v28  ;;  %4206 = vmatpush.bf16.msrb.mxu3 %v9954_v55  ;;  %v3317_v28 = vadd.f32 0.5, %v3316_v23  ;;  %v3327_v47 = vmul.f32 %v3321_v36, %v13414_v60  ;;  %v10117_v60 = vld [vmem:[#allocation6 + $0x3d0] sm:$0xf]  ;;  %v9831_v23 = vld [vmem:[#allocation6 + $0x1b0] sm:$0xf0] }
 0x338   :  { %v10118_v61 = vor.u32 %v12465_v1, %v10117_v60  ;;  %v12369_v60 = vld [vmem:[#allocation6 + $0xec] sm:$0xf0]  ;;  %v9735_v5 = vld [vmem:[#allocation6 + $0xf0] sm:$0xf0] }
 0x33a   :  { %4181 = vmatpush.bf16.msrb.mxu1 %v9918_v6  ;;  %4194 = vmatpush.bf16.msrb.mxu2 %v9666_v3  ;;  %v10119_v6 = vld [vmem:[#allocation6 + $0x3f0] sm:$0xf0] }
 0x33b   :  { %4168 = vmatpush.bf16.msrb.mxu0 %v9662_v0  ;;  %4207 = vmatpush.bf16.msrb.mxu3 %v9922_v11  ;;  %v9829_v11 = vld [vmem:[#allocation6 + $0x190] sm:$0xf] }
 0x33c   :  { %v3243_v54 = vpop.f32.mrf.mxu0  ;;  %v3256_v31 = vpop.f32.mrf.mxu1  ;;  %v9830_v52 = vor.u32 %v12393_v12, %v9829_v11  ;;  %v9701_v11 = vld [vmem:[#allocation6 + $0x90] sm:$0xf] }
 0x33d   :  { %v3257_v18 = vadd.f32 %v3256_v31, %v3243_v54  ;;  %v12361_v12 = vld [vmem:[#allocation6 + $0xac] sm:$0xf0] }
 0x33e   :  { %4182 = vmatpush.bf16.msrb.mxu1 %v9886_v17  ;;  %4195 = vmatpush.bf16.msrb.mxu2 %v9634_v48  ;;  %v12385_v17 = vld [vmem:[#allocation6 + $0x16c] sm:$0xf0]  ;;  %v9834_v48 = vor.u32 %v12389_v22, %v9831_v23  ;;  %v12357_v22 = vld [vmem:[#allocation6 + $0x94] sm:$0xf] }
 0x33f   :  { %v3312_v41 = vadd.f32 %v3257_v18, %v185_v14  ;;  %4169 = vmatpush.bf16.msrb.mxu0 %v9630_v24  ;;  %4208 = vmatpush.bf16.msrb.mxu3 %v9890_v45  ;;  %v12453_v24 = vld [vmem:[#allocation6 + $0x394] sm:$0xf] }
 0x340   :  { %v10090_v36 = vor.u32 %v12453_v24, %v10087_v30  ;;  %v12445_v45 = vld [vmem:[#allocation6 + $0x354] sm:$0xf] }
 0x341   :  { %12998 = vtanh.f32 %v3312_v41  ;;  %v12461_v41 = vld [vmem:[#allocation6 + $0x3d4] sm:$0xf] }
 0x342   :  { %v10122_v44 = vor.u32 %v12461_v41, %v10119_v6  ;;  %v12429_v41 = vld [vmem:[#allocation6 + $0x2d4] sm:$0xf] }
 0x343   :  { %v3269_v15 = vpop.f32.mrf.mxu2  ;;  %v3282_v32 = vpop.f32.mrf.mxu3  ;;  %v9991_v6 = vld [vmem:[#allocation6 + $0x2f0] sm:$0xf0] }
 0x344   :  { %v3283_v39 = vadd.f32 %v3282_v32, %v3269_v15  ;;  %v3245_v43 = vpop.f32.mrf.mxu0  ;;  %v3258_v62 = vpop.f32.mrf.mxu1  ;;  %v10086_v15 = vor.u32 %v12457_v21, %v10085_v16  ;;  %v9797_v32 = vld [vmem:[#allocation6 + $0x150] sm:$0xf]  ;;  %v9703_v23 = vld [vmem:[#allocation6 + $0xb0] sm:$0xf0] }
 0x345   :  { %v12381_v43 = vld [vmem:[#allocation6 + $0x154] sm:$0xf]  ;;  %v9957_v16 = vld [vmem:[#allocation6 + $0x290] sm:$0xf] }
 0x346   :  { %v3313_v46 = vadd.f32 %v3283_v39, %v186_v38  ;;  %v10053_v38 = vld [vmem:[#allocation6 + $0x350] sm:$0xf]  ;;  %v9799_v62 = vld [vmem:[#allocation6 + $0x170] sm:$0xf0] }
 0x347   :  { %v12999_v29 = vpop.eup %12998  ;;  %v12449_v39 = vld [vmem:[#allocation6 + $0x36c] sm:$0xf0]  ;;  %v12421_v24 = vld [vmem:[#allocation6 + $0x294] sm:$0xf] }
 0x348   :  { %v3328_v49 = vmul.f32 %v12999_v29, %v3317_v28  ;;  %v3323_v50 = vmul.f32 0.5, %v3313_v46  ;;  %v10055_v28 = vld [vmem:[#allocation6 + $0x370] sm:$0xf0]  ;;  %v9798_v46 = vor.u32 %v12385_v17, %v9797_v32  ;;  %v10054_v29 = vor.u32 %v12449_v39, %v10053_v38  ;;  %v12425_v21 = vld [vmem:[#allocation6 + $0x2ac] sm:$0xf0] }
 0x349   :  { %v9959_v30 = vld [vmem:[#allocation6 + $0x2b0] sm:$0xf0]  ;;  %v9669_v32 = vld [vmem:[#allocation6 + $0x50] sm:$0xf] }
 0x34a   :  { %v13466_v51 = vadd.f32 %v3328_v49, %v3327_v47  ;;  %13000 = vtanh.f32 %v3323_v50  ;;  %v9765_v47 = vld [vmem:[#allocation6 + $0x110] sm:$0xf]  ;;  %v9802_v50 = vor.u32 %v12381_v43, %v9799_v62  ;;  %v12349_v43 = vld [vmem:[#allocation6 + $0x54] sm:$0xf] }
 0x34b   :  { %v3271_v58 = vpop.f32.mrf.mxu2  ;;  %v3284_v53 = vpop.f32.mrf.mxu3  ;;  %v12377_v49 = vld [vmem:[#allocation6 + $0x12c] sm:$0xf0]  ;;  %v9671_v62 = vld [vmem:[#allocation6 + $0x70] sm:$0xf0] }
 0x34c   :  { %13002 = vtanh.f32 %v13466_v51  ;;  %v10058_v58 = vor.u32 %v12445_v45, %v10055_v28  ;;  %v10021_v53 = vld [vmem:[#allocation6 + $0x310] sm:$0xf]  ;;  %v12413_v45 = vld [vmem:[#allocation6 + $0x254] sm:$0xf] }
 0x34d   :  { %v12353_v17 = vld [vmem:[#allocation6 + $0x6c] sm:$0xf0]  ;;  %v9927_v28 = vld [vmem:[#allocation6 + $0x270] sm:$0xf0] }
 0x34e   :  { %v9925_v38 = vld [vmem:[#allocation6 + $0x250] sm:$0xf] }
 0x34f   :  { %v12417_v39 = vld [vmem:[#allocation6 + $0x26c] sm:$0xf0] }
 0x350   :  { %v13001_v54 = vpop.eup %13000 }
 0x351   :  { %v3325_v31 = vmul.f32 0.5, %v13001_v54  ;;  %v12441_v54 = vld [vmem:[#allocation6 + $0x32c] sm:$0xf0] }
 0x352   :  { %v13003_v55 = vpop.eup %13002  ;;  %v10022_v59 = vor.u32 %v12441_v54, %v10021_v53  ;;  %v9674_v53 = vor.u32 %v12349_v43, %v9671_v62  ;;  %v9930_v54 = vor.u32 %v12413_v45, %v9927_v28  ;;  %v12382_v43 = vld [vmem:[#allocation6 + $0x15c] sm:$0xf] }
 0x353   :  { %v3326_v14 = vadd.f32 0.5, %v3325_v31  ;;  %v12373_v31 = vld [vmem:[#allocation6 + $0x114] sm:$0xf]  ;;  %v9807_v62 = vld [vmem:[#allocation6 + $0x178] sm:$0xf0] }
 0x354   :  { %v12446_v45 = vld [vmem:[#allocation6 + $0x35c] sm:$0xf] }
 0x355   :  { %v3331_v18 = vmul.f32 %v13003_v55, %v3326_v14  ;;  %v9767_v55 = vld [vmem:[#allocation6 + $0x130] sm:$0xf0]  ;;  %v10063_v28 = vld [vmem:[#allocation6 + $0x378] sm:$0xf0] }
 0x356   :  { %v12437_v14 = vld [vmem:[#allocation6 + $0x314] sm:$0xf] }
 0x357   :  { %v3332_v57 = vpack.c.bf16 %v3331_v18, %v3331_v18  ;;  %v10023_v18 = vld [vmem:[#allocation6 + $0x330] sm:$0xf0] }
 0x358   :  { %v10026_v1 = vor.u32 %v12437_v14, %v10023_v18  ;;  %v12405_v14 = vld [vmem:[#allocation6 + $0x214] sm:$0xf] }
 0x359   :  { %3333 = vst [vmem:[#allocation2] sm:$0xf] %v3332_v57  ;;  %v9766_v57 = vor.u32 %v12377_v49, %v9765_v47  ;;  %v9926_v47 = vor.u32 %v12417_v39, %v9925_v38  ;;  %v12345_v49 = vld [vmem:[#allocation6 + $0x2c] sm:$0xf0]  ;;  %v9895_v18 = vld [vmem:[#allocation6 + $0x230] sm:$0xf0] }
 0x35a   :  { %v10061_v38 = vld [vmem:[#allocation6 + $0x358] sm:$0xf] }
 0x35b   :  { %v12450_v39 = vld [vmem:[#allocation6 + $0x374] sm:$0xf0] }
 0x360   :  { %v3334_v0 = vld [vmem:[#allocation2] sm:$0xff] }
 0x361   :  { %v3464_v33 = vunpack.c.l.b16 %v3334_v0  ;;  %v3465_v35 = vunpack.c.h.b16 %v3334_v0  ;;  %v9770_v0 = vor.u32 %v12373_v31, %v9767_v55  ;;  %v12341_v31 = vld [vmem:[#allocation6 + $0x14] sm:$0xf] }
 0x362   :  { %v9639_v55 = vld [vmem:[#allocation6 + $0x30] sm:$0xf0] }
 0x363   :  { %v13469_v3 = vpack.c.b16 %v3464_v33, %v3464_v33  ;;  %v13471_v7 = vpack.c.b16 %v3465_v35, %v3465_v35  ;;  %v12433_v33 = vld [vmem:[#allocation6 + $0x2ec] sm:$0xf0]  ;;  %v12365_v35 = vld [vmem:[#allocation6 + $0xd4] sm:$0xf] }
 0x365   :  { %4118 = vmatmul.bf16.vlgmr.msra.gmra.mxu0 %v13469_v3  ;;  %4131 = vmatmul.bf16.vlgmr.msra.gmra.mxu1 %v13471_v7 }
 0x366   :  { %4144 = vmatmul.bf16.vlgmr.msra.gmra.mxu2 %v13469_v3  ;;  %4157 = vmatmul.bf16.vlgmr.msra.gmra.mxu3 %v13471_v7 }
 0x367   :  { %4214 = vmatpush.bf16.msra.mxu0 %v9862_v10  ;;  %4227 = vmatpush.bf16.msra.mxu1 %v10118_v61  ;;  %v9734_v10 = vor.u32 %v12369_v60, %v9733_v63  ;;  %v9990_v61 = vor.u32 %v12433_v33, %v9989_v4  ;;  %v10125_v63 = vld [vmem:[#allocation6 + $0x3d8] sm:$0xf]  ;;  %v9871_v33 = vld [vmem:[#allocation6 + $0x1f8] sm:$0xf0] }
 0x368   :  { %4240 = vmatpush.bf16.msra.mxu2 %v9866_v13  ;;  %4253 = vmatpush.bf16.msra.mxu3 %v10122_v44  ;;  %v9738_v13 = vor.u32 %v12365_v35, %v9735_v5  ;;  %v9994_v44 = vor.u32 %v12429_v41, %v9991_v6  ;;  %v12466_v60 = vld [vmem:[#allocation6 + $0x3f4] sm:$0xf0]  ;;  %v12462_v35 = vld [vmem:[#allocation6 + $0x3dc] sm:$0xf]  ;;  %v9642_v41 = vor.u32 %v12341_v31, %v9639_v55 }
 0x369   :  { %v10127_v5 = vld [vmem:[#allocation6 + $0x3f8] sm:$0xf0]  ;;  %v9898_v6 = vor.u32 %v12405_v14, %v9895_v18  ;;  %v12442_v31 = vld [vmem:[#allocation6 + $0x334] sm:$0xf0] }
 0x36a   :  { %v12374_v55 = vld [vmem:[#allocation6 + $0x11c] sm:$0xf] }
 0x36b   :  { %4215 = vmatpush.bf16.msra.mxu0 %v9830_v52  ;;  %4228 = vmatpush.bf16.msra.mxu1 %v10086_v15  ;;  %v9702_v52 = vor.u32 %v12361_v12, %v9701_v11  ;;  %v9958_v15 = vor.u32 %v12425_v21, %v9957_v16  ;;  %v9837_v11 = vld [vmem:[#allocation6 + $0x198] sm:$0xf]  ;;  %v9775_v14 = vld [vmem:[#allocation6 + $0x138] sm:$0xf0] }
 0x36c   :  { %4241 = vmatpush.bf16.msra.mxu2 %v9834_v48  ;;  %4254 = vmatpush.bf16.msra.mxu3 %v10090_v36  ;;  %v9706_v48 = vor.u32 %v12357_v22, %v9703_v23  ;;  %v9962_v36 = vor.u32 %v12421_v24, %v9959_v30  ;;  %v12394_v12 = vld [vmem:[#allocation6 + $0x1b4] sm:$0xf0]  ;;  %v12390_v22 = vld [vmem:[#allocation6 + $0x19c] sm:$0xf] }
 0x36d   :  { %v10093_v16 = vld [vmem:[#allocation6 + $0x398] sm:$0xf]  ;;  %v9839_v23 = vld [vmem:[#allocation6 + $0x1b8] sm:$0xf0] }
 0x36e   :  { %v12458_v21 = vld [vmem:[#allocation6 + $0x3b4] sm:$0xf0]  ;;  %v12454_v24 = vld [vmem:[#allocation6 + $0x39c] sm:$0xf] }
 0x36f   :  { %4216 = vmatpush.bf16.msra.mxu0 %v9798_v46  ;;  %4229 = vmatpush.bf16.msra.mxu1 %v10054_v29  ;;  %v9637_v46 = vld [vmem:[#allocation6 + $0x10] sm:$0xf]  ;;  %v9670_v29 = vor.u32 %v12353_v17, %v9669_v32  ;;  %v10095_v30 = vld [vmem:[#allocation6 + $0x3b8] sm:$0xf0]  ;;  %v9805_v32 = vld [vmem:[#allocation6 + $0x158] sm:$0xf] }
 0x370   :  { %4242 = vmatpush.bf16.msra.mxu2 %v9802_v50  ;;  %4255 = vmatpush.bf16.msra.mxu3 %v10058_v58  ;;  %v9893_v50 = vld [vmem:[#allocation6 + $0x210] sm:$0xf]  ;;  %v12386_v17 = vld [vmem:[#allocation6 + $0x174] sm:$0xf0]  ;;  %v12438_v18 = vld [vmem:[#allocation6 + $0x31c] sm:$0xf] }
 0x371   :  { %v12409_v58 = vld [vmem:[#allocation6 + $0x22c] sm:$0xf0] }
 0x372   :  { %v9894_v4 = vor.u32 %v12409_v58, %v9893_v50  ;;  %v12378_v50 = vld [vmem:[#allocation6 + $0x134] sm:$0xf0]  ;;  %v9810_v58 = vor.u32 %v12382_v43, %v9807_v62 }
 0x373   :  { %4217 = vmatpush.bf16.msra.mxu0 %v9766_v57  ;;  %4230 = vmatpush.bf16.msra.mxu1 %v10022_v59  ;;  %v9869_v57 = vld [vmem:[#allocation6 + $0x1d8] sm:$0xf] }
 0x374   :  { %4243 = vmatpush.bf16.msra.mxu2 %v9770_v0  ;;  %4256 = vmatpush.bf16.msra.mxu3 %v10026_v1  ;;  %v12402_v59 = vld [vmem:[#allocation6 + $0x1f4] sm:$0xf0]  ;;  %v12398_v0 = vld [vmem:[#allocation6 + $0x1dc] sm:$0xf]  ;;  %v9638_v1 = vor.u32 %v12345_v49, %v9637_v46 }
 0x375   :  { %4170 = vmatmul.bf16.vlgmr.msrb.gmra.mxu0 %v13469_v3  ;;  %4183 = vmatmul.bf16.vlgmr.msrb.gmra.mxu1 %v13471_v7  ;;  %v75_v46 = vld [vmem:[%s13715_s0 + $0x20] sm:$0xff] }
 0x376   :  { %4196 = vmatmul.bf16.vlgmr.msrb.gmra.mxu2 %v13469_v3  ;;  %4209 = vmatmul.bf16.vlgmr.msrb.gmra.mxu3 %v13471_v7  ;;  %v9773_v49 = vld [vmem:[#allocation6 + $0x118] sm:$0xf] }
 0x377   :  { %4218 = vmatpush.bf16.msra.mxu0 %v9734_v10  ;;  %4231 = vmatpush.bf16.msra.mxu1 %v9990_v61  ;;  %v9870_v10 = vor.u32 %v12402_v59, %v9869_v57  ;;  %v10126_v61 = vor.u32 %v12466_v60, %v10125_v63  ;;  %v10031_v57 = vld [vmem:[#allocation6 + $0x338] sm:$0xf0]  ;;  %v9774_v59 = vor.u32 %v12378_v50, %v9773_v49  ;;  %v9741_v60 = vld [vmem:[#allocation6 + $0xd8] sm:$0xf] }
 0x378   :  { %4244 = vmatpush.bf16.msra.mxu2 %v9738_v13  ;;  %4257 = vmatpush.bf16.msra.mxu3 %v9994_v44  ;;  %v9874_v13 = vor.u32 %v12398_v0, %v9871_v33  ;;  %v10130_v44 = vor.u32 %v12462_v35, %v10127_v5  ;;  %v12370_v0 = vld [vmem:[#allocation6 + $0xf4] sm:$0xf0]  ;;  %v12366_v5 = vld [vmem:[#allocation6 + $0xdc] sm:$0xf] }
 0x379   :  { %102 = vperm.xlu2 %12932, %v75_v46   ;;  %v9997_v33 = vld [vmem:[#allocation6 + $0x2d8] sm:$0xf]  ;;  %v12414_v46 = vld [vmem:[#allocation6 + $0x25c] sm:$0xf] }
 0x37a   :  { %v12434_v35 = vld [vmem:[#allocation6 + $0x2f4] sm:$0xf0] }
 0x37b   :  { %4219 = vmatpush.bf16.msra.mxu0 %v9702_v52  ;;  %4232 = vmatpush.bf16.msra.mxu1 %v9958_v15  ;;  %v9838_v52 = vor.u32 %v12394_v12, %v9837_v11  ;;  %v10094_v15 = vor.u32 %v12458_v21, %v10093_v16  ;;  %v9742_v11 = vor.u32 %v12370_v0, %v9741_v60  ;;  %v9933_v43 = vld [vmem:[#allocation6 + $0x258] sm:$0xf] }
 0x37c   :  { %4245 = vmatpush.bf16.msra.mxu2 %v9706_v48  ;;  %4258 = vmatpush.bf16.msra.mxu3 %v9962_v36  ;;  %v9842_v48 = vor.u32 %v12390_v22, %v9839_v23  ;;  %v10098_v36 = vor.u32 %v12454_v24, %v10095_v30  ;;  %v9998_v12 = vor.u32 %v12434_v35, %v9997_v33  ;;  %v9965_v22 = vld [vmem:[#allocation6 + $0x298] sm:$0xf]  ;;  %v12358_v24 = vld [vmem:[#allocation6 + $0x9c] sm:$0xf] }
 0x37d   :  { %v12426_v23 = vld [vmem:[#allocation6 + $0x2b4] sm:$0xf0]  ;;  %v9711_v30 = vld [vmem:[#allocation6 + $0xb8] sm:$0xf0] }
 0x37e   :  { %v12418_v62 = vld [vmem:[#allocation6 + $0x274] sm:$0xf0] }
 0x37f   :  { %4220 = vmatpush.bf16.msra.mxu0 %v9670_v29  ;;  %4233 = vmatpush.bf16.msra.mxu1 %v9926_v47  ;;  %v9806_v29 = vor.u32 %v12386_v17, %v9805_v32  ;;  %v10062_v47 = vor.u32 %v12450_v39, %v10061_v38  ;;  %v9966_v17 = vor.u32 %v12426_v23, %v9965_v22  ;;  %v9645_v50 = vld [vmem:[#allocation6 + $0x18] sm:$0xf]  ;;  %v12591_v23 = vld [vmem:[#allocation6 + $0x3dc] sm:$0xf0] }
 0x380   :  { %4246 = vmatpush.bf16.msra.mxu2 %v9674_v53  ;;  %4259 = vmatpush.bf16.msra.mxu3 %v9930_v54  ;;  %v10066_v53 = vor.u32 %v12446_v45, %v10063_v28  ;;  %v10029_v54 = vld [vmem:[#allocation6 + $0x318] sm:$0xf]  ;;  %v9714_v38 = vor.u32 %v12358_v24, %v9711_v30  ;;  %v12350_v45 = vld [vmem:[#allocation6 + $0x5c] sm:$0xf]  ;;  %v9934_v49 = vor.u32 %v12418_v62, %v9933_v43  ;;  %v10359_v30 = vld [vmem:[#allocation6 + $0x1e0] sm:$0xf0] }
 0x381   :  { %v10030_v63 = vor.u32 %v12442_v31, %v10029_v54  ;;  %v9679_v28 = vld [vmem:[#allocation6 + $0x78] sm:$0xf0]  ;;  %v9901_v31 = vld [vmem:[#allocation6 + $0x218] sm:$0xf]  ;;  %v10581_v43 = vld [vmem:[#allocation6 + $0x380] sm:$0xf] }
 0x383   :  { %4221 = vmatpush.bf16.msra.mxu0 %v9638_v1  ;;  %4234 = vmatpush.bf16.msra.mxu1 %v9894_v4  ;;  %v9778_v1 = vor.u32 %v12374_v55, %v9775_v14  ;;  %v10034_v4 = vor.u32 %v12438_v18, %v10031_v57  ;;  %v12410_v55 = vld [vmem:[#allocation6 + $0x234] sm:$0xf0]  ;;  %v12342_v14 = vld [vmem:[#allocation6 + $0x1c] sm:$0xf] }
 0x384   :  { %4247 = vmatpush.bf16.msra.mxu2 %v9642_v41  ;;  %4260 = vmatpush.bf16.msra.mxu3 %v9898_v6  ;;  %v9743_v41 = vld [vmem:[#allocation6 + $0xf8] sm:$0xf0]  ;;  %v9902_v60 = vor.u32 %v12410_v55, %v9901_v31 }
 0x385   :  { %v12430_v6 = vld [vmem:[#allocation6 + $0x2dc] sm:$0xf]  ;;  %v9746_v16 = vor.u32 %v12366_v5, %v9743_v41 }
 0x386   :  { %4222 = vmatmul.bf16.vlgmr.msra.gmra.mxu0 %v13469_v3  ;;  %4235 = vmatmul.bf16.vlgmr.msra.gmra.mxu1 %v13471_v7  ;;  %v9647_v18 = vld [vmem:[#allocation6 + $0x38] sm:$0xf0] }
 0x387   :  { %4266 = vmatpush.bf16.msrb.mxu0 %v9870_v10  ;;  %4279 = vmatpush.bf16.msrb.mxu1 %v10126_v61  ;;  %v9999_v10 = vld [vmem:[#allocation6 + $0x2f8] sm:$0xf0]  ;;  %v9650_v0 = vor.u32 %v12342_v14, %v9647_v18  ;;  %v10293_v18 = vld [vmem:[#allocation6 + $0x140] sm:$0xf] }
 0x388   :  { %4292 = vmatpush.bf16.msrb.mxu2 %v9874_v13  ;;  %4305 = vmatpush.bf16.msrb.mxu3 %v10130_v44  ;;  %v76_v61 = vld [vmem:[%s13715_s0 + $0x28] sm:$0xff]  ;;  %v9709_v13 = vld [vmem:[#allocation6 + $0x98] sm:$0xf]  ;;  %v10002_v21 = vor.u32 %v12430_v6, %v9999_v10 }
 0x389   :  { %4248 = vmatmul.bf16.vlgmr.msra.gmra.mxu2 %v13469_v3  ;;  %4261 = vmatmul.bf16.vlgmr.msra.gmra.mxu3 %v13471_v7  ;;  %v12362_v44 = vld [vmem:[#allocation6 + $0xb4] sm:$0xf0]  ;;  %v12406_v57 = vld [vmem:[#allocation6 + $0x21c] sm:$0xf] }
 0x38a   :  { %107 = vperm.xlu2 %12932, %v76_v61   ;;  %v9710_v32 = vor.u32 %v12362_v44, %v9709_v13  ;;  %v10357_v44 = vld [vmem:[#allocation6 + $0x1c0] sm:$0xf] }
 0x38b   :  { %4267 = vmatpush.bf16.msrb.mxu0 %v9838_v52  ;;  %4280 = vmatpush.bf16.msrb.mxu1 %v10094_v15  ;;  %v12422_v52 = vld [vmem:[#allocation6 + $0x29c] sm:$0xf] }
 0x38c   :  { %4293 = vmatpush.bf16.msrb.mxu2 %v9842_v48  ;;  %4306 = vmatpush.bf16.msrb.mxu3 %v10098_v36  ;;  %v9967_v15 = vld [vmem:[#allocation6 + $0x2b8] sm:$0xf0]  ;;  %v9677_v48 = vld [vmem:[#allocation6 + $0x58] sm:$0xf] }
 0x38d   :  { %v12354_v36 = vld [vmem:[#allocation6 + $0x74] sm:$0xf0]  ;;  %v9970_v39 = vor.u32 %v12422_v52, %v9967_v15  ;;  %v12587_v52 = vld [vmem:[#allocation6 + $0x3c4] sm:$0xf] }
 0x38e   :  { %v10615_v15 = vld [vmem:[#allocation6 + $0x3e0] sm:$0xf0] }
 0x38f   :  { %4268 = vmatpush.bf16.msrb.mxu0 %v9806_v29  ;;  %4281 = vmatpush.bf16.msrb.mxu1 %v10062_v47  ;;  %v9935_v29 = vld [vmem:[#allocation6 + $0x278] sm:$0xf0]  ;;  %v9678_v47 = vor.u32 %v12354_v36, %v9677_v48 }
 0x390   :  { %4294 = vmatpush.bf16.msrb.mxu2 %v9810_v58  ;;  %4307 = vmatpush.bf16.msrb.mxu3 %v10066_v53  ;;  %v12346_v58 = vld [vmem:[#allocation6 + $0x34] sm:$0xf0]  ;;  %v9682_v53 = vor.u32 %v12350_v45, %v9679_v28  ;;  %v9938_v54 = vor.u32 %v12414_v46, %v9935_v29  ;;  %v12583_v46 = vld [vmem:[#allocation6 + $0x39c] sm:$0xf0]  ;;  %v12515_v29 = vld [vmem:[#allocation6 + $0x184] sm:$0xf] }
 0x393   :  { %4269 = vmatpush.bf16.msrb.mxu0 %v9774_v59  ;;  %4282 = vmatpush.bf16.msrb.mxu1 %v10030_v63  ;;  %v9903_v59 = vld [vmem:[#allocation6 + $0x238] sm:$0xf0]  ;;  %v9646_v63 = vor.u32 %v12346_v58, %v9645_v50  ;;  %v10327_v50 = vld [vmem:[#allocation6 + $0x1a0] sm:$0xf0] }
 0x394   :  { %4295 = vmatpush.bf16.msrb.mxu2 %v9778_v1  ;;  %4308 = vmatpush.bf16.msrb.mxu3 %v10034_v4  ;;  %v9906_v1 = vor.u32 %v12406_v57, %v9903_v59  ;;  %v12579_v58 = vld [vmem:[#allocation6 + $0x384] sm:$0xf]  ;;  %v12511_v57 = vld [vmem:[#allocation6 + $0x15c] sm:$0xf0] }
 0x395   :  { %v10549_v59 = vld [vmem:[#allocation6 + $0x340] sm:$0xf] }
 0x397   :  { %4270 = vmatpush.bf16.msrb.mxu0 %v9742_v11  ;;  %4283 = vmatpush.bf16.msrb.mxu1 %v9998_v12 }
 0x398   :  { %4296 = vmatpush.bf16.msrb.mxu2 %v9746_v16  ;;  %4309 = vmatpush.bf16.msrb.mxu3 %v10002_v21  ;;  %v12527_v16 = vld [vmem:[#allocation6 + $0x1dc] sm:$0xf0] }
 0x399   :  { %v10613_v21 = vld [vmem:[#allocation6 + $0x3c0] sm:$0xf] }
 0x39a   :  { %v10614_v24 = vor.u32 %v12591_v23, %v10613_v21 }
 0x39b   :  { %4271 = vmatpush.bf16.msrb.mxu0 %v9710_v32  ;;  %4284 = vmatpush.bf16.msrb.mxu1 %v9966_v17  ;;  %v10618_v17 = vor.u32 %v12587_v52, %v10615_v15  ;;  %v10263_v15 = vld [vmem:[#allocation6 + $0x120] sm:$0xf0] }
 0x39c   :  { %4297 = vmatpush.bf16.msrb.mxu2 %v9714_v38  ;;  %4310 = vmatpush.bf16.msrb.mxu3 %v9970_v39  ;;  %v10325_v38 = vld [vmem:[#allocation6 + $0x180] sm:$0xf] }
 0x39d   :  { %v12519_v39 = vld [vmem:[#allocation6 + $0x19c] sm:$0xf0] }
 0x39e   :  { %v10326_v28 = vor.u32 %v12519_v39, %v10325_v38 }
 0x39f   :  { %4272 = vmatpush.bf16.msrb.mxu0 %v9678_v47  ;;  %4285 = vmatpush.bf16.msrb.mxu1 %v9934_v49  ;;  %v10582_v49 = vor.u32 %v12583_v46, %v10581_v43 }
 0x3a0   :  { %4298 = vmatpush.bf16.msrb.mxu2 %v9682_v53  ;;  %4311 = vmatpush.bf16.msrb.mxu3 %v9938_v54  ;;  %v10583_v53 = vld [vmem:[#allocation6 + $0x3a0] sm:$0xf0]  ;;  %v10330_v54 = vor.u32 %v12515_v29, %v10327_v50  ;;  %v12559_v50 = vld [vmem:[#allocation6 + $0x2dc] sm:$0xf0] }
 0x3a1   :  { %v10586_v31 = vor.u32 %v12579_v58, %v10583_v53  ;;  %v12491_v58 = vld [vmem:[#allocation6 + $0xc4] sm:$0xf] }
 0x3a3   :  { %4273 = vmatpush.bf16.msrb.mxu0 %v9646_v63  ;;  %4286 = vmatpush.bf16.msrb.mxu1 %v9902_v60  ;;  %v10294_v60 = vor.u32 %v12511_v57, %v10293_v18 }
 0x3a4   :  { %4299 = vmatpush.bf16.msrb.mxu2 %v9650_v0  ;;  %4312 = vmatpush.bf16.msrb.mxu3 %v9906_v1  ;;  %v12575_v0 = vld [vmem:[#allocation6 + $0x35c] sm:$0xf0]  ;;  %v12507_v1 = vld [vmem:[#allocation6 + $0x144] sm:$0xf] }
 0x3a6   :  { %4274 = vmatmul.bf16.vlgmr.msrb.gmra.mxu0 %v13469_v3  ;;  %4287 = vmatmul.bf16.vlgmr.msrb.gmra.mxu1 %v13471_v7 }
 0x3a7   :  { %4300 = vmatmul.bf16.vlgmr.msrb.gmra.mxu2 %v13469_v3  ;;  %4313 = vmatmul.bf16.vlgmr.msrb.gmra.mxu3 %v13471_v7  ;;  %v10358_v3 = vor.u32 %v12527_v16, %v10357_v44  ;;  %v12523_v7 = vld [vmem:[#allocation6 + $0x1c4] sm:$0xf]  ;;  %v10261_v44 = vld [vmem:[#allocation6 + $0x100] sm:$0xf] }
 0x3a8   :  { %v10362_v32 = vor.u32 %v12523_v7, %v10359_v30  ;;  %5155 = vmatpush.bf16.msra.mxu1 %v10614_v24  ;;  %5181 = vmatpush.bf16.msra.mxu3 %v10618_v17  ;;  %v12503_v16 = vld [vmem:[#allocation6 + $0x11c] sm:$0xf0]  ;;  %v12499_v30 = vld [vmem:[#allocation6 + $0x104] sm:$0xf] }
 0x3a9   :  { %5142 = vmatpush.bf16.msra.mxu0 %v10358_v3  ;;  %v10262_v23 = vor.u32 %v12503_v16, %v10261_v44  ;;  %v10517_v7 = vld [vmem:[#allocation6 + $0x300] sm:$0xf]  ;;  %v10519_v17 = vld [vmem:[#allocation6 + $0x320] sm:$0xf0]  ;;  %v10266_v39 = vor.u32 %v12499_v30, %v10263_v15 }
 0x3aa   :  { %5168 = vmatpush.bf16.msra.mxu2 %v10362_v32  ;;  %v12567_v24 = vld [vmem:[#allocation6 + $0x31c] sm:$0xf0]  ;;  %v12563_v32 = vld [vmem:[#allocation6 + $0x304] sm:$0xf] }
 0x3ab   :  { %v10518_v52 = vor.u32 %v12567_v24, %v10517_v7  ;;  %v10522_v43 = vor.u32 %v12563_v32, %v10519_v17  ;;  %v12479_v44 = vld [vmem:[#allocation6 + $0x5c] sm:$0xf0]  ;;  %v10167_v7 = vld [vmem:[#allocation6 + $0x60] sm:$0xf0] }
 0x3ac   :  { %5156 = vmatpush.bf16.msra.mxu1 %v10582_v49  ;;  %5182 = vmatpush.bf16.msra.mxu3 %v10586_v31  ;;  %v12555_v31 = vld [vmem:[#allocation6 + $0x2c4] sm:$0xf]  ;;  %v10421_v16 = vld [vmem:[#allocation6 + $0x240] sm:$0xf] }
 0x3ad   :  { %5143 = vmatpush.bf16.msra.mxu0 %v10326_v28  ;;  %v10485_v28 = vld [vmem:[#allocation6 + $0x2c0] sm:$0xf]  ;;  %v12539_v15 = vld [vmem:[#allocation6 + $0x244] sm:$0xf] }
 0x3ae   :  { %5169 = vmatpush.bf16.msra.mxu2 %v10330_v54  ;;  %v10486_v53 = vor.u32 %v12559_v50, %v10485_v28  ;;  %v10231_v54 = vld [vmem:[#allocation6 + $0xe0] sm:$0xf0]  ;;  %v10389_v28 = vld [vmem:[#allocation6 + $0x200] sm:$0xf] }
 0x3af   :  { %v10234_v18 = vor.u32 %v12491_v58, %v10231_v54  ;;  %v10423_v32 = vld [vmem:[#allocation6 + $0x260] sm:$0xf0] }
 0x3b0   :  { %v12531_v54 = vld [vmem:[#allocation6 + $0x204] sm:$0xf] }
 0x3b1   :  { %5144 = vmatpush.bf16.msra.mxu0 %v10294_v60  ;;  %v12487_v60 = vld [vmem:[#allocation6 + $0x9c] sm:$0xf0] }
 0x3b5   :  { %5145 = vmatpush.bf16.msra.mxu0 %v10262_v23  ;;  %v12475_v23 = vld [vmem:[#allocation6 + $0x44] sm:$0xf] }
 0x3e2   :  { %v4119_v4 = vpop.f32.mrf.mxu0  ;;  %v4132_v33 = vpop.f32.mrf.mxu1 }
 0x3e3   :  { %v4133_v35 = vadd.f32 %v4132_v33, %v4119_v4  ;;  %v10295_v4 = vld [vmem:[#allocation6 + $0x160] sm:$0xf0] }
 0x3e5   :  { %v4318_v5 = vadd.f32 %v4133_v35, %v13314_v34  ;;  %v10550_v35 = vor.u32 %v12575_v0, %v10549_v59  ;;  %v10453_v0 = vld [vmem:[#allocation6 + $0x280] sm:$0xf] }
 0x3e7   :  { %v4322_v12 = vmul.f32 0.5, %v4318_v5  ;;  %v10298_v5 = vor.u32 %v12507_v1, %v10295_v4  ;;  %5157 = vmatpush.bf16.msra.mxu1 %v10550_v35  ;;  %v12551_v4 = vld [vmem:[#allocation6 + $0x29c] sm:$0xf0]  ;;  %v10199_v35 = vld [vmem:[#allocation6 + $0xa0] sm:$0xf0] }
 0x3e9   :  { %v4145_v41 = vpop.f32.mrf.mxu2  ;;  %v4158_v6 = vpop.f32.mrf.mxu3  ;;  %13004 = vtanh.f32 %v4322_v12  ;;  %5170 = vmatpush.bf16.msra.mxu2 %v10298_v5  ;;  %v10454_v5 = vor.u32 %v12551_v4, %v10453_v0  ;;  %v10621_v0 = vld [vmem:[#allocation6 + $0x3c8] sm:$0xf] }
 0x3ea   :  { %v4159_v10 = vadd.f32 %v4158_v6, %v4145_v41  ;;  %v4121_v61 = vpop.f32.mrf.mxu0  ;;  %v4134_v11 = vpop.f32.mrf.mxu1  ;;  %v12571_v41 = vld [vmem:[#allocation6 + $0x344] sm:$0xf] }
 0x3eb   :  { %v10551_v6 = vld [vmem:[#allocation6 + $0x360] sm:$0xf0]  ;;  %5158 = vmatpush.bf16.msra.mxu1 %v10518_v52  ;;  %v10170_v52 = vor.u32 %v12475_v23, %v10167_v7 }
 0x3ec   :  { %v4319_v13 = vadd.f32 %v4159_v10, %v13318_v37  ;;  %v10554_v61 = vor.u32 %v12571_v41, %v10551_v6  ;;  %v12547_v6 = vld [vmem:[#allocation6 + $0x284] sm:$0xf] }
 0x3ed   :  { %5171 = vmatpush.bf16.msra.mxu2 %v10266_v39 }
 0x3ee   :  { %v4326_v22 = vmul.f32 0.5, %v4319_v13  ;;  %5183 = vmatpush.bf16.msra.mxu3 %v10554_v61 }
 0x3ef   :  { %v13005_v55 = vpop.eup %13004  ;;  %5159 = vmatpush.bf16.msra.mxu1 %v10486_v53  ;;  %v10135_v53 = vld [vmem:[#allocation6 + $0x20] sm:$0xf0] }
 0x3f0   :  { %13006 = vtanh.f32 %v4326_v22  ;;  %v4324_v10 = vmul.f32 0.5, %v13005_v55  ;;  %v10487_v55 = vld [vmem:[#allocation6 + $0x2e0] sm:$0xf0] }
 0x3f1   :  { %v4147_v48 = vpop.f32.mrf.mxu2  ;;  %v4160_v36 = vpop.f32.mrf.mxu3  ;;  %v10490_v57 = vor.u32 %v12555_v31, %v10487_v55  ;;  %5172 = vmatpush.bf16.msra.mxu2 %v10234_v18  ;;  %v10391_v31 = vld [vmem:[#allocation6 + $0x220] sm:$0xf0] }
 0x3f2   :  { %v4171_v62 = vpop.f32.mrf.mxu0  ;;  %v4184_v45 = vpop.f32.mrf.mxu1  ;;  %v4325_v48 = vadd.f32 0.5, %v4324_v10  ;;  %5184 = vmatpush.bf16.msra.mxu3 %v10522_v43  ;;  %v10455_v10 = vld [vmem:[#allocation6 + $0x2a0] sm:$0xf0]  ;;  %v10133_v43 = vld [vmem:[#allocation6] sm:$0xf] }
 0x3f3   :  { %v4185_v47 = vadd.f32 %v4184_v45, %v4171_v62  ;;  %v10229_v62 = vld [vmem:[#allocation6 + $0xc0] sm:$0xf]  ;;  %5160 = vmatpush.bf16.msra.mxu1 %v10454_v5  ;;  %v12592_v5 = vld [vmem:[#allocation6 + $0x3e4] sm:$0xf0] }
 0x3f4   :  { %v12495_v45 = vld [vmem:[#allocation6 + $0xdc] sm:$0xf0] }
 0x3f5   :  { %v4320_v14 = vadd.f32 %v4185_v47, %v13322_v56  ;;  %v10230_v49 = vor.u32 %v12495_v45, %v10229_v62  ;;  %v12471_v62 = vld [vmem:[#allocation6 + $0x1c] sm:$0xf0] }
 0x3f6   :  { %v13007_v63 = vpop.eup %13006  ;;  %5185 = vmatpush.bf16.msra.mxu3 %v10490_v57  ;;  %v10134_v45 = vor.u32 %v12471_v62, %v10133_v43  ;;  %v10301_v62 = vld [vmem:[#allocation6 + $0x148] sm:$0xf] }
 0x3f7   :  { %v4328_v33 = vmul.f32 0.5, %v13007_v63  ;;  %13008 = vtanh.f32 %v4320_v14  ;;  %5146 = vmatpush.bf16.msra.mxu0 %v10230_v49 }
 0x3f9   :  { %v4329_v11 = vadd.f32 0.5, %v4328_v33  ;;  %v4197_v12 = vpop.f32.mrf.mxu2  ;;  %v4210_v13 = vpop.f32.mrf.mxu3  ;;  %v12483_v33 = vld [vmem:[#allocation6 + $0x84] sm:$0xf] }
 0x3fa   :  { %v4211_v21 = vadd.f32 %v4210_v13, %v4197_v12  ;;  %v4173_v22 = vpop.f32.mrf.mxu0  ;;  %v4186_v3 = vpop.f32.mrf.mxu1  ;;  %v10202_v41 = vor.u32 %v12483_v33, %v10199_v35  ;;  %v10458_v12 = vor.u32 %v12547_v6, %v10455_v10  ;;  %v10165_v13 = vld [vmem:[#allocation6 + $0x40] sm:$0xf]  ;;  %v10367_v6 = vld [vmem:[#allocation6 + $0x1e8] sm:$0xf0]  ;;  %v10622_v10 = vor.u32 %v12592_v5, %v10621_v0 }
 0x3fb   :  { %v4335_v46 = vmul.f32 %v4329_v11, %v13442_v2  ;;  %v10197_v2 = vld [vmem:[#allocation6 + $0x80] sm:$0xf]  ;;  %v10166_v22 = vor.u32 %v12479_v44, %v10165_v13  ;;  %v12588_v13 = vld [vmem:[#allocation6 + $0x3cc] sm:$0xf] }
 0x3fc   :  { %v4321_v36 = vadd.f32 %v4211_v21, %v13326_v40  ;;  %v10198_v1 = vor.u32 %v12487_v60, %v10197_v2  ;;  %v12543_v3 = vld [vmem:[#allocation6 + $0x25c] sm:$0xf0]  ;;  %5173 = vmatpush.bf16.msra.mxu2 %v10202_v41  ;;  %5186 = vmatpush.bf16.msra.mxu3 %v10458_v12  ;;  %v10365_v2 = vld [vmem:[#allocation6 + $0x1c8] sm:$0xf]  ;;  %v12524_v41 = vld [vmem:[#allocation6 + $0x1cc] sm:$0xf] }
 0x3fd   :  { %v13009_v38 = vpop.eup %13008  ;;  %v10422_v30 = vor.u32 %v12543_v3, %v10421_v16  ;;  %v12528_v60 = vld [vmem:[#allocation6 + $0x1e4] sm:$0xf0]  ;;  %v10370_v12 = vor.u32 %v12524_v41, %v10367_v6  ;;  %v10623_v44 = vld [vmem:[#allocation6 + $0x3e8] sm:$0xf0] }
 0x3fe   :  { %v4336_v29 = vmul.f32 %v13009_v38, %v4325_v48  ;;  %v4331_v47 = vmul.f32 0.5, %v4321_v36  ;;  %5147 = vmatpush.bf16.msra.mxu0 %v10198_v1  ;;  %v13507_v48 = vpop.permute.xlu2 %102  ;;  %v10426_v36 = vor.u32 %v12539_v15, %v10423_v32  ;;  %v10366_v35 = vor.u32 %v12528_v60, %v10365_v2  ;;  %v10333_v16 = vld [vmem:[#allocation6 + $0x188] sm:$0xf]  ;;  %v12500_v60 = vld [vmem:[#allocation6 + $0x10c] sm:$0xf] }
 0x3ff   :  { %v146_v39 = vmul.f32 %v13266_v9, %v13507_v48  ;;  %5161 = vmatpush.bf16.msra.mxu1 %v10422_v30  ;;  %v145_v55 = vmul.f32 %v13264_v8, %v13507_v48  ;;  %v10589_v3 = vld [vmem:[#allocation6 + $0x388] sm:$0xf]  ;;  %v12516_v30 = vld [vmem:[#allocation6 + $0x18c] sm:$0xf] }
 0x400   :  { %v13500_v14 = vadd.f32 %v4336_v29, %v4335_v46  ;;  %13010 = vtanh.f32 %v4331_v47  ;;  %v12535_v46 = vld [vmem:[#allocation6 + $0x21c] sm:$0xf0]  ;;  %v12467_v29 = vld [vmem:[#allocation6 + $0x4] sm:$0xf]  ;;  %5174 = vmatpush.bf16.msra.mxu2 %v10170_v52  ;;  %5187 = vmatpush.bf16.msra.mxu3 %v10426_v36  ;;  %v12580_v36 = vld [vmem:[#allocation6 + $0x38c] sm:$0xf] }
 0x401   :  { %v4199_v59 = vpop.f32.mrf.mxu2  ;;  %v4212_v63 = vpop.f32.mrf.mxu3  ;;  %v10390_v58 = vor.u32 %v12535_v46, %v10389_v28  ;;  %v188_v4 = vadd.f32 %v13274_v26, %v146_v39  ;;  %v187_v23 = vadd.f32 %v13272_v25, %v145_v55  ;;  %v10559_v55 = vld [vmem:[#allocation6 + $0x368] sm:$0xf0]  ;;  %v12568_v2 = vld [vmem:[#allocation6 + $0x324] sm:$0xf0] }
 0x402   :  { %13012 = vtanh.f32 %v13500_v14  ;;  %5148 = vmatpush.bf16.msra.mxu0 %v10166_v22  ;;  %v10138_v59 = vor.u32 %v12467_v29, %v10135_v53  ;;  %v10394_v63 = vor.u32 %v12531_v54, %v10391_v31  ;;  %v12520_v22 = vld [vmem:[#allocation6 + $0x1a4] sm:$0xf0]  ;;  %v10271_v0 = vld [vmem:[#allocation6 + $0x128] sm:$0xf0] }
 0x403   :  { %v13503_v61 = vpop.f32.mrf.mxu0  ;;  %v13505_v11 = vpop.f32.mrf.mxu1  ;;  %5162 = vmatpush.bf16.msra.mxu1 %v10390_v58  ;;  %v10334_v7 = vor.u32 %v12520_v22, %v10333_v16  ;;  %v10557_v29 = vld [vmem:[#allocation6 + $0x348] sm:$0xf]  ;;  %v12572_v58 = vld [vmem:[#allocation6 + $0x34c] sm:$0xf]  ;;  %v10274_v41 = vor.u32 %v12500_v60, %v10271_v0 }
 0x404   :  { %5175 = vmatpush.bf16.msra.mxu2 %v10138_v59  ;;  %5188 = vmatpush.bf16.msra.mxu3 %v10394_v63  ;;  %v4237_v52 = vadd.f32 %v13505_v11, %v13503_v61  ;;  %v10303_v11 = vld [vmem:[#allocation6 + $0x168] sm:$0xf0]  ;;  %v12504_v59 = vld [vmem:[#allocation6 + $0x124] sm:$0xf0] }
 0x405   :  { %v10525_v63 = vld [vmem:[#allocation6 + $0x308] sm:$0xf]  ;;  %v12492_v16 = vld [vmem:[#allocation6 + $0xcc] sm:$0xf] }
 0x406   :  { %v13011_v21 = vpop.eup %13010  ;;  %5149 = vmatpush.bf16.msra.mxu0 %v10134_v45  ;;  %v12512_v45 = vld [vmem:[#allocation6 + $0x164] sm:$0xf0]  ;;  %v4342_v53 = vadd.f32 %v4237_v52, %v187_v23  ;;  %v12556_v23 = vld [vmem:[#allocation6 + $0x2cc] sm:$0xf]  ;;  %v147_v52 = vmul.f32 %v13268_v19, %v13507_v48 }
 0x407   :  { %v4333_v24 = vmul.f32 0.5, %v13011_v21  ;;  %v10626_v21 = vor.u32 %v12588_v13, %v10623_v44  ;;  %5207 = vmatpush.bf16.msrb.mxu1 %v10622_v10  ;;  %v10237_v10 = vld [vmem:[#allocation6 + $0xc8] sm:$0xf] }
 0x408   :  { %v13013_v17 = vpop.eup %13012  ;;  %5220 = vmatpush.bf16.msrb.mxu2 %v10370_v12  ;;  %v4346_v5 = vmul.f32 0.5, %v4342_v53  ;;  %v12496_v12 = vld [vmem:[#allocation6 + $0xe4] sm:$0xf0] }
 0x409   :  { %v4334_v38 = vadd.f32 0.5, %v4333_v24  ;;  %v12584_v24 = vld [vmem:[#allocation6 + $0x3a4] sm:$0xf0]  ;;  %5233 = vmatpush.bf16.msrb.mxu3 %v10626_v21  ;;  %v10238_v21 = vor.u32 %v12496_v12, %v10237_v10  ;;  %v12468_v12 = vld [vmem:[#allocation6 + $0xc] sm:$0xf] }
 0x40a   :  { %5194 = vmatpush.bf16.msrb.mxu0 %v10366_v35  ;;  %v10590_v32 = vor.u32 %v12584_v24, %v10589_v3  ;;  %v10527_v35 = vld [vmem:[#allocation6 + $0x328] sm:$0xf0]  ;;  %v10493_v13 = vld [vmem:[#allocation6 + $0x2c8] sm:$0xf] }
 0x40b   :  { %v4339_v47 = vmul.f32 %v13013_v17, %v4334_v38  ;;  %v4225_v18 = vpop.f32.mrf.mxu0  ;;  %v4238_v57 = vpop.f32.mrf.mxu1  ;;  %v10335_v17 = vld [vmem:[#allocation6 + $0x1a8] sm:$0xf0]  ;;  %v12560_v44 = vld [vmem:[#allocation6 + $0x2e4] sm:$0xf0] }
 0x40c   :  { %v4249_v49 = vpop.f32.mrf.mxu2  ;;  %v4262_v50 = vpop.f32.mrf.mxu3  ;;  %v10591_v38 = vld [vmem:[#allocation6 + $0x3a8] sm:$0xf0]  ;;  %v10338_v39 = vor.u32 %v12516_v30, %v10335_v17  ;;  %5208 = vmatpush.bf16.msrb.mxu1 %v10590_v32  ;;  %v10562_v18 = vor.u32 %v12572_v58, %v10559_v55  ;;  %v10269_v57 = vld [vmem:[#allocation6 + $0x108] sm:$0xf]  ;;  %v10494_v22 = vor.u32 %v12560_v44, %v10493_v13 }
 0x40d   :  { %v4340_v1 = vpack.c.bf16 %v4339_v47, %v4339_v47  ;;  %v4263_v33 = vadd.f32 %v4262_v50, %v4249_v49  ;;  %v10594_v43 = vor.u32 %v12580_v36, %v10591_v38  ;;  %v12576_v47 = vld [vmem:[#allocation6 + $0x364] sm:$0xf0]  ;;  %v12508_v49 = vld [vmem:[#allocation6 + $0x14c] sm:$0xf]  ;;  %v10302_v50 = vor.u32 %v12512_v45, %v10301_v62 }
 0x40e   :  { %5195 = vmatpush.bf16.msrb.mxu0 %v10334_v7  ;;  %v10558_v61 = vor.u32 %v12576_v47, %v10557_v29  ;;  %5221 = vmatpush.bf16.msrb.mxu2 %v10338_v39  ;;  %v10306_v31 = vor.u32 %v12508_v49, %v10303_v11  ;;  %v10239_v3 = vld [vmem:[#allocation6 + $0xe8] sm:$0xf0]  ;;  %v12488_v32 = vld [vmem:[#allocation6 + $0xa4] sm:$0xf0] }
 0x40f   :  { %4341 = vst [vmem:[#allocation2 + $0x4] sm:$0xf] %v4340_v1  ;;  %v4343_v15 = vadd.f32 %v4263_v33, %v188_v4  ;;  %5234 = vmatpush.bf16.msrb.mxu3 %v10594_v43  ;;  %v10270_v1 = vor.u32 %v12504_v59, %v10269_v57  ;;  %v10526_v4 = vor.u32 %v12568_v2, %v10525_v63  ;;  %v12564_v33 = vld [vmem:[#allocation6 + $0x30c] sm:$0xf]  ;;  %v10461_v17 = vld [vmem:[#allocation6 + $0x288] sm:$0xf] }
 0x410   :  { %5209 = vmatpush.bf16.msrb.mxu1 %v10558_v61  ;;  %v10530_v6 = vor.u32 %v12564_v33, %v10527_v35  ;;  %v10495_v7 = vld [vmem:[#allocation6 + $0x2e8] sm:$0xf0]  ;;  %v10242_v24 = vor.u32 %v12492_v16, %v10239_v3  ;;  %v12552_v36 = vld [vmem:[#allocation6 + $0x2a4] sm:$0xf0]  ;;  %v148_v59 = vmul.f32 %v13270_v20, %v13507_v48 }
 0x411   :  { %v4350_v54 = vmul.f32 0.5, %v4343_v15  ;;  %v10498_v30 = vor.u32 %v12556_v23, %v10495_v7  ;;  %v10205_v15 = vld [vmem:[#allocation6 + $0x88] sm:$0xf]  ;;  %v12484_v38 = vld [vmem:[#allocation6 + $0x8c] sm:$0xf]  ;;  %v10462_v62 = vor.u32 %v12552_v36, %v10461_v17 }
 0x412   :  { %5196 = vmatpush.bf16.msrb.mxu0 %v10302_v50  ;;  %5222 = vmatpush.bf16.msrb.mxu2 %v10306_v31  ;;  %v10207_v39 = vld [vmem:[#allocation6 + $0xa8] sm:$0xf0]  ;;  %v10206_v43 = vor.u32 %v12488_v32, %v10205_v15  ;;  %v12480_v11 = vld [vmem:[#allocation6 + $0x64] sm:$0xf0] }
 0x413   :  { %5235 = vmatpush.bf16.msrb.mxu3 %v10562_v18  ;;  %13014 = vtanh.f32 %v4350_v54  ;;  %v12548_v45 = vld [vmem:[#allocation6 + $0x28c] sm:$0xf]  ;;  %v10210_v50 = vor.u32 %v12484_v38, %v10207_v39  ;;  %v10429_v58 = vld [vmem:[#allocation6 + $0x248] sm:$0xf]  ;;  %v189_v54 = vadd.f32 %v13281_v42, %v147_v52 }
 0x414   :  { %v4251_v28 = vpop.f32.mrf.mxu2  ;;  %v4264_v46 = vpop.f32.mrf.mxu3  ;;  %5210 = vmatpush.bf16.msrb.mxu1 %v10526_v4  ;;  %13016 = vtanh.f32 %v4346_v5  ;;  %v12544_v53 = vld [vmem:[#allocation6 + $0x264] sm:$0xf0]  ;;  %v12476_v55 = vld [vmem:[#allocation6 + $0x4c] sm:$0xf] }
 0x415   :  { %v10463_v28 = vld [vmem:[#allocation6 + $0x2a8] sm:$0xf0]  ;;  %v10173_v46 = vld [vmem:[#allocation6 + $0x48] sm:$0xf]  ;;  %v10430_v4 = vor.u32 %v12544_v53, %v10429_v58  ;;  %v10373_v53 = vld [vmem:[#allocation6 + $0x1d0] sm:$0xf] }
 0x416   :  { %5197 = vmatpush.bf16.msrb.mxu0 %v10270_v1  ;;  %5223 = vmatpush.bf16.msrb.mxu2 %v10274_v41  ;;  %v10466_v61 = vor.u32 %v12548_v45, %v10463_v28  ;;  %v10175_v18 = vld [vmem:[#allocation6 + $0x68] sm:$0xf0]  ;;  %v10174_v1 = vor.u32 %v12480_v11, %v10173_v46  ;;  %v10141_v33 = vld [vmem:[#allocation6 + $0x8] sm:$0xf] }
 0x417   :  { %5236 = vmatpush.bf16.msrb.mxu3 %v10530_v6  ;;  %v12540_v57 = vld [vmem:[#allocation6 + $0x24c] sm:$0xf]  ;;  %v12472_v35 = vld [vmem:[#allocation6 + $0x24] sm:$0xf0]  ;;  %v10178_v5 = vor.u32 %v12476_v55, %v10175_v18  ;;  %v12593_v55 = vld [vmem:[#allocation6 + $0x3ec] sm:$0xf0] }
 0x418   :  { %5211 = vmatpush.bf16.msrb.mxu1 %v10494_v22  ;;  %v10431_v63 = vld [vmem:[#allocation6 + $0x268] sm:$0xf0]  ;;  %v10397_v6 = vld [vmem:[#allocation6 + $0x208] sm:$0xf]  ;;  %v190_v22 = vadd.f32 %v13276_v27, %v148_v59  ;;  %v10142_v23 = vor.u32 %v12472_v35, %v10141_v33  ;;  %v12525_v18 = vld [vmem:[#allocation6 + $0x1d4] sm:$0xf] }
 0x419   :  { %v13015_v29 = vpop.eup %13014  ;;  %v10434_v41 = vor.u32 %v12540_v57, %v10431_v63  ;;  %v12536_v10 = vld [vmem:[#allocation6 + $0x224] sm:$0xf0]  ;;  %v10143_v13 = vld [vmem:[#allocation6 + $0x28] sm:$0xf0]  ;;  %v10375_v63 = vld [vmem:[#allocation6 + $0x1f0] sm:$0xf0] }
 0x41a   :  { %5198 = vmatpush.bf16.msrb.mxu0 %v10238_v21  ;;  %5224 = vmatpush.bf16.msrb.mxu2 %v10242_v24  ;;  %v13017_v2 = vpop.eup %13016  ;;  %v4352_v60 = vmul.f32 0.5, %v13015_v29  ;;  %v12532_v48 = vld [vmem:[#allocation6 + $0x20c] sm:$0xf]  ;;  %v10398_v7 = vor.u32 %v12536_v10, %v10397_v6  ;;  %v10146_v32 = vor.u32 %v12468_v12, %v10143_v13  ;;  %v10341_v35 = vld [vmem:[#allocation6 + $0x190] sm:$0xf] }
 0x41b   :  { %5237 = vmatpush.bf16.msrb.mxu3 %v10498_v30  ;;  %v10399_v44 = vld [vmem:[#allocation6 + $0x228] sm:$0xf0]  ;;  %v4348_v16 = vmul.f32 0.5, %v13017_v2  ;;  %v12589_v2 = vld [vmem:[#allocation6 + $0x3d4] sm:$0xf] }
 0x41c   :  { %5212 = vmatpush.bf16.msrb.mxu1 %v10462_v62  ;;  %v4353_v24 = vadd.f32 0.5, %v4352_v60  ;;  %v10402_v17 = vor.u32 %v12532_v48, %v10399_v44  ;;  %v10631_v60 = vld [vmem:[#allocation6 + $0x3f0] sm:$0xf0]  ;;  %v10597_v10 = vld [vmem:[#allocation6 + $0x390] sm:$0xf] }
 0x41d   :  { %v4349_v36 = vadd.f32 0.5, %v4348_v16  ;;  %v10634_v6 = vor.u32 %v12589_v2, %v10631_v60  ;;  %v12585_v12 = vld [vmem:[#allocation6 + $0x3ac] sm:$0xf0]  ;;  %v12517_v13 = vld [vmem:[#allocation6 + $0x194] sm:$0xf] }
 0x41e   :  { %5199 = vmatpush.bf16.msrb.mxu0 %v10206_v43  ;;  %5225 = vmatpush.bf16.msrb.mxu2 %v10210_v50  ;;  %v4359_v43 = vmul.f32 %v4353_v24, %v13466_v51  ;;  %v12529_v51 = vld [vmem:[#allocation6 + $0x1ec] sm:$0xf0]  ;;  %v10343_v48 = vld [vmem:[#allocation6 + $0x1b0] sm:$0xf0] }
 0x41f   :  { %5238 = vmatpush.bf16.msrb.mxu3 %v10466_v61  ;;  %v12581_v44 = vld [vmem:[#allocation6 + $0x394] sm:$0xf] }
 0x420   :  { %5213 = vmatpush.bf16.msrb.mxu1 %v10430_v4  ;;  %v10374_v4 = vor.u32 %v12529_v51, %v10373_v53  ;;  %v10599_v16 = vld [vmem:[#allocation6 + $0x3b0] sm:$0xf0]  ;;  %v10245_v51 = vld [vmem:[#allocation6 + $0xd0] sm:$0xf] }
 0x421   :  { %v10602_v24 = vor.u32 %v12581_v44, %v10599_v16  ;;  %v12557_v2 = vld [vmem:[#allocation6 + $0x2d4] sm:$0xf] }
 0x422   :  { %5200 = vmatpush.bf16.msrb.mxu0 %v10174_v1  ;;  %5226 = vmatpush.bf16.msrb.mxu2 %v10178_v5  ;;  %v12521_v5 = vld [vmem:[#allocation6 + $0x1ac] sm:$0xf0]  ;;  %v10503_v60 = vld [vmem:[#allocation6 + $0x2f0] sm:$0xf0] }
 0x423   :  { %v4275_v47 = vpop.f32.mrf.mxu0  ;;  %v4288_v49 = vpop.f32.mrf.mxu1  ;;  %5239 = vmatpush.bf16.msrb.mxu3 %v10434_v41  ;;  %v10378_v41 = vor.u32 %v12525_v18, %v10375_v63  ;;  %v10501_v18 = vld [vmem:[#allocation6 + $0x2d0] sm:$0xf]  ;;  %v10247_v63 = vld [vmem:[#allocation6 + $0xf0] sm:$0xf0] }
 0x424   :  { %v4289_v31 = vadd.f32 %v4288_v49, %v4275_v47  ;;  %5214 = vmatpush.bf16.msrb.mxu1 %v10398_v7  ;;  %v10346_v7 = vor.u32 %v12517_v13, %v10343_v48  ;;  %v12485_v13 = vld [vmem:[#allocation6 + $0x94] sm:$0xf] }
 0x425   :  { %v10215_v48 = vld [vmem:[#allocation6 + $0xb0] sm:$0xf0] }
 0x426   :  { %v4344_v0 = vadd.f32 %v4289_v31, %v189_v54  ;;  %5201 = vmatpush.bf16.msrb.mxu0 %v10142_v23  ;;  %5227 = vmatpush.bf16.msrb.mxu2 %v10146_v32  ;;  %v10629_v54 = vld [vmem:[#allocation6 + $0x3d0] sm:$0xf]  ;;  %v10311_v32 = vld [vmem:[#allocation6 + $0x170] sm:$0xf0] }
 0x427   :  { %5240 = vmatpush.bf16.msrb.mxu3 %v10402_v17  ;;  %v10630_v33 = vor.u32 %v12593_v55, %v10629_v54  ;;  %v12513_v23 = vld [vmem:[#allocation6 + $0x16c] sm:$0xf0]  ;;  %v12573_v17 = vld [vmem:[#allocation6 + $0x354] sm:$0xf] }
 0x428   :  { %13018 = vtanh.f32 %v4344_v0  ;;  %v12497_v54 = vld [vmem:[#allocation6 + $0xec] sm:$0xf0]  ;;  %v12549_v44 = vld [vmem:[#allocation6 + $0x294] sm:$0xf] }
 0x429   :  { %v10471_v16 = vld [vmem:[#allocation6 + $0x2b0] sm:$0xf0] }
 0x42a   :  { %v4301_v21 = vpop.f32.mrf.mxu2  ;;  %v4314_v3 = vpop.f32.mrf.mxu3 }
 0x42b   :  { %v4315_v30 = vadd.f32 %v4314_v3, %v4301_v21  ;;  %v4277_v52 = vpop.f32.mrf.mxu0  ;;  %v4290_v15 = vpop.f32.mrf.mxu1  ;;  %v10342_v21 = vor.u32 %v12521_v5, %v10341_v35  ;;  %v10309_v3 = vld [vmem:[#allocation6 + $0x150] sm:$0xf] }
 0x42c   :  { %v12577_v52 = vld [vmem:[#allocation6 + $0x36c] sm:$0xf0]  ;;  %v12509_v15 = vld [vmem:[#allocation6 + $0x154] sm:$0xf] }
 0x42d   :  { %v4345_v38 = vadd.f32 %v4315_v30, %v190_v22  ;;  %v10598_v22 = vor.u32 %v12585_v12, %v10597_v10  ;;  %v10565_v30 = vld [vmem:[#allocation6 + $0x350] sm:$0xf] }
 0x42e   :  { %v13019_v39 = vpop.eup %13018  ;;  %v10213_v35 = vld [vmem:[#allocation6 + $0x90] sm:$0xf] }
 0x42f   :  { %v4360_v62 = vmul.f32 %v13019_v39, %v4349_v36  ;;  %v4355_v45 = vmul.f32 0.5, %v4345_v38  ;;  %v10567_v36 = vld [vmem:[#allocation6 + $0x370] sm:$0xf0]  ;;  %v10310_v38 = vor.u32 %v12513_v23, %v10309_v3  ;;  %v10566_v39 = vor.u32 %v12577_v52, %v10565_v30  ;;  %v12489_v5 = vld [vmem:[#allocation6 + $0xac] sm:$0xf0] }
 0x430   :  { %v10469_v10 = vld [vmem:[#allocation6 + $0x290] sm:$0xf] }
 0x431   :  { %v13524_v28 = vadd.f32 %v4360_v62, %v4359_v43  ;;  %13020 = vtanh.f32 %v4355_v45  ;;  %v10277_v43 = vld [vmem:[#allocation6 + $0x110] sm:$0xf]  ;;  %v10314_v45 = vor.u32 %v12509_v15, %v10311_v32  ;;  %v12477_v15 = vld [vmem:[#allocation6 + $0x54] sm:$0xf] }
 0x432   :  { %v4303_v46 = vpop.f32.mrf.mxu2  ;;  %v4316_v29 = vpop.f32.mrf.mxu3  ;;  %v12505_v62 = vld [vmem:[#allocation6 + $0x12c] sm:$0xf0]  ;;  %v10183_v32 = vld [vmem:[#allocation6 + $0x70] sm:$0xf0] }
 0x433   :  { %13022 = vtanh.f32 %v13524_v28  ;;  %v10570_v46 = vor.u32 %v12573_v17, %v10567_v36  ;;  %v10533_v29 = vld [vmem:[#allocation6 + $0x310] sm:$0xf]  ;;  %v12541_v17 = vld [vmem:[#allocation6 + $0x254] sm:$0xf] }
 0x434   :  { %v12553_v12 = vld [vmem:[#allocation6 + $0x2ac] sm:$0xf0]  ;;  %v10439_v36 = vld [vmem:[#allocation6 + $0x270] sm:$0xf0] }
 0x435   :  { %v10181_v3 = vld [vmem:[#allocation6 + $0x50] sm:$0xf] }
 0x436   :  { %v12481_v23 = vld [vmem:[#allocation6 + $0x6c] sm:$0xf0] }
 0x437   :  { %v13021_v47 = vpop.eup %13020  ;;  %v10437_v30 = vld [vmem:[#allocation6 + $0x250] sm:$0xf] }
 0x438   :  { %v4357_v49 = vmul.f32 0.5, %v13021_v47  ;;  %v12569_v47 = vld [vmem:[#allocation6 + $0x32c] sm:$0xf0] }
 0x439   :  { %v13023_v50 = vpop.eup %13022  ;;  %v10534_v53 = vor.u32 %v12569_v47, %v10533_v29  ;;  %v12545_v52 = vld [vmem:[#allocation6 + $0x26c] sm:$0xf0]  ;;  %v10186_v29 = vor.u32 %v12477_v15, %v10183_v32  ;;  %v10442_v47 = vor.u32 %v12541_v17, %v10439_v36  ;;  %v12510_v15 = vld [vmem:[#allocation6 + $0x15c] sm:$0xf] }
 0x43a   :  { %v4358_v61 = vadd.f32 0.5, %v4357_v49  ;;  %v12501_v49 = vld [vmem:[#allocation6 + $0x114] sm:$0xf]  ;;  %v10319_v32 = vld [vmem:[#allocation6 + $0x178] sm:$0xf0] }
 0x43b   :  { %v12574_v17 = vld [vmem:[#allocation6 + $0x35c] sm:$0xf] }
 0x43c   :  { %v4363_v11 = vmul.f32 %v13023_v50, %v4358_v61  ;;  %v10279_v50 = vld [vmem:[#allocation6 + $0x130] sm:$0xf0]  ;;  %v10575_v36 = vld [vmem:[#allocation6 + $0x378] sm:$0xf0] }
 0x43d   :  { %v12565_v61 = vld [vmem:[#allocation6 + $0x314] sm:$0xf] }
 0x43e   :  { %v4364_v58 = vpack.c.bf16 %v4363_v11, %v4363_v11  ;;  %v10535_v11 = vld [vmem:[#allocation6 + $0x330] sm:$0xf0] }
 0x43f   :  { %v10538_v55 = vor.u32 %v12565_v61, %v10535_v11  ;;  %v12533_v61 = vld [vmem:[#allocation6 + $0x214] sm:$0xf] }
 0x440   :  { %4365 = vst [vmem:[#allocation2] sm:$0xf] %v4364_v58  ;;  %v10278_v58 = vor.u32 %v12505_v62, %v10277_v43  ;;  %v10438_v43 = vor.u32 %v12545_v52, %v10437_v30  ;;  %v12473_v62 = vld [vmem:[#allocation6 + $0x2c] sm:$0xf0]  ;;  %v10407_v11 = vld [vmem:[#allocation6 + $0x230] sm:$0xf0] }
 0x441   :  { %v10573_v30 = vld [vmem:[#allocation6 + $0x358] sm:$0xf] }
 0x442   :  { %v12578_v52 = vld [vmem:[#allocation6 + $0x374] sm:$0xf0] }
 0x447   :  { %v4366_v31 = vld [vmem:[#allocation2] sm:$0xff] }
 0x448   :  { %v4496_v57 = vunpack.c.l.b16 %v4366_v31  ;;  %v4497_v59 = vunpack.c.h.b16 %v4366_v31  ;;  %v10282_v31 = vor.u32 %v12501_v49, %v10279_v50  ;;  %v12469_v49 = vld [vmem:[#allocation6 + $0x14] sm:$0xf] }
 0x449   :  { %v10151_v50 = vld [vmem:[#allocation6 + $0x30] sm:$0xf0] }
 0x44a   :  { %v13527_v0 = vpack.c.b16 %v4496_v57, %v4496_v57  ;;  %v13529_v1 = vpack.c.b16 %v4497_v59, %v4497_v59  ;;  %v12561_v57 = vld [vmem:[#allocation6 + $0x2ec] sm:$0xf0]  ;;  %v12493_v59 = vld [vmem:[#allocation6 + $0xd4] sm:$0xf] }
 0x44c   :  { %5150 = vmatmul.bf16.vlgmr.msra.gmra.mxu0 %v13527_v0  ;;  %5163 = vmatmul.bf16.vlgmr.msra.gmra.mxu1 %v13529_v1 }
 0x44d   :  { %5176 = vmatmul.bf16.vlgmr.msra.gmra.mxu2 %v13527_v0  ;;  %5189 = vmatmul.bf16.vlgmr.msra.gmra.mxu3 %v13529_v1 }
 0x44e   :  { %5246 = vmatpush.bf16.msra.mxu0 %v10374_v4  ;;  %5259 = vmatpush.bf16.msra.mxu1 %v10630_v33  ;;  %v10246_v4 = vor.u32 %v12497_v54, %v10245_v51  ;;  %v10502_v33 = vor.u32 %v12561_v57, %v10501_v18  ;;  %v10637_v51 = vld [vmem:[#allocation6 + $0x3d8] sm:$0xf]  ;;  %v10383_v57 = vld [vmem:[#allocation6 + $0x1f8] sm:$0xf0] }
 0x44f   :  { %5272 = vmatpush.bf16.msra.mxu2 %v10378_v41  ;;  %5285 = vmatpush.bf16.msra.mxu3 %v10634_v6  ;;  %v10250_v41 = vor.u32 %v12493_v59, %v10247_v63  ;;  %v10506_v6 = vor.u32 %v12557_v2, %v10503_v60  ;;  %v12594_v54 = vld [vmem:[#allocation6 + $0x3f4] sm:$0xf0]  ;;  %v12590_v59 = vld [vmem:[#allocation6 + $0x3dc] sm:$0xf]  ;;  %v10154_v2 = vor.u32 %v12469_v49, %v10151_v50 }
 0x450   :  { %v10639_v63 = vld [vmem:[#allocation6 + $0x3f8] sm:$0xf0]  ;;  %v10410_v60 = vor.u32 %v12533_v61, %v10407_v11 }
 0x451   :  { %v12502_v49 = vld [vmem:[#allocation6 + $0x11c] sm:$0xf] }
 0x452   :  { %5247 = vmatpush.bf16.msra.mxu0 %v10342_v21  ;;  %5260 = vmatpush.bf16.msra.mxu1 %v10598_v22  ;;  %v10214_v21 = vor.u32 %v12489_v5, %v10213_v35  ;;  %v10470_v22 = vor.u32 %v12553_v12, %v10469_v10  ;;  %v10349_v35 = vld [vmem:[#allocation6 + $0x198] sm:$0xf]  ;;  %v10287_v50 = vld [vmem:[#allocation6 + $0x138] sm:$0xf0] }
 0x453   :  { %5273 = vmatpush.bf16.msra.mxu2 %v10346_v7  ;;  %5286 = vmatpush.bf16.msra.mxu3 %v10602_v24  ;;  %v10218_v7 = vor.u32 %v12485_v13, %v10215_v48  ;;  %v10474_v24 = vor.u32 %v12549_v44, %v10471_v16  ;;  %v12522_v5 = vld [vmem:[#allocation6 + $0x1b4] sm:$0xf0]  ;;  %v12518_v13 = vld [vmem:[#allocation6 + $0x19c] sm:$0xf] }
 0x454   :  { %v10605_v10 = vld [vmem:[#allocation6 + $0x398] sm:$0xf]  ;;  %v10351_v48 = vld [vmem:[#allocation6 + $0x1b8] sm:$0xf0] }
 0x455   :  { %v12586_v12 = vld [vmem:[#allocation6 + $0x3b4] sm:$0xf0]  ;;  %v12582_v44 = vld [vmem:[#allocation6 + $0x39c] sm:$0xf] }
 0x456   :  { %5248 = vmatpush.bf16.msra.mxu0 %v10310_v38  ;;  %5261 = vmatpush.bf16.msra.mxu1 %v10566_v39  ;;  %v10149_v38 = vld [vmem:[#allocation6 + $0x10] sm:$0xf]  ;;  %v10182_v39 = vor.u32 %v12481_v23, %v10181_v3  ;;  %v10607_v16 = vld [vmem:[#allocation6 + $0x3b8] sm:$0xf0]  ;;  %v10317_v3 = vld [vmem:[#allocation6 + $0x158] sm:$0xf] }
 0x457   :  { %5274 = vmatpush.bf16.msra.mxu2 %v10314_v45  ;;  %5287 = vmatpush.bf16.msra.mxu3 %v10570_v46  ;;  %v10405_v45 = vld [vmem:[#allocation6 + $0x210] sm:$0xf]  ;;  %v12514_v23 = vld [vmem:[#allocation6 + $0x174] sm:$0xf0]  ;;  %v12566_v61 = vld [vmem:[#allocation6 + $0x31c] sm:$0xf] }
 0x458   :  { %v12537_v46 = vld [vmem:[#allocation6 + $0x22c] sm:$0xf0]  ;;  %v10543_v11 = vld [vmem:[#allocation6 + $0x338] sm:$0xf0] }
 0x459   :  { %v10406_v18 = vor.u32 %v12537_v46, %v10405_v45  ;;  %v10322_v45 = vor.u32 %v12510_v15, %v10319_v32  ;;  %v10578_v46 = vor.u32 %v12574_v17, %v10575_v36  ;;  %v12478_v15 = vld [vmem:[#allocation6 + $0x5c] sm:$0xf] }
 0x45a   :  { %5249 = vmatpush.bf16.msra.mxu0 %v10278_v58  ;;  %5262 = vmatpush.bf16.msra.mxu1 %v10534_v53  ;;  %v10381_v58 = vld [vmem:[#allocation6 + $0x1d8] sm:$0xf]  ;;  %v10191_v32 = vld [vmem:[#allocation6 + $0x78] sm:$0xf0] }
 0x45b   :  { %5275 = vmatpush.bf16.msra.mxu2 %v10282_v31  ;;  %5288 = vmatpush.bf16.msra.mxu3 %v10538_v55  ;;  %v12530_v53 = vld [vmem:[#allocation6 + $0x1f4] sm:$0xf0]  ;;  %v12526_v31 = vld [vmem:[#allocation6 + $0x1dc] sm:$0xf]  ;;  %v10150_v55 = vor.u32 %v12473_v62, %v10149_v38  ;;  %v10318_v38 = vor.u32 %v12514_v23, %v10317_v3 }
 0x45c   :  { %5202 = vmatmul.bf16.vlgmr.msrb.gmra.mxu0 %v13527_v0  ;;  %5215 = vmatmul.bf16.vlgmr.msrb.gmra.mxu1 %v13529_v1  ;;  %v12506_v62 = vld [vmem:[#allocation6 + $0x134] sm:$0xf0]  ;;  %v12542_v17 = vld [vmem:[#allocation6 + $0x25c] sm:$0xf] }
 0x45d   :  { %5228 = vmatmul.bf16.vlgmr.msrb.gmra.mxu2 %v13527_v0  ;;  %5241 = vmatmul.bf16.vlgmr.msrb.gmra.mxu3 %v13529_v1  ;;  %v10189_v3 = vld [vmem:[#allocation6 + $0x58] sm:$0xf]  ;;  %v10447_v36 = vld [vmem:[#allocation6 + $0x278] sm:$0xf0] }
 0x45e   :  { %5250 = vmatpush.bf16.msra.mxu0 %v10246_v4  ;;  %5263 = vmatpush.bf16.msra.mxu1 %v10502_v33  ;;  %v10382_v4 = vor.u32 %v12530_v53, %v10381_v58  ;;  %v10638_v33 = vor.u32 %v12594_v54, %v10637_v51  ;;  %v10253_v51 = vld [vmem:[#allocation6 + $0xd8] sm:$0xf] }
 0x45f   :  { %5276 = vmatpush.bf16.msra.mxu2 %v10250_v41  ;;  %5289 = vmatpush.bf16.msra.mxu3 %v10506_v6  ;;  %v10386_v41 = vor.u32 %v12526_v31, %v10383_v57  ;;  %v10642_v6 = vor.u32 %v12590_v59, %v10639_v63  ;;  %v12498_v54 = vld [vmem:[#allocation6 + $0xf4] sm:$0xf0]  ;;  %v10290_v31 = vor.u32 %v12502_v49, %v10287_v50  ;;  %v12494_v59 = vld [vmem:[#allocation6 + $0xdc] sm:$0xf] }
 0x460   :  { %v12562_v57 = vld [vmem:[#allocation6 + $0x2f4] sm:$0xf0]  ;;  %v10255_v63 = vld [vmem:[#allocation6 + $0xf8] sm:$0xf0] }
 0x461   :  { %v12482_v23 = vld [vmem:[#allocation6 + $0x74] sm:$0xf0]  ;;  %v12470_v49 = vld [vmem:[#allocation6 + $0x1c] sm:$0xf] }
 0x462   :  { %5251 = vmatpush.bf16.msra.mxu0 %v10214_v21  ;;  %5264 = vmatpush.bf16.msra.mxu1 %v10470_v22  ;;  %v10350_v21 = vor.u32 %v12522_v5, %v10349_v35  ;;  %v10606_v22 = vor.u32 %v12586_v12, %v10605_v10  ;;  %v10221_v35 = vld [vmem:[#allocation6 + $0x98] sm:$0xf]  ;;  %v10159_v50 = vld [vmem:[#allocation6 + $0x38] sm:$0xf0] }
 0x463   :  { %5277 = vmatpush.bf16.msra.mxu2 %v10218_v7  ;;  %5290 = vmatpush.bf16.msra.mxu3 %v10474_v24  ;;  %v10354_v7 = vor.u32 %v12518_v13, %v10351_v48  ;;  %v10610_v24 = vor.u32 %v12582_v44, %v10607_v16  ;;  %v12490_v5 = vld [vmem:[#allocation6 + $0xb4] sm:$0xf0]  ;;  %v12486_v13 = vld [vmem:[#allocation6 + $0x9c] sm:$0xf] }
 0x464   :  { %v10477_v10 = vld [vmem:[#allocation6 + $0x298] sm:$0xf]  ;;  %v10223_v48 = vld [vmem:[#allocation6 + $0xb8] sm:$0xf0] }
 0x465   :  { %v12554_v12 = vld [vmem:[#allocation6 + $0x2b4] sm:$0xf0]  ;;  %v12550_v44 = vld [vmem:[#allocation6 + $0x29c] sm:$0xf] }
 0x466   :  { %5252 = vmatpush.bf16.msra.mxu0 %v10182_v39  ;;  %5265 = vmatpush.bf16.msra.mxu1 %v10438_v43  ;;  %v10574_v39 = vor.u32 %v12578_v52, %v10573_v30  ;;  %v10285_v43 = vld [vmem:[#allocation6 + $0x118] sm:$0xf]  ;;  %v10479_v16 = vld [vmem:[#allocation6 + $0x2b8] sm:$0xf0] }
 0x467   :  { %5278 = vmatpush.bf16.msra.mxu2 %v10186_v29  ;;  %5291 = vmatpush.bf16.msra.mxu3 %v10442_v47  ;;  %v10541_v29 = vld [vmem:[#allocation6 + $0x318] sm:$0xf]  ;;  %v10286_v58 = vor.u32 %v12506_v62, %v10285_v43 }
 0x468   :  { %v12570_v47 = vld [vmem:[#allocation6 + $0x334] sm:$0xf0] }
 0x469   :  { %v10542_v53 = vor.u32 %v12570_v47, %v10541_v29  ;;  %v10445_v30 = vld [vmem:[#allocation6 + $0x258] sm:$0xf] }
 0x46a   :  { %5253 = vmatpush.bf16.msra.mxu0 %v10150_v55  ;;  %5266 = vmatpush.bf16.msra.mxu1 %v10406_v18  ;;  %v10546_v55 = vor.u32 %v12566_v61, %v10543_v11  ;;  %v10509_v18 = vld [vmem:[#allocation6 + $0x2d8] sm:$0xf]  ;;  %v12534_v61 = vld [vmem:[#allocation6 + $0x21c] sm:$0xf] }
 0x46b   :  { %5279 = vmatpush.bf16.msra.mxu2 %v10154_v2  ;;  %5292 = vmatpush.bf16.msra.mxu3 %v10410_v60  ;;  %v12558_v2 = vld [vmem:[#allocation6 + $0x2dc] sm:$0xf]  ;;  %v12546_v52 = vld [vmem:[#allocation6 + $0x274] sm:$0xf0] }
 0x46c   :  { %v10511_v60 = vld [vmem:[#allocation6 + $0x2f8] sm:$0xf0]  ;;  %v10157_v43 = vld [vmem:[#allocation6 + $0x18] sm:$0xf] }
 0x46d   :  { %5254 = vmatmul.bf16.vlgmr.msra.gmra.mxu0 %v13527_v0  ;;  %5267 = vmatmul.bf16.vlgmr.msra.gmra.mxu1 %v13529_v1  ;;  %v12474_v62 = vld [vmem:[#allocation6 + $0x34] sm:$0xf0]  ;;  %v10415_v11 = vld [vmem:[#allocation6 + $0x238] sm:$0xf0] }
 0x46e   :  { %5298 = vmatpush.bf16.msrb.mxu0 %v10382_v4  ;;  %5311 = vmatpush.bf16.msrb.mxu1 %v10638_v33  ;;  %v10254_v4 = vor.u32 %v12498_v54, %v10253_v51  ;;  %v10510_v33 = vor.u32 %v12562_v57, %v10509_v18  ;;  %v10413_v29 = vld [vmem:[#allocation6 + $0x218] sm:$0xf]  ;;  %v10162_v51 = vor.u32 %v12470_v49, %v10159_v50  ;;  %v10805_v50 = vld [vmem:[#allocation6 + $0x140] sm:$0xf] }
 0x46f   :  { %5324 = vmatpush.bf16.msrb.mxu2 %v10386_v41  ;;  %5337 = vmatpush.bf16.msrb.mxu3 %v10642_v6  ;;  %v10258_v41 = vor.u32 %v12494_v59, %v10255_v63  ;;  %v10514_v6 = vor.u32 %v12558_v2, %v10511_v60  ;;  %v12538_v47 = vld [vmem:[#allocation6 + $0x234] sm:$0xf0]  ;;  %v10418_v54 = vor.u32 %v12534_v61, %v10415_v11  ;;  %v12639_v61 = vld [vmem:[#allocation6 + $0x15c] sm:$0xf0] }
 0x470   :  { %5280 = vmatmul.bf16.vlgmr.msra.gmra.mxu2 %v13527_v0  ;;  %5293 = vmatmul.bf16.vlgmr.msra.gmra.mxu3 %v13529_v1  ;;  %v11061_v11 = vld [vmem:[#allocation6 + $0x340] sm:$0xf] }
 0x472   :  { %5299 = vmatpush.bf16.msrb.mxu0 %v10350_v21  ;;  %5312 = vmatpush.bf16.msrb.mxu1 %v10606_v22  ;;  %v10222_v21 = vor.u32 %v12490_v5, %v10221_v35  ;;  %v10478_v22 = vor.u32 %v12554_v12, %v10477_v10  ;;  %v10869_v5 = vld [vmem:[#allocation6 + $0x1c0] sm:$0xf] }
 0x473   :  { %5325 = vmatpush.bf16.msrb.mxu2 %v10354_v7  ;;  %5338 = vmatpush.bf16.msrb.mxu3 %v10610_v24  ;;  %v10226_v7 = vor.u32 %v12486_v13, %v10223_v48  ;;  %v10482_v24 = vor.u32 %v12550_v44, %v10479_v16  ;;  %v12719_v12 = vld [vmem:[#allocation6 + $0x3dc] sm:$0xf0]  ;;  %v10871_v48 = vld [vmem:[#allocation6 + $0x1e0] sm:$0xf0] }
 0x474   :  { %v12715_v44 = vld [vmem:[#allocation6 + $0x3c4] sm:$0xf] }
 0x475   :  { %v11127_v16 = vld [vmem:[#allocation6 + $0x3e0] sm:$0xf0] }
 0x476   :  { %5300 = vmatpush.bf16.msrb.mxu0 %v10318_v38  ;;  %5313 = vmatpush.bf16.msrb.mxu1 %v10574_v39  ;;  %v10190_v38 = vor.u32 %v12482_v23, %v10189_v3  ;;  %v10446_v39 = vor.u32 %v12546_v52, %v10445_v30  ;;  %v11093_v30 = vld [vmem:[#allocation6 + $0x380] sm:$0xf] }
 0x477   :  { %5326 = vmatpush.bf16.msrb.mxu2 %v10322_v45  ;;  %5339 = vmatpush.bf16.msrb.mxu3 %v10578_v46  ;;  %v10194_v45 = vor.u32 %v12478_v15, %v10191_v32  ;;  %v10450_v46 = vor.u32 %v12542_v17, %v10447_v36  ;;  %v12711_v17 = vld [vmem:[#allocation6 + $0x39c] sm:$0xf0]  ;;  %v12643_v36 = vld [vmem:[#allocation6 + $0x184] sm:$0xf] }
 0x47a   :  { %5301 = vmatpush.bf16.msrb.mxu0 %v10286_v58  ;;  %5314 = vmatpush.bf16.msrb.mxu1 %v10542_v53  ;;  %v10158_v58 = vor.u32 %v12474_v62, %v10157_v43  ;;  %v10414_v53 = vor.u32 %v12538_v47, %v10413_v29  ;;  %v10839_v43 = vld [vmem:[#allocation6 + $0x1a0] sm:$0xf0] }
 0x47b   :  { %5327 = vmatpush.bf16.msrb.mxu2 %v10290_v31  ;;  %5340 = vmatpush.bf16.msrb.mxu3 %v10546_v55  ;;  %v12707_v62 = vld [vmem:[#allocation6 + $0x384] sm:$0xf] }
 0x47e   :  { %5302 = vmatpush.bf16.msrb.mxu0 %v10254_v4  ;;  %5315 = vmatpush.bf16.msrb.mxu1 %v10510_v33 }
 0x47f   :  { %5328 = vmatpush.bf16.msrb.mxu2 %v10258_v41  ;;  %5341 = vmatpush.bf16.msrb.mxu3 %v10514_v6  ;;  %v12655_v41 = vld [vmem:[#allocation6 + $0x1dc] sm:$0xf0] }
 0x480   :  { %v11125_v6 = vld [vmem:[#allocation6 + $0x3c0] sm:$0xf] }
 0x481   :  { %v11126_v13 = vor.u32 %v12719_v12, %v11125_v6 }
 0x482   :  { %5303 = vmatpush.bf16.msrb.mxu0 %v10222_v21  ;;  %5316 = vmatpush.bf16.msrb.mxu1 %v10478_v22  ;;  %v11130_v22 = vor.u32 %v12715_v44, %v11127_v16  ;;  %v10775_v16 = vld [vmem:[#allocation6 + $0x120] sm:$0xf0] }
 0x483   :  { %5329 = vmatpush.bf16.msrb.mxu2 %v10226_v7  ;;  %5342 = vmatpush.bf16.msrb.mxu3 %v10482_v24  ;;  %v10837_v7 = vld [vmem:[#allocation6 + $0x180] sm:$0xf] }
 0x484   :  { %v12647_v24 = vld [vmem:[#allocation6 + $0x19c] sm:$0xf0] }
 0x485   :  { %v10838_v32 = vor.u32 %v12647_v24, %v10837_v7 }
 0x486   :  { %5304 = vmatpush.bf16.msrb.mxu0 %v10190_v38  ;;  %5317 = vmatpush.bf16.msrb.mxu1 %v10446_v39  ;;  %v11094_v39 = vor.u32 %v12711_v17, %v11093_v30 }
 0x487   :  { %5330 = vmatpush.bf16.msrb.mxu2 %v10194_v45  ;;  %5343 = vmatpush.bf16.msrb.mxu3 %v10450_v46  ;;  %v11095_v45 = vld [vmem:[#allocation6 + $0x3a0] sm:$0xf0]  ;;  %v10842_v46 = vor.u32 %v12643_v36, %v10839_v43  ;;  %v12687_v43 = vld [vmem:[#allocation6 + $0x2dc] sm:$0xf0] }
 0x488   :  { %v11098_v29 = vor.u32 %v12707_v62, %v11095_v45  ;;  %v12619_v62 = vld [vmem:[#allocation6 + $0xc4] sm:$0xf] }
 0x48a   :  { %5305 = vmatpush.bf16.msrb.mxu0 %v10158_v58  ;;  %5318 = vmatpush.bf16.msrb.mxu1 %v10414_v53  ;;  %v10806_v53 = vor.u32 %v12639_v61, %v10805_v50 }
 0x48b   :  { %5331 = vmatpush.bf16.msrb.mxu2 %v10162_v51  ;;  %5344 = vmatpush.bf16.msrb.mxu3 %v10418_v54  ;;  %v12703_v51 = vld [vmem:[#allocation6 + $0x35c] sm:$0xf0]  ;;  %v12635_v54 = vld [vmem:[#allocation6 + $0x144] sm:$0xf] }
 0x48d   :  { %5306 = vmatmul.bf16.vlgmr.msrb.gmra.mxu0 %v13527_v0  ;;  %5319 = vmatmul.bf16.vlgmr.msrb.gmra.mxu1 %v13529_v1 }
 0x48e   :  { %5332 = vmatmul.bf16.vlgmr.msrb.gmra.mxu2 %v13527_v0  ;;  %5345 = vmatmul.bf16.vlgmr.msrb.gmra.mxu3 %v13529_v1  ;;  %v10870_v0 = vor.u32 %v12655_v41, %v10869_v5  ;;  %v12651_v1 = vld [vmem:[#allocation6 + $0x1c4] sm:$0xf]  ;;  %v10773_v5 = vld [vmem:[#allocation6 + $0x100] sm:$0xf] }
 0x48f   :  { %v10874_v21 = vor.u32 %v12651_v1, %v10871_v48  ;;  %6187 = vmatpush.bf16.msra.mxu1 %v11126_v13  ;;  %6213 = vmatpush.bf16.msra.mxu3 %v11130_v22  ;;  %v12631_v41 = vld [vmem:[#allocation6 + $0x11c] sm:$0xf0]  ;;  %v12627_v48 = vld [vmem:[#allocation6 + $0x104] sm:$0xf] }
 0x490   :  { %6174 = vmatpush.bf16.msra.mxu0 %v10870_v0  ;;  %v10774_v12 = vor.u32 %v12631_v41, %v10773_v5  ;;  %v11029_v1 = vld [vmem:[#allocation6 + $0x300] sm:$0xf]  ;;  %v11031_v22 = vld [vmem:[#allocation6 + $0x320] sm:$0xf0]  ;;  %v10778_v7 = vor.u32 %v12627_v48, %v10775_v16 }
 0x491   :  { %6200 = vmatpush.bf16.msra.mxu2 %v10874_v21  ;;  %v12695_v13 = vld [vmem:[#allocation6 + $0x31c] sm:$0xf0]  ;;  %v12691_v21 = vld [vmem:[#allocation6 + $0x304] sm:$0xf] }
 0x492   :  { %v11030_v44 = vor.u32 %v12695_v13, %v11029_v1  ;;  %v11034_v24 = vor.u32 %v12691_v21, %v11031_v22  ;;  %v12607_v5 = vld [vmem:[#allocation6 + $0x5c] sm:$0xf0]  ;;  %v10679_v1 = vld [vmem:[#allocation6 + $0x60] sm:$0xf0] }
 0x493   :  { %6188 = vmatpush.bf16.msra.mxu1 %v11094_v39  ;;  %6214 = vmatpush.bf16.msra.mxu3 %v11098_v29  ;;  %v12683_v29 = vld [vmem:[#allocation6 + $0x2c4] sm:$0xf]  ;;  %v10933_v41 = vld [vmem:[#allocation6 + $0x240] sm:$0xf] }
 0x494   :  { %6175 = vmatpush.bf16.msra.mxu0 %v10838_v32  ;;  %v10997_v32 = vld [vmem:[#allocation6 + $0x2c0] sm:$0xf]  ;;  %v12667_v16 = vld [vmem:[#allocation6 + $0x244] sm:$0xf] }
 0x495   :  { %6201 = vmatpush.bf16.msra.mxu2 %v10842_v46  ;;  %v10998_v45 = vor.u32 %v12687_v43, %v10997_v32  ;;  %v10743_v46 = vld [vmem:[#allocation6 + $0xe0] sm:$0xf0]  ;;  %v12663_v32 = vld [vmem:[#allocation6 + $0x21c] sm:$0xf0] }
 0x496   :  { %v10746_v50 = vor.u32 %v12619_v62, %v10743_v46  ;;  %v10935_v21 = vld [vmem:[#allocation6 + $0x260] sm:$0xf0] }
 0x497   :  { %v12659_v46 = vld [vmem:[#allocation6 + $0x204] sm:$0xf] }
 0x498   :  { %6176 = vmatpush.bf16.msra.mxu0 %v10806_v53  ;;  %v12615_v53 = vld [vmem:[#allocation6 + $0x9c] sm:$0xf0] }
 0x49c   :  { %6177 = vmatpush.bf16.msra.mxu0 %v10774_v12  ;;  %v12603_v12 = vld [vmem:[#allocation6 + $0x44] sm:$0xf] }
 0x4c9   :  { %v5151_v31 = vpop.f32.mrf.mxu0  ;;  %v5164_v55 = vpop.f32.mrf.mxu1 }
 0x4ca   :  { %v5165_v18 = vadd.f32 %v5164_v55, %v5151_v31  ;;  %v10807_v31 = vld [vmem:[#allocation6 + $0x160] sm:$0xf0] }
 0x4cc   :  { %v5350_v57 = vadd.f32 %v5165_v18, %v13314_v34  ;;  %v11062_v18 = vor.u32 %v12703_v51, %v11061_v11  ;;  %v10965_v51 = vld [vmem:[#allocation6 + $0x280] sm:$0xf] }
 0x4ce   :  { %v5354_v33 = vmul.f32 0.5, %v5350_v57  ;;  %v10810_v57 = vor.u32 %v12635_v54, %v10807_v31  ;;  %6189 = vmatpush.bf16.msra.mxu1 %v11062_v18  ;;  %v12679_v31 = vld [vmem:[#allocation6 + $0x29c] sm:$0xf0]  ;;  %v10711_v18 = vld [vmem:[#allocation6 + $0xa0] sm:$0xf0] }
 0x4d0   :  { %v5177_v59 = vpop.f32.mrf.mxu2  ;;  %v5190_v63 = vpop.f32.mrf.mxu3  ;;  %13024 = vtanh.f32 %v5354_v33  ;;  %6202 = vmatpush.bf16.msra.mxu2 %v10810_v57  ;;  %v10966_v57 = vor.u32 %v12679_v31, %v10965_v51 }
 0x4d1   :  { %v5191_v2 = vadd.f32 %v5190_v63, %v5177_v59  ;;  %v5153_v60 = vpop.f32.mrf.mxu0  ;;  %v5166_v4 = vpop.f32.mrf.mxu1  ;;  %v12699_v59 = vld [vmem:[#allocation6 + $0x344] sm:$0xf] }
 0x4d2   :  { %v11063_v63 = vld [vmem:[#allocation6 + $0x360] sm:$0xf0]  ;;  %6190 = vmatpush.bf16.msra.mxu1 %v11030_v44  ;;  %v10682_v44 = vor.u32 %v12603_v12, %v10679_v1  ;;  %v12712_v1 = vld [vmem:[#allocation6 + $0x3a4] sm:$0xf0] }
 0x4d3   :  { %v5351_v35 = vadd.f32 %v5191_v2, %v13318_v37  ;;  %v11066_v60 = vor.u32 %v12699_v59, %v11063_v63  ;;  %v12675_v63 = vld [vmem:[#allocation6 + $0x284] sm:$0xf] }
 0x4d4   :  { %6203 = vmatpush.bf16.msra.mxu2 %v10778_v7 }
 0x4d5   :  { %v5358_v10 = vmul.f32 0.5, %v5351_v35  ;;  %6215 = vmatpush.bf16.msra.mxu3 %v11066_v60 }
 0x4d6   :  { %v13025_v47 = vpop.eup %13024  ;;  %6191 = vmatpush.bf16.msra.mxu1 %v10998_v45  ;;  %v10647_v45 = vld [vmem:[#allocation6 + $0x20] sm:$0xf0] }
 0x4d7   :  { %13026 = vtanh.f32 %v5358_v10  ;;  %v5356_v2 = vmul.f32 0.5, %v13025_v47  ;;  %v10999_v47 = vld [vmem:[#allocation6 + $0x2e0] sm:$0xf0] }
 0x4d8   :  { %v5179_v3 = vpop.f32.mrf.mxu2  ;;  %v5192_v23 = vpop.f32.mrf.mxu3  ;;  %v11002_v61 = vor.u32 %v12683_v29, %v10999_v47  ;;  %6204 = vmatpush.bf16.msra.mxu2 %v10746_v50  ;;  %v10903_v29 = vld [vmem:[#allocation6 + $0x220] sm:$0xf0] }
 0x4d9   :  { %v5203_v52 = vpop.f32.mrf.mxu0  ;;  %v5216_v15 = vpop.f32.mrf.mxu1  ;;  %v5357_v3 = vadd.f32 0.5, %v5356_v2  ;;  %6216 = vmatpush.bf16.msra.mxu3 %v11034_v24  ;;  %v10967_v2 = vld [vmem:[#allocation6 + $0x2a0] sm:$0xf0]  ;;  %v10645_v24 = vld [vmem:[#allocation6] sm:$0xf] }
 0x4da   :  { %v5217_v38 = vadd.f32 %v5216_v15, %v5203_v52  ;;  %v10741_v52 = vld [vmem:[#allocation6 + $0xc0] sm:$0xf]  ;;  %6192 = vmatpush.bf16.msra.mxu1 %v10966_v57  ;;  %v10879_v57 = vld [vmem:[#allocation6 + $0x1e8] sm:$0xf0] }
 0x4db   :  { %v12623_v15 = vld [vmem:[#allocation6 + $0xdc] sm:$0xf0] }
 0x4dc   :  { %v5352_v49 = vadd.f32 %v5217_v38, %v13322_v56  ;;  %v10742_v39 = vor.u32 %v12623_v15, %v10741_v52  ;;  %v10901_v15 = vld [vmem:[#allocation6 + $0x200] sm:$0xf] }
 0x4dd   :  { %v13027_v58 = vpop.eup %13026  ;;  %6217 = vmatpush.bf16.msra.mxu3 %v11002_v61  ;;  %v10902_v62 = vor.u32 %v12663_v32, %v10901_v15 }
 0x4de   :  { %v5360_v55 = vmul.f32 0.5, %v13027_v58  ;;  %13028 = vtanh.f32 %v5352_v49  ;;  %6178 = vmatpush.bf16.msra.mxu0 %v10742_v39 }
 0x4e0   :  { %v5361_v4 = vadd.f32 0.5, %v5360_v55  ;;  %v5229_v33 = vpop.f32.mrf.mxu2  ;;  %v5242_v35 = vpop.f32.mrf.mxu3  ;;  %v12611_v55 = vld [vmem:[#allocation6 + $0x84] sm:$0xf] }
 0x4e1   :  { %v5243_v6 = vadd.f32 %v5242_v35, %v5229_v33  ;;  %v5205_v10 = vpop.f32.mrf.mxu0  ;;  %v5218_v0 = vpop.f32.mrf.mxu1  ;;  %v10714_v59 = vor.u32 %v12611_v55, %v10711_v18  ;;  %v10970_v33 = vor.u32 %v12675_v63, %v10967_v2  ;;  %v10677_v35 = vld [vmem:[#allocation6 + $0x40] sm:$0xf]  ;;  %v12720_v55 = vld [vmem:[#allocation6 + $0x3e4] sm:$0xf0]  ;;  %v12652_v18 = vld [vmem:[#allocation6 + $0x1cc] sm:$0xf] }
 0x4e2   :  { %v5367_v17 = vmul.f32 %v5361_v4, %v13500_v14  ;;  %v10709_v14 = vld [vmem:[#allocation6 + $0x80] sm:$0xf]  ;;  %v10678_v10 = vor.u32 %v12607_v5, %v10677_v35  ;;  %v10882_v63 = vor.u32 %v12652_v18, %v10879_v57  ;;  %v12716_v2 = vld [vmem:[#allocation6 + $0x3cc] sm:$0xf]  ;;  %v10845_v35 = vld [vmem:[#allocation6 + $0x188] sm:$0xf] }
 0x4e3   :  { %v5353_v23 = vadd.f32 %v5243_v6, %v13326_v40  ;;  %v10710_v54 = vor.u32 %v12615_v53, %v10709_v14  ;;  %6205 = vmatpush.bf16.msra.mxu2 %v10714_v59  ;;  %6218 = vmatpush.bf16.msra.mxu3 %v10970_v33  ;;  %v12671_v0 = vld [vmem:[#allocation6 + $0x25c] sm:$0xf0]  ;;  %v12656_v14 = vld [vmem:[#allocation6 + $0x1e4] sm:$0xf0]  ;;  %v11135_v33 = vld [vmem:[#allocation6 + $0x3e8] sm:$0xf0] }
 0x4e4   :  { %v13029_v30 = vpop.eup %13028  ;;  %v10934_v48 = vor.u32 %v12671_v0, %v10933_v41  ;;  %v11133_v53 = vld [vmem:[#allocation6 + $0x3c8] sm:$0xf]  ;;  %v12692_v18 = vld [vmem:[#allocation6 + $0x30c] sm:$0xf] }
 0x4e5   :  { %v5368_v36 = vmul.f32 %v13029_v30, %v5357_v3  ;;  %v5363_v38 = vmul.f32 0.5, %v5353_v23  ;;  %6179 = vmatpush.bf16.msra.mxu0 %v10710_v54  ;;  %v13559_v3 = vpop.permute.xlu2 %107  ;;  %v10938_v23 = vor.u32 %v12667_v16, %v10935_v21  ;;  %v12599_v30 = vld [vmem:[#allocation6 + $0x1c] sm:$0xf0]  ;;  %v11134_v59 = vor.u32 %v12720_v55, %v11133_v53  ;;  %v11101_v0 = vld [vmem:[#allocation6 + $0x388] sm:$0xf] }
 0x4e6   :  { %6193 = vmatpush.bf16.msra.mxu1 %v10934_v48  ;;  %v10646_v52 = vor.u32 %v12599_v30, %v10645_v24  ;;  %v149_v5 = vmul.f32 %v13264_v8, %v13559_v3  ;;  %v11102_v16 = vor.u32 %v12712_v1, %v11101_v0  ;;  %v10847_v21 = vld [vmem:[#allocation6 + $0x1a8] sm:$0xf0]  ;;  %v10813_v30 = vld [vmem:[#allocation6 + $0x148] sm:$0xf] }
 0x4e7   :  { %v13552_v49 = vadd.f32 %v5368_v36, %v5367_v17  ;;  %13030 = vtanh.f32 %v5363_v38  ;;  %6206 = vmatpush.bf16.msra.mxu2 %v10682_v44  ;;  %6219 = vmatpush.bf16.msra.mxu3 %v10938_v23  ;;  %v12595_v17 = vld [vmem:[#allocation6 + $0x4] sm:$0xf]  ;;  %v150_v36 = vmul.f32 %v13266_v9, %v13559_v3  ;;  %v11103_v23 = vld [vmem:[#allocation6 + $0x3a8] sm:$0xf0]  ;;  %v12696_v53 = vld [vmem:[#allocation6 + $0x324] sm:$0xf0] }
 0x4e8   :  { %v5231_v11 = vpop.f32.mrf.mxu2  ;;  %v5244_v58 = vpop.f32.mrf.mxu3  ;;  %v10650_v61 = vor.u32 %v12595_v17, %v10647_v45  ;;  %v191_v15 = vadd.f32 %v13272_v25, %v149_v5  ;;  %v11039_v57 = vld [vmem:[#allocation6 + $0x328] sm:$0xf0] }
 0x4e9   :  { %13032 = vtanh.f32 %v13552_v49  ;;  %6180 = vmatpush.bf16.msra.mxu0 %v10678_v10  ;;  %v10906_v11 = vor.u32 %v12659_v46, %v10903_v29  ;;  %v10877_v58 = vld [vmem:[#allocation6 + $0x1c8] sm:$0xf]  ;;  %v192_v41 = vadd.f32 %v13274_v26, %v150_v36  ;;  %v10751_v0 = vld [vmem:[#allocation6 + $0xe8] sm:$0xf0] }
 0x4ea   :  { %v13555_v60 = vpop.f32.mrf.mxu0  ;;  %v13557_v4 = vpop.f32.mrf.mxu1  ;;  %6194 = vmatpush.bf16.msra.mxu1 %v10902_v62  ;;  %v10878_v31 = vor.u32 %v12656_v14, %v10877_v58  ;;  %v12648_v10 = vld [vmem:[#allocation6 + $0x1a4] sm:$0xf0]  ;;  %v12700_v62 = vld [vmem:[#allocation6 + $0x34c] sm:$0xf] }
 0x4eb   :  { %6207 = vmatpush.bf16.msra.mxu2 %v10650_v61  ;;  %6220 = vmatpush.bf16.msra.mxu3 %v10906_v11  ;;  %v10846_v12 = vor.u32 %v12648_v10, %v10845_v35  ;;  %v5269_v48 = vadd.f32 %v13557_v4, %v13555_v60  ;;  %v10815_v4 = vld [vmem:[#allocation6 + $0x168] sm:$0xf0]  ;;  %v10781_v61 = vld [vmem:[#allocation6 + $0x108] sm:$0xf] }
 0x4ec   :  { %v12632_v11 = vld [vmem:[#allocation6 + $0x124] sm:$0xf0]  ;;  %v11007_v1 = vld [vmem:[#allocation6 + $0x2e8] sm:$0xf0] }
 0x4ed   :  { %v13031_v6 = vpop.eup %13030  ;;  %6181 = vmatpush.bf16.msra.mxu0 %v10646_v52  ;;  %v12640_v52 = vld [vmem:[#allocation6 + $0x164] sm:$0xf0]  ;;  %v5374_v45 = vadd.f32 %v5269_v48, %v191_v15  ;;  %v10782_v14 = vor.u32 %v12632_v11, %v10781_v61  ;;  %v12668_v61 = vld [vmem:[#allocation6 + $0x24c] sm:$0xf] }
 0x4ee   :  { %v5365_v13 = vmul.f32 0.5, %v13031_v6  ;;  %v11138_v6 = vor.u32 %v12716_v2, %v11135_v33  ;;  %6239 = vmatpush.bf16.msrb.mxu1 %v11134_v59  ;;  %v10814_v36 = vor.u32 %v12640_v52, %v10813_v30  ;;  %v11037_v58 = vld [vmem:[#allocation6 + $0x308] sm:$0xf]  ;;  %v10719_v30 = vld [vmem:[#allocation6 + $0xa8] sm:$0xf0] }
 0x4ef   :  { %v13033_v22 = vpop.eup %13032  ;;  %6252 = vmatpush.bf16.msrb.mxu2 %v10882_v63  ;;  %v5378_v59 = vmul.f32 0.5, %v5374_v45  ;;  %v11042_v63 = vor.u32 %v12692_v18, %v11039_v57  ;;  %v10749_v2 = vld [vmem:[#allocation6 + $0xc8] sm:$0xf] }
 0x4f0   :  { %v5366_v7 = vadd.f32 0.5, %v5365_v13  ;;  %v12644_v13 = vld [vmem:[#allocation6 + $0x18c] sm:$0xf]  ;;  %6265 = vmatpush.bf16.msrb.mxu3 %v11138_v6  ;;  %v12624_v33 = vld [vmem:[#allocation6 + $0xe4] sm:$0xf0] }
 0x4f1   :  { %6226 = vmatpush.bf16.msrb.mxu0 %v10878_v31  ;;  %v11038_v31 = vor.u32 %v12696_v53, %v11037_v58  ;;  %v11005_v35 = vld [vmem:[#allocation6 + $0x2c8] sm:$0xf]  ;;  %v10750_v5 = vor.u32 %v12624_v33, %v10749_v2  ;;  %v12620_v6 = vld [vmem:[#allocation6 + $0xcc] sm:$0xf] }
 0x4f2   :  { %v5371_v38 = vmul.f32 %v13033_v22, %v5366_v7  ;;  %v5257_v47 = vpop.f32.mrf.mxu0  ;;  %v5270_v50 = vpop.f32.mrf.mxu1  ;;  %v12708_v22 = vld [vmem:[#allocation6 + $0x38c] sm:$0xf]  ;;  %v10850_v7 = vor.u32 %v12644_v13, %v10847_v21  ;;  %6240 = vmatpush.bf16.msrb.mxu1 %v11102_v16  ;;  %v10754_v13 = vor.u32 %v12620_v6, %v10751_v0  ;;  %v10717_v16 = vld [vmem:[#allocation6 + $0x88] sm:$0xf] }
 0x4f3   :  { %v5281_v39 = vpop.f32.mrf.mxu2  ;;  %v5294_v43 = vpop.f32.mrf.mxu3  ;;  %v11106_v24 = vor.u32 %v12708_v22, %v11103_v23  ;;  %v11071_v47 = vld [vmem:[#allocation6 + $0x368] sm:$0xf0]  ;;  %v12616_v21 = vld [vmem:[#allocation6 + $0xa4] sm:$0xf0] }
 0x4f4   :  { %v5372_v51 = vpack.c.bf16 %v5371_v38, %v5371_v38  ;;  %v5295_v54 = vadd.f32 %v5294_v43, %v5281_v39  ;;  %v11069_v38 = vld [vmem:[#allocation6 + $0x348] sm:$0xf]  ;;  %v12636_v43 = vld [vmem:[#allocation6 + $0x14c] sm:$0xf]  ;;  %6253 = vmatpush.bf16.msrb.mxu2 %v10850_v7  ;;  %v11074_v50 = vor.u32 %v12700_v62, %v11071_v47  ;;  %v10718_v23 = vor.u32 %v12616_v21, %v10717_v16 }
 0x4f5   :  { %6227 = vmatpush.bf16.msrb.mxu0 %v10846_v12  ;;  %v12704_v39 = vld [vmem:[#allocation6 + $0x364] sm:$0xf0]  ;;  %6266 = vmatpush.bf16.msrb.mxu3 %v11106_v24  ;;  %v10818_v29 = vor.u32 %v12636_v43, %v10815_v4  ;;  %v12684_v12 = vld [vmem:[#allocation6 + $0x2cc] sm:$0xf] }
 0x4f6   :  { %5373 = vst [vmem:[#allocation2 + $0x4] sm:$0xf] %v5372_v51  ;;  %v5375_v44 = vadd.f32 %v5295_v54, %v192_v41  ;;  %v11070_v60 = vor.u32 %v12704_v39, %v11069_v38  ;;  %v12628_v51 = vld [vmem:[#allocation6 + $0x10c] sm:$0xf]  ;;  %v12688_v41 = vld [vmem:[#allocation6 + $0x2e4] sm:$0xf0]  ;;  %v11010_v48 = vor.u32 %v12684_v12, %v11007_v1 }
 0x4f7   :  { %v10783_v54 = vld [vmem:[#allocation6 + $0x128] sm:$0xf0]  ;;  %v11006_v10 = vor.u32 %v12688_v41, %v11005_v35  ;;  %v10973_v22 = vld [vmem:[#allocation6 + $0x288] sm:$0xf] }
 0x4f8   :  { %v5382_v46 = vmul.f32 0.5, %v5375_v44  ;;  %6241 = vmatpush.bf16.msrb.mxu1 %v11070_v60  ;;  %6254 = vmatpush.bf16.msrb.mxu2 %v10818_v29  ;;  %v10786_v55 = vor.u32 %v12628_v51, %v10783_v54  ;;  %v151_v44 = vmul.f32 %v13268_v19, %v13559_v3  ;;  %v12680_v7 = vld [vmem:[#allocation6 + $0x2a4] sm:$0xf0]  ;;  %v12612_v24 = vld [vmem:[#allocation6 + $0x8c] sm:$0xf] }
 0x4f9   :  { %6228 = vmatpush.bf16.msrb.mxu0 %v10814_v36  ;;  %6267 = vmatpush.bf16.msrb.mxu3 %v11074_v50  ;;  %v10974_v15 = vor.u32 %v12680_v7, %v10973_v22  ;;  %v10975_v36 = vld [vmem:[#allocation6 + $0x2a8] sm:$0xf0]  ;;  %v10685_v38 = vld [vmem:[#allocation6 + $0x48] sm:$0xf] }
 0x4fa   :  { %13034 = vtanh.f32 %v5382_v46  ;;  %v12608_v4 = vld [vmem:[#allocation6 + $0x64] sm:$0xf0]  ;;  %v193_v46 = vadd.f32 %v13281_v42, %v151_v44  ;;  %v12604_v47 = vld [vmem:[#allocation6 + $0x4c] sm:$0xf] }
 0x4fb   :  { %v5283_v32 = vpop.f32.mrf.mxu2  ;;  %v5296_v17 = vpop.f32.mrf.mxu3  ;;  %13036 = vtanh.f32 %v5378_v59  ;;  %v10941_v62 = vld [vmem:[#allocation6 + $0x248] sm:$0xf]  ;;  %v10687_v50 = vld [vmem:[#allocation6 + $0x68] sm:$0xf0]  ;;  %v10686_v58 = vor.u32 %v12608_v4, %v10685_v38  ;;  %v152_v59 = vmul.f32 %v13270_v20, %v13559_v3 }
 0x4fc   :  { %6242 = vmatpush.bf16.msrb.mxu1 %v11038_v31  ;;  %6255 = vmatpush.bf16.msrb.mxu2 %v10786_v55  ;;  %v10722_v32 = vor.u32 %v12612_v24, %v10719_v30  ;;  %v12676_v17 = vld [vmem:[#allocation6 + $0x28c] sm:$0xf]  ;;  %v12672_v45 = vld [vmem:[#allocation6 + $0x264] sm:$0xf0]  ;;  %v10690_v31 = vor.u32 %v12604_v47, %v10687_v50  ;;  %v12721_v47 = vld [vmem:[#allocation6 + $0x3ec] sm:$0xf0] }
 0x4fd   :  { %6229 = vmatpush.bf16.msrb.mxu0 %v10782_v14  ;;  %6268 = vmatpush.bf16.msrb.mxu3 %v11042_v63  ;;  %v10978_v60 = vor.u32 %v12676_v17, %v10975_v36  ;;  %v10943_v14 = vld [vmem:[#allocation6 + $0x268] sm:$0xf0]  ;;  %v10942_v54 = vor.u32 %v12672_v45, %v10941_v62  ;;  %v10653_v55 = vld [vmem:[#allocation6 + $0x8] sm:$0xf]  ;;  %v194_v3 = vadd.f32 %v13276_v27, %v152_v59  ;;  %v10885_v45 = vld [vmem:[#allocation6 + $0x1d0] sm:$0xf] }
 0x4fe   :  { %v12600_v18 = vld [vmem:[#allocation6 + $0x24] sm:$0xf0]  ;;  %v10946_v63 = vor.u32 %v12668_v61, %v10943_v14  ;;  %v12596_v33 = vld [vmem:[#allocation6 + $0xc] sm:$0xf]  ;;  %v12653_v50 = vld [vmem:[#allocation6 + $0x1d4] sm:$0xf] }
 0x4ff   :  { %v10909_v57 = vld [vmem:[#allocation6 + $0x208] sm:$0xf]  ;;  %v10655_v35 = vld [vmem:[#allocation6 + $0x28] sm:$0xf0]  ;;  %v12717_v14 = vld [vmem:[#allocation6 + $0x3d4] sm:$0xf] }
 0x500   :  { %v13035_v52 = vpop.eup %13034  ;;  %6243 = vmatpush.bf16.msrb.mxu1 %v11006_v10  ;;  %6256 = vmatpush.bf16.msrb.mxu2 %v10754_v13  ;;  %v12664_v2 = vld [vmem:[#allocation6 + $0x224] sm:$0xf0]  ;;  %v10911_v41 = vld [vmem:[#allocation6 + $0x228] sm:$0xf0]  ;;  %v10654_v10 = vor.u32 %v12600_v18, %v10653_v55  ;;  %v10658_v13 = vor.u32 %v12596_v33, %v10655_v35  ;;  %v10853_v18 = vld [vmem:[#allocation6 + $0x190] sm:$0xf] }
 0x501   :  { %6230 = vmatpush.bf16.msrb.mxu0 %v10750_v5  ;;  %6269 = vmatpush.bf16.msrb.mxu3 %v11010_v48  ;;  %v5384_v11 = vmul.f32 0.5, %v13035_v52  ;;  %v13037_v53 = vpop.eup %13036  ;;  %v12660_v5 = vld [vmem:[#allocation6 + $0x20c] sm:$0xf]  ;;  %v10910_v1 = vor.u32 %v12664_v2, %v10909_v57  ;;  %v12649_v57 = vld [vmem:[#allocation6 + $0x1ac] sm:$0xf0] }
 0x502   :  { %v5380_v6 = vmul.f32 0.5, %v13037_v53  ;;  %v10914_v22 = vor.u32 %v12660_v5, %v10911_v41  ;;  %v11143_v53 = vld [vmem:[#allocation6 + $0x3f0] sm:$0xf0]  ;;  %v11109_v2 = vld [vmem:[#allocation6 + $0x390] sm:$0xf] }
 0x503   :  { %v5385_v48 = vadd.f32 0.5, %v5384_v11  ;;  %v12713_v33 = vld [vmem:[#allocation6 + $0x3ac] sm:$0xf0]  ;;  %v12645_v35 = vld [vmem:[#allocation6 + $0x194] sm:$0xf] }
 0x504   :  { %6244 = vmatpush.bf16.msrb.mxu1 %v10974_v15  ;;  %6257 = vmatpush.bf16.msrb.mxu2 %v10722_v32  ;;  %v10855_v5 = vld [vmem:[#allocation6 + $0x1b0] sm:$0xf0] }
 0x505   :  { %6231 = vmatpush.bf16.msrb.mxu0 %v10718_v23  ;;  %6270 = vmatpush.bf16.msrb.mxu3 %v10978_v60  ;;  %v5381_v23 = vadd.f32 0.5, %v5380_v6  ;;  %v5391_v30 = vmul.f32 %v5385_v48, %v13524_v28  ;;  %v11141_v28 = vld [vmem:[#allocation6 + $0x3d0] sm:$0xf]  ;;  %v12709_v41 = vld [vmem:[#allocation6 + $0x394] sm:$0xf] }
 0x506   :  { %v11142_v55 = vor.u32 %v12721_v47, %v11141_v28  ;;  %v11111_v6 = vld [vmem:[#allocation6 + $0x3b0] sm:$0xf0]  ;;  %v12625_v28 = vld [vmem:[#allocation6 + $0xec] sm:$0xf0] }
 0x507   :  { %v11114_v48 = vor.u32 %v12709_v41, %v11111_v6  ;;  %v12677_v41 = vld [vmem:[#allocation6 + $0x294] sm:$0xf] }
 0x508   :  { %6245 = vmatpush.bf16.msrb.mxu1 %v10942_v54  ;;  %6258 = vmatpush.bf16.msrb.mxu2 %v10690_v31  ;;  %v10983_v6 = vld [vmem:[#allocation6 + $0x2b0] sm:$0xf0] }
 0x509   :  { %6232 = vmatpush.bf16.msrb.mxu0 %v10686_v58  ;;  %6271 = vmatpush.bf16.msrb.mxu3 %v10946_v63  ;;  %v10887_v58 = vld [vmem:[#allocation6 + $0x1f0] sm:$0xf0]  ;;  %v11146_v63 = vor.u32 %v12717_v14, %v11143_v53 }
 0x50a   :  { %v5307_v39 = vpop.f32.mrf.mxu0  ;;  %v5320_v43 = vpop.f32.mrf.mxu1  ;;  %v10890_v59 = vor.u32 %v12653_v50, %v10887_v58  ;;  %v11013_v50 = vld [vmem:[#allocation6 + $0x2d0] sm:$0xf]  ;;  %v10759_v58 = vld [vmem:[#allocation6 + $0xf0] sm:$0xf0] }
 0x50b   :  { %v5321_v29 = vadd.f32 %v5320_v43, %v5307_v39  ;;  %v12685_v14 = vld [vmem:[#allocation6 + $0x2d4] sm:$0xf] }
 0x50c   :  { %6246 = vmatpush.bf16.msrb.mxu1 %v10910_v1  ;;  %6259 = vmatpush.bf16.msrb.mxu2 %v10658_v13  ;;  %v12641_v1 = vld [vmem:[#allocation6 + $0x16c] sm:$0xf0]  ;;  %v10858_v13 = vor.u32 %v12645_v35, %v10855_v5  ;;  %v11015_v53 = vld [vmem:[#allocation6 + $0x2f0] sm:$0xf0] }
 0x50d   :  { %v5376_v51 = vadd.f32 %v5321_v29, %v193_v46  ;;  %6233 = vmatpush.bf16.msrb.mxu0 %v10654_v10  ;;  %6272 = vmatpush.bf16.msrb.mxu3 %v10914_v22  ;;  %v12657_v46 = vld [vmem:[#allocation6 + $0x1ec] sm:$0xf0]  ;;  %v10854_v10 = vor.u32 %v12649_v57, %v10853_v18  ;;  %v12701_v22 = vld [vmem:[#allocation6 + $0x354] sm:$0xf] }
 0x50e   :  { %v10886_v31 = vor.u32 %v12657_v46, %v10885_v45  ;;  %v10757_v46 = vld [vmem:[#allocation6 + $0xd0] sm:$0xf]  ;;  %v12613_v35 = vld [vmem:[#allocation6 + $0x94] sm:$0xf] }
 0x50f   :  { %13038 = vtanh.f32 %v5376_v51  ;;  %v10725_v18 = vld [vmem:[#allocation6 + $0x90] sm:$0xf]  ;;  %v10727_v5 = vld [vmem:[#allocation6 + $0xb0] sm:$0xf0] }
 0x510   :  { %v12617_v57 = vld [vmem:[#allocation6 + $0xac] sm:$0xf0] }
 0x511   :  { %v5333_v0 = vpop.f32.mrf.mxu2  ;;  %v5346_v12 = vpop.f32.mrf.mxu3 }
 0x512   :  { %v5347_v44 = vadd.f32 %v5346_v12, %v5333_v0  ;;  %v5309_v16 = vpop.f32.mrf.mxu0  ;;  %v5322_v21 = vpop.f32.mrf.mxu1  ;;  %v11110_v0 = vor.u32 %v12713_v33, %v11109_v2  ;;  %v10821_v12 = vld [vmem:[#allocation6 + $0x150] sm:$0xf] }
 0x513   :  { %v12637_v16 = vld [vmem:[#allocation6 + $0x154] sm:$0xf]  ;;  %v10981_v2 = vld [vmem:[#allocation6 + $0x290] sm:$0xf] }
 0x514   :  { %v5377_v7 = vadd.f32 %v5347_v44, %v194_v3  ;;  %v11077_v3 = vld [vmem:[#allocation6 + $0x350] sm:$0xf]  ;;  %v10823_v21 = vld [vmem:[#allocation6 + $0x170] sm:$0xf0] }
 0x515   :  { %v13039_v24 = vpop.eup %13038  ;;  %v12705_v44 = vld [vmem:[#allocation6 + $0x36c] sm:$0xf0] }
 0x516   :  { %v5392_v52 = vmul.f32 %v13039_v24, %v5381_v23  ;;  %v5387_v15 = vmul.f32 0.5, %v5377_v7  ;;  %v11079_v23 = vld [vmem:[#allocation6 + $0x370] sm:$0xf0]  ;;  %v10822_v7 = vor.u32 %v12641_v1, %v10821_v12  ;;  %v11078_v24 = vor.u32 %v12705_v44, %v11077_v3  ;;  %v12681_v33 = vld [vmem:[#allocation6 + $0x2ac] sm:$0xf0] }
 0x517   :  { %v10693_v12 = vld [vmem:[#allocation6 + $0x50] sm:$0xf] }
 0x518   :  { %v13576_v32 = vadd.f32 %v5392_v52, %v5391_v30  ;;  %13040 = vtanh.f32 %v5387_v15  ;;  %v10789_v30 = vld [vmem:[#allocation6 + $0x110] sm:$0xf]  ;;  %v10826_v15 = vor.u32 %v12637_v16, %v10823_v21  ;;  %v12605_v16 = vld [vmem:[#allocation6 + $0x54] sm:$0xf] }
 0x519   :  { %v5335_v17 = vpop.f32.mrf.mxu2  ;;  %v5348_v36 = vpop.f32.mrf.mxu3  ;;  %v12633_v52 = vld [vmem:[#allocation6 + $0x12c] sm:$0xf0]  ;;  %v10695_v21 = vld [vmem:[#allocation6 + $0x70] sm:$0xf0] }
 0x51a   :  { %13042 = vtanh.f32 %v13576_v32  ;;  %v11082_v17 = vor.u32 %v12701_v22, %v11079_v23  ;;  %v11045_v36 = vld [vmem:[#allocation6 + $0x310] sm:$0xf]  ;;  %v12669_v22 = vld [vmem:[#allocation6 + $0x254] sm:$0xf] }
 0x51b   :  { %v12609_v1 = vld [vmem:[#allocation6 + $0x6c] sm:$0xf0]  ;;  %v10951_v23 = vld [vmem:[#allocation6 + $0x270] sm:$0xf0] }
 0x51c   :  { %v10949_v3 = vld [vmem:[#allocation6 + $0x250] sm:$0xf] }
 0x51d   :  { %v12673_v44 = vld [vmem:[#allocation6 + $0x26c] sm:$0xf0] }
 0x51e   :  { %v13041_v38 = vpop.eup %13040 }
 0x51f   :  { %v5389_v39 = vmul.f32 0.5, %v13041_v38  ;;  %v12697_v38 = vld [vmem:[#allocation6 + $0x32c] sm:$0xf0] }
 0x520   :  { %v13043_v43 = vpop.eup %13042  ;;  %v11046_v45 = vor.u32 %v12697_v38, %v11045_v36  ;;  %v10698_v36 = vor.u32 %v12605_v16, %v10695_v21  ;;  %v10954_v38 = vor.u32 %v12669_v22, %v10951_v23  ;;  %v12638_v16 = vld [vmem:[#allocation6 + $0x15c] sm:$0xf] }
 0x521   :  { %v5390_v60 = vadd.f32 0.5, %v5389_v39  ;;  %v12629_v39 = vld [vmem:[#allocation6 + $0x114] sm:$0xf]  ;;  %v10831_v21 = vld [vmem:[#allocation6 + $0x178] sm:$0xf0] }
 0x522   :  { %v12702_v22 = vld [vmem:[#allocation6 + $0x35c] sm:$0xf] }
 0x523   :  { %v5395_v4 = vmul.f32 %v13043_v43, %v5390_v60  ;;  %v10791_v43 = vld [vmem:[#allocation6 + $0x130] sm:$0xf0]  ;;  %v11087_v23 = vld [vmem:[#allocation6 + $0x378] sm:$0xf0] }
 0x524   :  { %v12693_v60 = vld [vmem:[#allocation6 + $0x314] sm:$0xf] }
 0x525   :  { %v5396_v62 = vpack.c.bf16 %v5395_v4, %v5395_v4  ;;  %v11047_v4 = vld [vmem:[#allocation6 + $0x330] sm:$0xf0] }
 0x526   :  { %v11050_v47 = vor.u32 %v12693_v60, %v11047_v4  ;;  %v12661_v60 = vld [vmem:[#allocation6 + $0x214] sm:$0xf] }
 0x527   :  { %5397 = vst [vmem:[#allocation2] sm:$0xf] %v5396_v62  ;;  %v10790_v62 = vor.u32 %v12633_v52, %v10789_v30  ;;  %v10950_v30 = vor.u32 %v12673_v44, %v10949_v3  ;;  %v12601_v52 = vld [vmem:[#allocation6 + $0x2c] sm:$0xf0]  ;;  %v10919_v4 = vld [vmem:[#allocation6 + $0x230] sm:$0xf0] }
 0x528   :  { %v11085_v3 = vld [vmem:[#allocation6 + $0x358] sm:$0xf] }
 0x529   :  { %v12706_v44 = vld [vmem:[#allocation6 + $0x374] sm:$0xf0] }
 0x52e   :  { %v5398_v29 = vld [vmem:[#allocation2] sm:$0xff] }
 0x52f   :  { %v5528_v61 = vunpack.c.l.b16 %v5398_v29  ;;  %v5529_v11 = vunpack.c.h.b16 %v5398_v29  ;;  %v10794_v29 = vor.u32 %v12629_v39, %v10791_v43  ;;  %v12597_v39 = vld [vmem:[#allocation6 + $0x14] sm:$0xf] }
 0x530   :  { %v10663_v43 = vld [vmem:[#allocation6 + $0x30] sm:$0xf0] }
 0x531   :  { %v13579_v51 = vpack.c.b16 %v5528_v61, %v5528_v61  ;;  %v13581_v54 = vpack.c.b16 %v5529_v11, %v5529_v11  ;;  %v12689_v61 = vld [vmem:[#allocation6 + $0x2ec] sm:$0xf0]  ;;  %v12621_v11 = vld [vmem:[#allocation6 + $0xd4] sm:$0xf] }
 0x533   :  { %6182 = vmatmul.bf16.vlgmr.msra.gmra.mxu0 %v13579_v51  ;;  %6195 = vmatmul.bf16.vlgmr.msra.gmra.mxu1 %v13581_v54 }
 0x534   :  { %6208 = vmatmul.bf16.vlgmr.msra.gmra.mxu2 %v13579_v51  ;;  %6221 = vmatmul.bf16.vlgmr.msra.gmra.mxu3 %v13581_v54 }
 0x535   :  { %6278 = vmatpush.bf16.msra.mxu0 %v10886_v31  ;;  %6291 = vmatpush.bf16.msra.mxu1 %v11142_v55  ;;  %v10758_v31 = vor.u32 %v12625_v28, %v10757_v46  ;;  %v11014_v55 = vor.u32 %v12689_v61, %v11013_v50  ;;  %v11149_v46 = vld [vmem:[#allocation6 + $0x3d8] sm:$0xf]  ;;  %v10895_v61 = vld [vmem:[#allocation6 + $0x1f8] sm:$0xf0] }
 0x536   :  { %6304 = vmatpush.bf16.msra.mxu2 %v10890_v59  ;;  %6317 = vmatpush.bf16.msra.mxu3 %v11146_v63  ;;  %v10762_v59 = vor.u32 %v12621_v11, %v10759_v58  ;;  %v11018_v63 = vor.u32 %v12685_v14, %v11015_v53  ;;  %v12722_v28 = vld [vmem:[#allocation6 + $0x3f4] sm:$0xf0]  ;;  %v12718_v11 = vld [vmem:[#allocation6 + $0x3dc] sm:$0xf]  ;;  %v10666_v14 = vor.u32 %v12597_v39, %v10663_v43 }
 0x537   :  { %v11151_v58 = vld [vmem:[#allocation6 + $0x3f8] sm:$0xf0]  ;;  %v10922_v53 = vor.u32 %v12661_v60, %v10919_v4 }
 0x538   :  { %v12630_v39 = vld [vmem:[#allocation6 + $0x11c] sm:$0xf] }
 0x539   :  { %6279 = vmatpush.bf16.msra.mxu0 %v10854_v10  ;;  %6292 = vmatpush.bf16.msra.mxu1 %v11110_v0  ;;  %v10726_v10 = vor.u32 %v12617_v57, %v10725_v18  ;;  %v10982_v0 = vor.u32 %v12681_v33, %v10981_v2  ;;  %v10861_v18 = vld [vmem:[#allocation6 + $0x198] sm:$0xf]  ;;  %v10799_v43 = vld [vmem:[#allocation6 + $0x138] sm:$0xf0] }
 0x53a   :  { %6305 = vmatpush.bf16.msra.mxu2 %v10858_v13  ;;  %6318 = vmatpush.bf16.msra.mxu3 %v11114_v48  ;;  %v10730_v13 = vor.u32 %v12613_v35, %v10727_v5  ;;  %v10986_v48 = vor.u32 %v12677_v41, %v10983_v6  ;;  %v12650_v57 = vld [vmem:[#allocation6 + $0x1b4] sm:$0xf0]  ;;  %v12646_v35 = vld [vmem:[#allocation6 + $0x19c] sm:$0xf] }
 0x53b   :  { %v11117_v2 = vld [vmem:[#allocation6 + $0x398] sm:$0xf]  ;;  %v10863_v5 = vld [vmem:[#allocation6 + $0x1b8] sm:$0xf0] }
 0x53c   :  { %v12714_v33 = vld [vmem:[#allocation6 + $0x3b4] sm:$0xf0]  ;;  %v12710_v41 = vld [vmem:[#allocation6 + $0x39c] sm:$0xf] }
 0x53d   :  { %6280 = vmatpush.bf16.msra.mxu0 %v10822_v7  ;;  %6293 = vmatpush.bf16.msra.mxu1 %v11078_v24  ;;  %v10661_v7 = vld [vmem:[#allocation6 + $0x10] sm:$0xf]  ;;  %v10694_v24 = vor.u32 %v12609_v1, %v10693_v12  ;;  %v11119_v6 = vld [vmem:[#allocation6 + $0x3b8] sm:$0xf0]  ;;  %v10829_v12 = vld [vmem:[#allocation6 + $0x158] sm:$0xf] }
 0x53e   :  { %6306 = vmatpush.bf16.msra.mxu2 %v10826_v15  ;;  %6319 = vmatpush.bf16.msra.mxu3 %v11082_v17  ;;  %v10917_v15 = vld [vmem:[#allocation6 + $0x210] sm:$0xf]  ;;  %v12642_v1 = vld [vmem:[#allocation6 + $0x174] sm:$0xf0]  ;;  %v12694_v60 = vld [vmem:[#allocation6 + $0x31c] sm:$0xf] }
 0x53f   :  { %v12665_v17 = vld [vmem:[#allocation6 + $0x22c] sm:$0xf0]  ;;  %v11055_v4 = vld [vmem:[#allocation6 + $0x338] sm:$0xf0] }
 0x540   :  { %v10918_v50 = vor.u32 %v12665_v17, %v10917_v15  ;;  %v10834_v15 = vor.u32 %v12638_v16, %v10831_v21  ;;  %v11090_v17 = vor.u32 %v12702_v22, %v11087_v23  ;;  %v12606_v16 = vld [vmem:[#allocation6 + $0x5c] sm:$0xf] }
 0x541   :  { %6281 = vmatpush.bf16.msra.mxu0 %v10790_v62  ;;  %6294 = vmatpush.bf16.msra.mxu1 %v11046_v45  ;;  %v10893_v62 = vld [vmem:[#allocation6 + $0x1d8] sm:$0xf]  ;;  %v10703_v21 = vld [vmem:[#allocation6 + $0x78] sm:$0xf0] }
 0x542   :  { %6307 = vmatpush.bf16.msra.mxu2 %v10794_v29  ;;  %6320 = vmatpush.bf16.msra.mxu3 %v11050_v47  ;;  %v12658_v45 = vld [vmem:[#allocation6 + $0x1f4] sm:$0xf0]  ;;  %v12654_v29 = vld [vmem:[#allocation6 + $0x1dc] sm:$0xf]  ;;  %v10662_v47 = vor.u32 %v12601_v52, %v10661_v7  ;;  %v10830_v7 = vor.u32 %v12642_v1, %v10829_v12 }
 0x543   :  { %6234 = vmatmul.bf16.vlgmr.msrb.gmra.mxu0 %v13579_v51  ;;  %6247 = vmatmul.bf16.vlgmr.msrb.gmra.mxu1 %v13581_v54  ;;  %v12634_v52 = vld [vmem:[#allocation6 + $0x134] sm:$0xf0]  ;;  %v12670_v22 = vld [vmem:[#allocation6 + $0x25c] sm:$0xf] }
 0x544   :  { %6260 = vmatmul.bf16.vlgmr.msrb.gmra.mxu2 %v13579_v51  ;;  %6273 = vmatmul.bf16.vlgmr.msrb.gmra.mxu3 %v13581_v54  ;;  %v10701_v12 = vld [vmem:[#allocation6 + $0x58] sm:$0xf]  ;;  %v10959_v23 = vld [vmem:[#allocation6 + $0x278] sm:$0xf0] }
 0x545   :  { %6282 = vmatpush.bf16.msra.mxu0 %v10758_v31  ;;  %6295 = vmatpush.bf16.msra.mxu1 %v11014_v55  ;;  %v10894_v31 = vor.u32 %v12658_v45, %v10893_v62  ;;  %v11150_v55 = vor.u32 %v12722_v28, %v11149_v46  ;;  %v10765_v46 = vld [vmem:[#allocation6 + $0xd8] sm:$0xf] }
 0x546   :  { %6308 = vmatpush.bf16.msra.mxu2 %v10762_v59  ;;  %6321 = vmatpush.bf16.msra.mxu3 %v11018_v63  ;;  %v10898_v59 = vor.u32 %v12654_v29, %v10895_v61  ;;  %v11154_v63 = vor.u32 %v12718_v11, %v11151_v58  ;;  %v12626_v28 = vld [vmem:[#allocation6 + $0xf4] sm:$0xf0]  ;;  %v10802_v29 = vor.u32 %v12630_v39, %v10799_v43  ;;  %v12622_v11 = vld [vmem:[#allocation6 + $0xdc] sm:$0xf] }
 0x547   :  { %v12690_v61 = vld [vmem:[#allocation6 + $0x2f4] sm:$0xf0]  ;;  %v10767_v58 = vld [vmem:[#allocation6 + $0xf8] sm:$0xf0] }
 0x548   :  { %v12610_v1 = vld [vmem:[#allocation6 + $0x74] sm:$0xf0]  ;;  %v12598_v39 = vld [vmem:[#allocation6 + $0x1c] sm:$0xf] }
 0x549   :  { %6283 = vmatpush.bf16.msra.mxu0 %v10726_v10  ;;  %6296 = vmatpush.bf16.msra.mxu1 %v10982_v0  ;;  %v10862_v10 = vor.u32 %v12650_v57, %v10861_v18  ;;  %v11118_v0 = vor.u32 %v12714_v33, %v11117_v2  ;;  %v10733_v18 = vld [vmem:[#allocation6 + $0x98] sm:$0xf]  ;;  %v10671_v43 = vld [vmem:[#allocation6 + $0x38] sm:$0xf0] }
 0x54a   :  { %6309 = vmatpush.bf16.msra.mxu2 %v10730_v13  ;;  %6322 = vmatpush.bf16.msra.mxu3 %v10986_v48  ;;  %v10866_v13 = vor.u32 %v12646_v35, %v10863_v5  ;;  %v11122_v48 = vor.u32 %v12710_v41, %v11119_v6  ;;  %v12618_v57 = vld [vmem:[#allocation6 + $0xb4] sm:$0xf0]  ;;  %v12614_v35 = vld [vmem:[#allocation6 + $0x9c] sm:$0xf] }
 0x54b   :  { %v10989_v2 = vld [vmem:[#allocation6 + $0x298] sm:$0xf]  ;;  %v10735_v5 = vld [vmem:[#allocation6 + $0xb8] sm:$0xf0] }
 0x54c   :  { %v12682_v33 = vld [vmem:[#allocation6 + $0x2b4] sm:$0xf0]  ;;  %v12678_v41 = vld [vmem:[#allocation6 + $0x29c] sm:$0xf] }
 0x54d   :  { %6284 = vmatpush.bf16.msra.mxu0 %v10694_v24  ;;  %6297 = vmatpush.bf16.msra.mxu1 %v10950_v30  ;;  %v11086_v24 = vor.u32 %v12706_v44, %v11085_v3  ;;  %v10797_v30 = vld [vmem:[#allocation6 + $0x118] sm:$0xf]  ;;  %v10991_v6 = vld [vmem:[#allocation6 + $0x2b8] sm:$0xf0] }
 0x54e   :  { %6310 = vmatpush.bf16.msra.mxu2 %v10698_v36  ;;  %6323 = vmatpush.bf16.msra.mxu3 %v10954_v38  ;;  %v11053_v36 = vld [vmem:[#allocation6 + $0x318] sm:$0xf]  ;;  %v10798_v62 = vor.u32 %v12634_v52, %v10797_v30 }
 0x54f   :  { %v12698_v38 = vld [vmem:[#allocation6 + $0x334] sm:$0xf0] }
 0x550   :  { %v11054_v45 = vor.u32 %v12698_v38, %v11053_v36  ;;  %v10957_v3 = vld [vmem:[#allocation6 + $0x258] sm:$0xf] }
 0x551   :  { %6285 = vmatpush.bf16.msra.mxu0 %v10662_v47  ;;  %6298 = vmatpush.bf16.msra.mxu1 %v10918_v50  ;;  %v11058_v47 = vor.u32 %v12694_v60, %v11055_v4  ;;  %v11021_v50 = vld [vmem:[#allocation6 + $0x2d8] sm:$0xf]  ;;  %v12662_v60 = vld [vmem:[#allocation6 + $0x21c] sm:$0xf] }
 0x552   :  { %6311 = vmatpush.bf16.msra.mxu2 %v10666_v14  ;;  %6324 = vmatpush.bf16.msra.mxu3 %v10922_v53  ;;  %v12686_v14 = vld [vmem:[#allocation6 + $0x2dc] sm:$0xf]  ;;  %v12674_v44 = vld [vmem:[#allocation6 + $0x274] sm:$0xf0] }
 0x553   :  { %v11023_v53 = vld [vmem:[#allocation6 + $0x2f8] sm:$0xf0]  ;;  %v10669_v30 = vld [vmem:[#allocation6 + $0x18] sm:$0xf] }
 0x554   :  { %6286 = vmatmul.bf16.vlgmr.msra.gmra.mxu0 %v13579_v51  ;;  %6299 = vmatmul.bf16.vlgmr.msra.gmra.mxu1 %v13581_v54  ;;  %v12602_v52 = vld [vmem:[#allocation6 + $0x34] sm:$0xf0]  ;;  %v10927_v4 = vld [vmem:[#allocation6 + $0x238] sm:$0xf0] }
 0x555   :  { %6330 = vmatpush.bf16.msrb.mxu0 %v10894_v31  ;;  %6343 = vmatpush.bf16.msrb.mxu1 %v11150_v55  ;;  %v10766_v31 = vor.u32 %v12626_v28, %v10765_v46  ;;  %v11022_v55 = vor.u32 %v12690_v61, %v11021_v50  ;;  %v10925_v36 = vld [vmem:[#allocation6 + $0x218] sm:$0xf]  ;;  %v10674_v46 = vor.u32 %v12598_v39, %v10671_v43  ;;  %v11317_v43 = vld [vmem:[#allocation6 + $0x140] sm:$0xf] }
 0x556   :  { %6356 = vmatpush.bf16.msrb.mxu2 %v10898_v59  ;;  %6369 = vmatpush.bf16.msrb.mxu3 %v11154_v63  ;;  %v10770_v59 = vor.u32 %v12622_v11, %v10767_v58  ;;  %v11026_v63 = vor.u32 %v12686_v14, %v11023_v53  ;;  %v12666_v38 = vld [vmem:[#allocation6 + $0x234] sm:$0xf0]  ;;  %v10930_v28 = vor.u32 %v12662_v60, %v10927_v4  ;;  %v12767_v60 = vld [vmem:[#allocation6 + $0x15c] sm:$0xf0] }
 0x557   :  { %6312 = vmatmul.bf16.vlgmr.msra.gmra.mxu2 %v13579_v51  ;;  %6325 = vmatmul.bf16.vlgmr.msra.gmra.mxu3 %v13581_v54  ;;  %v11573_v4 = vld [vmem:[#allocation6 + $0x340] sm:$0xf] }
 0x559   :  { %6331 = vmatpush.bf16.msrb.mxu0 %v10862_v10  ;;  %6344 = vmatpush.bf16.msrb.mxu1 %v11118_v0  ;;  %v10734_v10 = vor.u32 %v12618_v57, %v10733_v18  ;;  %v10990_v0 = vor.u32 %v12682_v33, %v10989_v2  ;;  %v11381_v57 = vld [vmem:[#allocation6 + $0x1c0] sm:$0xf] }
 0x55a   :  { %6357 = vmatpush.bf16.msrb.mxu2 %v10866_v13  ;;  %6370 = vmatpush.bf16.msrb.mxu3 %v11122_v48  ;;  %v10738_v13 = vor.u32 %v12614_v35, %v10735_v5  ;;  %v10994_v48 = vor.u32 %v12678_v41, %v10991_v6  ;;  %v12847_v33 = vld [vmem:[#allocation6 + $0x3dc] sm:$0xf0]  ;;  %v11383_v5 = vld [vmem:[#allocation6 + $0x1e0] sm:$0xf0] }
 0x55b   :  { %v12843_v41 = vld [vmem:[#allocation6 + $0x3c4] sm:$0xf] }
 0x55c   :  { %v11639_v6 = vld [vmem:[#allocation6 + $0x3e0] sm:$0xf0] }
 0x55d   :  { %6332 = vmatpush.bf16.msrb.mxu0 %v10830_v7  ;;  %6345 = vmatpush.bf16.msrb.mxu1 %v11086_v24  ;;  %v10702_v7 = vor.u32 %v12610_v1, %v10701_v12  ;;  %v10958_v24 = vor.u32 %v12674_v44, %v10957_v3  ;;  %v11605_v3 = vld [vmem:[#allocation6 + $0x380] sm:$0xf] }
 0x55e   :  { %6358 = vmatpush.bf16.msrb.mxu2 %v10834_v15  ;;  %6371 = vmatpush.bf16.msrb.mxu3 %v11090_v17  ;;  %v10706_v15 = vor.u32 %v12606_v16, %v10703_v21  ;;  %v10962_v17 = vor.u32 %v12670_v22, %v10959_v23  ;;  %v12839_v22 = vld [vmem:[#allocation6 + $0x39c] sm:$0xf0]  ;;  %v12771_v23 = vld [vmem:[#allocation6 + $0x184] sm:$0xf] }
 0x561   :  { %6333 = vmatpush.bf16.msrb.mxu0 %v10798_v62  ;;  %6346 = vmatpush.bf16.msrb.mxu1 %v11054_v45  ;;  %v10670_v62 = vor.u32 %v12602_v52, %v10669_v30  ;;  %v10926_v45 = vor.u32 %v12666_v38, %v10925_v36  ;;  %v11351_v30 = vld [vmem:[#allocation6 + $0x1a0] sm:$0xf0] }
 0x562   :  { %6359 = vmatpush.bf16.msrb.mxu2 %v10802_v29  ;;  %6372 = vmatpush.bf16.msrb.mxu3 %v11058_v47  ;;  %v12835_v52 = vld [vmem:[#allocation6 + $0x384] sm:$0xf] }
 0x565   :  { %6334 = vmatpush.bf16.msrb.mxu0 %v10766_v31  ;;  %6347 = vmatpush.bf16.msrb.mxu1 %v11022_v55 }
 0x566   :  { %6360 = vmatpush.bf16.msrb.mxu2 %v10770_v59  ;;  %6373 = vmatpush.bf16.msrb.mxu3 %v11026_v63  ;;  %v12783_v59 = vld [vmem:[#allocation6 + $0x1dc] sm:$0xf0] }
 0x567   :  { %v11637_v63 = vld [vmem:[#allocation6 + $0x3c0] sm:$0xf] }
 0x568   :  { %v11638_v35 = vor.u32 %v12847_v33, %v11637_v63 }
 0x569   :  { %6335 = vmatpush.bf16.msrb.mxu0 %v10734_v10  ;;  %6348 = vmatpush.bf16.msrb.mxu1 %v10990_v0  ;;  %v11642_v0 = vor.u32 %v12843_v41, %v11639_v6  ;;  %v11287_v6 = vld [vmem:[#allocation6 + $0x120] sm:$0xf0] }
 0x56a   :  { %6361 = vmatpush.bf16.msrb.mxu2 %v10738_v13  ;;  %6374 = vmatpush.bf16.msrb.mxu3 %v10994_v48  ;;  %v11349_v13 = vld [vmem:[#allocation6 + $0x180] sm:$0xf] }
 0x56b   :  { %v12775_v48 = vld [vmem:[#allocation6 + $0x19c] sm:$0xf0] }
 0x56c   :  { %v11350_v21 = vor.u32 %v12775_v48, %v11349_v13 }
 0x56d   :  { %6336 = vmatpush.bf16.msrb.mxu0 %v10702_v7  ;;  %6349 = vmatpush.bf16.msrb.mxu1 %v10958_v24  ;;  %v11606_v24 = vor.u32 %v12839_v22, %v11605_v3 }
 0x56e   :  { %6362 = vmatpush.bf16.msrb.mxu2 %v10706_v15  ;;  %6375 = vmatpush.bf16.msrb.mxu3 %v10962_v17  ;;  %v11607_v15 = vld [vmem:[#allocation6 + $0x3a0] sm:$0xf0]  ;;  %v11354_v17 = vor.u32 %v12771_v23, %v11351_v30  ;;  %v12815_v30 = vld [vmem:[#allocation6 + $0x2dc] sm:$0xf0] }
 0x56f   :  { %v11610_v36 = vor.u32 %v12835_v52, %v11607_v15  ;;  %v12747_v52 = vld [vmem:[#allocation6 + $0xc4] sm:$0xf] }
 0x571   :  { %6337 = vmatpush.bf16.msrb.mxu0 %v10670_v62  ;;  %6350 = vmatpush.bf16.msrb.mxu1 %v10926_v45  ;;  %v11318_v45 = vor.u32 %v12767_v60, %v11317_v43 }
 0x572   :  { %6363 = vmatpush.bf16.msrb.mxu2 %v10674_v46  ;;  %6376 = vmatpush.bf16.msrb.mxu3 %v10930_v28  ;;  %v12831_v46 = vld [vmem:[#allocation6 + $0x35c] sm:$0xf0]  ;;  %v12763_v28 = vld [vmem:[#allocation6 + $0x144] sm:$0xf] }
 0x574   :  { %6338 = vmatmul.bf16.vlgmr.msrb.gmra.mxu0 %v13579_v51  ;;  %6351 = vmatmul.bf16.vlgmr.msrb.gmra.mxu1 %v13581_v54 }
 0x575   :  { %6364 = vmatmul.bf16.vlgmr.msrb.gmra.mxu2 %v13579_v51  ;;  %6377 = vmatmul.bf16.vlgmr.msrb.gmra.mxu3 %v13581_v54  ;;  %v11382_v51 = vor.u32 %v12783_v59, %v11381_v57  ;;  %v12779_v54 = vld [vmem:[#allocation6 + $0x1c4] sm:$0xf]  ;;  %v11285_v57 = vld [vmem:[#allocation6 + $0x100] sm:$0xf] }
 0x576   :  { %v11386_v10 = vor.u32 %v12779_v54, %v11383_v5  ;;  %7219 = vmatpush.bf16.msra.mxu1 %v11638_v35  ;;  %7245 = vmatpush.bf16.msra.mxu3 %v11642_v0  ;;  %v12759_v59 = vld [vmem:[#allocation6 + $0x11c] sm:$0xf0]  ;;  %v12755_v5 = vld [vmem:[#allocation6 + $0x104] sm:$0xf] }
 0x577   :  { %7206 = vmatpush.bf16.msra.mxu0 %v11382_v51  ;;  %v11286_v33 = vor.u32 %v12759_v59, %v11285_v57  ;;  %v11541_v54 = vld [vmem:[#allocation6 + $0x300] sm:$0xf]  ;;  %v11543_v0 = vld [vmem:[#allocation6 + $0x320] sm:$0xf0]  ;;  %v11290_v13 = vor.u32 %v12755_v5, %v11287_v6 }
 0x578   :  { %7232 = vmatpush.bf16.msra.mxu2 %v11386_v10  ;;  %v12823_v35 = vld [vmem:[#allocation6 + $0x31c] sm:$0xf0]  ;;  %v12819_v10 = vld [vmem:[#allocation6 + $0x304] sm:$0xf] }
 0x579   :  { %v11542_v41 = vor.u32 %v12823_v35, %v11541_v54  ;;  %v11546_v48 = vor.u32 %v12819_v10, %v11543_v0  ;;  %v12735_v57 = vld [vmem:[#allocation6 + $0x5c] sm:$0xf0]  ;;  %v11191_v54 = vld [vmem:[#allocation6 + $0x60] sm:$0xf0] }
 0x57a   :  { %7220 = vmatpush.bf16.msra.mxu1 %v11606_v24  ;;  %7246 = vmatpush.bf16.msra.mxu3 %v11610_v36  ;;  %v12811_v36 = vld [vmem:[#allocation6 + $0x2c4] sm:$0xf]  ;;  %v11445_v59 = vld [vmem:[#allocation6 + $0x240] sm:$0xf] }
 0x57b   :  { %7207 = vmatpush.bf16.msra.mxu0 %v11350_v21  ;;  %v11509_v21 = vld [vmem:[#allocation6 + $0x2c0] sm:$0xf]  ;;  %v12795_v6 = vld [vmem:[#allocation6 + $0x244] sm:$0xf] }
 0x57c   :  { %7233 = vmatpush.bf16.msra.mxu2 %v11354_v17  ;;  %v11510_v15 = vor.u32 %v12815_v30, %v11509_v21  ;;  %v11255_v17 = vld [vmem:[#allocation6 + $0xe0] sm:$0xf0]  ;;  %v12791_v21 = vld [vmem:[#allocation6 + $0x21c] sm:$0xf0] }
 0x57d   :  { %v11258_v43 = vor.u32 %v12747_v52, %v11255_v17  ;;  %v11447_v10 = vld [vmem:[#allocation6 + $0x260] sm:$0xf0] }
 0x57e   :  { %v12787_v17 = vld [vmem:[#allocation6 + $0x204] sm:$0xf] }
 0x57f   :  { %7208 = vmatpush.bf16.msra.mxu0 %v11318_v45  ;;  %v12743_v45 = vld [vmem:[#allocation6 + $0x9c] sm:$0xf0] }
 0x583   :  { %7209 = vmatpush.bf16.msra.mxu0 %v11286_v33  ;;  %v12731_v33 = vld [vmem:[#allocation6 + $0x44] sm:$0xf] }
 0x5b0   :  { %v6183_v29 = vpop.f32.mrf.mxu0  ;;  %v6196_v47 = vpop.f32.mrf.mxu1 }
 0x5b1   :  { %v6197_v50 = vadd.f32 %v6196_v47, %v6183_v29  ;;  %v11319_v29 = vld [vmem:[#allocation6 + $0x160] sm:$0xf0] }
 0x5b3   :  { %v6382_v61 = vadd.f32 %v6197_v50, %v13314_v34  ;;  %v11574_v50 = vor.u32 %v12831_v46, %v11573_v4  ;;  %v11477_v46 = vld [vmem:[#allocation6 + $0x280] sm:$0xf] }
 0x5b5   :  { %v6386_v55 = vmul.f32 0.5, %v6382_v61  ;;  %v11322_v61 = vor.u32 %v12763_v28, %v11319_v29  ;;  %7221 = vmatpush.bf16.msra.mxu1 %v11574_v50  ;;  %v12807_v29 = vld [vmem:[#allocation6 + $0x29c] sm:$0xf0]  ;;  %v11223_v50 = vld [vmem:[#allocation6 + $0xa0] sm:$0xf0] }
 0x5b7   :  { %v6209_v11 = vpop.f32.mrf.mxu2  ;;  %v6222_v58 = vpop.f32.mrf.mxu3  ;;  %13044 = vtanh.f32 %v6386_v55  ;;  %7234 = vmatpush.bf16.msra.mxu2 %v11322_v61  ;;  %v11478_v61 = vor.u32 %v12807_v29, %v11477_v46 }
 0x5b8   :  { %v6223_v14 = vadd.f32 %v6222_v58, %v6209_v11  ;;  %v6185_v53 = vpop.f32.mrf.mxu0  ;;  %v6198_v31 = vpop.f32.mrf.mxu1  ;;  %v12827_v11 = vld [vmem:[#allocation6 + $0x344] sm:$0xf] }
 0x5b9   :  { %v11575_v58 = vld [vmem:[#allocation6 + $0x360] sm:$0xf0]  ;;  %7222 = vmatpush.bf16.msra.mxu1 %v11542_v41  ;;  %v11194_v41 = vor.u32 %v12731_v33, %v11191_v54  ;;  %v12840_v54 = vld [vmem:[#allocation6 + $0x3a4] sm:$0xf0] }
 0x5ba   :  { %v6383_v18 = vadd.f32 %v6223_v14, %v13318_v37  ;;  %v11578_v53 = vor.u32 %v12827_v11, %v11575_v58  ;;  %v12803_v58 = vld [vmem:[#allocation6 + $0x284] sm:$0xf] }
 0x5bb   :  { %7235 = vmatpush.bf16.msra.mxu2 %v11290_v13 }
 0x5bc   :  { %v6390_v2 = vmul.f32 0.5, %v6383_v18  ;;  %7247 = vmatpush.bf16.msra.mxu3 %v11578_v53 }
 0x5bd   :  { %v13045_v38 = vpop.eup %13044  ;;  %7223 = vmatpush.bf16.msra.mxu1 %v11510_v15  ;;  %v11159_v15 = vld [vmem:[#allocation6 + $0x20] sm:$0xf0] }
 0x5be   :  { %13046 = vtanh.f32 %v6390_v2  ;;  %v6388_v14 = vmul.f32 0.5, %v13045_v38  ;;  %v11511_v38 = vld [vmem:[#allocation6 + $0x2e0] sm:$0xf0] }
 0x5bf   :  { %v6211_v12 = vpop.f32.mrf.mxu2  ;;  %v6224_v1 = vpop.f32.mrf.mxu3  ;;  %v11514_v60 = vor.u32 %v12811_v36, %v11511_v38  ;;  %7236 = vmatpush.bf16.msra.mxu2 %v11258_v43  ;;  %v11415_v36 = vld [vmem:[#allocation6 + $0x220] sm:$0xf0] }
 0x5c0   :  { %v6235_v44 = vpop.f32.mrf.mxu0  ;;  %v6248_v16 = vpop.f32.mrf.mxu1  ;;  %v6389_v12 = vadd.f32 0.5, %v6388_v14  ;;  %7248 = vmatpush.bf16.msra.mxu3 %v11546_v48  ;;  %v11479_v14 = vld [vmem:[#allocation6 + $0x2a0] sm:$0xf0]  ;;  %v11157_v48 = vld [vmem:[#allocation6] sm:$0xf] }
 0x5c1   :  { %v6249_v7 = vadd.f32 %v6248_v16, %v6235_v44  ;;  %v11253_v44 = vld [vmem:[#allocation6 + $0xc0] sm:$0xf]  ;;  %7224 = vmatpush.bf16.msra.mxu1 %v11478_v61  ;;  %v11391_v61 = vld [vmem:[#allocation6 + $0x1e8] sm:$0xf0] }
 0x5c2   :  { %v12751_v16 = vld [vmem:[#allocation6 + $0xdc] sm:$0xf0] }
 0x5c3   :  { %v6384_v39 = vadd.f32 %v6249_v7, %v13322_v56  ;;  %v11254_v24 = vor.u32 %v12751_v16, %v11253_v44  ;;  %v11413_v16 = vld [vmem:[#allocation6 + $0x200] sm:$0xf] }
 0x5c4   :  { %v13047_v62 = vpop.eup %13046  ;;  %7249 = vmatpush.bf16.msra.mxu3 %v11514_v60  ;;  %v11414_v52 = vor.u32 %v12791_v21, %v11413_v16 }
 0x5c5   :  { %v6392_v47 = vmul.f32 0.5, %v13047_v62  ;;  %13048 = vtanh.f32 %v6384_v39  ;;  %7210 = vmatpush.bf16.msra.mxu0 %v11254_v24 }
 0x5c7   :  { %v6393_v31 = vadd.f32 0.5, %v6392_v47  ;;  %v6261_v55 = vpop.f32.mrf.mxu2  ;;  %v6274_v18 = vpop.f32.mrf.mxu3  ;;  %v12739_v47 = vld [vmem:[#allocation6 + $0x84] sm:$0xf] }
 0x5c8   :  { %v6275_v63 = vadd.f32 %v6274_v18, %v6261_v55  ;;  %v6237_v2 = vpop.f32.mrf.mxu0  ;;  %v6250_v51 = vpop.f32.mrf.mxu1  ;;  %v11226_v11 = vor.u32 %v12739_v47, %v11223_v50  ;;  %v11482_v55 = vor.u32 %v12803_v58, %v11479_v14  ;;  %v11189_v18 = vld [vmem:[#allocation6 + $0x40] sm:$0xf]  ;;  %v12848_v47 = vld [vmem:[#allocation6 + $0x3e4] sm:$0xf0]  ;;  %v12780_v50 = vld [vmem:[#allocation6 + $0x1cc] sm:$0xf] }
 0x5c9   :  { %v6399_v22 = vmul.f32 %v6393_v31, %v13552_v49  ;;  %v11221_v49 = vld [vmem:[#allocation6 + $0x80] sm:$0xf]  ;;  %v11190_v2 = vor.u32 %v12735_v57, %v11189_v18  ;;  %v11394_v58 = vor.u32 %v12780_v50, %v11391_v61  ;;  %v12844_v14 = vld [vmem:[#allocation6 + $0x3cc] sm:$0xf]  ;;  %v11357_v18 = vld [vmem:[#allocation6 + $0x188] sm:$0xf] }
 0x5ca   :  { %v6385_v1 = vadd.f32 %v6275_v63, %v13326_v40  ;;  %v11222_v28 = vor.u32 %v12743_v45, %v11221_v49  ;;  %7237 = vmatpush.bf16.msra.mxu2 %v11226_v11  ;;  %7250 = vmatpush.bf16.msra.mxu3 %v11482_v55  ;;  %v12799_v51 = vld [vmem:[#allocation6 + $0x25c] sm:$0xf0]  ;;  %v12784_v49 = vld [vmem:[#allocation6 + $0x1e4] sm:$0xf0]  ;;  %v11647_v55 = vld [vmem:[#allocation6 + $0x3e8] sm:$0xf0] }
 0x5cb   :  { %v13049_v3 = vpop.eup %13048  ;;  %v11446_v5 = vor.u32 %v12799_v51, %v11445_v59  ;;  %v11645_v45 = vld [vmem:[#allocation6 + $0x3c8] sm:$0xf]  ;;  %v12820_v50 = vld [vmem:[#allocation6 + $0x30c] sm:$0xf] }
 0x5cc   :  { %v6400_v23 = vmul.f32 %v13049_v3, %v6389_v12  ;;  %v6395_v7 = vmul.f32 0.5, %v6385_v1  ;;  %7211 = vmatpush.bf16.msra.mxu0 %v11222_v28  ;;  %v13611_v12 = vpop.permute.xlu0 %112  ;;  %v11450_v1 = vor.u32 %v12795_v6, %v11447_v10  ;;  %v12727_v3 = vld [vmem:[#allocation6 + $0x1c] sm:$0xf0]  ;;  %v11646_v11 = vor.u32 %v12848_v47, %v11645_v45  ;;  %v11613_v51 = vld [vmem:[#allocation6 + $0x388] sm:$0xf] }
 0x5cd   :  { %7225 = vmatpush.bf16.msra.mxu1 %v11446_v5  ;;  %v11158_v44 = vor.u32 %v12727_v3, %v11157_v48  ;;  %v153_v57 = vmul.f32 %v13264_v8, %v13611_v12  ;;  %v11614_v6 = vor.u32 %v12840_v54, %v11613_v51  ;;  %v11359_v10 = vld [vmem:[#allocation6 + $0x1a8] sm:$0xf0]  ;;  %v11325_v3 = vld [vmem:[#allocation6 + $0x148] sm:$0xf] }
 0x5ce   :  { %v13604_v39 = vadd.f32 %v6400_v23, %v6399_v22  ;;  %13050 = vtanh.f32 %v6395_v7  ;;  %7238 = vmatpush.bf16.msra.mxu2 %v11194_v41  ;;  %7251 = vmatpush.bf16.msra.mxu3 %v11450_v1  ;;  %v12723_v22 = vld [vmem:[#allocation6 + $0x4] sm:$0xf]  ;;  %v154_v23 = vmul.f32 %v13266_v9, %v13611_v12  ;;  %v11615_v1 = vld [vmem:[#allocation6 + $0x3a8] sm:$0xf0]  ;;  %v12824_v45 = vld [vmem:[#allocation6 + $0x324] sm:$0xf0] }
 0x5cf   :  { %v6263_v4 = vpop.f32.mrf.mxu2  ;;  %v6276_v62 = vpop.f32.mrf.mxu3  ;;  %v11162_v60 = vor.u32 %v12723_v22, %v11159_v15  ;;  %v195_v16 = vadd.f32 %v13272_v25, %v153_v57  ;;  %v11551_v61 = vld [vmem:[#allocation6 + $0x328] sm:$0xf0] }
 0x5d0   :  { %13052 = vtanh.f32 %v13604_v39  ;;  %7212 = vmatpush.bf16.msra.mxu0 %v11190_v2  ;;  %v11418_v4 = vor.u32 %v12787_v17, %v11415_v36  ;;  %v11389_v62 = vld [vmem:[#allocation6 + $0x1c8] sm:$0xf]  ;;  %v196_v59 = vadd.f32 %v13274_v26, %v154_v23  ;;  %v11263_v51 = vld [vmem:[#allocation6 + $0xe8] sm:$0xf0] }
 0x5d1   :  { %v13607_v53 = vpop.f32.mrf.mxu0  ;;  %v13609_v31 = vpop.f32.mrf.mxu1  ;;  %7226 = vmatpush.bf16.msra.mxu1 %v11414_v52  ;;  %v11390_v29 = vor.u32 %v12784_v49, %v11389_v62  ;;  %v12776_v2 = vld [vmem:[#allocation6 + $0x1a4] sm:$0xf0]  ;;  %v12828_v52 = vld [vmem:[#allocation6 + $0x34c] sm:$0xf] }
 0x5d2   :  { %7239 = vmatpush.bf16.msra.mxu2 %v11162_v60  ;;  %7252 = vmatpush.bf16.msra.mxu3 %v11418_v4  ;;  %v11358_v33 = vor.u32 %v12776_v2, %v11357_v18  ;;  %v6301_v5 = vadd.f32 %v13609_v31, %v13607_v53  ;;  %v11327_v31 = vld [vmem:[#allocation6 + $0x168] sm:$0xf0]  ;;  %v11293_v60 = vld [vmem:[#allocation6 + $0x108] sm:$0xf] }
 0x5d3   :  { %v12760_v4 = vld [vmem:[#allocation6 + $0x124] sm:$0xf0]  ;;  %v11519_v54 = vld [vmem:[#allocation6 + $0x2e8] sm:$0xf0] }
 0x5d4   :  { %v13051_v63 = vpop.eup %13050  ;;  %7213 = vmatpush.bf16.msra.mxu0 %v11158_v44  ;;  %v12768_v44 = vld [vmem:[#allocation6 + $0x164] sm:$0xf0]  ;;  %v6406_v15 = vadd.f32 %v6301_v5, %v195_v16  ;;  %v11294_v49 = vor.u32 %v12760_v4, %v11293_v60  ;;  %v12796_v60 = vld [vmem:[#allocation6 + $0x24c] sm:$0xf] }
 0x5d5   :  { %v6397_v35 = vmul.f32 0.5, %v13051_v63  ;;  %v11650_v63 = vor.u32 %v12844_v14, %v11647_v55  ;;  %7271 = vmatpush.bf16.msrb.mxu1 %v11646_v11  ;;  %v11326_v23 = vor.u32 %v12768_v44, %v11325_v3  ;;  %v11549_v62 = vld [vmem:[#allocation6 + $0x308] sm:$0xf]  ;;  %v11231_v3 = vld [vmem:[#allocation6 + $0xa8] sm:$0xf0] }
 0x5d6   :  { %v13053_v0 = vpop.eup %13052  ;;  %7284 = vmatpush.bf16.msrb.mxu2 %v11394_v58  ;;  %v6410_v11 = vmul.f32 0.5, %v6406_v15  ;;  %v11554_v58 = vor.u32 %v12820_v50, %v11551_v61  ;;  %v11261_v14 = vld [vmem:[#allocation6 + $0xc8] sm:$0xf] }
 0x5d7   :  { %v6398_v13 = vadd.f32 0.5, %v6397_v35  ;;  %v12772_v35 = vld [vmem:[#allocation6 + $0x18c] sm:$0xf]  ;;  %7297 = vmatpush.bf16.msrb.mxu3 %v11650_v63  ;;  %v12752_v55 = vld [vmem:[#allocation6 + $0xe4] sm:$0xf0] }
 0x5d8   :  { %7258 = vmatpush.bf16.msrb.mxu0 %v11390_v29  ;;  %v11550_v29 = vor.u32 %v12824_v45, %v11549_v62  ;;  %v11517_v18 = vld [vmem:[#allocation6 + $0x2c8] sm:$0xf]  ;;  %v11262_v57 = vor.u32 %v12752_v55, %v11261_v14  ;;  %v12748_v63 = vld [vmem:[#allocation6 + $0xcc] sm:$0xf] }
 0x5d9   :  { %v6403_v7 = vmul.f32 %v13053_v0, %v6398_v13  ;;  %v6289_v38 = vpop.f32.mrf.mxu0  ;;  %v6302_v43 = vpop.f32.mrf.mxu1  ;;  %v12836_v0 = vld [vmem:[#allocation6 + $0x38c] sm:$0xf]  ;;  %v11362_v13 = vor.u32 %v12772_v35, %v11359_v10  ;;  %7272 = vmatpush.bf16.msrb.mxu1 %v11614_v6  ;;  %v11266_v35 = vor.u32 %v12748_v63, %v11263_v51  ;;  %v11229_v6 = vld [vmem:[#allocation6 + $0x88] sm:$0xf] }
 0x5da   :  { %v6313_v24 = vpop.f32.mrf.mxu2  ;;  %v6326_v30 = vpop.f32.mrf.mxu3  ;;  %v11618_v48 = vor.u32 %v12836_v0, %v11615_v1  ;;  %v11583_v38 = vld [vmem:[#allocation6 + $0x368] sm:$0xf0]  ;;  %v12744_v10 = vld [vmem:[#allocation6 + $0xa4] sm:$0xf0] }
 0x5db   :  { %v6404_v46 = vpack.c.bf16 %v6403_v7, %v6403_v7  ;;  %v6327_v28 = vadd.f32 %v6326_v30, %v6313_v24  ;;  %v11581_v7 = vld [vmem:[#allocation6 + $0x348] sm:$0xf]  ;;  %v12764_v30 = vld [vmem:[#allocation6 + $0x14c] sm:$0xf]  ;;  %7285 = vmatpush.bf16.msrb.mxu2 %v11362_v13  ;;  %v11586_v43 = vor.u32 %v12828_v52, %v11583_v38  ;;  %v11230_v1 = vor.u32 %v12744_v10, %v11229_v6 }
 0x5dc   :  { %7259 = vmatpush.bf16.msrb.mxu0 %v11358_v33  ;;  %v12832_v24 = vld [vmem:[#allocation6 + $0x364] sm:$0xf0]  ;;  %7298 = vmatpush.bf16.msrb.mxu3 %v11618_v48  ;;  %v11330_v36 = vor.u32 %v12764_v30, %v11327_v31  ;;  %v12812_v33 = vld [vmem:[#allocation6 + $0x2cc] sm:$0xf] }
 0x5dd   :  { %6405 = vst [vmem:[#allocation2 + $0x4] sm:$0xf] %v6404_v46  ;;  %v6407_v41 = vadd.f32 %v6327_v28, %v196_v59  ;;  %v11582_v53 = vor.u32 %v12832_v24, %v11581_v7  ;;  %v12756_v46 = vld [vmem:[#allocation6 + $0x10c] sm:$0xf]  ;;  %v12816_v59 = vld [vmem:[#allocation6 + $0x2e4] sm:$0xf0]  ;;  %v11522_v5 = vor.u32 %v12812_v33, %v11519_v54 }
 0x5de   :  { %v11295_v28 = vld [vmem:[#allocation6 + $0x128] sm:$0xf0]  ;;  %v11518_v2 = vor.u32 %v12816_v59, %v11517_v18  ;;  %v11485_v0 = vld [vmem:[#allocation6 + $0x288] sm:$0xf] }
 0x5df   :  { %v6414_v17 = vmul.f32 0.5, %v6407_v41  ;;  %7273 = vmatpush.bf16.msrb.mxu1 %v11582_v53  ;;  %7286 = vmatpush.bf16.msrb.mxu2 %v11330_v36  ;;  %v11298_v47 = vor.u32 %v12756_v46, %v11295_v28  ;;  %v155_v41 = vmul.f32 %v13268_v19, %v13611_v12  ;;  %v12808_v13 = vld [vmem:[#allocation6 + $0x2a4] sm:$0xf0]  ;;  %v12740_v48 = vld [vmem:[#allocation6 + $0x8c] sm:$0xf] }
 0x5e0   :  { %7260 = vmatpush.bf16.msrb.mxu0 %v11326_v23  ;;  %7299 = vmatpush.bf16.msrb.mxu3 %v11586_v43  ;;  %v11486_v16 = vor.u32 %v12808_v13, %v11485_v0  ;;  %v11487_v23 = vld [vmem:[#allocation6 + $0x2a8] sm:$0xf0]  ;;  %v11197_v7 = vld [vmem:[#allocation6 + $0x48] sm:$0xf] }
 0x5e1   :  { %13054 = vtanh.f32 %v6414_v17  ;;  %v12736_v31 = vld [vmem:[#allocation6 + $0x64] sm:$0xf0]  ;;  %v197_v17 = vadd.f32 %v13281_v42, %v155_v41  ;;  %v12732_v38 = vld [vmem:[#allocation6 + $0x4c] sm:$0xf] }
 0x5e2   :  { %v6315_v21 = vpop.f32.mrf.mxu2  ;;  %v6328_v22 = vpop.f32.mrf.mxu3  ;;  %13056 = vtanh.f32 %v6410_v11  ;;  %v11453_v52 = vld [vmem:[#allocation6 + $0x248] sm:$0xf]  ;;  %v11199_v43 = vld [vmem:[#allocation6 + $0x68] sm:$0xf0]  ;;  %v11198_v62 = vor.u32 %v12736_v31, %v11197_v7  ;;  %v156_v11 = vmul.f32 %v13270_v20, %v13611_v12 }
 0x5e3   :  { %7274 = vmatpush.bf16.msrb.mxu1 %v11550_v29  ;;  %7287 = vmatpush.bf16.msrb.mxu2 %v11298_v47  ;;  %v11234_v21 = vor.u32 %v12740_v48, %v11231_v3  ;;  %v12804_v22 = vld [vmem:[#allocation6 + $0x28c] sm:$0xf]  ;;  %v12800_v15 = vld [vmem:[#allocation6 + $0x264] sm:$0xf0]  ;;  %v11202_v29 = vor.u32 %v12732_v38, %v11199_v43  ;;  %v12849_v38 = vld [vmem:[#allocation6 + $0x3ec] sm:$0xf0] }
 0x5e4   :  { %7261 = vmatpush.bf16.msrb.mxu0 %v11294_v49  ;;  %7300 = vmatpush.bf16.msrb.mxu3 %v11554_v58  ;;  %v11490_v53 = vor.u32 %v12804_v22, %v11487_v23  ;;  %v11455_v49 = vld [vmem:[#allocation6 + $0x268] sm:$0xf0]  ;;  %v11454_v28 = vor.u32 %v12800_v15, %v11453_v52  ;;  %v11165_v47 = vld [vmem:[#allocation6 + $0x8] sm:$0xf]  ;;  %v198_v12 = vadd.f32 %v13276_v27, %v156_v11  ;;  %v11397_v15 = vld [vmem:[#allocation6 + $0x1d0] sm:$0xf] }
 0x5e5   :  { %v12728_v50 = vld [vmem:[#allocation6 + $0x24] sm:$0xf0]  ;;  %v11458_v58 = vor.u32 %v12796_v60, %v11455_v49  ;;  %v12724_v55 = vld [vmem:[#allocation6 + $0xc] sm:$0xf]  ;;  %v12781_v43 = vld [vmem:[#allocation6 + $0x1d4] sm:$0xf] }
 0x5e6   :  { %v11421_v61 = vld [vmem:[#allocation6 + $0x208] sm:$0xf]  ;;  %v11167_v18 = vld [vmem:[#allocation6 + $0x28] sm:$0xf0]  ;;  %v12845_v49 = vld [vmem:[#allocation6 + $0x3d4] sm:$0xf] }
 0x5e7   :  { %v13055_v44 = vpop.eup %13054  ;;  %7275 = vmatpush.bf16.msrb.mxu1 %v11518_v2  ;;  %7288 = vmatpush.bf16.msrb.mxu2 %v11266_v35  ;;  %v12792_v14 = vld [vmem:[#allocation6 + $0x224] sm:$0xf0]  ;;  %v11423_v59 = vld [vmem:[#allocation6 + $0x228] sm:$0xf0]  ;;  %v11166_v2 = vor.u32 %v12728_v50, %v11165_v47  ;;  %v11170_v35 = vor.u32 %v12724_v55, %v11167_v18  ;;  %v11365_v50 = vld [vmem:[#allocation6 + $0x190] sm:$0xf] }
 0x5e8   :  { %7262 = vmatpush.bf16.msrb.mxu0 %v11262_v57  ;;  %7301 = vmatpush.bf16.msrb.mxu3 %v11522_v5  ;;  %v6416_v4 = vmul.f32 0.5, %v13055_v44  ;;  %v13057_v45 = vpop.eup %13056  ;;  %v12788_v57 = vld [vmem:[#allocation6 + $0x20c] sm:$0xf]  ;;  %v11422_v54 = vor.u32 %v12792_v14, %v11421_v61  ;;  %v12777_v61 = vld [vmem:[#allocation6 + $0x1ac] sm:$0xf0] }
 0x5e9   :  { %v6412_v63 = vmul.f32 0.5, %v13057_v45  ;;  %v11426_v0 = vor.u32 %v12788_v57, %v11423_v59  ;;  %v11655_v45 = vld [vmem:[#allocation6 + $0x3f0] sm:$0xf0]  ;;  %v11621_v14 = vld [vmem:[#allocation6 + $0x390] sm:$0xf] }
 0x5ea   :  { %v6417_v5 = vadd.f32 0.5, %v6416_v4  ;;  %v12841_v55 = vld [vmem:[#allocation6 + $0x3ac] sm:$0xf0]  ;;  %v12773_v18 = vld [vmem:[#allocation6 + $0x194] sm:$0xf] }
 0x5eb   :  { %7276 = vmatpush.bf16.msrb.mxu1 %v11486_v16  ;;  %7289 = vmatpush.bf16.msrb.mxu2 %v11234_v21  ;;  %v11367_v57 = vld [vmem:[#allocation6 + $0x1b0] sm:$0xf0] }
 0x5ec   :  { %7263 = vmatpush.bf16.msrb.mxu0 %v11230_v1  ;;  %7302 = vmatpush.bf16.msrb.mxu3 %v11490_v53  ;;  %v6413_v1 = vadd.f32 0.5, %v6412_v63  ;;  %v6423_v3 = vmul.f32 %v6417_v5, %v13576_v32  ;;  %v11653_v32 = vld [vmem:[#allocation6 + $0x3d0] sm:$0xf]  ;;  %v12837_v59 = vld [vmem:[#allocation6 + $0x394] sm:$0xf] }
 0x5ed   :  { %v11654_v47 = vor.u32 %v12849_v38, %v11653_v32  ;;  %v11623_v63 = vld [vmem:[#allocation6 + $0x3b0] sm:$0xf0]  ;;  %v12753_v32 = vld [vmem:[#allocation6 + $0xec] sm:$0xf0] }
 0x5ee   :  { %v11626_v5 = vor.u32 %v12837_v59, %v11623_v63  ;;  %v12805_v59 = vld [vmem:[#allocation6 + $0x294] sm:$0xf] }
 0x5ef   :  { %7277 = vmatpush.bf16.msrb.mxu1 %v11454_v28  ;;  %7290 = vmatpush.bf16.msrb.mxu2 %v11202_v29  ;;  %v11495_v63 = vld [vmem:[#allocation6 + $0x2b0] sm:$0xf0] }
 0x5f0   :  { %7264 = vmatpush.bf16.msrb.mxu0 %v11198_v62  ;;  %7303 = vmatpush.bf16.msrb.mxu3 %v11458_v58  ;;  %v11399_v62 = vld [vmem:[#allocation6 + $0x1f0] sm:$0xf0]  ;;  %v11658_v58 = vor.u32 %v12845_v49, %v11655_v45 }
 0x5f1   :  { %v6339_v24 = vpop.f32.mrf.mxu0  ;;  %v6352_v30 = vpop.f32.mrf.mxu1  ;;  %v11402_v11 = vor.u32 %v12781_v43, %v11399_v62  ;;  %v11525_v43 = vld [vmem:[#allocation6 + $0x2d0] sm:$0xf]  ;;  %v11271_v62 = vld [vmem:[#allocation6 + $0xf0] sm:$0xf0] }
 0x5f2   :  { %v6353_v36 = vadd.f32 %v6352_v30, %v6339_v24  ;;  %v12813_v49 = vld [vmem:[#allocation6 + $0x2d4] sm:$0xf] }
 0x5f3   :  { %7278 = vmatpush.bf16.msrb.mxu1 %v11422_v54  ;;  %7291 = vmatpush.bf16.msrb.mxu2 %v11170_v35  ;;  %v12769_v54 = vld [vmem:[#allocation6 + $0x16c] sm:$0xf0]  ;;  %v11370_v35 = vor.u32 %v12773_v18, %v11367_v57  ;;  %v11527_v45 = vld [vmem:[#allocation6 + $0x2f0] sm:$0xf0] }
 0x5f4   :  { %v6408_v46 = vadd.f32 %v6353_v36, %v197_v17  ;;  %7265 = vmatpush.bf16.msrb.mxu0 %v11166_v2  ;;  %7304 = vmatpush.bf16.msrb.mxu3 %v11426_v0  ;;  %v12785_v17 = vld [vmem:[#allocation6 + $0x1ec] sm:$0xf0]  ;;  %v11366_v2 = vor.u32 %v12777_v61, %v11365_v50  ;;  %v12829_v0 = vld [vmem:[#allocation6 + $0x354] sm:$0xf] }
 0x5f5   :  { %v11398_v29 = vor.u32 %v12785_v17, %v11397_v15  ;;  %v11269_v17 = vld [vmem:[#allocation6 + $0xd0] sm:$0xf]  ;;  %v12741_v18 = vld [vmem:[#allocation6 + $0x94] sm:$0xf] }
 0x5f6   :  { %13058 = vtanh.f32 %v6408_v46  ;;  %v11237_v50 = vld [vmem:[#allocation6 + $0x90] sm:$0xf]  ;;  %v11239_v57 = vld [vmem:[#allocation6 + $0xb0] sm:$0xf0] }
 0x5f7   :  { %v12745_v61 = vld [vmem:[#allocation6 + $0xac] sm:$0xf0] }
 0x5f8   :  { %v6365_v51 = vpop.f32.mrf.mxu2  ;;  %v6378_v33 = vpop.f32.mrf.mxu3 }
 0x5f9   :  { %v6379_v41 = vadd.f32 %v6378_v33, %v6365_v51  ;;  %v6341_v6 = vpop.f32.mrf.mxu0  ;;  %v6354_v10 = vpop.f32.mrf.mxu1  ;;  %v11622_v51 = vor.u32 %v12841_v55, %v11621_v14  ;;  %v11333_v33 = vld [vmem:[#allocation6 + $0x150] sm:$0xf] }
 0x5fa   :  { %v12765_v6 = vld [vmem:[#allocation6 + $0x154] sm:$0xf]  ;;  %v11493_v14 = vld [vmem:[#allocation6 + $0x290] sm:$0xf] }
 0x5fb   :  { %v6409_v13 = vadd.f32 %v6379_v41, %v198_v12  ;;  %v11589_v12 = vld [vmem:[#allocation6 + $0x350] sm:$0xf]  ;;  %v11335_v10 = vld [vmem:[#allocation6 + $0x170] sm:$0xf0] }
 0x5fc   :  { %v13059_v48 = vpop.eup %13058  ;;  %v12833_v41 = vld [vmem:[#allocation6 + $0x36c] sm:$0xf0] }
 0x5fd   :  { %v6424_v44 = vmul.f32 %v13059_v48, %v6413_v1  ;;  %v6419_v16 = vmul.f32 0.5, %v6409_v13  ;;  %v11591_v1 = vld [vmem:[#allocation6 + $0x370] sm:$0xf0]  ;;  %v11334_v13 = vor.u32 %v12769_v54, %v11333_v33  ;;  %v11590_v48 = vor.u32 %v12833_v41, %v11589_v12  ;;  %v12809_v55 = vld [vmem:[#allocation6 + $0x2ac] sm:$0xf0] }
 0x5fe   :  { %v11205_v33 = vld [vmem:[#allocation6 + $0x50] sm:$0xf] }
 0x5ff   :  { %v13628_v21 = vadd.f32 %v6424_v44, %v6423_v3  ;;  %13060 = vtanh.f32 %v6419_v16  ;;  %v11301_v3 = vld [vmem:[#allocation6 + $0x110] sm:$0xf]  ;;  %v11338_v16 = vor.u32 %v12765_v6, %v11335_v10  ;;  %v12733_v6 = vld [vmem:[#allocation6 + $0x54] sm:$0xf] }
 0x600   :  { %v6367_v22 = vpop.f32.mrf.mxu2  ;;  %v6380_v23 = vpop.f32.mrf.mxu3  ;;  %v12761_v44 = vld [vmem:[#allocation6 + $0x12c] sm:$0xf0]  ;;  %v11207_v10 = vld [vmem:[#allocation6 + $0x70] sm:$0xf0] }
 0x601   :  { %13062 = vtanh.f32 %v13628_v21  ;;  %v11594_v22 = vor.u32 %v12829_v0, %v11591_v1  ;;  %v11557_v23 = vld [vmem:[#allocation6 + $0x310] sm:$0xf]  ;;  %v12797_v0 = vld [vmem:[#allocation6 + $0x254] sm:$0xf] }
 0x602   :  { %v12737_v54 = vld [vmem:[#allocation6 + $0x6c] sm:$0xf0]  ;;  %v11463_v1 = vld [vmem:[#allocation6 + $0x270] sm:$0xf0] }
 0x603   :  { %v11461_v12 = vld [vmem:[#allocation6 + $0x250] sm:$0xf] }
 0x604   :  { %v12801_v41 = vld [vmem:[#allocation6 + $0x26c] sm:$0xf0] }
 0x605   :  { %v13061_v7 = vpop.eup %13060 }
 0x606   :  { %v6421_v24 = vmul.f32 0.5, %v13061_v7  ;;  %v12825_v7 = vld [vmem:[#allocation6 + $0x32c] sm:$0xf0] }
 0x607   :  { %v13063_v30 = vpop.eup %13062  ;;  %v11558_v15 = vor.u32 %v12825_v7, %v11557_v23  ;;  %v11210_v23 = vor.u32 %v12733_v6, %v11207_v10  ;;  %v11466_v7 = vor.u32 %v12797_v0, %v11463_v1  ;;  %v12766_v6 = vld [vmem:[#allocation6 + $0x15c] sm:$0xf] }
 0x608   :  { %v6422_v53 = vadd.f32 0.5, %v6421_v24  ;;  %v12757_v24 = vld [vmem:[#allocation6 + $0x114] sm:$0xf]  ;;  %v11343_v10 = vld [vmem:[#allocation6 + $0x178] sm:$0xf0] }
 0x609   :  { %v12830_v0 = vld [vmem:[#allocation6 + $0x35c] sm:$0xf] }
 0x60a   :  { %v6427_v31 = vmul.f32 %v13063_v30, %v6422_v53  ;;  %v11303_v30 = vld [vmem:[#allocation6 + $0x130] sm:$0xf0]  ;;  %v11599_v1 = vld [vmem:[#allocation6 + $0x378] sm:$0xf0] }
 0x60b   :  { %v12821_v53 = vld [vmem:[#allocation6 + $0x314] sm:$0xf] }
 0x60c   :  { %v6428_v52 = vpack.c.bf16 %v6427_v31, %v6427_v31  ;;  %v11559_v31 = vld [vmem:[#allocation6 + $0x330] sm:$0xf0] }
 0x60d   :  { %v11562_v38 = vor.u32 %v12821_v53, %v11559_v31  ;;  %v12789_v53 = vld [vmem:[#allocation6 + $0x214] sm:$0xf] }
 0x60e   :  { %6429 = vst [vmem:[#allocation2] sm:$0xf] %v6428_v52  ;;  %v11302_v52 = vor.u32 %v12761_v44, %v11301_v3  ;;  %v11462_v3 = vor.u32 %v12801_v41, %v11461_v12  ;;  %v12729_v44 = vld [vmem:[#allocation6 + $0x2c] sm:$0xf0]  ;;  %v11431_v31 = vld [vmem:[#allocation6 + $0x230] sm:$0xf0] }
 0x60f   :  { %v11597_v12 = vld [vmem:[#allocation6 + $0x358] sm:$0xf] }
 0x610   :  { %v12834_v41 = vld [vmem:[#allocation6 + $0x374] sm:$0xf0] }
 0x615   :  { %v6430_v36 = vld [vmem:[#allocation2] sm:$0xff] }
 0x616   :  { %v6560_v60 = vunpack.c.l.b16 %v6430_v36  ;;  %v6561_v4 = vunpack.c.h.b16 %v6430_v36  ;;  %v11306_v36 = vor.u32 %v12757_v24, %v11303_v30  ;;  %v12725_v24 = vld [vmem:[#allocation6 + $0x14] sm:$0xf] }
 0x617   :  { %v11175_v30 = vld [vmem:[#allocation6 + $0x30] sm:$0xf0] }
 0x618   :  { %v13631_v46 = vpack.c.b16 %v6560_v60, %v6560_v60  ;;  %v13633_v28 = vpack.c.b16 %v6561_v4, %v6561_v4  ;;  %v12817_v60 = vld [vmem:[#allocation6 + $0x2ec] sm:$0xf0]  ;;  %v12749_v4 = vld [vmem:[#allocation6 + $0xd4] sm:$0xf] }
 0x61a   :  { %7214 = vmatmul.bf16.vlgmr.msra.gmra.mxu0 %v13631_v46  ;;  %7227 = vmatmul.bf16.vlgmr.msra.gmra.mxu1 %v13633_v28 }
 0x61b   :  { %7240 = vmatmul.bf16.vlgmr.msra.gmra.mxu2 %v13631_v46  ;;  %7253 = vmatmul.bf16.vlgmr.msra.gmra.mxu3 %v13633_v28 }
 0x61c   :  { %7310 = vmatpush.bf16.msra.mxu0 %v11398_v29  ;;  %7323 = vmatpush.bf16.msra.mxu1 %v11654_v47  ;;  %v11270_v29 = vor.u32 %v12753_v32, %v11269_v17  ;;  %v11526_v47 = vor.u32 %v12817_v60, %v11525_v43  ;;  %v11661_v17 = vld [vmem:[#allocation6 + $0x3d8] sm:$0xf]  ;;  %v11407_v60 = vld [vmem:[#allocation6 + $0x1f8] sm:$0xf0] }
 0x61d   :  { %7336 = vmatpush.bf16.msra.mxu2 %v11402_v11  ;;  %7349 = vmatpush.bf16.msra.mxu3 %v11658_v58  ;;  %v11274_v11 = vor.u32 %v12749_v4, %v11271_v62  ;;  %v11530_v58 = vor.u32 %v12813_v49, %v11527_v45  ;;  %v12850_v32 = vld [vmem:[#allocation6 + $0x3f4] sm:$0xf0]  ;;  %v12846_v4 = vld [vmem:[#allocation6 + $0x3dc] sm:$0xf]  ;;  %v11178_v49 = vor.u32 %v12725_v24, %v11175_v30 }
 0x61e   :  { %v11663_v62 = vld [vmem:[#allocation6 + $0x3f8] sm:$0xf0]  ;;  %v11434_v45 = vor.u32 %v12789_v53, %v11431_v31 }
 0x61f   :  { %v12758_v24 = vld [vmem:[#allocation6 + $0x11c] sm:$0xf] }
 0x620   :  { %7311 = vmatpush.bf16.msra.mxu0 %v11366_v2  ;;  %7324 = vmatpush.bf16.msra.mxu1 %v11622_v51  ;;  %v11238_v2 = vor.u32 %v12745_v61, %v11237_v50  ;;  %v11494_v51 = vor.u32 %v12809_v55, %v11493_v14  ;;  %v11373_v50 = vld [vmem:[#allocation6 + $0x198] sm:$0xf]  ;;  %v11311_v30 = vld [vmem:[#allocation6 + $0x138] sm:$0xf0] }
 0x621   :  { %7337 = vmatpush.bf16.msra.mxu2 %v11370_v35  ;;  %7350 = vmatpush.bf16.msra.mxu3 %v11626_v5  ;;  %v11242_v35 = vor.u32 %v12741_v18, %v11239_v57  ;;  %v11498_v5 = vor.u32 %v12805_v59, %v11495_v63  ;;  %v12778_v61 = vld [vmem:[#allocation6 + $0x1b4] sm:$0xf0]  ;;  %v12774_v18 = vld [vmem:[#allocation6 + $0x19c] sm:$0xf] }
 0x622   :  { %v11629_v14 = vld [vmem:[#allocation6 + $0x398] sm:$0xf]  ;;  %v11375_v57 = vld [vmem:[#allocation6 + $0x1b8] sm:$0xf0] }
 0x623   :  { %v12842_v55 = vld [vmem:[#allocation6 + $0x3b4] sm:$0xf0]  ;;  %v12838_v59 = vld [vmem:[#allocation6 + $0x39c] sm:$0xf] }
 0x624   :  { %7312 = vmatpush.bf16.msra.mxu0 %v11334_v13  ;;  %7325 = vmatpush.bf16.msra.mxu1 %v11590_v48  ;;  %v11173_v13 = vld [vmem:[#allocation6 + $0x10] sm:$0xf]  ;;  %v11206_v48 = vor.u32 %v12737_v54, %v11205_v33  ;;  %v11631_v63 = vld [vmem:[#allocation6 + $0x3b8] sm:$0xf0]  ;;  %v11341_v33 = vld [vmem:[#allocation6 + $0x158] sm:$0xf] }
 0x625   :  { %7338 = vmatpush.bf16.msra.mxu2 %v11338_v16  ;;  %7351 = vmatpush.bf16.msra.mxu3 %v11594_v22  ;;  %v11429_v16 = vld [vmem:[#allocation6 + $0x210] sm:$0xf]  ;;  %v12770_v54 = vld [vmem:[#allocation6 + $0x174] sm:$0xf0]  ;;  %v12822_v53 = vld [vmem:[#allocation6 + $0x31c] sm:$0xf] }
 0x626   :  { %v12793_v22 = vld [vmem:[#allocation6 + $0x22c] sm:$0xf0]  ;;  %v11567_v31 = vld [vmem:[#allocation6 + $0x338] sm:$0xf0] }
 0x627   :  { %v11430_v43 = vor.u32 %v12793_v22, %v11429_v16  ;;  %v11346_v16 = vor.u32 %v12766_v6, %v11343_v10  ;;  %v11602_v22 = vor.u32 %v12830_v0, %v11599_v1  ;;  %v12734_v6 = vld [vmem:[#allocation6 + $0x5c] sm:$0xf] }
 0x628   :  { %7313 = vmatpush.bf16.msra.mxu0 %v11302_v52  ;;  %7326 = vmatpush.bf16.msra.mxu1 %v11558_v15  ;;  %v11405_v52 = vld [vmem:[#allocation6 + $0x1d8] sm:$0xf]  ;;  %v11215_v10 = vld [vmem:[#allocation6 + $0x78] sm:$0xf0] }
 0x629   :  { %7339 = vmatpush.bf16.msra.mxu2 %v11306_v36  ;;  %7352 = vmatpush.bf16.msra.mxu3 %v11562_v38  ;;  %v12786_v15 = vld [vmem:[#allocation6 + $0x1f4] sm:$0xf0]  ;;  %v12782_v36 = vld [vmem:[#allocation6 + $0x1dc] sm:$0xf]  ;;  %v11174_v38 = vor.u32 %v12729_v44, %v11173_v13  ;;  %v11342_v13 = vor.u32 %v12770_v54, %v11341_v33 }
 0x62a   :  { %7266 = vmatmul.bf16.vlgmr.msrb.gmra.mxu0 %v13631_v46  ;;  %7279 = vmatmul.bf16.vlgmr.msrb.gmra.mxu1 %v13633_v28  ;;  %v12762_v44 = vld [vmem:[#allocation6 + $0x134] sm:$0xf0]  ;;  %v12798_v0 = vld [vmem:[#allocation6 + $0x25c] sm:$0xf] }
 0x62b   :  { %7292 = vmatmul.bf16.vlgmr.msrb.gmra.mxu2 %v13631_v46  ;;  %7305 = vmatmul.bf16.vlgmr.msrb.gmra.mxu3 %v13633_v28  ;;  %v11213_v33 = vld [vmem:[#allocation6 + $0x58] sm:$0xf]  ;;  %v11471_v1 = vld [vmem:[#allocation6 + $0x278] sm:$0xf0] }
 0x62c   :  { %7314 = vmatpush.bf16.msra.mxu0 %v11270_v29  ;;  %7327 = vmatpush.bf16.msra.mxu1 %v11526_v47  ;;  %v11406_v29 = vor.u32 %v12786_v15, %v11405_v52  ;;  %v11662_v47 = vor.u32 %v12850_v32, %v11661_v17  ;;  %v11277_v17 = vld [vmem:[#allocation6 + $0xd8] sm:$0xf] }
 0x62d   :  { %7340 = vmatpush.bf16.msra.mxu2 %v11274_v11  ;;  %7353 = vmatpush.bf16.msra.mxu3 %v11530_v58  ;;  %v11410_v11 = vor.u32 %v12782_v36, %v11407_v60  ;;  %v11666_v58 = vor.u32 %v12846_v4, %v11663_v62  ;;  %v12754_v32 = vld [vmem:[#allocation6 + $0xf4] sm:$0xf0]  ;;  %v11314_v36 = vor.u32 %v12758_v24, %v11311_v30  ;;  %v12750_v4 = vld [vmem:[#allocation6 + $0xdc] sm:$0xf] }
 0x62e   :  { %v12818_v60 = vld [vmem:[#allocation6 + $0x2f4] sm:$0xf0]  ;;  %v11279_v62 = vld [vmem:[#allocation6 + $0xf8] sm:$0xf0] }
 0x62f   :  { %v12738_v54 = vld [vmem:[#allocation6 + $0x74] sm:$0xf0]  ;;  %v12726_v24 = vld [vmem:[#allocation6 + $0x1c] sm:$0xf] }
 0x630   :  { %7315 = vmatpush.bf16.msra.mxu0 %v11238_v2  ;;  %7328 = vmatpush.bf16.msra.mxu1 %v11494_v51  ;;  %v11374_v2 = vor.u32 %v12778_v61, %v11373_v50  ;;  %v11630_v51 = vor.u32 %v12842_v55, %v11629_v14  ;;  %v11245_v50 = vld [vmem:[#allocation6 + $0x98] sm:$0xf]  ;;  %v11183_v30 = vld [vmem:[#allocation6 + $0x38] sm:$0xf0] }
 0x631   :  { %7341 = vmatpush.bf16.msra.mxu2 %v11242_v35  ;;  %7354 = vmatpush.bf16.msra.mxu3 %v11498_v5  ;;  %v11378_v35 = vor.u32 %v12774_v18, %v11375_v57  ;;  %v11634_v5 = vor.u32 %v12838_v59, %v11631_v63  ;;  %v12746_v61 = vld [vmem:[#allocation6 + $0xb4] sm:$0xf0]  ;;  %v12742_v18 = vld [vmem:[#allocation6 + $0x9c] sm:$0xf] }
 0x632   :  { %v11501_v14 = vld [vmem:[#allocation6 + $0x298] sm:$0xf]  ;;  %v11247_v57 = vld [vmem:[#allocation6 + $0xb8] sm:$0xf0] }
 0x633   :  { %v12810_v55 = vld [vmem:[#allocation6 + $0x2b4] sm:$0xf0]  ;;  %v12806_v59 = vld [vmem:[#allocation6 + $0x29c] sm:$0xf] }
 0x634   :  { %7316 = vmatpush.bf16.msra.mxu0 %v11206_v48  ;;  %7329 = vmatpush.bf16.msra.mxu1 %v11462_v3  ;;  %v11598_v48 = vor.u32 %v12834_v41, %v11597_v12  ;;  %v11309_v3 = vld [vmem:[#allocation6 + $0x118] sm:$0xf]  ;;  %v11503_v63 = vld [vmem:[#allocation6 + $0x2b8] sm:$0xf0] }
 0x635   :  { %7342 = vmatpush.bf16.msra.mxu2 %v11210_v23  ;;  %7355 = vmatpush.bf16.msra.mxu3 %v11466_v7  ;;  %v11565_v23 = vld [vmem:[#allocation6 + $0x318] sm:$0xf]  ;;  %v11310_v52 = vor.u32 %v12762_v44, %v11309_v3 }
 0x636   :  { %v12826_v7 = vld [vmem:[#allocation6 + $0x334] sm:$0xf0] }
 0x637   :  { %v11566_v15 = vor.u32 %v12826_v7, %v11565_v23  ;;  %v11469_v12 = vld [vmem:[#allocation6 + $0x258] sm:$0xf] }
 0x638   :  { %7317 = vmatpush.bf16.msra.mxu0 %v11174_v38  ;;  %7330 = vmatpush.bf16.msra.mxu1 %v11430_v43  ;;  %v11570_v38 = vor.u32 %v12822_v53, %v11567_v31  ;;  %v11533_v43 = vld [vmem:[#allocation6 + $0x2d8] sm:$0xf]  ;;  %v12790_v53 = vld [vmem:[#allocation6 + $0x21c] sm:$0xf] }
 0x639   :  { %7343 = vmatpush.bf16.msra.mxu2 %v11178_v49  ;;  %7356 = vmatpush.bf16.msra.mxu3 %v11434_v45  ;;  %v12814_v49 = vld [vmem:[#allocation6 + $0x2dc] sm:$0xf]  ;;  %v12802_v41 = vld [vmem:[#allocation6 + $0x274] sm:$0xf0] }
 0x63a   :  { %v11535_v45 = vld [vmem:[#allocation6 + $0x2f8] sm:$0xf0]  ;;  %v11181_v3 = vld [vmem:[#allocation6 + $0x18] sm:$0xf] }
 0x63b   :  { %7318 = vmatmul.bf16.vlgmr.msra.gmra.mxu0 %v13631_v46  ;;  %7331 = vmatmul.bf16.vlgmr.msra.gmra.mxu1 %v13633_v28  ;;  %v12730_v44 = vld [vmem:[#allocation6 + $0x34] sm:$0xf0]  ;;  %v11439_v31 = vld [vmem:[#allocation6 + $0x238] sm:$0xf0] }
 0x63c   :  { %7362 = vmatpush.bf16.msrb.mxu0 %v11406_v29  ;;  %7375 = vmatpush.bf16.msrb.mxu1 %v11662_v47  ;;  %v11278_v29 = vor.u32 %v12754_v32, %v11277_v17  ;;  %v11534_v47 = vor.u32 %v12818_v60, %v11533_v43  ;;  %v11437_v23 = vld [vmem:[#allocation6 + $0x218] sm:$0xf]  ;;  %v11186_v17 = vor.u32 %v12726_v24, %v11183_v30 }
 0x63d   :  { %7388 = vmatpush.bf16.msrb.mxu2 %v11410_v11  ;;  %7401 = vmatpush.bf16.msrb.mxu3 %v11666_v58  ;;  %v11282_v11 = vor.u32 %v12750_v4, %v11279_v62  ;;  %v11538_v58 = vor.u32 %v12814_v49, %v11535_v45  ;;  %v12794_v7 = vld [vmem:[#allocation6 + $0x234] sm:$0xf0]  ;;  %v11442_v32 = vor.u32 %v12790_v53, %v11439_v31 }
 0x63e   :  { %7344 = vmatmul.bf16.vlgmr.msra.gmra.mxu2 %v13631_v46  ;;  %7357 = vmatmul.bf16.vlgmr.msra.gmra.mxu3 %v13633_v28 }
 0x640   :  { %7363 = vmatpush.bf16.msrb.mxu0 %v11374_v2  ;;  %7376 = vmatpush.bf16.msrb.mxu1 %v11630_v51  ;;  %v11246_v2 = vor.u32 %v12746_v61, %v11245_v50  ;;  %v11502_v51 = vor.u32 %v12810_v55, %v11501_v14 }
 0x641   :  { %7389 = vmatpush.bf16.msrb.mxu2 %v11378_v35  ;;  %7402 = vmatpush.bf16.msrb.mxu3 %v11634_v5  ;;  %v11250_v35 = vor.u32 %v12742_v18, %v11247_v57  ;;  %v11506_v5 = vor.u32 %v12806_v59, %v11503_v63 }
 0x644   :  { %7364 = vmatpush.bf16.msrb.mxu0 %v11342_v13  ;;  %7377 = vmatpush.bf16.msrb.mxu1 %v11598_v48  ;;  %v11214_v13 = vor.u32 %v12738_v54, %v11213_v33  ;;  %v11470_v48 = vor.u32 %v12802_v41, %v11469_v12  ;;  %v11781_v41 = vld [vmem:[#allocation6 + $0x1c0] sm:$0xf] }
 0x645   :  { %7390 = vmatpush.bf16.msrb.mxu2 %v11346_v16  ;;  %7403 = vmatpush.bf16.msrb.mxu3 %v11602_v22  ;;  %v11218_v16 = vor.u32 %v12734_v6, %v11215_v10  ;;  %v11474_v22 = vor.u32 %v12798_v0, %v11471_v1  ;;  %v12881_v6 = vld [vmem:[#allocation6 + $0x1dc] sm:$0xf0] }
 0x646   :  { %v11909_v10 = vld [vmem:[#allocation6 + $0x3c0] sm:$0xf]  ;;  %v11782_v1 = vor.u32 %v12881_v6, %v11781_v41 }
 0x647   :  { %v11733_v41 = vld [vmem:[#allocation6 + $0x100] sm:$0xf] }
 0x648   :  { %7365 = vmatpush.bf16.msrb.mxu0 %v11310_v52  ;;  %7378 = vmatpush.bf16.msrb.mxu1 %v11566_v15  ;;  %v11182_v52 = vor.u32 %v12730_v44, %v11181_v3  ;;  %v11438_v15 = vor.u32 %v12794_v7, %v11437_v23  ;;  %v11783_v3 = vld [vmem:[#allocation6 + $0x1e0] sm:$0xf0]  ;;  %v12869_v6 = vld [vmem:[#allocation6 + $0x11c] sm:$0xf0] }
 0x649   :  { %7391 = vmatpush.bf16.msrb.mxu2 %v11314_v36  ;;  %7404 = vmatpush.bf16.msrb.mxu3 %v11570_v38  ;;  %v12911_v23 = vld [vmem:[#allocation6 + $0x3c4] sm:$0xf] }
 0x64a   :  { %v11911_v7 = vld [vmem:[#allocation6 + $0x3e0] sm:$0xf0] }
 0x64b   :  { %v11914_v31 = vor.u32 %v12911_v23, %v11911_v7  ;;  %v11735_v23 = vld [vmem:[#allocation6 + $0x120] sm:$0xf0] }
 0x64c   :  { %7366 = vmatpush.bf16.msrb.mxu0 %v11278_v29  ;;  %7379 = vmatpush.bf16.msrb.mxu1 %v11534_v47  ;;  %v12899_v7 = vld [vmem:[#allocation6 + $0x304] sm:$0xf] }
 0x64d   :  { %7392 = vmatpush.bf16.msrb.mxu2 %v11282_v11  ;;  %7405 = vmatpush.bf16.msrb.mxu3 %v11538_v58 }
 0x650   :  { %7367 = vmatpush.bf16.msrb.mxu0 %v11246_v2  ;;  %7380 = vmatpush.bf16.msrb.mxu1 %v11502_v51 }
 0x651   :  { %7393 = vmatpush.bf16.msrb.mxu2 %v11250_v35  ;;  %7406 = vmatpush.bf16.msrb.mxu3 %v11506_v5 }
 0x654   :  { %7368 = vmatpush.bf16.msrb.mxu0 %v11214_v13  ;;  %7381 = vmatpush.bf16.msrb.mxu1 %v11470_v48  ;;  %v12913_v13 = vld [vmem:[#allocation6 + $0x3dc] sm:$0xf0]  ;;  %v12879_v48 = vld [vmem:[#allocation6 + $0x1c4] sm:$0xf] }
 0x655   :  { %7394 = vmatpush.bf16.msrb.mxu2 %v11218_v16  ;;  %7407 = vmatpush.bf16.msrb.mxu3 %v11474_v22  ;;  %v11910_v16 = vor.u32 %v12913_v13, %v11909_v10  ;;  %v11786_v22 = vor.u32 %v12879_v48, %v11783_v3  ;;  %v11861_v13 = vld [vmem:[#allocation6 + $0x300] sm:$0xf]  ;;  %v12867_v3 = vld [vmem:[#allocation6 + $0x104] sm:$0xf] }
 0x656   :  { %v12901_v48 = vld [vmem:[#allocation6 + $0x31c] sm:$0xf0] }
 0x658   :  { %7369 = vmatpush.bf16.msrb.mxu0 %v11182_v52  ;;  %7382 = vmatpush.bf16.msrb.mxu1 %v11438_v15  ;;  %v11765_v52 = vld [vmem:[#allocation6 + $0x180] sm:$0xf] }
 0x659   :  { %7395 = vmatpush.bf16.msrb.mxu2 %v11186_v17  ;;  %7408 = vmatpush.bf16.msrb.mxu3 %v11442_v32  ;;  %v12877_v15 = vld [vmem:[#allocation6 + $0x19c] sm:$0xf0]  ;;  %v13656_v32 = vpop.permute.xlu1 %117 }
 0x65a   :  { %v11893_v17 = vld [vmem:[#allocation6 + $0x380] sm:$0xf] }
 0x65b   :  { %7370 = vmatmul.bf16.vlgmr.msrb.gmra.mxu0 %v13631_v46  ;;  %7383 = vmatmul.bf16.vlgmr.msrb.gmra.mxu1 %v13633_v28 }
 0x65c   :  { %7396 = vmatmul.bf16.vlgmr.msrb.gmra.mxu2 %v13631_v46  ;;  %7409 = vmatmul.bf16.vlgmr.msrb.gmra.mxu3 %v13633_v28 }
 0x65d   :  { %7854 = vmatpush.bf16.msra.mxu0 %v11782_v1  ;;  %7867 = vmatpush.bf16.msra.mxu1 %v11910_v16  ;;  %v11734_v1 = vor.u32 %v12869_v6, %v11733_v41  ;;  %v11685_v41 = vld [vmem:[#allocation6 + $0x40] sm:$0xf] }
 0x65e   :  { %7880 = vmatpush.bf16.msra.mxu2 %v11786_v22  ;;  %7893 = vmatpush.bf16.msra.mxu3 %v11914_v31  ;;  %v11862_v22 = vor.u32 %v12901_v48, %v11861_v13  ;;  %v12857_v6 = vld [vmem:[#allocation6 + $0x5c] sm:$0xf0]  ;;  %v12855_v13 = vld [vmem:[#allocation6 + $0x44] sm:$0xf] }
 0x697   :  { %v7215_v36 = vpop.f32.mrf.mxu0  ;;  %v7228_v38 = vpop.f32.mrf.mxu1 }
 0x698   :  { %v7229_v43 = vadd.f32 %v7228_v38, %v7215_v36  ;;  %v11766_v38 = vor.u32 %v12877_v15, %v11765_v52  ;;  %v11717_v15 = vld [vmem:[#allocation6 + $0xc0] sm:$0xf] }
 0x69a   :  { %v7414_v60 = vadd.f32 %v7229_v43, %v13314_v34  ;;  %v12909_v43 = vld [vmem:[#allocation6 + $0x39c] sm:$0xf0]  ;;  %7855 = vmatpush.bf16.msra.mxu0 %v11766_v38 }
 0x69c   :  { %v7418_v4 = vmul.f32 0.5, %v7414_v60  ;;  %v12875_v60 = vld [vmem:[#allocation6 + $0x184] sm:$0xf] }
 0x69e   :  { %v7241_v62 = vpop.f32.mrf.mxu2  ;;  %v7254_v49 = vpop.f32.mrf.mxu3  ;;  %13064 = vtanh.f32 %v7418_v4  ;;  %v11767_v4 = vld [vmem:[#allocation6 + $0x1a0] sm:$0xf0] }
 0x69f   :  { %v7255_v45 = vadd.f32 %v7254_v49, %v7241_v62  ;;  %v7217_v29 = vpop.f32.mrf.mxu0  ;;  %v7230_v47 = vpop.f32.mrf.mxu1  ;;  %v11894_v49 = vor.u32 %v12909_v43, %v11893_v17  ;;  %v11845_v17 = vld [vmem:[#allocation6 + $0x2c0] sm:$0xf] }
 0x6a0   :  { %v12907_v29 = vld [vmem:[#allocation6 + $0x384] sm:$0xf] }
 0x6a1   :  { %v7415_v50 = vadd.f32 %v7255_v45, %v13318_v37  ;;  %v11770_v45 = vor.u32 %v12875_v60, %v11767_v4  ;;  %v11895_v47 = vld [vmem:[#allocation6 + $0x3a0] sm:$0xf0]  ;;  %7868 = vmatpush.bf16.msra.mxu1 %v11894_v49 }
 0x6a2   :  { %v12863_v49 = vld [vmem:[#allocation6 + $0xc4] sm:$0xf] }
 0x6a3   :  { %v7422_v61 = vmul.f32 0.5, %v7415_v50  ;;  %v11898_v50 = vor.u32 %v12907_v29, %v11895_v47  ;;  %7881 = vmatpush.bf16.msra.mxu2 %v11770_v45  ;;  %v11719_v45 = vld [vmem:[#allocation6 + $0xe0] sm:$0xf0] }
 0x6a4   :  { %v13065_v14 = vpop.eup %13064 }
 0x6a5   :  { %13066 = vtanh.f32 %v7422_v61  ;;  %v7420_v59 = vmul.f32 0.5, %v13065_v14  ;;  %v157_v61 = vmul.f32 %v13264_v8, %v13656_v32  ;;  %7894 = vmatpush.bf16.msra.mxu3 %v11898_v50 }
 0x6a6   :  { %v7243_v11 = vpop.f32.mrf.mxu2  ;;  %v7256_v46 = vpop.f32.mrf.mxu3 }
 0x6a7   :  { %v7267_v58 = vpop.f32.mrf.mxu0  ;;  %v7280_v28 = vpop.f32.mrf.mxu1  ;;  %v7421_v33 = vadd.f32 0.5, %v7420_v59  ;;  %v11749_v11 = vld [vmem:[#allocation6 + $0x140] sm:$0xf]  ;;  %v11751_v59 = vld [vmem:[#allocation6 + $0x160] sm:$0xf0] }
 0x6a8   :  { %v7281_v55 = vadd.f32 %v7280_v28, %v7267_v58  ;;  %v12873_v46 = vld [vmem:[#allocation6 + $0x15c] sm:$0xf0] }
 0x6a9   :  { %v11877_v58 = vld [vmem:[#allocation6 + $0x340] sm:$0xf] }
 0x6aa   :  { %v7416_v18 = vadd.f32 %v7281_v55, %v13322_v56  ;;  %v11750_v55 = vor.u32 %v12873_v46, %v11749_v11  ;;  %v12895_v11 = vld [vmem:[#allocation6 + $0x2c4] sm:$0xf] }
 0x6ab   :  { %v13067_v57 = vpop.eup %13066  ;;  %v11847_v46 = vld [vmem:[#allocation6 + $0x2e0] sm:$0xf0] }
 0x6ac   :  { %v7424_v63 = vmul.f32 0.5, %v13067_v57  ;;  %13068 = vtanh.f32 %v7416_v18  ;;  %v12905_v18 = vld [vmem:[#allocation6 + $0x35c] sm:$0xf0]  ;;  %v12871_v57 = vld [vmem:[#allocation6 + $0x144] sm:$0xf]  ;;  %7856 = vmatpush.bf16.msra.mxu0 %v11750_v55 }
 0x6ae   :  { %v7293_v2 = vpop.f32.mrf.mxu2  ;;  %v7306_v51 = vpop.f32.mrf.mxu3  ;;  %v7425_v54 = vadd.f32 0.5, %v7424_v63 }
 0x6af   :  { %v7307_v35 = vadd.f32 %v7306_v51, %v7293_v2  ;;  %v7269_v5 = vpop.f32.mrf.mxu0  ;;  %v7282_v12 = vpop.f32.mrf.mxu1  ;;  %v11878_v2 = vor.u32 %v12905_v18, %v11877_v58  ;;  %v11754_v51 = vor.u32 %v12871_v57, %v11751_v59  ;;  %v11829_v57 = vld [vmem:[#allocation6 + $0x280] sm:$0xf] }
 0x6b0   :  { %v7431_v24 = vmul.f32 %v7425_v54, %v13604_v39  ;;  %v11879_v54 = vld [vmem:[#allocation6 + $0x360] sm:$0xf0]  ;;  %v199_v12 = vadd.f32 %v13272_v25, %v157_v61  ;;  %7857 = vmatpush.bf16.msra.mxu0 %v11734_v1  ;;  %v11738_v25 = vor.u32 %v12867_v3, %v11735_v23  ;;  %v11722_v61 = vor.u32 %v12863_v49, %v11719_v45  ;;  %v12893_v59 = vld [vmem:[#allocation6 + $0x29c] sm:$0xf0]  ;;  %v11917_v49 = vld [vmem:[#allocation6 + $0x3c8] sm:$0xf] }
 0x6b1   :  { %v7417_v0 = vadd.f32 %v7307_v35, %v13326_v40  ;;  %7869 = vmatpush.bf16.msra.mxu1 %v11878_v2  ;;  %7882 = vmatpush.bf16.msra.mxu2 %v11754_v51  ;;  %v12859_v2 = vld [vmem:[#allocation6 + $0x84] sm:$0xf]  ;;  %v12889_v1 = vld [vmem:[#allocation6 + $0x25c] sm:$0xf0] }
 0x6b2   :  { %v13069_v44 = vpop.eup %13068  ;;  %v11703_v51 = vld [vmem:[#allocation6 + $0xa0] sm:$0xf0] }
 0x6b3   :  { %v7432_v30 = vmul.f32 %v13069_v44, %v7421_v33  ;;  %v7427_v53 = vmul.f32 0.5, %v7417_v0  ;;  %v12903_v33 = vld [vmem:[#allocation6 + $0x344] sm:$0xf]  ;;  %v158_v0 = vmul.f32 %v13266_v9, %v13656_v32  ;;  %v12865_v9 = vld [vmem:[#allocation6 + $0xdc] sm:$0xf0] }
 0x6b4   :  { %v11882_v8 = vor.u32 %v12903_v33, %v11879_v54  ;;  %v12891_v33 = vld [vmem:[#allocation6 + $0x284] sm:$0xf]  ;;  %v11706_v54 = vor.u32 %v12859_v2, %v11703_v51  ;;  %v12910_v2 = vld [vmem:[#allocation6 + $0x3a4] sm:$0xf0]  ;;  %v12876_v51 = vld [vmem:[#allocation6 + $0x18c] sm:$0xf] }
 0x6b5   :  { %v13658_v36 = vadd.f32 %v7432_v30, %v7431_v24  ;;  %13070 = vtanh.f32 %v7427_v53  ;;  %v11863_v24 = vld [vmem:[#allocation6 + $0x320] sm:$0xf0]  ;;  %7870 = vmatpush.bf16.msra.mxu1 %v11862_v22  ;;  %v200_v38 = vadd.f32 %v13274_v26, %v158_v0  ;;  %7883 = vmatpush.bf16.msra.mxu2 %v11738_v25  ;;  %v11701_v26 = vld [vmem:[#allocation6 + $0x80] sm:$0xf]  ;;  %v11686_v0 = vor.u32 %v12857_v6, %v11685_v41  ;;  %v12874_v6 = vld [vmem:[#allocation6 + $0x164] sm:$0xf0] }
 0x6b6   :  { %v7295_v39 = vpop.f32.mrf.mxu2  ;;  %v7308_v62 = vpop.f32.mrf.mxu3  ;;  %7895 = vmatpush.bf16.msra.mxu3 %v11882_v8  ;;  %v11866_v52 = vor.u32 %v12899_v7, %v11863_v24  ;;  %v11687_v3 = vld [vmem:[#allocation6 + $0x60] sm:$0xf0]  ;;  %v11669_v25 = vld [vmem:[#allocation6] sm:$0xf] }
 0x6b7   :  { %13072 = vtanh.f32 %v13658_v36  ;;  %v11718_v39 = vor.u32 %v12865_v9, %v11717_v15  ;;  %v12897_v62 = vld [vmem:[#allocation6 + $0x2dc] sm:$0xf0]  ;;  %v11690_v22 = vor.u32 %v12855_v13, %v11687_v3  ;;  %v12851_v15 = vld [vmem:[#allocation6 + $0x4] sm:$0xf]  ;;  %v11759_v3 = vld [vmem:[#allocation6 + $0x168] sm:$0xf0] }
 0x6b8   :  { %v7319_v28 = vpop.f32.mrf.mxu0  ;;  %v7332_v14 = vpop.f32.mrf.mxu1  ;;  %v11846_v50 = vor.u32 %v12897_v62, %v11845_v17  ;;  %v12853_v24 = vld [vmem:[#allocation6 + $0x1c] sm:$0xf0]  ;;  %v11671_v9 = vld [vmem:[#allocation6 + $0x20] sm:$0xf0]  ;;  %v12882_v62 = vld [vmem:[#allocation6 + $0x1e4] sm:$0xf0] }
 0x6b9   :  { %v7333_v63 = vadd.f32 %v7332_v14, %v7319_v28  ;;  %7858 = vmatpush.bf16.msra.mxu0 %v11718_v39  ;;  %v11850_v28 = vor.u32 %v12895_v11, %v11847_v46  ;;  %v12861_v14 = vld [vmem:[#allocation6 + $0x9c] sm:$0xf0]  ;;  %7884 = vmatpush.bf16.msra.mxu2 %v11722_v61  ;;  %v11789_v39 = vld [vmem:[#allocation6 + $0x1c8] sm:$0xf]  ;;  %v12880_v61 = vld [vmem:[#allocation6 + $0x1cc] sm:$0xf] }
 0x6ba   :  { %7896 = vmatpush.bf16.msra.mxu3 %v11866_v52  ;;  %7871 = vmatpush.bf16.msra.mxu1 %v11846_v50  ;;  %v11702_v18 = vor.u32 %v12861_v14, %v11701_v26  ;;  %v12885_v52 = vld [vmem:[#allocation6 + $0x21c] sm:$0xf0]  ;;  %v12914_v50 = vld [vmem:[#allocation6 + $0x3e4] sm:$0xf0]  ;;  %v11791_v46 = vld [vmem:[#allocation6 + $0x1e8] sm:$0xf0] }
 0x6bb   :  { %v13071_v35 = vpop.eup %13070  ;;  %v7438_v16 = vadd.f32 %v7333_v63, %v199_v12  ;;  %v11830_v63 = vor.u32 %v12893_v59, %v11829_v57  ;;  %v11918_v11 = vor.u32 %v12914_v50, %v11917_v49  ;;  %v11794_v26 = vor.u32 %v12880_v61, %v11791_v46  ;;  %v11901_v57 = vld [vmem:[#allocation6 + $0x388] sm:$0xf] }
 0x6bc   :  { %v7429_v5 = vmul.f32 0.5, %v13071_v35  ;;  %v11831_v35 = vld [vmem:[#allocation6 + $0x2a0] sm:$0xf0]  ;;  %v159_v59 = vmul.f32 %v13268_v19, %v13656_v32 }
 0x6bd   :  { %v13073_v10 = vpop.eup %13072  ;;  %v7442_v47 = vmul.f32 0.5, %v7438_v16  ;;  %7859 = vmatpush.bf16.msra.mxu0 %v11702_v18  ;;  %v11834_v12 = vor.u32 %v12891_v33, %v11831_v35  ;;  %7885 = vmatpush.bf16.msra.mxu2 %v11706_v54  ;;  %v11815_v16 = vld [vmem:[#allocation6 + $0x260] sm:$0xf0]  ;;  %v12878_v18 = vld [vmem:[#allocation6 + $0x1a4] sm:$0xf0]  ;;  %v11902_v54 = vor.u32 %v12910_v2, %v11901_v57 }
 0x6be   :  { %v7430_v44 = vadd.f32 0.5, %v7429_v5  ;;  %7897 = vmatpush.bf16.msra.mxu3 %v11850_v28  ;;  %7872 = vmatpush.bf16.msra.mxu1 %v11830_v63  ;;  %v11919_v28 = vld [vmem:[#allocation6 + $0x3e8] sm:$0xf0] }
 0x6bf   :  { %13074 = vtanh.f32 %v7442_v47  ;;  %v11790_v47 = vor.u32 %v12882_v62, %v11789_v39  ;;  %v11775_v33 = vld [vmem:[#allocation6 + $0x1a8] sm:$0xf0] }
 0x6c0   :  { %v7435_v30 = vmul.f32 %v13073_v10, %v7430_v44  ;;  %v7321_v60 = vpop.f32.mrf.mxu0  ;;  %v7334_v4 = vpop.f32.mrf.mxu1  ;;  %v11813_v10 = vld [vmem:[#allocation6 + $0x240] sm:$0xf]  ;;  %v12887_v44 = vld [vmem:[#allocation6 + $0x244] sm:$0xf]  ;;  %v11778_v35 = vor.u32 %v12876_v51, %v11775_v33  ;;  %v11727_v57 = vld [vmem:[#allocation6 + $0xe8] sm:$0xf0] }
 0x6c1   :  { %v7345_v53 = vpop.f32.mrf.mxu2  ;;  %v7358_v31 = vpop.f32.mrf.mxu3  ;;  %v11814_v48 = vor.u32 %v12889_v1, %v11813_v10  ;;  %7860 = vmatpush.bf16.msra.mxu0 %v11686_v0  ;;  %v11818_v23 = vor.u32 %v12887_v44, %v11815_v16  ;;  %7886 = vmatpush.bf16.msra.mxu2 %v11690_v22  ;;  %v11799_v60 = vld [vmem:[#allocation6 + $0x220] sm:$0xf0]  ;;  %v11885_v10 = vld [vmem:[#allocation6 + $0x348] sm:$0xf]  ;;  %v12904_v44 = vld [vmem:[#allocation6 + $0x34c] sm:$0xf]  ;;  %v201_v16 = vadd.f32 %v13281_v42, %v159_v59 }
 0x6c2   :  { %v7359_v43 = vadd.f32 %v7358_v31, %v7345_v53  ;;  %v7436_v29 = vpack.c.bf16 %v7435_v30, %v7435_v30  ;;  %7898 = vmatpush.bf16.msra.mxu3 %v11834_v12  ;;  %v11797_v30 = vld [vmem:[#allocation6 + $0x200] sm:$0xf]  ;;  %v11670_v31 = vor.u32 %v12853_v24, %v11669_v25  ;;  %v11757_v12 = vld [vmem:[#allocation6 + $0x148] sm:$0xf]  ;;  %v160_v42 = vmul.f32 %v13270_v20, %v13656_v32  ;;  %v11855_v2 = vld [vmem:[#allocation6 + $0x2e8] sm:$0xf0] }
 0x6c3   :  { %7873 = vmatpush.bf16.msra.mxu1 %v11814_v48  ;;  %v11798_v17 = vor.u32 %v12885_v52, %v11797_v30  ;;  %v12906_v0 = vld [vmem:[#allocation6 + $0x364] sm:$0xf0]  ;;  %v11758_v19 = vor.u32 %v12874_v6, %v11757_v12  ;;  %v12872_v48 = vld [vmem:[#allocation6 + $0x14c] sm:$0xf] }
 0x6c4   :  { %v7439_v58 = vadd.f32 %v7359_v43, %v200_v38  ;;  %7437 = vst [vmem:[#allocation2 + $0x4] sm:$0xf] %v7436_v29  ;;  %v11674_v38 = vor.u32 %v12851_v15, %v11671_v9  ;;  %v12883_v43 = vld [vmem:[#allocation6 + $0x204] sm:$0xf]  ;;  %v11741_v25 = vld [vmem:[#allocation6 + $0x108] sm:$0xf]  ;;  %v11762_v30 = vor.u32 %v12872_v48, %v11759_v3 }
 0x6c5   :  { %v13075_v7 = vpop.eup %13074  ;;  %7861 = vmatpush.bf16.msra.mxu0 %v11670_v31  ;;  %v11802_v4 = vor.u32 %v12883_v43, %v11799_v60  ;;  %v12870_v24 = vld [vmem:[#allocation6 + $0x124] sm:$0xf0]  ;;  %v12868_v15 = vld [vmem:[#allocation6 + $0x10c] sm:$0xf] }
 0x6c6   :  { %v7446_v55 = vmul.f32 0.5, %v7439_v58  ;;  %7899 = vmatpush.bf16.msra.mxu3 %v11818_v23  ;;  %v13667_v45 = vmul.f32 0.5, %v13075_v7  ;;  %7887 = vmatpush.bf16.msra.mxu2 %v11674_v38  ;;  %v12912_v58 = vld [vmem:[#allocation6 + $0x3cc] sm:$0xf]  ;;  %v11886_v23 = vor.u32 %v12906_v0, %v11885_v10  ;;  %v11869_v31 = vld [vmem:[#allocation6 + $0x308] sm:$0xf]  ;;  %v11742_v60 = vor.u32 %v12870_v24, %v11741_v25 }
 0x6c7   :  { %7874 = vmatpush.bf16.msra.mxu1 %v11798_v17  ;;  %v11922_v14 = vor.u32 %v12912_v58, %v11919_v28  ;;  %v11887_v7 = vld [vmem:[#allocation6 + $0x368] sm:$0xf0]  ;;  %v12902_v52 = vld [vmem:[#allocation6 + $0x324] sm:$0xf0] }
 0x6c8   :  { %13076 = vtanh.f32 %v7446_v55  ;;  %v11773_v55 = vld [vmem:[#allocation6 + $0x188] sm:$0xf]  ;;  %v11743_v17 = vld [vmem:[#allocation6 + $0x128] sm:$0xf0]  ;;  %v7445_v49 = vadd.f32 0.5, %v13667_v45 }
 0x6c9   :  { %v7347_v8 = vpop.f32.mrf.mxu2  ;;  %v7360_v5 = vpop.f32.mrf.mxu3  ;;  %7906 = vmatpush.bf16.msrb.mxu0 %v11790_v47  ;;  %v11774_v63 = vor.u32 %v12878_v18, %v11773_v55  ;;  %v12900_v38 = vld [vmem:[#allocation6 + $0x30c] sm:$0xf]  ;;  %v11746_v39 = vor.u32 %v12868_v15, %v11743_v17  ;;  %v11725_v32 = vld [vmem:[#allocation6 + $0xc8] sm:$0xf] }
 0x6ca   :  { %7900 = vmatpush.bf16.msra.mxu3 %v11802_v4  ;;  %7932 = vmatpush.bf16.msrb.mxu2 %v11794_v26  ;;  %v12908_v8 = vld [vmem:[#allocation6 + $0x38c] sm:$0xf]  ;;  %v11870_v4 = vor.u32 %v12902_v52, %v11869_v31  ;;  %v12866_v28 = vld [vmem:[#allocation6 + $0xe4] sm:$0xf0] }
 0x6cb   :  { %7919 = vmatpush.bf16.msrb.mxu1 %v11918_v11  ;;  %v11903_v5 = vld [vmem:[#allocation6 + $0x3a8] sm:$0xf0]  ;;  %v202_v11 = vadd.f32 %v13276_v27, %v160_v42  ;;  %v11853_v26 = vld [vmem:[#allocation6 + $0x2c8] sm:$0xf] }
 0x6cc   :  { %v11906_v41 = vor.u32 %v12908_v8, %v11903_v5  ;;  %v11871_v43 = vld [vmem:[#allocation6 + $0x328] sm:$0xf0]  ;;  %v12898_v55 = vld [vmem:[#allocation6 + $0x2e4] sm:$0xf0] }
 0x6cd   :  { %7907 = vmatpush.bf16.msrb.mxu0 %v11774_v63  ;;  %v11874_v62 = vor.u32 %v12900_v38, %v11871_v43  ;;  %v12864_v18 = vld [vmem:[#allocation6 + $0xcc] sm:$0xf]  ;;  %v11854_v45 = vor.u32 %v12898_v55, %v11853_v26  ;;  %v11709_v27 = vld [vmem:[#allocation6 + $0x88] sm:$0xf] }
 0x6ce   :  { %v13077_v53 = vpop.eup %13076  ;;  %7945 = vmatpush.bf16.msrb.mxu3 %v11922_v14  ;;  %7933 = vmatpush.bf16.msrb.mxu2 %v11778_v35  ;;  %v11726_v14 = vor.u32 %v12866_v28, %v11725_v32  ;;  %v12896_v63 = vld [vmem:[#allocation6 + $0x2cc] sm:$0xf]  ;;  %v11837_v35 = vld [vmem:[#allocation6 + $0x288] sm:$0xf] }
 0x6cf   :  { %v13669_v29 = vmul.f32 0.5, %v13077_v53  ;;  %7920 = vmatpush.bf16.msrb.mxu1 %v11902_v54  ;;  %v11890_v53 = vor.u32 %v12904_v44, %v11887_v7  ;;  %v11858_v33 = vor.u32 %v12896_v63, %v11855_v2  ;;  %v12862_v54 = vld [vmem:[#allocation6 + $0xa4] sm:$0xf0]  ;;  %v12860_v10 = vld [vmem:[#allocation6 + $0x8c] sm:$0xf]  ;;  %v12920_v63 = vld [vmem:[%s13720_s5 + $0x28] sm:$0xff] }
 0x6d0   :  { %v12894_v8 = vld [vmem:[#allocation6 + $0x2a4] sm:$0xf0]  ;;  %v11710_v6 = vor.u32 %v12862_v54, %v11709_v27  ;;  %v11711_v0 = vld [vmem:[#allocation6 + $0xa8] sm:$0xf0] }
 0x6d1   :  { %7908 = vmatpush.bf16.msrb.mxu0 %v11758_v19  ;;  %v7449_v47 = vadd.f32 0.5, %v13669_v29  ;;  %v11730_v29 = vor.u32 %v12864_v18, %v11727_v57  ;;  %v11839_v19 = vld [vmem:[#allocation6 + $0x2a8] sm:$0xf0]  ;;  %v11693_v48 = vld [vmem:[#allocation6 + $0x48] sm:$0xf]  ;;  %v11714_v44 = vor.u32 %v12860_v10, %v11711_v0 }
 0x6d2   :  { %7946 = vmatpush.bf16.msrb.mxu3 %v11906_v41  ;;  %7934 = vmatpush.bf16.msrb.mxu2 %v11762_v30  ;;  %v12856_v24 = vld [vmem:[#allocation6 + $0x4c] sm:$0xf]  ;;  %v12854_v17 = vld [vmem:[#allocation6 + $0x24] sm:$0xf0] }
 0x6d3   :  { %7921 = vmatpush.bf16.msrb.mxu1 %v11886_v23  ;;  %v7455_v5 = vmul.f32 %v7449_v47, %v13628_v21  ;;  %v11821_v23 = vld [vmem:[#allocation6 + $0x248] sm:$0xf]  ;;  %v11695_v30 = vld [vmem:[#allocation6 + $0x68] sm:$0xf0] }
 0x6d4   :  { %v12890_v21 = vld [vmem:[#allocation6 + $0x264] sm:$0xf0]  ;;  %v11823_v52 = vld [vmem:[#allocation6 + $0x268] sm:$0xf0]  ;;  %v11698_v38 = vor.u32 %v12856_v24, %v11695_v30 }
 0x6d5   :  { %7909 = vmatpush.bf16.msrb.mxu0 %v11742_v60  ;;  %v11822_v15 = vor.u32 %v12890_v21, %v11821_v23  ;;  %v11805_v42 = vld [vmem:[#allocation6 + $0x208] sm:$0xf]  ;;  %v12918_v54 = vld [vmem:[%s13720_s5 + $0x18] sm:$0xff] }
 0x6d6   :  { %7947 = vmatpush.bf16.msrb.mxu3 %v11890_v53  ;;  %7935 = vmatpush.bf16.msrb.mxu2 %v11746_v39  ;;  %v12888_v53 = vld [vmem:[#allocation6 + $0x24c] sm:$0xf]  ;;  %v12886_v60 = vld [vmem:[#allocation6 + $0x224] sm:$0xf0] }
 0x6d7   :  { %7922 = vmatpush.bf16.msrb.mxu1 %v11870_v4  ;;  %v11826_v43 = vor.u32 %v12888_v53, %v11823_v52  ;;  %v12852_v4 = vld [vmem:[#allocation6 + $0xc] sm:$0xf]  ;;  %v12917_v10 = vld [vmem:[%s13720_s5 + $0x10] sm:$0xff] }
 0x6d8   :  { %v7371_v1 = vpop.f32.mrf.mxu0  ;;  %v7384_v13 = vpop.f32.mrf.mxu1  ;;  %v11679_v39 = vld [vmem:[#allocation6 + $0x28] sm:$0xf0] }
 0x6d9   :  { %v7385_v22 = vadd.f32 %v7384_v13, %v7371_v1  ;;  %7910 = vmatpush.bf16.msrb.mxu0 %v11726_v14  ;;  %v11838_v1 = vor.u32 %v12894_v8, %v11837_v35  ;;  %v12892_v13 = vld [vmem:[#allocation6 + $0x28c] sm:$0xf] }
 0x6da   :  { %7948 = vmatpush.bf16.msrb.mxu3 %v11874_v62  ;;  %7936 = vmatpush.bf16.msrb.mxu2 %v11730_v29  ;;  %v12884_v62 = vld [vmem:[#allocation6 + $0x20c] sm:$0xf]  ;;  %v12921_v29 = vld [vmem:[%s13720_s5 + $0x30] sm:$0xff] }
 0x6db   :  { %v7440_v9 = vadd.f32 %v7385_v22, %v201_v16  ;;  %7923 = vmatpush.bf16.msrb.mxu1 %v11854_v45  ;;  %v11842_v16 = vor.u32 %v12892_v13, %v11839_v19  ;;  %v12858_v22 = vld [vmem:[#allocation6 + $0x64] sm:$0xf0]  ;;  %v12922_v45 = vld [vmem:[%s13720_s5 + $0x38] sm:$0xff]  ;;  %v12916_v19 = vld [vmem:[%s13720_s5 + $0x8] sm:$0xff] }
 0x6dc   :  { %v11694_v31 = vor.u32 %v12858_v22, %v11693_v48 }
 0x6dd   :  { %13078 = vtanh.f32 %v7440_v9  ;;  %7911 = vmatpush.bf16.msrb.mxu0 %v11710_v6  ;;  %v11677_v9 = vld [vmem:[#allocation6 + $0x8] sm:$0xf] }
 0x6de   :  { %7949 = vmatpush.bf16.msrb.mxu3 %v11858_v33  ;;  %7937 = vmatpush.bf16.msrb.mxu2 %v11714_v44 }
 0x6df   :  { %v7397_v50 = vpop.f32.mrf.mxu2  ;;  %v7410_v61 = vpop.f32.mrf.mxu3  ;;  %7924 = vmatpush.bf16.msrb.mxu1 %v11838_v1 }
 0x6e0   :  { %v7411_v46 = vadd.f32 %v7410_v61, %v7397_v50  ;;  %v7373_v58 = vpop.f32.mrf.mxu0  ;;  %v7386_v20 = vpop.f32.mrf.mxu1  ;;  %v11678_v50 = vor.u32 %v12854_v17, %v11677_v9 }
 0x6e1   :  { %7912 = vmatpush.bf16.msrb.mxu0 %v11694_v31  ;;  %v11682_v58 = vor.u32 %v12852_v4, %v11679_v39 }
 0x6e2   :  { %v7441_v59 = vadd.f32 %v7411_v46, %v202_v11  ;;  %7950 = vmatpush.bf16.msrb.mxu3 %v11842_v16  ;;  %v11806_v11 = vor.u32 %v12886_v60, %v11805_v42  ;;  %7938 = vmatpush.bf16.msrb.mxu2 %v11698_v38 }
 0x6e3   :  { %v13079_v51 = vpop.eup %13078  ;;  %7925 = vmatpush.bf16.msrb.mxu1 %v11822_v15 }
 0x6e4   :  { %v7456_v12 = vmul.f32 %v13079_v51, %v7445_v49  ;;  %v7451_v41 = vmul.f32 0.5, %v7441_v59  ;;  %v11807_v49 = vld [vmem:[#allocation6 + $0x228] sm:$0xf0]  ;;  %v12919_v51 = vld [vmem:[%s13720_s5 + $0x20] sm:$0xff] }
 0x6e5   :  { %v11810_v20 = vor.u32 %v12884_v62, %v11807_v49  ;;  %7913 = vmatpush.bf16.msrb.mxu0 %v11678_v50 }
 0x6e6   :  { %v7457_v3 = vadd.f32 %v7456_v12, %v7455_v5  ;;  %13080 = vtanh.f32 %v7451_v41  ;;  %7951 = vmatpush.bf16.msrb.mxu3 %v11826_v43  ;;  %7939 = vmatpush.bf16.msrb.mxu2 %v11682_v58 }
 0x6e7   :  { %v7399_v7 = vpop.f32.mrf.mxu2  ;;  %v7412_v25 = vpop.f32.mrf.mxu3  ;;  %7926 = vmatpush.bf16.msrb.mxu1 %v11806_v11 }
 0x6e8   :  { %13082 = vtanh.f32 %v7457_v3 }
 0x6ea   :  { %7952 = vmatpush.bf16.msrb.mxu3 %v11810_v20 }
 0x6ec   :  { %v13081_v47 = vpop.eup %13080 }
 0x6ed   :  { %v7453_v61 = vmul.f32 0.5, %v13081_v47 }
 0x6ee   :  { %v13083_v46 = vpop.eup %13082 }
 0x6ef   :  { %v7454_v32 = vadd.f32 0.5, %v7453_v61 }
 0x6f1   :  { %v7459_v28 = vmul.f32 %v13083_v46, %v7454_v32 }
 0x6f3   :  { %v7460_v26 = vpack.c.bf16 %v7459_v28, %v7459_v28 }
 0x6f5   :  { %7461 = vst [vmem:[#allocation2] sm:$0xf] %v7460_v26 }
 0x6fc   :  { %v7462_v14 = vld [vmem:[#allocation2] sm:$0xff] }
 0x6fd   :  { %v7528_v55 = vunpack.c.l.b16 %v7462_v14  ;;  %v7529_v18 = vunpack.c.h.b16 %v7462_v14 }
 0x6ff   :  { %v7530_v57 = vpack.c.b16 %v7528_v55, %v7528_v55  ;;  %v7531_v59 = vpack.c.b16 %v7529_v18, %v7529_v18 }
 0x701   :  { %7862 = vmatmul.bf16.vlgmr.msra.gmra.mxu0 %v7530_v57  ;;  %7875 = vmatmul.bf16.vlgmr.msra.gmra.mxu1 %v7531_v59 }
 0x702   :  { %7888 = vmatmul.bf16.vlgmr.msra.gmra.mxu2 %v7530_v57  ;;  %7901 = vmatmul.bf16.vlgmr.msra.gmra.mxu3 %v7531_v59 }
 0x703   :  { %8051 = vmatpush.bf16.msra.mxu0 %v12922_v45 }
 0x707   :  { %8052 = vmatpush.bf16.msra.mxu0 %v12921_v29 }
 0x70b   :  { %8053 = vmatpush.bf16.msra.mxu0 %v12920_v63 }
 0x70f   :  { %8054 = vmatpush.bf16.msra.mxu0 %v12919_v51 }
 0x711   :  { %7914 = vmatmul.bf16.vlgmr.msrb.gmra.mxu0 %v7530_v57  ;;  %7927 = vmatmul.bf16.vlgmr.msrb.gmra.mxu1 %v7531_v59 }
 0x712   :  { %7940 = vmatmul.bf16.vlgmr.msrb.gmra.mxu2 %v7530_v57  ;;  %7953 = vmatmul.bf16.vlgmr.msrb.gmra.mxu3 %v7531_v59 }
 0x713   :  { %8055 = vmatpush.bf16.msra.mxu0 %v12918_v54 }
 0x717   :  { %8056 = vmatpush.bf16.msra.mxu0 %v12917_v10 }
 0x71b   :  { %8057 = vmatpush.bf16.msra.mxu0 %v12916_v19 }
 0x77e   :  { %v7863_v2 = vpop.f32.mrf.mxu0  ;;  %v7876_v27 = vpop.f32.mrf.mxu1 }
 0x77f   :  { %v7877_v33 = vadd.f32 %v7876_v27, %v7863_v2 }
 0x781   :  { %v7958_v35 = vadd.f32 %v7877_v33, %v13314_v34  ;;  %v12915_v34 = vld [vmem:[%s13720_s5] sm:$0xff] }
 0x782   :  { %8058 = vmatpush.bf16.msra.mxu0 %v12915_v34 }
 0x783   :  { %v7962_v0 = vmul.f32 0.5, %v7958_v35 }
 0x785   :  { %v7889_v8 = vpop.f32.mrf.mxu2  ;;  %v7902_v5 = vpop.f32.mrf.mxu3  ;;  %13084 = vtanh.f32 %v7962_v0 }
 0x786   :  { %v7903_v12 = vadd.f32 %v7902_v5, %v7889_v8  ;;  %v7865_v41 = vpop.f32.mrf.mxu0  ;;  %v7878_v6 = vpop.f32.mrf.mxu1 }
 0x788   :  { %v7959_v1 = vadd.f32 %v7903_v12, %v13318_v37 }
 0x78a   :  { %v7966_v13 = vmul.f32 0.5, %v7959_v1 }
 0x78b   :  { %v13085_v37 = vpop.eup %13084 }
 0x78c   :  { %13086 = vtanh.f32 %v7966_v13  ;;  %v7964_v25 = vmul.f32 0.5, %v13085_v37 }
 0x78d   :  { %v7891_v48 = vpop.f32.mrf.mxu2  ;;  %v7904_v3 = vpop.f32.mrf.mxu3 }
 0x78e   :  { %v7915_v44 = vpop.f32.mrf.mxu0  ;;  %v7928_v16 = vpop.f32.mrf.mxu1  ;;  %v7965_v9 = vadd.f32 0.5, %v7964_v25 }
 0x78f   :  { %v7929_v22 = vadd.f32 %v7928_v16, %v7915_v44 }
 0x791   :  { %v7960_v23 = vadd.f32 %v7929_v22, %v13322_v56 }
 0x792   :  { %v13087_v21 = vpop.eup %13086 }
 0x793   :  { %v7968_v7 = vmul.f32 0.5, %v13087_v21  ;;  %13088 = vtanh.f32 %v7960_v23 }
 0x795   :  { %v7941_v24 = vpop.f32.mrf.mxu2  ;;  %v7954_v30 = vpop.f32.mrf.mxu3  ;;  %v7969_v53 = vadd.f32 0.5, %v7968_v7 }
 0x796   :  { %v7955_v31 = vadd.f32 %v7954_v30, %v7941_v24  ;;  %v7917_v52 = vpop.f32.mrf.mxu0  ;;  %v7930_v15 = vpop.f32.mrf.mxu1 }
 0x797   :  { %v7975_v43 = vmul.f32 %v7969_v53, %v13658_v36 }
 0x798   :  { %v7961_v17 = vadd.f32 %v7955_v31, %v13326_v40  ;;  %v12933_v40 = vld [vmem:[%s13721_s6] ss:$0 sm:$0xff] }
 0x799   :  { %v13089_v38 = vpop.eup %13088 }
 0x79a   :  { %v7976_v42 = vmul.f32 %v13089_v38, %v7965_v9  ;;  %v7971_v60 = vmul.f32 0.5, %v7961_v17 }
 0x79c   :  { %v7977_v4 = vadd.f32 %v7976_v42, %v7975_v43  ;;  %13090 = vtanh.f32 %v7971_v60 }
 0x79d   :  { %v7943_v56 = vpop.f32.mrf.mxu2  ;;  %v7956_v39 = vpop.f32.mrf.mxu3 }
 0x79e   :  { %13092 = vtanh.f32 %v7977_v4 }
 0x7a2   :  { %v13091_v62 = vpop.eup %13090 }
 0x7a3   :  { %v7973_v49 = vmul.f32 0.5, %v13091_v62 }
 0x7a4   :  { %v13093_v47 = vpop.eup %13092 }
 0x7a5   :  { %v7974_v50 = vadd.f32 0.5, %v7973_v49 }
 0x7a7   :  { %v7979_v61 = vmul.f32 %v13093_v47, %v7974_v50 }
 0x7a9   :  { %v7980_v11 = vpack.c.bf16 %v7979_v61, %v7979_v61 }
 0x7ab   :  { %7981 = vst [vmem:[#allocation2 + $0x4] sm:$0xf] %v7980_v11 }
 0x7b2   :  { %v7982_v46 = vld [vmem:[#allocation2 + $0x4] sm:$0xf] }
 0x7b3   :  { %8059 = vmatmul.bf16.vlgmr.msra.gmra.mxu0 %v7982_v46 }
 0x830   :  { %v8060_v36 = vpop.f32.mrf.mxu0 }
 0x831   :  { %v8061_v58 = vadd.f32 %v12933_v40, %v8060_v36 }
 0x833   :  { %8064 = vst [vmem:[#allocation9] sm:$0xff] %v8061_v58 }
 0x834   :  { %8075 = dma.vmem_to_hbm [thread:$0]  %s8071_s1, 128, %s8073_s25, [#allocation5]  }
 0x838   :  { %v8062_v20 = vpop.f32.mrf.mxu0 }
 0x839   :  { %13194 = dma.done.wait [#allocation5], 128  }
 0x83a   :  { %13195 = vsyncadd [#allocation5], 4294967168 }
 0x83b   :  { %8080 = vsyncpa [#allocation4], 1 }
 0x83c   :  { %8081 = vsyncpa [#allocation7], 1 }
 0x83d   :  { %8082 = vsyncpa [#allocation5], 1 }

</bundles_post_ra>
